<compile_context>
chip_gen: v6e
topology: v6e:2x2x1
jax: 0.10.0
libtpu: 0.0.40
codegen_flags: <defaults>
</compile_context>

<pallas_src>
import math

import numpy as np
import jax
import jax.numpy as jnp
from jax.experimental import pallas as pl
from jax.experimental.pallas import tpu as pltpu


_DB_SCALE = 10.0 / math.log(10.0)          # 10*log10(x) == _DB_SCALE * ln(x)


def _round_up(x, m):
    return ((x + m - 1) // m) * m


def _cdiv(a, b):
    return -(-a // b)


def _pick_tile(m, target=3328):
    """Lane-tile tn (multiple of 128) and padded M for a (C_out, M) conv GEMM."""
    m128 = _round_up(m, 128)
    if m128 <= target:
        return m128, m128                  # single full-extent block
    steps = _cdiv(m128, target)
    tn = _round_up(_cdiv(m, steps), 128)
    return tn, tn * steps


def _pad_last(a, m_pad):
    pad = m_pad - a.shape[-1]
    if pad == 0:
        return a
    return jnp.pad(a, ((0, 0), (0, pad)))


# ---------------------------------------------------------------------------
# Pallas kernels
# ---------------------------------------------------------------------------
def _mel_db_kernel(fr_ref, win_ref, dft_ref, fb_ref, s_ref, t_ref, o_ref):
    # frames -> hann window -> [re|im] DFT -> power -> mel -> dB -> spec_bn.
    f = fr_ref[...] * win_ref[...]
    z = jnp.dot(f, dft_ref[...], preferred_element_type=jnp.float32)
    fdim = fb_ref.shape[0]                 # lane-aligned (multiple of 128)
    re = z[:, :fdim]
    im = z[:, fdim:]
    power = re * re + im * im
    mel = jnp.dot(power, fb_ref[...], preferred_element_type=jnp.float32)
    db = _DB_SCALE * jnp.log(jnp.maximum(mel, 1e-10))
    o_ref[...] = db * s_ref[...] + t_ref[...]


def _pair_conv_kernel(w_ref, t_ref, p_ref, o_ref):
    # Fused conv1(+bn1+relu) and conv3(+bn3): ONE stacked-weight MXU pass over
    # the shared im2col patch tile; ReLU only on the conv1 rows (iota mask).
    half = o_ref.shape[0] // 2
    z = jnp.dot(w_ref[...], p_ref[...], preferred_element_type=jnp.float32)
    z = z + t_ref[...]
    rows = jax.lax.broadcasted_iota(jnp.int32, z.shape, 0)
    o_ref[...] = jnp.where(rows < half, jnp.maximum(z, 0.0), z)


def _conv_res_kernel(w_ref, t_ref, p_ref, r_ref, o_ref):
    # conv2 (BN-scale folded into weight) + shift + residual add + relu.
    z = jnp.dot(w_ref[...], p_ref[...], preferred_element_type=jnp.float32)
    z = z + t_ref[...] + r_ref[...]
    o_ref[...] = jnp.maximum(z, 0.0).astype(o_ref.dtype)


def _make_tail_kernel(layer_dims, batch, tp):
    """Res blocks 4..7 + head fused into a single kernel.

    layer_dims: tuple of (c_in, c_out, n_in, m_out) per block.
    Per-layer refs: s1 (9,N,M), w1, t1, w3, t3, s2 (9,M,M), w2, t2.
    Head refs: wd1, td1, wd2, bd2.  Output: (n_class, batch).
    """
    def kernel(*refs):
        x = refs[0][...]
        pos = 1
        for (_c_in, _c_out, _n_in, _m) in layer_dims:
            s1, w1, t1, w3, t3, s2, w2, t2 = refs[pos:pos + 8]
            pos += 8
            taps = [jnp.dot(x, s1[t], preferred_element_type=jnp.float32)
                    for t in range(9)]
            p1 = jnp.concatenate(taps, axis=0)                       # (9*c_in, m)
            h = jnp.dot(w1[...], p1, preferred_element_type=jnp.float32) + t1[...]
            h = jnp.maximum(h, 0.0)
            r = jnp.dot(w3[...], p1, preferred_element_type=jnp.float32) + t3[...]
            taps2 = [jnp.dot(h, s2[t], preferred_element_type=jnp.float32)
                     for t in range(9)]
            p2 = jnp.concatenate(taps2, axis=0)                      # (9*c_out, m)
            z = jnp.dot(w2[...], p2, preferred_element_type=jnp.float32) + t2[...]
            x = jnp.maximum(z + r, 0.0)
        wd1, td1, wd2, bd2, o_ref = (refs[pos], refs[pos + 1], refs[pos + 2],
                                     refs[pos + 3], refs[pos + 4])
        c4 = x.shape[0]
        # MaxPool1d over time, one batch column group at a time:
        # mask + lane reduce + one-hot placement (no value reshapes / slices).
        col = jax.lax.broadcasted_iota(jnp.int32, x.shape, 1)
        hm = jnp.zeros((c4, batch), jnp.float32)
        for b in range(batch):
            sel = (col >= b * tp) & (col < (b + 1) * tp)
            cmax = jnp.max(jnp.where(sel, x, -jnp.inf), axis=1, keepdims=True)
            onehot = (jax.lax.broadcasted_iota(jnp.int32, (1, batch), 1) == b
                      ).astype(jnp.float32)
            hm = hm + cmax * onehot
        z1 = jnp.dot(wd1[...], hm, preferred_element_type=jnp.float32) + td1[...]
        z1 = jnp.maximum(z1, 0.0)
        # TODO(synk): Dropout(0.5) is stochastic only in training; identity here.
        z2 = jnp.dot(wd2[...], z1, preferred_element_type=jnp.float32) + bd2[...]
        o_ref[...] = 0.5 * (jnp.tanh(0.5 * z2) + 1.0)                # sigmoid
    return kernel


# ---------------------------------------------------------------------------
# Conv / BN preparation and im2col (channels-first flat layout)
# ---------------------------------------------------------------------------
def _prep_conv_bn_folded(conv_p, bn_p, eps=1e-5):
    """BN scale folded into the conv weight (f32 fold -> bf16), K padded to 16."""
    w, b = conv_p                          # w: (C_out, C_in, 3, 3) like PyTorch
    g, beta, mean, var = bn_p
    s = g / jnp.sqrt(var + eps)
    shift = (b - mean) * s + beta
    c_out = w.shape[0]
    wf = (w * s[:, None, None, None]).reshape(c_out, -1)   # K order (c_in, kh, kw)
    kp = _round_up(wf.shape[1], 16)
    wf = jnp.pad(wf, ((0, 0), (0, kp - wf.shape[1]))).astype(jnp.bfloat16)
    return wf, shift.reshape(c_out, 1).astype(jnp.float32)


def _prep_conv_bn_tapmajor(conv_p, bn_p, eps=1e-5):
    """Same BN fold, f32 weights with columns ordered (kh, kw, c_in) (tail kernel)."""
    w, b = conv_p
    g, beta, mean, var = bn_p
    s = g / jnp.sqrt(var + eps)
    shift = (b - mean) * s + beta
    c_out, c_in = w.shape[0], w.shape[1]
    wf = (w * s[:, None, None, None]).transpose(0, 2, 3, 1).reshape(c_out, 9 * c_in)
    return wf.astype(jnp.float32), shift.reshape(c_out, 1).astype(jnp.float32)


def _im2col_cf(x, stride, ksize=3, pad=1):
    """Channels-first im2col: (C, B, H, W) -> (Kp, B*Ho*Wo) bf16 patches."""
    C, B, H, W = x.shape
    Ho = (H + 2 * pad - ksize) // stride + 1
    Wo = (W + 2 * pad - ksize) // stride + 1
    xp = jnp.pad(x, ((0, 0), (0, 0), (pad, pad), (pad, pad)))
    taps = []
    for kh in range(ksize):
        for kw in range(ksize):
            taps.append(xp[:, :, kh:kh + (Ho - 1) * stride + 1:stride,
                               kw:kw + (Wo - 1) * stride + 1:stride])
    p = jnp.stack(taps, axis=1).reshape(C * ksize * ksize, B * Ho * Wo)
    kp = _round_up(C * ksize * ksize, 16)            # bf16 sublane packing
    if kp != p.shape[0]:
        p = jnp.pad(p, ((0, kp - p.shape[0]), (0, 0)))
    return p.astype(jnp.bfloat16), (B, Ho, Wo)


# ---------------------------------------------------------------------------
# GEMM wrappers for the large Res blocks (layers 1-3)
# ---------------------------------------------------------------------------
def _pair_conv_gemm(w13, t13, patches, tn):
    kp, m_pad = patches.shape
    c2 = w13.shape[0]
    flops = 2 * c2 * kp * m_pad
    bytes_acc = patches.size * 2 + c2 * kp * 2 + c2 * 4 + c2 * m_pad * 4
    return pl.pallas_call(
        _pair_conv_kernel,
        out_shape=jax.ShapeDtypeStruct((c2, m_pad), jnp.float32),
        grid=(m_pad // tn,),
        in_specs=[pl.BlockSpec((c2, kp), lambda j: (0, 0)),
                  pl.BlockSpec((c2, 1), lambda j: (0, 0)),
                  pl.BlockSpec((kp, tn), lambda j: (0, j))],
        out_specs=pl.BlockSpec((c2, tn), lambda j: (0, j)),
        compiler_params=pltpu.CompilerParams(
            dimension_semantics=("parallel",)),
        cost_estimate=pl.CostEstimate(flops=int(flops), transcendentals=0,
                                      bytes_accessed=int(bytes_acc)),
    )(w13, t13, patches)


def _conv_res_gemm(w2, t2, patches, residual, tn):
    kp, m_pad = patches.shape
    c_out = w2.shape[0]
    flops = 2 * c_out * kp * m_pad
    bytes_acc = (patches.size * 2 + c_out * kp * 2 + c_out * 4
                 + c_out * m_pad * 4 + c_out * m_pad * 2)
    return pl.pallas_call(
        _conv_res_kernel,
        out_shape=jax.ShapeDtypeStruct((c_out, m_pad), jnp.bfloat16),
        grid=(m_pad // tn,),
        in_specs=[pl.BlockSpec((c_out, kp), lambda j: (0, 0)),
                  pl.BlockSpec((c_out, 1), lambda j: (0, 0)),
                  pl.BlockSpec((kp, tn), lambda j: (0, j)),
                  pl.BlockSpec((c_out, tn), lambda j: (0, j))],
        out_specs=pl.BlockSpec((c_out, tn), lambda j: (0, j)),
        compiler_params=pltpu.CompilerParams(
            dimension_semantics=("parallel",)),
        cost_estimate=pl.CostEstimate(flops=int(flops), transcendentals=0,
                                      bytes_accessed=int(bytes_acc)),
    )(w2, t2, patches, residual)


def res_2d_gemm(x_cf, p, stride=2):
    """Res_2d: relu(bn2(conv2(relu(bn1(conv1(x))))) + bn3(conv3(x))).

    x_cf: (C_in, B, H, W) channels-first activation; returns (C_out, B, Ho, Wo).
    """
    patches1, (B, Ho, Wo) = _im2col_cf(x_cf, stride)
    M = B * Ho * Wo
    tn, m_pad = _pick_tile(M)
    patches1 = _pad_last(patches1, m_pad)
    w1, t1 = _prep_conv_bn_folded(p["conv1"], p["bn1"])
    w3, t3 = _prep_conv_bn_folded(p["conv3"], p["bn3"])
    c_out = w1.shape[0]
    w13 = jnp.concatenate([w1, w3], axis=0)
    t13 = jnp.concatenate([t1, t3], axis=0)
    out13 = _pair_conv_gemm(w13, t13, patches1, tn)        # (2*C_out, m_pad) f32
    h_cf = out13[:c_out, :M].reshape(c_out, B, Ho, Wo)     # conv1 branch (post-relu)
    residual = out13[c_out:, :]                            # conv3 branch (padded cols)
    # TODO(synk): conv2's im2col could also move in-kernel (shifted reads with
    # row-boundary masking) to fuse the whole block; kept as a second GEMM here.
    patches2, _ = _im2col_cf(h_cf, 1)                      # stride-1, same spatial
    patches2 = _pad_last(patches2, m_pad)
    w2, t2 = _prep_conv_bn_folded(p["conv2"], p["bn2"])
    out = _conv_res_gemm(w2, t2, patches2, residual, tn)   # (C_out, m_pad) bf16
    return out[:, :M].reshape(c_out, B, Ho, Wo)


# ---------------------------------------------------------------------------
# MelSpectrogram + AmplitudeToDB + spec_bn (one fused Pallas kernel)
# ---------------------------------------------------------------------------
def mel_spectrogram_db(x, params, cfg):
    """(B, 1, L) waveform -> (1, B, n_mels, T) dB mel-spec with spec_bn applied."""
    n_fft, n_mels = cfg["n_fft"], cfg["n_mels"]
    hop = n_fft // 2
    pad = n_fft // 2
    B, C, L = x.shape
    assert C == 1, "spec_bn is BatchNorm2d(1); single input channel expected"

    # TODO(synk): frame extraction (reflect pad + 50%-overlap gather) stays in
    # XLA; for long waveforms move it in-kernel with pl.ds(i*hop, n_fft) reads.
    xr = x.reshape(B * C, L).astype(jnp.float32)
    xp = jnp.pad(xr, ((0, 0), (pad, pad)), mode="reflect")      # center=True
    T = (xp.shape[1] - n_fft) // hop + 1
    idx = jnp.arange(T)[:, None] * hop + jnp.arange(n_fft)[None, :]
    frames = xp[:, idx].reshape(B * C * T, n_fft)

    M = frames.shape[0]
    tm = 512 if M > 512 else _round_up(M, 8)
    m_pad = _round_up(M, tm)
    if m_pad != M:
        frames = jnp.pad(frames, ((0, m_pad - M), (0, 0)))

    dft = params["dft_cat"]            # (n_fft, 2*F_pad), lane-dense padded
    fb = params["mel_fb_pad"]          # (F_pad, nm_pad), mel columns padded to 128
    win = params["window_row"]         # (1, n_fft)
    f_pad, nm_pad = fb.shape

    g, beta, mean, var = params["spec_bn"]
    s = g / jnp.sqrt(var + 1e-5)
    t = beta - mean * s
    colmask = (jnp.arange(nm_pad) < n_mels).astype(jnp.float32)
    s_row = (colmask * s[0]).reshape(1, nm_pad).astype(jnp.float32)
    t_row = (colmask * t[0]).reshape(1, nm_pad).astype(jnp.float32)

    flops = 2 * m_pad * (n_fft * 2 * f_pad + f_pad * nm_pad)
    bytes_acc = (frames.size + dft.size + fb.size + m_pad * nm_pad) * 4

    spec = pl.pallas_call(
        _mel_db_kernel,
        out_shape=jax.ShapeDtypeStruct((m_pad, nm_pad), jnp.float32),
        grid=(m_pad // tm,),
        in_specs=[pl.BlockSpec((tm, n_fft), lambda i: (i, 0)),
                  pl.BlockSpec((1, n_fft), lambda i: (0, 0)),
                  pl.BlockSpec((n_fft, 2 * f_pad), lambda i: (0, 0)),
                  pl.BlockSpec((f_pad, nm_pad), lambda i: (0, 0)),
                  pl.BlockSpec((1, nm_pad), lambda i: (0, 0)),
                  pl.BlockSpec((1, nm_pad), lambda i: (0, 0))],
        out_specs=pl.BlockSpec((tm, nm_pad), lambda i: (i, 0)),
        compiler_params=pltpu.CompilerParams(
            dimension_semantics=("parallel",)),
        cost_estimate=pl.CostEstimate(flops=int(flops),
                                      transcendentals=int(m_pad * nm_pad),
                                      bytes_accessed=int(bytes_acc)),
    )(frames, win, dft, fb, s_row, t_row)

    spec = spec[:M, :n_mels].reshape(B * C, T, n_mels).transpose(0, 2, 1)
    return spec[None]                                             # (1, B, n_mels, T)


# ---------------------------------------------------------------------------
# Tail (layers 4-7 + head) fused into one Pallas kernel
# ---------------------------------------------------------------------------
def _gather_mats(B, H, W, stride, pad=1, k=3):
    """0/1 tap-selection matrices S[t] so that (X @ S[t]) == im2col tap t."""
    Ho = (H + 2 * pad - k) // stride + 1
    Wo = (W + 2 * pad - k) // stride + 1
    N, M = B * H * W, B * Ho * Wo
    S = np.zeros((k * k, N, M), np.float32)
    for kh in range(k):
        for kw in range(k):
            t = kh * k + kw
            for b in range(B):
                for ho in range(Ho):
                    h = ho * stride + kh - pad
                    if h < 0 or h >= H:
                        continue
                    for wo in range(Wo):
                        w = wo * stride + kw - pad
                        if 0 <= w < W:
                            S[t, (b * H + h) * W + w, (b * Ho + ho) * Wo + wo] = 1.0
    return S, Ho, Wo


def _full_block(arr):
    nd = arr.ndim
    return pl.BlockSpec(arr.shape, lambda i, _nd=nd: (0,) * _nd)


def tail_forward(x_flat, spatial, params, cfg):
    """Res blocks 4-7 + classification head in a single pallas_call."""
    B, H, W = spatial
    n_class = cfg["n_class"]
    ops = [x_flat]
    layer_dims = []
    c_in, h_cur, w_cur = x_flat.shape[0], H, W
    for i in range(4, 8):
        p = params[f"layer{i}"]
        s1, ho, wo = _gather_mats(B, h_cur, w_cur, stride=2)
        s2, _, _ = _gather_mats(B, ho, wo, stride=1)
        w1, t1 = _prep_conv_bn_tapmajor(p["conv1"], p["bn1"])
        w3, t3 = _prep_conv_bn_tapmajor(p["conv3"], p["bn3"])
        w2, t2 = _prep_conv_bn_tapmajor(p["conv2"], p["bn2"])
        c_out = w1.shape[0]
        layer_dims.append((c_in, c_out, B * h_cur * w_cur, B * ho * wo))
        ops += [jnp.asarray(s1), w1, t1, w3, t3, jnp.asarray(s2), w2, t2]
        c_in, h_cur, w_cur = c_out, ho, wo
    assert h_cur == 1, "n_mels does not collapse to 1 after 7 stride-2 convs"

    w1d, b1d = params["dense1"]
    g, beta, mean, var = params["bn"]
    s = g / jnp.sqrt(var + 1e-5)
    wd1 = (w1d * s[:, None]).astype(jnp.float32)                  # BN1d fold
    td1 = ((b1d - mean) * s + beta).reshape(-1, 1).astype(jnp.float32)
    w2d, b2d = params["dense2"]
    ops += [wd1, td1, w2d.astype(jnp.float32),
            b2d.reshape(-1, 1).astype(jnp.float32)]

    kernel = _make_tail_kernel(tuple(layer_dims), B, w_cur)
    out = pl.pallas_call(
        kernel,
        out_shape=jax.ShapeDtypeStruct((n_class, B), jnp.float32),
        grid=(1,),
        in_specs=[_full_block(a) for a in ops],
        out_specs=pl.BlockSpec((n_class, B), lambda i: (0, 0)),
    )(*ops)
    return out.T                                                  # (B, n_class)


# ---------------------------------------------------------------------------
# MelSpectrogram constants (torchaudio defaults: hann, center/reflect, power=2,
# hop = n_fft // 2, htk mel scale, norm=None)
# ---------------------------------------------------------------------------
def hann_window(n):
    return 0.5 - 0.5 * jnp.cos(2.0 * jnp.pi * jnp.arange(n, dtype=jnp.float32) / n)


def dft_matrices(n_fft):
    n_freqs = n_fft // 2 + 1
    n = jnp.arange(n_fft, dtype=jnp.float32)[:, None]
    k = jnp.arange(n_freqs, dtype=jnp.float32)[None, :]
    ang = 2.0 * jnp.pi * n * k / n_fft
    return jnp.cos(ang), -jnp.sin(ang)


def mel_filterbank(n_freqs, f_min, f_max, n_mels, sample_rate):
    all_freqs = jnp.linspace(0.0, sample_rate / 2.0, n_freqs)
    m_min = 2595.0 * jnp.log10(1.0 + f_min / 700.0)
    m_max = 2595.0 * jnp.log10(1.0 + f_max / 700.0)
    m_pts = jnp.linspace(m_min, m_max, n_mels + 2)
    f_pts = 700.0 * (10.0 ** (m_pts / 2595.0) - 1.0)
    f_diff = f_pts[1:] - f_pts[:-1]
    slopes = f_pts[None, :] - all_freqs[:, None]
    down = (-1.0 * slopes[:, :-2]) / f_diff[:-1]
    up = slopes[:, 2:] / f_diff[1:]
    return jnp.maximum(0.0, jnp.minimum(down, up)).astype(jnp.float32)


# ---------------------------------------------------------------------------
# Parameters (deterministic synthetic init)
# ---------------------------------------------------------------------------
def init_params(key, cfg):
    nc = cfg["n_channels"]
    nc2, nc4 = nc * 2, nc * 4
    n_class, n_fft, n_mels = cfg["n_class"], cfg["n_fft"], cfg["n_mels"]
    keys = iter(jax.random.split(key, 256))

    def conv_params(cin, cout):
        w = 0.1 * jax.random.normal(next(keys), (cout, cin, 3, 3), jnp.float32)
        b = 0.1 * jax.random.normal(next(keys), (cout,), jnp.float32)
        return (w, b)

    def bn_params(c):
        gamma = 1.0 + 0.1 * jax.random.normal(next(keys), (c,), jnp.float32)
        beta = 0.1 * jax.random.normal(next(keys), (c,), jnp.float32)
        mean = 0.1 * jax.random.normal(next(keys), (c,), jnp.float32)
        var = jax.random.uniform(next(keys), (c,), jnp.float32, 0.5, 1.5)
        return (gamma, beta, mean, var)

    def res_params(cin, cout):
        return {"conv1": conv_params(cin, cout), "bn1": bn_params(cout),
                "conv2": conv_params(cout, cout), "bn2": bn_params(cout),
                "conv3": conv_params(cin, cout), "bn3": bn_params(cout)}

    widths = [(1, nc), (nc, nc), (nc, nc2), (nc2, nc2),
              (nc2, nc2), (nc2, nc2), (nc2, nc4)]
    params = {"spec_bn": bn_params(1)}
    for i, (ci, co) in enumerate(widths, start=1):
        params[f"layer{i}"] = res_params(ci, co)

    params["dense1"] = (0.1 * jax.random.normal(next(keys), (nc4, nc4), jnp.float32),
                        0.1 * jax.random.normal(next(keys), (nc4,), jnp.float32))
    params["bn"] = bn_params(nc4)
    params["dense2"] = (0.1 * jax.random.normal(next(keys), (n_class, nc4), jnp.float32),
                        0.1 * jax.random.normal(next(keys), (n_class,), jnp.float32))

    # Mel constants, pre-padded lane-dense (freq -> mult of 128, mel cols -> 128).
    n_freqs = n_fft // 2 + 1
    f_pad = _round_up(n_freqs, 128)
    nm_pad = _round_up(n_mels, 128)
    cosm, sinm = dft_matrices(n_fft)
    cos_p = jnp.pad(cosm, ((0, 0), (0, f_pad - n_freqs)))
    sin_p = jnp.pad(sinm, ((0, 0), (0, f_pad - n_freqs)))
    params["dft_cat"] = jnp.concatenate([cos_p, sin_p], axis=1)      # (n_fft, 2*f_pad)
    fb = mel_filterbank(n_freqs, cfg["f_min"], cfg["f_max"], n_mels,
                        cfg["sample_rate"])
    params["mel_fb_pad"] = jnp.pad(fb, ((0, f_pad - n_freqs),
                                        (0, nm_pad - n_mels)))
    params["window_row"] = hann_window(n_fft).reshape(1, n_fft)
    return params


# ---------------------------------------------------------------------------
# Full forward pass
# ---------------------------------------------------------------------------
def short_chunk_cnn_res_forward(x, params, cfg):
    h = mel_spectrogram_db(x, params, cfg)              # (1, B, n_mels, T)
    for i in (1, 2, 3):                                 # big blocks: im2col GEMMs
        h = res_2d_gemm(h, params[f"layer{i}"], stride=2)
    C3, B, H3, W3 = h.shape
    x_flat = h.reshape(C3, B * H3 * W3).astype(jnp.float32)
    return tail_forward(x_flat, (B, H3, W3), params, cfg)   # layers 4-7 + head


if __name__ == "__main__":
    cfg = dict(n_channels=4, sample_rate=16000, n_fft=128,
               f_min=0.0, f_max=8000.0, n_mels=64, n_class=10)
    key = jax.random.PRNGKey(0)
    pkey, xkey = jax.random.split(key)
    params = init_params(pkey, cfg)
    # Small waveform input: (batch=2, channel=1, samples=12800) -> T=201 frames,
    # mel image (1, 2, 64, 201); 7 stride-2 Res_2d blocks -> (16, 2, 1, 2).
    x = jax.random.normal(xkey, (2, 1, 12800), jnp.float32)

    fwd = jax.jit(lambda wav, prm: short_chunk_cnn_res_forward(wav, prm, cfg))
    out = jax.block_until_ready(fwd(x, params))
    assert out.shape == (2, cfg["n_class"]), out.shape
    assert bool(jnp.all(jnp.isfinite(out)))
    assert bool(jnp.all((out >= 0.0) & (out <= 1.0)))
    print("KERNEL_OK")
</pallas_src>

<mosaic_0001>
module attributes {stable_mosaic.version = 11 : i64} {
  func.func @_mel_db_kernel(%arg0: i32, %arg1: memref<408x128xf32, #tpu.memory_space<vmem>>, %arg2: memref<1x128xf32, #tpu.memory_space<vmem>>, %arg3: memref<128x256xf32, #tpu.memory_space<vmem>>, %arg4: memref<128x128xf32, #tpu.memory_space<vmem>>, %arg5: memref<1x128xf32, #tpu.memory_space<vmem>>, %arg6: memref<1x128xf32, #tpu.memory_space<vmem>>, %arg7: memref<408x128xf32, #tpu.memory_space<vmem>>) attributes {dimension_semantics = [#tpu.dimension_semantics<parallel>], iteration_bounds = array<i64: 1>, scalar_prefetch = 0 : i64, scratch_operands = 0 : i64, tpu.core_type = #tpu.core_type<tc>, window_params = [{transform_indices = @transform_0, window_bounds = array<i64: 408, 128>}, {pipeline_mode = #tpu.pipeline_mode<synchronous>, transform_indices = @transform_1, window_bounds = array<i64: 1, 128>}, {pipeline_mode = #tpu.pipeline_mode<synchronous>, transform_indices = @transform_2, window_bounds = array<i64: 128, 256>}, {pipeline_mode = #tpu.pipeline_mode<synchronous>, transform_indices = @transform_3, window_bounds = array<i64: 128, 128>}, {pipeline_mode = #tpu.pipeline_mode<synchronous>, transform_indices = @transform_4, window_bounds = array<i64: 1, 128>}, {pipeline_mode = #tpu.pipeline_mode<synchronous>, transform_indices = @transform_5, window_bounds = array<i64: 1, 128>}, {transform_indices = @transform_6, window_bounds = array<i64: 408, 128>}]} {
    %c0 = arith.constant 0 : index
    %c0_0 = arith.constant 0 : index
    %0 = vector.load %arg1[%c0, %c0_0] : memref<408x128xf32, #tpu.memory_space<vmem>>, vector<408x128xf32>
    %c0_1 = arith.constant 0 : index
    %c0_2 = arith.constant 0 : index
    %1 = vector.load %arg2[%c0_1, %c0_2] : memref<1x128xf32, #tpu.memory_space<vmem>>, vector<1x128xf32>
    %2 = vector.broadcast %1 : vector<1x128xf32> to vector<408x128xf32>
    %3 = arith.mulf %0, %2 : vector<408x128xf32>
    %c0_3 = arith.constant 0 : index
    %c0_4 = arith.constant 0 : index
    %4 = vector.load %arg3[%c0_3, %c0_4] : memref<128x256xf32, #tpu.memory_space<vmem>>, vector<128x256xf32>
    %cst = arith.constant dense<0.000000e+00> : vector<408x256xf32>
    %5 = tpu.matmul %3, %4, %cst {dimension_numbers = #tpu.dot_dimension_numbers<[1], [0], [0], [1], [0, 0, 1, 1], [], []>} : vector<408x128xf32>, vector<128x256xf32>, vector<408x256xf32> -> vector<408x256xf32>
    %6 = vector.extract_strided_slice %5 {offsets = [0, 0], sizes = [408, 128], strides = [1, 1]} : vector<408x256xf32> to vector<408x128xf32>
    %7 = vector.extract_strided_slice %5 {offsets = [0, 128], sizes = [408, 128], strides = [1, 1]} : vector<408x256xf32> to vector<408x128xf32>
    %8 = arith.mulf %6, %6 : vector<408x128xf32>
    %9 = arith.mulf %7, %7 : vector<408x128xf32>
    %10 = arith.addf %8, %9 : vector<408x128xf32>
    %c0_5 = arith.constant 0 : index
    %c0_6 = arith.constant 0 : index
    %11 = vector.load %arg4[%c0_5, %c0_6] : memref<128x128xf32, #tpu.memory_space<vmem>>, vector<128x128xf32>
    %cst_7 = arith.constant dense<0.000000e+00> : vector<408x128xf32>
    %12 = tpu.matmul %10, %11, %cst_7 {dimension_numbers = #tpu.dot_dimension_numbers<[1], [0], [0], [1], [0, 0, 1, 1], [], []>} : vector<408x128xf32>, vector<128x128xf32>, vector<408x128xf32> -> vector<408x128xf32>
    %cst_8 = arith.constant 1.000000e-10 : f32
    %13 = vector.broadcast %cst_8 : f32 to vector<408x128xf32>
    %14 = arith.maximumf %12, %13 : vector<408x128xf32>
    %15 = math.log %14 : vector<408x128xf32>
    %cst_9 = arith.constant 4.34294462 : f32
    %16 = vector.broadcast %cst_9 : f32 to vector<408x128xf32>
    %17 = arith.mulf %16, %15 : vector<408x128xf32>
    %c0_10 = arith.constant 0 : index
    %c0_11 = arith.constant 0 : index
    %18 = vector.load %arg5[%c0_10, %c0_11] : memref<1x128xf32, #tpu.memory_space<vmem>>, vector<1x128xf32>
    %19 = vector.broadcast %18 : vector<1x128xf32> to vector<408x128xf32>
    %20 = arith.mulf %17, %19 : vector<408x128xf32>
    %c0_12 = arith.constant 0 : index
    %c0_13 = arith.constant 0 : index
    %21 = vector.load %arg6[%c0_12, %c0_13] : memref<1x128xf32, #tpu.memory_space<vmem>>, vector<1x128xf32>
    %22 = vector.broadcast %21 : vector<1x128xf32> to vector<408x128xf32>
    %23 = arith.addf %20, %22 : vector<408x128xf32>
    %c0_14 = arith.constant 0 : index
    %c0_15 = arith.constant 0 : index
    %24 = vector.load %arg7[%c0_14, %c0_15] : memref<408x128xf32, #tpu.memory_space<vmem>>, vector<408x128xf32>
    tpu.vector_store %arg7[%c0_14, %c0_15], %23 {strides = array<i32>} : memref<408x128xf32, #tpu.memory_space<vmem>>, vector<408x128xf32>,
    return
  }
  func.func @transform_0(%arg0: i32) -> (i32, i32) {
    %c0_i32 = arith.constant 0 : i32
    %c0_i32_0 = arith.constant 0 : i32
    return %arg0, %c0_i32 : i32, i32
  }
  func.func @transform_1(%arg0: i32) -> (i32, i32) {
    %c0_i32 = arith.constant 0 : i32
    %c0_i32_0 = arith.constant 0 : i32
    %c0_i32_1 = arith.constant 0 : i32
    return %c0_i32, %c0_i32_0 : i32, i32
  }
  func.func @transform_2(%arg0: i32) -> (i32, i32) {
    %c0_i32 = arith.constant 0 : i32
    %c0_i32_0 = arith.constant 0 : i32
    %c0_i32_1 = arith.constant 0 : i32
    return %c0_i32, %c0_i32_0 : i32, i32
  }
  func.func @transform_3(%arg0: i32) -> (i32, i32) {
    %c0_i32 = arith.constant 0 : i32
    %c0_i32_0 = arith.constant 0 : i32
    %c0_i32_1 = arith.constant 0 : i32
    return %c0_i32, %c0_i32_0 : i32, i32
  }
  func.func @transform_4(%arg0: i32) -> (i32, i32) {
    %c0_i32 = arith.constant 0 : i32
    %c0_i32_0 = arith.constant 0 : i32
    %c0_i32_1 = arith.constant 0 : i32
    return %c0_i32, %c0_i32_0 : i32, i32
  }
  func.func @transform_5(%arg0: i32) -> (i32, i32) {
    %c0_i32 = arith.constant 0 : i32
    %c0_i32_0 = arith.constant 0 : i32
    %c0_i32_1 = arith.constant 0 : i32
    return %c0_i32, %c0_i32_0 : i32, i32
  }
  func.func @transform_6(%arg0: i32) -> (i32, i32) {
    %c0_i32 = arith.constant 0 : i32
    %c0_i32_0 = arith.constant 0 : i32
    return %arg0, %c0_i32 : i32, i32
  }
}

module attributes {stable_mosaic.version = 11 : i64} {
  func.func @_pair_conv_kernel(%arg0: i32, %arg1: memref<8x16xbf16, #tpu.memory_space<vmem>>, %arg2: memref<8x1xf32, #tpu.memory_space<vmem>>, %arg3: memref<16x3328xbf16, #tpu.memory_space<vmem>>, %arg4: memref<8x3328xf32, #tpu.memory_space<vmem>>) attributes {dimension_semantics = [#tpu.dimension_semantics<parallel>], iteration_bounds = array<i64: 2>, scalar_prefetch = 0 : i64, scratch_operands = 0 : i64, tpu.core_type = #tpu.core_type<tc>, window_params = [{pipeline_mode = #tpu.pipeline_mode<synchronous>, transform_indices = @transform_0, window_bounds = array<i64: 8, 16>}, {pipeline_mode = #tpu.pipeline_mode<synchronous>, transform_indices = @transform_1, window_bounds = array<i64: 8, 1>}, {transform_indices = @transform_2, window_bounds = array<i64: 16, 3328>}, {transform_indices = @transform_3, window_bounds = array<i64: 8, 3328>}]} {
    %c0 = arith.constant 0 : index
    %c0_0 = arith.constant 0 : index
    %0 = vector.load %arg1[%c0, %c0_0] : memref<8x16xbf16, #tpu.memory_space<vmem>>, vector<8x16xbf16>
    %c0_1 = arith.constant 0 : index
    %c0_2 = arith.constant 0 : index
    %1 = vector.load %arg3[%c0_1, %c0_2] : memref<16x3328xbf16, #tpu.memory_space<vmem>>, vector<16x3328xbf16>
    %cst = arith.constant dense<0.000000e+00> : vector<8x3328xf32>
    %2 = tpu.matmul %0, %1, %cst {dimension_numbers = #tpu.dot_dimension_numbers<[1], [0], [0], [1], [0, 0, 1, 1], [], []>} : vector<8x16xbf16>, vector<16x3328xbf16>, vector<8x3328xf32> -> vector<8x3328xf32>
    %c0_3 = arith.constant 0 : index
    %c0_4 = arith.constant 0 : index
    %3 = vector.load %arg2[%c0_3, %c0_4] : memref<8x1xf32, #tpu.memory_space<vmem>>, vector<8x1xf32>
    %4 = vector.broadcast %3 : vector<8x1xf32> to vector<8x3328xf32>
    %5 = arith.addf %2, %4 : vector<8x3328xf32>
    %6 = tpu.iota {dimensions = array<i32: 0>} : vector<8x3328xi32>
    %c4_i32 = arith.constant 4 : i32
    %7 = vector.broadcast %c4_i32 : i32 to vector<8x3328xi32>
    %8 = arith.cmpi slt, %6, %7 : vector<8x3328xi32>
    %cst_5 = arith.constant 0.000000e+00 : f32
    %9 = vector.broadcast %cst_5 : f32 to vector<8x3328xf32>
    %10 = arith.maximumf %5, %9 : vector<8x3328xf32>
    %11 = arith.select %8, %10, %5 : vector<8x3328xi1>, vector<8x3328xf32>
    %c0_6 = arith.constant 0 : index
    %c0_7 = arith.constant 0 : index
    %12 = vector.load %arg4[%c0_6, %c0_7] : memref<8x3328xf32, #tpu.memory_space<vmem>>, vector<8x3328xf32>
    tpu.vector_store %arg4[%c0_6, %c0_7], %11 {strides = array<i32>} : memref<8x3328xf32, #tpu.memory_space<vmem>>, vector<8x3328xf32>,
    return
  }
  func.func @transform_0(%arg0: i32) -> (i32, i32) {
    %c0_i32 = arith.constant 0 : i32
    %c0_i32_0 = arith.constant 0 : i32
    %c0_i32_1 = arith.constant 0 : i32
    return %c0_i32, %c0_i32_0 : i32, i32
  }
  func.func @transform_1(%arg0: i32) -> (i32, i32) {
    %c0_i32 = arith.constant 0 : i32
    %c0_i32_0 = arith.constant 0 : i32
    %c0_i32_1 = arith.constant 0 : i32
    return %c0_i32, %c0_i32_0 : i32, i32
  }
  func.func @transform_2(%arg0: i32) -> (i32, i32) {
    %c0_i32 = arith.constant 0 : i32
    %c0_i32_0 = arith.constant 0 : i32
    return %c0_i32, %arg0 : i32, i32
  }
  func.func @transform_3(%arg0: i32) -> (i32, i32) {
    %c0_i32 = arith.constant 0 : i32
    %c0_i32_0 = arith.constant 0 : i32
    return %c0_i32, %arg0 : i32, i32
  }
}

module attributes {stable_mosaic.version = 11 : i64} {
  func.func @_conv_res_kernel(%arg0: i32, %arg1: memref<4x48xbf16, #tpu.memory_space<vmem>>, %arg2: memref<4x1xf32, #tpu.memory_space<vmem>>, %arg3: memref<48x3328xbf16, #tpu.memory_space<vmem>>, %arg4: memref<4x3328xf32, #tpu.memory_space<vmem>>, %arg5: memref<4x3328xbf16, #tpu.memory_space<vmem>>) attributes {dimension_semantics = [#tpu.dimension_semantics<parallel>], iteration_bounds = array<i64: 2>, scalar_prefetch = 0 : i64, scratch_operands = 0 : i64, tpu.core_type = #tpu.core_type<tc>, window_params = [{pipeline_mode = #tpu.pipeline_mode<synchronous>, transform_indices = @transform_0, window_bounds = array<i64: 4, 48>}, {pipeline_mode = #tpu.pipeline_mode<synchronous>, transform_indices = @transform_1, window_bounds = array<i64: 4, 1>}, {transform_indices = @transform_2, window_bounds = array<i64: 48, 3328>}, {transform_indices = @transform_3, window_bounds = array<i64: 4, 3328>}, {transform_indices = @transform_4, window_bounds = array<i64: 4, 3328>}]} {
    %c0 = arith.constant 0 : index
    %c0_0 = arith.constant 0 : index
    %0 = vector.load %arg1[%c0, %c0_0] : memref<4x48xbf16, #tpu.memory_space<vmem>>, vector<4x48xbf16>
    %c0_1 = arith.constant 0 : index
    %c0_2 = arith.constant 0 : index
    %1 = vector.load %arg3[%c0_1, %c0_2] : memref<48x3328xbf16, #tpu.memory_space<vmem>>, vector<48x3328xbf16>
    %cst = arith.constant dense<0.000000e+00> : vector<4x3328xf32>
    %2 = tpu.matmul %0, %1, %cst {dimension_numbers = #tpu.dot_dimension_numbers<[1], [0], [0], [1], [0, 0, 1, 1], [], []>} : vector<4x48xbf16>, vector<48x3328xbf16>, vector<4x3328xf32> -> vector<4x3328xf32>
    %c0_3 = arith.constant 0 : index
    %c0_4 = arith.constant 0 : index
    %3 = vector.load %arg2[%c0_3, %c0_4] : memref<4x1xf32, #tpu.memory_space<vmem>>, vector<4x1xf32>
    %4 = vector.broadcast %3 : vector<4x1xf32> to vector<4x3328xf32>
    %5 = arith.addf %2, %4 : vector<4x3328xf32>
    %c0_5 = arith.constant 0 : index
    %c0_6 = arith.constant 0 : index
    %6 = vector.load %arg4[%c0_5, %c0_6] : memref<4x3328xf32, #tpu.memory_space<vmem>>, vector<4x3328xf32>
    %7 = arith.addf %5, %6 : vector<4x3328xf32>
    %cst_7 = arith.constant 0.000000e+00 : f32
    %8 = vector.broadcast %cst_7 : f32 to vector<4x3328xf32>
    %9 = arith.maximumf %7, %8 : vector<4x3328xf32>
    %10 = arith.truncf %9 : vector<4x3328xf32> to vector<4x3328xbf16>
    %c0_8 = arith.constant 0 : index
    %c0_9 = arith.constant 0 : index
    %11 = vector.load %arg5[%c0_8, %c0_9] : memref<4x3328xbf16, #tpu.memory_space<vmem>>, vector<4x3328xbf16>
    tpu.vector_store %arg5[%c0_8, %c0_9], %10 {strides = array<i32>} : memref<4x3328xbf16, #tpu.memory_space<vmem>>, vector<4x3328xbf16>,
    return
  }
  func.func @transform_0(%arg0: i32) -> (i32, i32) {
    %c0_i32 = arith.constant 0 : i32
    %c0_i32_0 = arith.constant 0 : i32
    %c0_i32_1 = arith.constant 0 : i32
    return %c0_i32, %c0_i32_0 : i32, i32
  }
  func.func @transform_1(%arg0: i32) -> (i32, i32) {
    %c0_i32 = arith.constant 0 : i32
    %c0_i32_0 = arith.constant 0 : i32
    %c0_i32_1 = arith.constant 0 : i32
    return %c0_i32, %c0_i32_0 : i32, i32
  }
  func.func @transform_2(%arg0: i32) -> (i32, i32) {
    %c0_i32 = arith.constant 0 : i32
    %c0_i32_0 = arith.constant 0 : i32
    return %c0_i32, %arg0 : i32, i32
  }
  func.func @transform_3(%arg0: i32) -> (i32, i32) {
    %c0_i32 = arith.constant 0 : i32
    %c0_i32_0 = arith.constant 0 : i32
    return %c0_i32, %arg0 : i32, i32
  }
  func.func @transform_4(%arg0: i32) -> (i32, i32) {
    %c0_i32 = arith.constant 0 : i32
    %c0_i32_0 = arith.constant 0 : i32
    return %c0_i32, %arg0 : i32, i32
  }
}

module attributes {stable_mosaic.version = 11 : i64} {
  func.func @_pair_conv_kernel(%arg0: i32, %arg1: memref<8x48xbf16, #tpu.memory_space<vmem>>, %arg2: memref<8x1xf32, #tpu.memory_space<vmem>>, %arg3: memref<48x1664xbf16, #tpu.memory_space<vmem>>, %arg4: memref<8x1664xf32, #tpu.memory_space<vmem>>) attributes {dimension_semantics = [#tpu.dimension_semantics<parallel>], iteration_bounds = array<i64: 1>, scalar_prefetch = 0 : i64, scratch_operands = 0 : i64, tpu.core_type = #tpu.core_type<tc>, window_params = [{pipeline_mode = #tpu.pipeline_mode<synchronous>, transform_indices = @transform_0, window_bounds = array<i64: 8, 48>}, {pipeline_mode = #tpu.pipeline_mode<synchronous>, transform_indices = @transform_1, window_bounds = array<i64: 8, 1>}, {transform_indices = @transform_2, window_bounds = array<i64: 48, 1664>}, {transform_indices = @transform_3, window_bounds = array<i64: 8, 1664>}]} {
    %c0 = arith.constant 0 : index
    %c0_0 = arith.constant 0 : index
    %0 = vector.load %arg1[%c0, %c0_0] : memref<8x48xbf16, #tpu.memory_space<vmem>>, vector<8x48xbf16>
    %c0_1 = arith.constant 0 : index
    %c0_2 = arith.constant 0 : index
    %1 = vector.load %arg3[%c0_1, %c0_2] : memref<48x1664xbf16, #tpu.memory_space<vmem>>, vector<48x1664xbf16>
    %cst = arith.constant dense<0.000000e+00> : vector<8x1664xf32>
    %2 = tpu.matmul %0, %1, %cst {dimension_numbers = #tpu.dot_dimension_numbers<[1], [0], [0], [1], [0, 0, 1, 1], [], []>} : vector<8x48xbf16>, vector<48x1664xbf16>, vector<8x1664xf32> -> vector<8x1664xf32>
    %c0_3 = arith.constant 0 : index
    %c0_4 = arith.constant 0 : index
    %3 = vector.load %arg2[%c0_3, %c0_4] : memref<8x1xf32, #tpu.memory_space<vmem>>, vector<8x1xf32>
    %4 = vector.broadcast %3 : vector<8x1xf32> to vector<8x1664xf32>
    %5 = arith.addf %2, %4 : vector<8x1664xf32>
    %6 = tpu.iota {dimensions = array<i32: 0>} : vector<8x1664xi32>
    %c4_i32 = arith.constant 4 : i32
    %7 = vector.broadcast %c4_i32 : i32 to vector<8x1664xi32>
    %8 = arith.cmpi slt, %6, %7 : vector<8x1664xi32>
    %cst_5 = arith.constant 0.000000e+00 : f32
    %9 = vector.broadcast %cst_5 : f32 to vector<8x1664xf32>
    %10 = arith.maximumf %5, %9 : vector<8x1664xf32>
    %11 = arith.select %8, %10, %5 : vector<8x1664xi1>, vector<8x1664xf32>
    %c0_6 = arith.constant 0 : index
    %c0_7 = arith.constant 0 : index
    %12 = vector.load %arg4[%c0_6, %c0_7] : memref<8x1664xf32, #tpu.memory_space<vmem>>, vector<8x1664xf32>
    tpu.vector_store %arg4[%c0_6, %c0_7], %11 {strides = array<i32>} : memref<8x1664xf32, #tpu.memory_space<vmem>>, vector<8x1664xf32>,
    return
  }
  func.func @transform_0(%arg0: i32) -> (i32, i32) {
    %c0_i32 = arith.constant 0 : i32
    %c0_i32_0 = arith.constant 0 : i32
    %c0_i32_1 = arith.constant 0 : i32
    return %c0_i32, %c0_i32_0 : i32, i32
  }
  func.func @transform_1(%arg0: i32) -> (i32, i32) {
    %c0_i32 = arith.constant 0 : i32
    %c0_i32_0 = arith.constant 0 : i32
    %c0_i32_1 = arith.constant 0 : i32
    return %c0_i32, %c0_i32_0 : i32, i32
  }
  func.func @transform_2(%arg0: i32) -> (i32, i32) {
    %c0_i32 = arith.constant 0 : i32
    %c0_i32_0 = arith.constant 0 : i32
    return %c0_i32, %arg0 : i32, i32
  }
  func.func @transform_3(%arg0: i32) -> (i32, i32) {
    %c0_i32 = arith.constant 0 : i32
    %c0_i32_0 = arith.constant 0 : i32
    return %c0_i32, %arg0 : i32, i32
  }
}

module attributes {stable_mosaic.version = 11 : i64} {
  func.func @_conv_res_kernel(%arg0: i32, %arg1: memref<4x48xbf16, #tpu.memory_space<vmem>>, %arg2: memref<4x1xf32, #tpu.memory_space<vmem>>, %arg3: memref<48x1664xbf16, #tpu.memory_space<vmem>>, %arg4: memref<4x1664xf32, #tpu.memory_space<vmem>>, %arg5: memref<4x1664xbf16, #tpu.memory_space<vmem>>) attributes {dimension_semantics = [#tpu.dimension_semantics<parallel>], iteration_bounds = array<i64: 1>, scalar_prefetch = 0 : i64, scratch_operands = 0 : i64, tpu.core_type = #tpu.core_type<tc>, window_params = [{pipeline_mode = #tpu.pipeline_mode<synchronous>, transform_indices = @transform_0, window_bounds = array<i64: 4, 48>}, {pipeline_mode = #tpu.pipeline_mode<synchronous>, transform_indices = @transform_1, window_bounds = array<i64: 4, 1>}, {transform_indices = @transform_2, window_bounds = array<i64: 48, 1664>}, {transform_indices = @transform_3, window_bounds = array<i64: 4, 1664>}, {transform_indices = @transform_4, window_bounds = array<i64: 4, 1664>}]} {
    %c0 = arith.constant 0 : index
    %c0_0 = arith.constant 0 : index
    %0 = vector.load %arg1[%c0, %c0_0] : memref<4x48xbf16, #tpu.memory_space<vmem>>, vector<4x48xbf16>
    %c0_1 = arith.constant 0 : index
    %c0_2 = arith.constant 0 : index
    %1 = vector.load %arg3[%c0_1, %c0_2] : memref<48x1664xbf16, #tpu.memory_space<vmem>>, vector<48x1664xbf16>
    %cst = arith.constant dense<0.000000e+00> : vector<4x1664xf32>
    %2 = tpu.matmul %0, %1, %cst {dimension_numbers = #tpu.dot_dimension_numbers<[1], [0], [0], [1], [0, 0, 1, 1], [], []>} : vector<4x48xbf16>, vector<48x1664xbf16>, vector<4x1664xf32> -> vector<4x1664xf32>
    %c0_3 = arith.constant 0 : index
    %c0_4 = arith.constant 0 : index
    %3 = vector.load %arg2[%c0_3, %c0_4] : memref<4x1xf32, #tpu.memory_space<vmem>>, vector<4x1xf32>
    %4 = vector.broadcast %3 : vector<4x1xf32> to vector<4x1664xf32>
    %5 = arith.addf %2, %4 : vector<4x1664xf32>
    %c0_5 = arith.constant 0 : index
    %c0_6 = arith.constant 0 : index
    %6 = vector.load %arg4[%c0_5, %c0_6] : memref<4x1664xf32, #tpu.memory_space<vmem>>, vector<4x1664xf32>
    %7 = arith.addf %5, %6 : vector<4x1664xf32>
    %cst_7 = arith.constant 0.000000e+00 : f32
    %8 = vector.broadcast %cst_7 : f32 to vector<4x1664xf32>
    %9 = arith.maximumf %7, %8 : vector<4x1664xf32>
    %10 = arith.truncf %9 : vector<4x1664xf32> to vector<4x1664xbf16>
    %c0_8 = arith.constant 0 : index
    %c0_9 = arith.constant 0 : index
    %11 = vector.load %arg5[%c0_8, %c0_9] : memref<4x1664xbf16, #tpu.memory_space<vmem>>, vector<4x1664xbf16>
    tpu.vector_store %arg5[%c0_8, %c0_9], %10 {strides = array<i32>} : memref<4x1664xbf16, #tpu.memory_space<vmem>>, vector<4x1664xbf16>,
    return
  }
  func.func @transform_0(%arg0: i32) -> (i32, i32) {
    %c0_i32 = arith.constant 0 : i32
    %c0_i32_0 = arith.constant 0 : i32
    %c0_i32_1 = arith.constant 0 : i32
    return %c0_i32, %c0_i32_0 : i32, i32
  }
  func.func @transform_1(%arg0: i32) -> (i32, i32) {
    %c0_i32 = arith.constant 0 : i32
    %c0_i32_0 = arith.constant 0 : i32
    %c0_i32_1 = arith.constant 0 : i32
    return %c0_i32, %c0_i32_0 : i32, i32
  }
  func.func @transform_2(%arg0: i32) -> (i32, i32) {
    %c0_i32 = arith.constant 0 : i32
    %c0_i32_0 = arith.constant 0 : i32
    return %c0_i32, %arg0 : i32, i32
  }
  func.func @transform_3(%arg0: i32) -> (i32, i32) {
    %c0_i32 = arith.constant 0 : i32
    %c0_i32_0 = arith.constant 0 : i32
    return %c0_i32, %arg0 : i32, i32
  }
  func.func @transform_4(%arg0: i32) -> (i32, i32) {
    %c0_i32 = arith.constant 0 : i32
    %c0_i32_0 = arith.constant 0 : i32
    return %c0_i32, %arg0 : i32, i32
  }
}

module attributes {stable_mosaic.version = 11 : i64} {
  func.func @_pair_conv_kernel(%arg0: i32, %arg1: memref<16x48xbf16, #tpu.memory_space<vmem>>, %arg2: memref<16x1xf32, #tpu.memory_space<vmem>>, %arg3: memref<48x512xbf16, #tpu.memory_space<vmem>>, %arg4: memref<16x512xf32, #tpu.memory_space<vmem>>) attributes {dimension_semantics = [#tpu.dimension_semantics<parallel>], iteration_bounds = array<i64: 1>, scalar_prefetch = 0 : i64, scratch_operands = 0 : i64, tpu.core_type = #tpu.core_type<tc>, window_params = [{pipeline_mode = #tpu.pipeline_mode<synchronous>, transform_indices = @transform_0, window_bounds = array<i64: 16, 48>}, {pipeline_mode = #tpu.pipeline_mode<synchronous>, transform_indices = @transform_1, window_bounds = array<i64: 16, 1>}, {transform_indices = @transform_2, window_bounds = array<i64: 48, 512>}, {transform_indices = @transform_3, window_bounds = array<i64: 16, 512>}]} {
    %c0 = arith.constant 0 : index
    %c0_0 = arith.constant 0 : index
    %0 = vector.load %arg1[%c0, %c0_0] : memref<16x48xbf16, #tpu.memory_space<vmem>>, vector<16x48xbf16>
    %c0_1 = arith.constant 0 : index
    %c0_2 = arith.constant 0 : index
    %1 = vector.load %arg3[%c0_1, %c0_2] : memref<48x512xbf16, #tpu.memory_space<vmem>>, vector<48x512xbf16>
    %cst = arith.constant dense<0.000000e+00> : vector<16x512xf32>
    %2 = tpu.matmul %0, %1, %cst {dimension_numbers = #tpu.dot_dimension_numbers<[1], [0], [0], [1], [0, 0, 1, 1], [], []>} : vector<16x48xbf16>, vector<48x512xbf16>, vector<16x512xf32> -> vector<16x512xf32>
    %c0_3 = arith.constant 0 : index
    %c0_4 = arith.constant 0 : index
    %3 = vector.load %arg2[%c0_3, %c0_4] : memref<16x1xf32, #tpu.memory_space<vmem>>, vector<16x1xf32>
    %4 = vector.broadcast %3 : vector<16x1xf32> to vector<16x512xf32>
    %5 = arith.addf %2, %4 : vector<16x512xf32>
    %6 = tpu.iota {dimensions = array<i32: 0>} : vector<16x512xi32>
    %c8_i32 = arith.constant 8 : i32
    %7 = vector.broadcast %c8_i32 : i32 to vector<16x512xi32>
    %8 = arith.cmpi slt, %6, %7 : vector<16x512xi32>
    %cst_5 = arith.constant 0.000000e+00 : f32
    %9 = vector.broadcast %cst_5 : f32 to vector<16x512xf32>
    %10 = arith.maximumf %5, %9 : vector<16x512xf32>
    %11 = arith.select %8, %10, %5 : vector<16x512xi1>, vector<16x512xf32>
    %c0_6 = arith.constant 0 : index
    %c0_7 = arith.constant 0 : index
    %12 = vector.load %arg4[%c0_6, %c0_7] : memref<16x512xf32, #tpu.memory_space<vmem>>, vector<16x512xf32>
    tpu.vector_store %arg4[%c0_6, %c0_7], %11 {strides = array<i32>} : memref<16x512xf32, #tpu.memory_space<vmem>>, vector<16x512xf32>,
    return
  }
  func.func @transform_0(%arg0: i32) -> (i32, i32) {
    %c0_i32 = arith.constant 0 : i32
    %c0_i32_0 = arith.constant 0 : i32
    %c0_i32_1 = arith.constant 0 : i32
    return %c0_i32, %c0_i32_0 : i32, i32
  }
  func.func @transform_1(%arg0: i32) -> (i32, i32) {
    %c0_i32 = arith.constant 0 : i32
    %c0_i32_0 = arith.constant 0 : i32
    %c0_i32_1 = arith.constant 0 : i32
    return %c0_i32, %c0_i32_0 : i32, i32
  }
  func.func @transform_2(%arg0: i32) -> (i32, i32) {
    %c0_i32 = arith.constant 0 : i32
    %c0_i32_0 = arith.constant 0 : i32
    return %c0_i32, %arg0 : i32, i32
  }
  func.func @transform_3(%arg0: i32) -> (i32, i32) {
    %c0_i32 = arith.constant 0 : i32
    %c0_i32_0 = arith.constant 0 : i32
    return %c0_i32, %arg0 : i32, i32
  }
}

module attributes {stable_mosaic.version = 11 : i64} {
  func.func @_conv_res_kernel(%arg0: i32, %arg1: memref<8x80xbf16, #tpu.memory_space<vmem>>, %arg2: memref<8x1xf32, #tpu.memory_space<vmem>>, %arg3: memref<80x512xbf16, #tpu.memory_space<vmem>>, %arg4: memref<8x512xf32, #tpu.memory_space<vmem>>, %arg5: memref<8x512xbf16, #tpu.memory_space<vmem>>) attributes {dimension_semantics = [#tpu.dimension_semantics<parallel>], iteration_bounds = array<i64: 1>, scalar_prefetch = 0 : i64, scratch_operands = 0 : i64, tpu.core_type = #tpu.core_type<tc>, window_params = [{pipeline_mode = #tpu.pipeline_mode<synchronous>, transform_indices = @transform_0, window_bounds = array<i64: 8, 80>}, {pipeline_mode = #tpu.pipeline_mode<synchronous>, transform_indices = @transform_1, window_bounds = array<i64: 8, 1>}, {transform_indices = @transform_2, window_bounds = array<i64: 80, 512>}, {transform_indices = @transform_3, window_bounds = array<i64: 8, 512>}, {transform_indices = @transform_4, window_bounds = array<i64: 8, 512>}]} {
    %c0 = arith.constant 0 : index
    %c0_0 = arith.constant 0 : index
    %0 = vector.load %arg1[%c0, %c0_0] : memref<8x80xbf16, #tpu.memory_space<vmem>>, vector<8x80xbf16>
    %c0_1 = arith.constant 0 : index
    %c0_2 = arith.constant 0 : index
    %1 = vector.load %arg3[%c0_1, %c0_2] : memref<80x512xbf16, #tpu.memory_space<vmem>>, vector<80x512xbf16>
    %cst = arith.constant dense<0.000000e+00> : vector<8x512xf32>
    %2 = tpu.matmul %0, %1, %cst {dimension_numbers = #tpu.dot_dimension_numbers<[1], [0], [0], [1], [0, 0, 1, 1], [], []>} : vector<8x80xbf16>, vector<80x512xbf16>, vector<8x512xf32> -> vector<8x512xf32>
    %c0_3 = arith.constant 0 : index
    %c0_4 = arith.constant 0 : index
    %3 = vector.load %arg2[%c0_3, %c0_4] : memref<8x1xf32, #tpu.memory_space<vmem>>, vector<8x1xf32>
    %4 = vector.broadcast %3 : vector<8x1xf32> to vector<8x512xf32>
    %5 = arith.addf %2, %4 : vector<8x512xf32>
    %c0_5 = arith.constant 0 : index
    %c0_6 = arith.constant 0 : index
    %6 = vector.load %arg4[%c0_5, %c0_6] : memref<8x512xf32, #tpu.memory_space<vmem>>, vector<8x512xf32>
    %7 = arith.addf %5, %6 : vector<8x512xf32>
    %cst_7 = arith.constant 0.000000e+00 : f32
    %8 = vector.broadcast %cst_7 : f32 to vector<8x512xf32>
    %9 = arith.maximumf %7, %8 : vector<8x512xf32>
    %10 = arith.truncf %9 : vector<8x512xf32> to vector<8x512xbf16>
    %c0_8 = arith.constant 0 : index
    %c0_9 = arith.constant 0 : index
    %11 = vector.load %arg5[%c0_8, %c0_9] : memref<8x512xbf16, #tpu.memory_space<vmem>>, vector<8x512xbf16>
    tpu.vector_store %arg5[%c0_8, %c0_9], %10 {strides = array<i32>} : memref<8x512xbf16, #tpu.memory_space<vmem>>, vector<8x512xbf16>,
    return
  }
  func.func @transform_0(%arg0: i32) -> (i32, i32) {
    %c0_i32 = arith.constant 0 : i32
    %c0_i32_0 = arith.constant 0 : i32
    %c0_i32_1 = arith.constant 0 : i32
    return %c0_i32, %c0_i32_0 : i32, i32
  }
  func.func @transform_1(%arg0: i32) -> (i32, i32) {
    %c0_i32 = arith.constant 0 : i32
    %c0_i32_0 = arith.constant 0 : i32
    %c0_i32_1 = arith.constant 0 : i32
    return %c0_i32, %c0_i32_0 : i32, i32
  }
  func.func @transform_2(%arg0: i32) -> (i32, i32) {
    %c0_i32 = arith.constant 0 : i32
    %c0_i32_0 = arith.constant 0 : i32
    return %c0_i32, %arg0 : i32, i32
  }
  func.func @transform_3(%arg0: i32) -> (i32, i32) {
    %c0_i32 = arith.constant 0 : i32
    %c0_i32_0 = arith.constant 0 : i32
    return %c0_i32, %arg0 : i32, i32
  }
  func.func @transform_4(%arg0: i32) -> (i32, i32) {
    %c0_i32 = arith.constant 0 : i32
    %c0_i32_0 = arith.constant 0 : i32
    return %c0_i32, %arg0 : i32, i32
  }
}

module attributes {stable_mosaic.version = 11 : i64} {
  func.func @kernel(%arg0: i32, %arg1: memref<8x416xf32, #tpu.memory_space<vmem>>, %arg2: memref<9x416x104xf32, #tpu.memory_space<vmem>>, %arg3: memref<8x72xf32, #tpu.memory_space<vmem>>, %arg4: memref<8x1xf32, #tpu.memory_space<vmem>>, %arg5: memref<8x72xf32, #tpu.memory_space<vmem>>, %arg6: memref<8x1xf32, #tpu.memory_space<vmem>>, %arg7: memref<9x104x104xf32, #tpu.memory_space<vmem>>, %arg8: memref<8x72xf32, #tpu.memory_space<vmem>>, %arg9: memref<8x1xf32, #tpu.memory_space<vmem>>, %arg10: memref<9x104x28xf32, #tpu.memory_space<vmem>>, %arg11: memref<8x72xf32, #tpu.memory_space<vmem>>, %arg12: memref<8x1xf32, #tpu.memory_space<vmem>>, %arg13: memref<8x72xf32, #tpu.memory_space<vmem>>, %arg14: memref<8x1xf32, #tpu.memory_space<vmem>>, %arg15: memref<9x28x28xf32, #tpu.memory_space<vmem>>, %arg16: memref<8x72xf32, #tpu.memory_space<vmem>>, %arg17: memref<8x1xf32, #tpu.memory_space<vmem>>, %arg18: memref<9x28x8xf32, #tpu.memory_space<vmem>>, %arg19: memref<8x72xf32, #tpu.memory_space<vmem>>, %arg20: memref<8x1xf32, #tpu.memory_space<vmem>>, %arg21: memref<8x72xf32, #tpu.memory_space<vmem>>, %arg22: memref<8x1xf32, #tpu.memory_space<vmem>>, %arg23: memref<9x8x8xf32, #tpu.memory_space<vmem>>, %arg24: memref<8x72xf32, #tpu.memory_space<vmem>>, %arg25: memref<8x1xf32, #tpu.memory_space<vmem>>, %arg26: memref<9x8x4xf32, #tpu.memory_space<vmem>>, %arg27: memref<16x72xf32, #tpu.memory_space<vmem>>, %arg28: memref<16x1xf32, #tpu.memory_space<vmem>>, %arg29: memref<16x72xf32, #tpu.memory_space<vmem>>, %arg30: memref<16x1xf32, #tpu.memory_space<vmem>>, %arg31: memref<9x4x4xf32, #tpu.memory_space<vmem>>, %arg32: memref<16x144xf32, #tpu.memory_space<vmem>>, %arg33: memref<16x1xf32, #tpu.memory_space<vmem>>, %arg34: memref<16x16xf32, #tpu.memory_space<vmem>>, %arg35: memref<16x1xf32, #tpu.memory_space<vmem>>, %arg36: memref<10x16xf32, #tpu.memory_space<vmem>>, %arg37: memref<10x1xf32, #tpu.memory_space<vmem>>, %arg38: memref<10x2xf32, #tpu.memory_space<vmem>>) attributes {dimension_semantics = [#tpu.dimension_semantics<arbitrary>], iteration_bounds = array<i64: 1>, scalar_prefetch = 0 : i64, scratch_operands = 0 : i64, tpu.core_type = #tpu.core_type<tc>, window_params = [{pipeline_mode = #tpu.pipeline_mode<synchronous>, transform_indices = @transform_0, window_bounds = array<i64: 8, 416>}, {pipeline_mode = #tpu.pipeline_mode<synchronous>, transform_indices = @transform_1, window_bounds = array<i64: 9, 416, 104>}, {pipeline_mode = #tpu.pipeline_mode<synchronous>, transform_indices = @transform_2, window_bounds = array<i64: 8, 72>}, {pipeline_mode = #tpu.pipeline_mode<synchronous>, transform_indices = @transform_3, window_bounds = array<i64: 8, 1>}, {pipeline_mode = #tpu.pipeline_mode<synchronous>, transform_indices = @transform_4, window_bounds = array<i64: 8, 72>}, {pipeline_mode = #tpu.pipeline_mode<synchronous>, transform_indices = @transform_5, window_bounds = array<i64: 8, 1>}, {pipeline_mode = #tpu.pipeline_mode<synchronous>, transform_indices = @transform_6, window_bounds = array<i64: 9, 104, 104>}, {pipeline_mode = #tpu.pipeline_mode<synchronous>, transform_indices = @transform_7, window_bounds = array<i64: 8, 72>}, {pipeline_mode = #tpu.pipeline_mode<synchronous>, transform_indices = @transform_8, window_bounds = array<i64: 8, 1>}, {pipeline_mode = #tpu.pipeline_mode<synchronous>, transform_indices = @transform_9, window_bounds = array<i64: 9, 104, 28>}, {pipeline_mode = #tpu.pipeline_mode<synchronous>, transform_indices = @transform_10, window_bounds = array<i64: 8, 72>}, {pipeline_mode = #tpu.pipeline_mode<synchronous>, transform_indices = @transform_11, window_bounds = array<i64: 8, 1>}, {pipeline_mode = #tpu.pipeline_mode<synchronous>, transform_indices = @transform_12, window_bounds = array<i64: 8, 72>}, {pipeline_mode = #tpu.pipeline_mode<synchronous>, transform_indices = @transform_13, window_bounds = array<i64: 8, 1>}, {pipeline_mode = #tpu.pipeline_mode<synchronous>, transform_indices = @transform_14, window_bounds = array<i64: 9, 28, 28>}, {pipeline_mode = #tpu.pipeline_mode<synchronous>, transform_indices = @transform_15, window_bounds = array<i64: 8, 72>}, {pipeline_mode = #tpu.pipeline_mode<synchronous>, transform_indices = @transform_16, window_bounds = array<i64: 8, 1>}, {pipeline_mode = #tpu.pipeline_mode<synchronous>, transform_indices = @transform_17, window_bounds = array<i64: 9, 28, 8>}, {pipeline_mode = #tpu.pipeline_mode<synchronous>, transform_indices = @transform_18, window_bounds = array<i64: 8, 72>}, {pipeline_mode = #tpu.pipeline_mode<synchronous>, transform_indices = @transform_19, window_bounds = array<i64: 8, 1>}, {pipeline_mode = #tpu.pipeline_mode<synchronous>, transform_indices = @transform_20, window_bounds = array<i64: 8, 72>}, {pipeline_mode = #tpu.pipeline_mode<synchronous>, transform_indices = @transform_21, window_bounds = array<i64: 8, 1>}, {pipeline_mode = #tpu.pipeline_mode<synchronous>, transform_indices = @transform_22, window_bounds = array<i64: 9, 8, 8>}, {pipeline_mode = #tpu.pipeline_mode<synchronous>, transform_indices = @transform_23, window_bounds = array<i64: 8, 72>}, {pipeline_mode = #tpu.pipeline_mode<synchronous>, transform_indices = @transform_24, window_bounds = array<i64: 8, 1>}, {pipeline_mode = #tpu.pipeline_mode<synchronous>, transform_indices = @transform_25, window_bounds = array<i64: 9, 8, 4>}, {pipeline_mode = #tpu.pipeline_mode<synchronous>, transform_indices = @transform_26, window_bounds = array<i64: 16, 72>}, {pipeline_mode = #tpu.pipeline_mode<synchronous>, transform_indices = @transform_27, window_bounds = array<i64: 16, 1>}, {pipeline_mode = #tpu.pipeline_mode<synchronous>, transform_indices = @transform_28, window_bounds = array<i64: 16, 72>}, {pipeline_mode = #tpu.pipeline_mode<synchronous>, transform_indices = @transform_29, window_bounds = array<i64: 16, 1>}, {pipeline_mode = #tpu.pipeline_mode<synchronous>, transform_indices = @transform_30, window_bounds = array<i64: 9, 4, 4>}, {pipeline_mode = #tpu.pipeline_mode<synchronous>, transform_indices = @transform_31, window_bounds = array<i64: 16, 144>}, {pipeline_mode = #tpu.pipeline_mode<synchronous>, transform_indices = @transform_32, window_bounds = array<i64: 16, 1>}, {pipeline_mode = #tpu.pipeline_mode<synchronous>, transform_indices = @transform_33, window_bounds = array<i64: 16, 16>}, {pipeline_mode = #tpu.pipeline_mode<synchronous>, transform_indices = @transform_34, window_bounds = array<i64: 16, 1>}, {pipeline_mode = #tpu.pipeline_mode<synchronous>, transform_indices = @transform_35, window_bounds = array<i64: 10, 16>}, {pipeline_mode = #tpu.pipeline_mode<synchronous>, transform_indices = @transform_36, window_bounds = array<i64: 10, 1>}, {pipeline_mode = #tpu.pipeline_mode<synchronous>, transform_indices = @transform_37, window_bounds = array<i64: 10, 2>}]} {
    %c0 = arith.constant 0 : index
    %c0_0 = arith.constant 0 : index
    %0 = vector.load %arg1[%c0, %c0_0] : memref<8x416xf32, #tpu.memory_space<vmem>>, vector<8x416xf32>
    %c0_1 = arith.constant 0 : index
    %c0_2 = arith.constant 0 : index
    %c0_3 = arith.constant 0 : index
    %1 = vector.load %arg2[%c0_1, %c0_2, %c0_3] : memref<9x416x104xf32, #tpu.memory_space<vmem>>, vector<1x416x104xf32>
    %2 = vector.shape_cast %1 : vector<1x416x104xf32> to vector<416x104xf32>
    %cst = arith.constant dense<0.000000e+00> : vector<8x104xf32>
    %3 = tpu.matmul %0, %2, %cst {dimension_numbers = #tpu.dot_dimension_numbers<[1], [0], [0], [1], [0, 0, 1, 1], [], []>} : vector<8x416xf32>, vector<416x104xf32>, vector<8x104xf32> -> vector<8x104xf32>
    %c1 = arith.constant 1 : index
    %c0_4 = arith.constant 0 : index
    %c0_5 = arith.constant 0 : index
    %4 = vector.load %arg2[%c1, %c0_4, %c0_5] : memref<9x416x104xf32, #tpu.memory_space<vmem>>, vector<1x416x104xf32>
    %5 = vector.shape_cast %4 : vector<1x416x104xf32> to vector<416x104xf32>
    %cst_6 = arith.constant dense<0.000000e+00> : vector<8x104xf32>
    %6 = tpu.matmul %0, %5, %cst_6 {dimension_numbers = #tpu.dot_dimension_numbers<[1], [0], [0], [1], [0, 0, 1, 1], [], []>} : vector<8x416xf32>, vector<416x104xf32>, vector<8x104xf32> -> vector<8x104xf32>
    %c2 = arith.constant 2 : index
    %c0_7 = arith.constant 0 : index
    %c0_8 = arith.constant 0 : index
    %7 = vector.load %arg2[%c2, %c0_7, %c0_8] : memref<9x416x104xf32, #tpu.memory_space<vmem>>, vector<1x416x104xf32>
    %8 = vector.shape_cast %7 : vector<1x416x104xf32> to vector<416x104xf32>
    %cst_9 = arith.constant dense<0.000000e+00> : vector<8x104xf32>
    %9 = tpu.matmul %0, %8, %cst_9 {dimension_numbers = #tpu.dot_dimension_numbers<[1], [0], [0], [1], [0, 0, 1, 1], [], []>} : vector<8x416xf32>, vector<416x104xf32>, vector<8x104xf32> -> vector<8x104xf32>
    %c3 = arith.constant 3 : index
    %c0_10 = arith.constant 0 : index
    %c0_11 = arith.constant 0 : index
    %10 = vector.load %arg2[%c3, %c0_10, %c0_11] : memref<9x416x104xf32, #tpu.memory_space<vmem>>, vector<1x416x104xf32>
    %11 = vector.shape_cast %10 : vector<1x416x104xf32> to vector<416x104xf32>
    %cst_12 = arith.constant dense<0.000000e+00> : vector<8x104xf32>
    %12 = tpu.matmul %0, %11, %cst_12 {dimension_numbers = #tpu.dot_dimension_numbers<[1], [0], [0], [1], [0, 0, 1, 1], [], []>} : vector<8x416xf32>, vector<416x104xf32>, vector<8x104xf32> -> vector<8x104xf32>
    %c4 = arith.constant 4 : index
    %c0_13 = arith.constant 0 : index
    %c0_14 = arith.constant 0 : index
    %13 = vector.load %arg2[%c4, %c0_13, %c0_14] : memref<9x416x104xf32, #tpu.memory_space<vmem>>, vector<1x416x104xf32>
    %14 = vector.shape_cast %13 : vector<1x416x104xf32> to vector<416x104xf32>
    %cst_15 = arith.constant dense<0.000000e+00> : vector<8x104xf32>
    %15 = tpu.matmul %0, %14, %cst_15 {dimension_numbers = #tpu.dot_dimension_numbers<[1], [0], [0], [1], [0, 0, 1, 1], [], []>} : vector<8x416xf32>, vector<416x104xf32>, vector<8x104xf32> -> vector<8x104xf32>
    %c5 = arith.constant 5 : index
    %c0_16 = arith.constant 0 : index
    %c0_17 = arith.constant 0 : index
    %16 = vector.load %arg2[%c5, %c0_16, %c0_17] : memref<9x416x104xf32, #tpu.memory_space<vmem>>, vector<1x416x104xf32>
    %17 = vector.shape_cast %16 : vector<1x416x104xf32> to vector<416x104xf32>
    %cst_18 = arith.constant dense<0.000000e+00> : vector<8x104xf32>
    %18 = tpu.matmul %0, %17, %cst_18 {dimension_numbers = #tpu.dot_dimension_numbers<[1], [0], [0], [1], [0, 0, 1, 1], [], []>} : vector<8x416xf32>, vector<416x104xf32>, vector<8x104xf32> -> vector<8x104xf32>
    %c6 = arith.constant 6 : index
    %c0_19 = arith.constant 0 : index
    %c0_20 = arith.constant 0 : index
    %19 = vector.load %arg2[%c6, %c0_19, %c0_20] : memref<9x416x104xf32, #tpu.memory_space<vmem>>, vector<1x416x104xf32>
    %20 = vector.shape_cast %19 : vector<1x416x104xf32> to vector<416x104xf32>
    %cst_21 = arith.constant dense<0.000000e+00> : vector<8x104xf32>
    %21 = tpu.matmul %0, %20, %cst_21 {dimension_numbers = #tpu.dot_dimension_numbers<[1], [0], [0], [1], [0, 0, 1, 1], [], []>} : vector<8x416xf32>, vector<416x104xf32>, vector<8x104xf32> -> vector<8x104xf32>
    %c7 = arith.constant 7 : index
    %c0_22 = arith.constant 0 : index
    %c0_23 = arith.constant 0 : index
    %22 = vector.load %arg2[%c7, %c0_22, %c0_23] : memref<9x416x104xf32, #tpu.memory_space<vmem>>, vector<1x416x104xf32>
    %23 = vector.shape_cast %22 : vector<1x416x104xf32> to vector<416x104xf32>
    %cst_24 = arith.constant dense<0.000000e+00> : vector<8x104xf32>
    %24 = tpu.matmul %0, %23, %cst_24 {dimension_numbers = #tpu.dot_dimension_numbers<[1], [0], [0], [1], [0, 0, 1, 1], [], []>} : vector<8x416xf32>, vector<416x104xf32>, vector<8x104xf32> -> vector<8x104xf32>
    %c8 = arith.constant 8 : index
    %c0_25 = arith.constant 0 : index
    %c0_26 = arith.constant 0 : index
    %25 = vector.load %arg2[%c8, %c0_25, %c0_26] : memref<9x416x104xf32, #tpu.memory_space<vmem>>, vector<1x416x104xf32>
    %26 = vector.shape_cast %25 : vector<1x416x104xf32> to vector<416x104xf32>
    %cst_27 = arith.constant dense<0.000000e+00> : vector<8x104xf32>
    %27 = tpu.matmul %0, %26, %cst_27 {dimension_numbers = #tpu.dot_dimension_numbers<[1], [0], [0], [1], [0, 0, 1, 1], [], []>} : vector<8x416xf32>, vector<416x104xf32>, vector<8x104xf32> -> vector<8x104xf32>
    %28 = tpu.concatenate %3, %6, %9, %12, %15, %18, %21, %24, %27 in 0 : vector<8x104xf32>, vector<8x104xf32>, vector<8x104xf32>, vector<8x104xf32>, vector<8x104xf32>, vector<8x104xf32>, vector<8x104xf32>, vector<8x104xf32>, vector<8x104xf32> -> vector<72x104xf32>
    %c0_28 = arith.constant 0 : index
    %c0_29 = arith.constant 0 : index
    %29 = vector.load %arg3[%c0_28, %c0_29] : memref<8x72xf32, #tpu.memory_space<vmem>>, vector<8x72xf32>
    %cst_30 = arith.constant dense<0.000000e+00> : vector<8x104xf32>
    %30 = tpu.matmul %29, %28, %cst_30 {dimension_numbers = #tpu.dot_dimension_numbers<[1], [0], [0], [1], [0, 0, 1, 1], [], []>} : vector<8x72xf32>, vector<72x104xf32>, vector<8x104xf32> -> vector<8x104xf32>
    %c0_31 = arith.constant 0 : index
    %c0_32 = arith.constant 0 : index
    %31 = vector.load %arg4[%c0_31, %c0_32] : memref<8x1xf32, #tpu.memory_space<vmem>>, vector<8x1xf32>
    %32 = vector.broadcast %31 : vector<8x1xf32> to vector<8x104xf32>
    %33 = arith.addf %30, %32 : vector<8x104xf32>
    %cst_33 = arith.constant 0.000000e+00 : f32
    %34 = vector.broadcast %cst_33 : f32 to vector<8x104xf32>
    %35 = arith.maximumf %33, %34 : vector<8x104xf32>
    %c0_34 = arith.constant 0 : index
    %c0_35 = arith.constant 0 : index
    %36 = vector.load %arg5[%c0_34, %c0_35] : memref<8x72xf32, #tpu.memory_space<vmem>>, vector<8x72xf32>
    %cst_36 = arith.constant dense<0.000000e+00> : vector<8x104xf32>
    %37 = tpu.matmul %36, %28, %cst_36 {dimension_numbers = #tpu.dot_dimension_numbers<[1], [0], [0], [1], [0, 0, 1, 1], [], []>} : vector<8x72xf32>, vector<72x104xf32>, vector<8x104xf32> -> vector<8x104xf32>
    %c0_37 = arith.constant 0 : index
    %c0_38 = arith.constant 0 : index
    %38 = vector.load %arg6[%c0_37, %c0_38] : memref<8x1xf32, #tpu.memory_space<vmem>>, vector<8x1xf32>
    %39 = vector.broadcast %38 : vector<8x1xf32> to vector<8x104xf32>
    %40 = arith.addf %37, %39 : vector<8x104xf32>
    %c0_39 = arith.constant 0 : index
    %c0_40 = arith.constant 0 : index
    %c0_41 = arith.constant 0 : index
    %41 = vector.load %arg7[%c0_39, %c0_40, %c0_41] : memref<9x104x104xf32, #tpu.memory_space<vmem>>, vector<1x104x104xf32>
    %42 = vector.shape_cast %41 : vector<1x104x104xf32> to vector<104x104xf32>
    %cst_42 = arith.constant dense<0.000000e+00> : vector<8x104xf32>
    %43 = tpu.matmul %35, %42, %cst_42 {dimension_numbers = #tpu.dot_dimension_numbers<[1], [0], [0], [1], [0, 0, 1, 1], [], []>} : vector<8x104xf32>, vector<104x104xf32>, vector<8x104xf32> -> vector<8x104xf32>
    %c1_43 = arith.constant 1 : index
    %c0_44 = arith.constant 0 : index
    %c0_45 = arith.constant 0 : index
    %44 = vector.load %arg7[%c1_43, %c0_44, %c0_45] : memref<9x104x104xf32, #tpu.memory_space<vmem>>, vector<1x104x104xf32>
    %45 = vector.shape_cast %44 : vector<1x104x104xf32> to vector<104x104xf32>
    %cst_46 = arith.constant dense<0.000000e+00> : vector<8x104xf32>
    %46 = tpu.matmul %35, %45, %cst_46 {dimension_numbers = #tpu.dot_dimension_numbers<[1], [0], [0], [1], [0, 0, 1, 1], [], []>} : vector<8x104xf32>, vector<104x104xf32>, vector<8x104xf32> -> vector<8x104xf32>
    %c2_47 = arith.constant 2 : index
    %c0_48 = arith.constant 0 : index
    %c0_49 = arith.constant 0 : index
    %47 = vector.load %arg7[%c2_47, %c0_48, %c0_49] : memref<9x104x104xf32, #tpu.memory_space<vmem>>, vector<1x104x104xf32>
    %48 = vector.shape_cast %47 : vector<1x104x104xf32> to vector<104x104xf32>
    %cst_50 = arith.constant dense<0.000000e+00> : vector<8x104xf32>
    %49 = tpu.matmul %35, %48, %cst_50 {dimension_numbers = #tpu.dot_dimension_numbers<[1], [0], [0], [1], [0, 0, 1, 1], [], []>} : vector<8x104xf32>, vector<104x104xf32>, vector<8x104xf32> -> vector<8x104xf32>
    %c3_51 = arith.constant 3 : index
    %c0_52 = arith.constant 0 : index
    %c0_53 = arith.constant 0 : index
    %50 = vector.load %arg7[%c3_51, %c0_52, %c0_53] : memref<9x104x104xf32, #tpu.memory_space<vmem>>, vector<1x104x104xf32>
    %51 = vector.shape_cast %50 : vector<1x104x104xf32> to vector<104x104xf32>
    %cst_54 = arith.constant dense<0.000000e+00> : vector<8x104xf32>
    %52 = tpu.matmul %35, %51, %cst_54 {dimension_numbers = #tpu.dot_dimension_numbers<[1], [0], [0], [1], [0, 0, 1, 1], [], []>} : vector<8x104xf32>, vector<104x104xf32>, vector<8x104xf32> -> vector<8x104xf32>
    %c4_55 = arith.constant 4 : index
    %c0_56 = arith.constant 0 : index
    %c0_57 = arith.constant 0 : index
    %53 = vector.load %arg7[%c4_55, %c0_56, %c0_57] : memref<9x104x104xf32, #tpu.memory_space<vmem>>, vector<1x104x104xf32>
    %54 = vector.shape_cast %53 : vector<1x104x104xf32> to vector<104x104xf32>
    %cst_58 = arith.constant dense<0.000000e+00> : vector<8x104xf32>
    %55 = tpu.matmul %35, %54, %cst_58 {dimension_numbers = #tpu.dot_dimension_numbers<[1], [0], [0], [1], [0, 0, 1, 1], [], []>} : vector<8x104xf32>, vector<104x104xf32>, vector<8x104xf32> -> vector<8x104xf32>
    %c5_59 = arith.constant 5 : index
    %c0_60 = arith.constant 0 : index
    %c0_61 = arith.constant 0 : index
    %56 = vector.load %arg7[%c5_59, %c0_60, %c0_61] : memref<9x104x104xf32, #tpu.memory_space<vmem>>, vector<1x104x104xf32>
    %57 = vector.shape_cast %56 : vector<1x104x104xf32> to vector<104x104xf32>
    %cst_62 = arith.constant dense<0.000000e+00> : vector<8x104xf32>
    %58 = tpu.matmul %35, %57, %cst_62 {dimension_numbers = #tpu.dot_dimension_numbers<[1], [0], [0], [1], [0, 0, 1, 1], [], []>} : vector<8x104xf32>, vector<104x104xf32>, vector<8x104xf32> -> vector<8x104xf32>
    %c6_63 = arith.constant 6 : index
    %c0_64 = arith.constant 0 : index
    %c0_65 = arith.constant 0 : index
    %59 = vector.load %arg7[%c6_63, %c0_64, %c0_65] : memref<9x104x104xf32, #tpu.memory_space<vmem>>, vector<1x104x104xf32>
    %60 = vector.shape_cast %59 : vector<1x104x104xf32> to vector<104x104xf32>
    %cst_66 = arith.constant dense<0.000000e+00> : vector<8x104xf32>
    %61 = tpu.matmul %35, %60, %cst_66 {dimension_numbers = #tpu.dot_dimension_numbers<[1], [0], [0], [1], [0, 0, 1, 1], [], []>} : vector<8x104xf32>, vector<104x104xf32>, vector<8x104xf32> -> vector<8x104xf32>
    %c7_67 = arith.constant 7 : index
    %c0_68 = arith.constant 0 : index
    %c0_69 = arith.constant 0 : index
    %62 = vector.load %arg7[%c7_67, %c0_68, %c0_69] : memref<9x104x104xf32, #tpu.memory_space<vmem>>, vector<1x104x104xf32>
    %63 = vector.shape_cast %62 : vector<1x104x104xf32> to vector<104x104xf32>
    %cst_70 = arith.constant dense<0.000000e+00> : vector<8x104xf32>
    %64 = tpu.matmul %35, %63, %cst_70 {dimension_numbers = #tpu.dot_dimension_numbers<[1], [0], [0], [1], [0, 0, 1, 1], [], []>} : vector<8x104xf32>, vector<104x104xf32>, vector<8x104xf32> -> vector<8x104xf32>
    %c8_71 = arith.constant 8 : index
    %c0_72 = arith.constant 0 : index
    %c0_73 = arith.constant 0 : index
    %65 = vector.load %arg7[%c8_71, %c0_72, %c0_73] : memref<9x104x104xf32, #tpu.memory_space<vmem>>, vector<1x104x104xf32>
    %66 = vector.shape_cast %65 : vector<1x104x104xf32> to vector<104x104xf32>
    %cst_74 = arith.constant dense<0.000000e+00> : vector<8x104xf32>
    %67 = tpu.matmul %35, %66, %cst_74 {dimension_numbers = #tpu.dot_dimension_numbers<[1], [0], [0], [1], [0, 0, 1, 1], [], []>} : vector<8x104xf32>, vector<104x104xf32>, vector<8x104xf32> -> vector<8x104xf32>
    %68 = tpu.concatenate %43, %46, %49, %52, %55, %58, %61, %64, %67 in 0 : vector<8x104xf32>, vector<8x104xf32>, vector<8x104xf32>, vector<8x104xf32>, vector<8x104xf32>, vector<8x104xf32>, vector<8x104xf32>, vector<8x104xf32>, vector<8x104xf32> -> vector<72x104xf32>
    %c0_75 = arith.constant 0 : index
    %c0_76 = arith.constant 0 : index
    %69 = vector.load %arg8[%c0_75, %c0_76] : memref<8x72xf32, #tpu.memory_space<vmem>>, vector<8x72xf32>
    %cst_77 = arith.constant dense<0.000000e+00> : vector<8x104xf32>
    %70 = tpu.matmul %69, %68, %cst_77 {dimension_numbers = #tpu.dot_dimension_numbers<[1], [0], [0], [1], [0, 0, 1, 1], [], []>} : vector<8x72xf32>, vector<72x104xf32>, vector<8x104xf32> -> vector<8x104xf32>
    %c0_78 = arith.constant 0 : index
    %c0_79 = arith.constant 0 : index
    %71 = vector.load %arg9[%c0_78, %c0_79] : memref<8x1xf32, #tpu.memory_space<vmem>>, vector<8x1xf32>
    %72 = vector.broadcast %71 : vector<8x1xf32> to vector<8x104xf32>
    %73 = arith.addf %70, %72 : vector<8x104xf32>
    %74 = arith.addf %73, %40 : vector<8x104xf32>
    %cst_80 = arith.constant 0.000000e+00 : f32
    %75 = vector.broadcast %cst_80 : f32 to vector<8x104xf32>
    %76 = arith.maximumf %74, %75 : vector<8x104xf32>
    %c0_81 = arith.constant 0 : index
    %c0_82 = arith.constant 0 : index
    %c0_83 = arith.constant 0 : index
    %77 = vector.load %arg10[%c0_81, %c0_82, %c0_83] : memref<9x104x28xf32, #tpu.memory_space<vmem>>, vector<1x104x28xf32>
    %78 = vector.shape_cast %77 : vector<1x104x28xf32> to vector<104x28xf32>
    %cst_84 = arith.constant dense<0.000000e+00> : vector<8x28xf32>
    %79 = tpu.matmul %76, %78, %cst_84 {dimension_numbers = #tpu.dot_dimension_numbers<[1], [0], [0], [1], [0, 0, 1, 1], [], []>} : vector<8x104xf32>, vector<104x28xf32>, vector<8x28xf32> -> vector<8x28xf32>
    %c1_85 = arith.constant 1 : index
    %c0_86 = arith.constant 0 : index
    %c0_87 = arith.constant 0 : index
    %80 = vector.load %arg10[%c1_85, %c0_86, %c0_87] : memref<9x104x28xf32, #tpu.memory_space<vmem>>, vector<1x104x28xf32>
    %81 = vector.shape_cast %80 : vector<1x104x28xf32> to vector<104x28xf32>
    %cst_88 = arith.constant dense<0.000000e+00> : vector<8x28xf32>
    %82 = tpu.matmul %76, %81, %cst_88 {dimension_numbers = #tpu.dot_dimension_numbers<[1], [0], [0], [1], [0, 0, 1, 1], [], []>} : vector<8x104xf32>, vector<104x28xf32>, vector<8x28xf32> -> vector<8x28xf32>
    %c2_89 = arith.constant 2 : index
    %c0_90 = arith.constant 0 : index
    %c0_91 = arith.constant 0 : index
    %83 = vector.load %arg10[%c2_89, %c0_90, %c0_91] : memref<9x104x28xf32, #tpu.memory_space<vmem>>, vector<1x104x28xf32>
    %84 = vector.shape_cast %83 : vector<1x104x28xf32> to vector<104x28xf32>
    %cst_92 = arith.constant dense<0.000000e+00> : vector<8x28xf32>
    %85 = tpu.matmul %76, %84, %cst_92 {dimension_numbers = #tpu.dot_dimension_numbers<[1], [0], [0], [1], [0, 0, 1, 1], [], []>} : vector<8x104xf32>, vector<104x28xf32>, vector<8x28xf32> -> vector<8x28xf32>
    %c3_93 = arith.constant 3 : index
    %c0_94 = arith.constant 0 : index
    %c0_95 = arith.constant 0 : index
    %86 = vector.load %arg10[%c3_93, %c0_94, %c0_95] : memref<9x104x28xf32, #tpu.memory_space<vmem>>, vector<1x104x28xf32>
    %87 = vector.shape_cast %86 : vector<1x104x28xf32> to vector<104x28xf32>
    %cst_96 = arith.constant dense<0.000000e+00> : vector<8x28xf32>
    %88 = tpu.matmul %76, %87, %cst_96 {dimension_numbers = #tpu.dot_dimension_numbers<[1], [0], [0], [1], [0, 0, 1, 1], [], []>} : vector<8x104xf32>, vector<104x28xf32>, vector<8x28xf32> -> vector<8x28xf32>
    %c4_97 = arith.constant 4 : index
    %c0_98 = arith.constant 0 : index
    %c0_99 = arith.constant 0 : index
    %89 = vector.load %arg10[%c4_97, %c0_98, %c0_99] : memref<9x104x28xf32, #tpu.memory_space<vmem>>, vector<1x104x28xf32>
    %90 = vector.shape_cast %89 : vector<1x104x28xf32> to vector<104x28xf32>
    %cst_100 = arith.constant dense<0.000000e+00> : vector<8x28xf32>
    %91 = tpu.matmul %76, %90, %cst_100 {dimension_numbers = #tpu.dot_dimension_numbers<[1], [0], [0], [1], [0, 0, 1, 1], [], []>} : vector<8x104xf32>, vector<104x28xf32>, vector<8x28xf32> -> vector<8x28xf32>
    %c5_101 = arith.constant 5 : index
    %c0_102 = arith.constant 0 : index
    %c0_103 = arith.constant 0 : index
    %92 = vector.load %arg10[%c5_101, %c0_102, %c0_103] : memref<9x104x28xf32, #tpu.memory_space<vmem>>, vector<1x104x28xf32>
    %93 = vector.shape_cast %92 : vector<1x104x28xf32> to vector<104x28xf32>
    %cst_104 = arith.constant dense<0.000000e+00> : vector<8x28xf32>
    %94 = tpu.matmul %76, %93, %cst_104 {dimension_numbers = #tpu.dot_dimension_numbers<[1], [0], [0], [1], [0, 0, 1, 1], [], []>} : vector<8x104xf32>, vector<104x28xf32>, vector<8x28xf32> -> vector<8x28xf32>
    %c6_105 = arith.constant 6 : index
    %c0_106 = arith.constant 0 : index
    %c0_107 = arith.constant 0 : index
    %95 = vector.load %arg10[%c6_105, %c0_106, %c0_107] : memref<9x104x28xf32, #tpu.memory_space<vmem>>, vector<1x104x28xf32>
    %96 = vector.shape_cast %95 : vector<1x104x28xf32> to vector<104x28xf32>
    %cst_108 = arith.constant dense<0.000000e+00> : vector<8x28xf32>
    %97 = tpu.matmul %76, %96, %cst_108 {dimension_numbers = #tpu.dot_dimension_numbers<[1], [0], [0], [1], [0, 0, 1, 1], [], []>} : vector<8x104xf32>, vector<104x28xf32>, vector<8x28xf32> -> vector<8x28xf32>
    %c7_109 = arith.constant 7 : index
    %c0_110 = arith.constant 0 : index
    %c0_111 = arith.constant 0 : index
    %98 = vector.load %arg10[%c7_109, %c0_110, %c0_111] : memref<9x104x28xf32, #tpu.memory_space<vmem>>, vector<1x104x28xf32>
    %99 = vector.shape_cast %98 : vector<1x104x28xf32> to vector<104x28xf32>
    %cst_112 = arith.constant dense<0.000000e+00> : vector<8x28xf32>
    %100 = tpu.matmul %76, %99, %cst_112 {dimension_numbers = #tpu.dot_dimension_numbers<[1], [0], [0], [1], [0, 0, 1, 1], [], []>} : vector<8x104xf32>, vector<104x28xf32>, vector<8x28xf32> -> vector<8x28xf32>
    %c8_113 = arith.constant 8 : index
    %c0_114 = arith.constant 0 : index
    %c0_115 = arith.constant 0 : index
    %101 = vector.load %arg10[%c8_113, %c0_114, %c0_115] : memref<9x104x28xf32, #tpu.memory_space<vmem>>, vector<1x104x28xf32>
    %102 = vector.shape_cast %101 : vector<1x104x28xf32> to vector<104x28xf32>
    %cst_116 = arith.constant dense<0.000000e+00> : vector<8x28xf32>
    %103 = tpu.matmul %76, %102, %cst_116 {dimension_numbers = #tpu.dot_dimension_numbers<[1], [0], [0], [1], [0, 0, 1, 1], [], []>} : vector<8x104xf32>, vector<104x28xf32>, vector<8x28xf32> -> vector<8x28xf32>
    %104 = tpu.concatenate %79, %82, %85, %88, %91, %94, %97, %100, %103 in 0 : vector<8x28xf32>, vector<8x28xf32>, vector<8x28xf32>, vector<8x28xf32>, vector<8x28xf32>, vector<8x28xf32>, vector<8x28xf32>, vector<8x28xf32>, vector<8x28xf32> -> vector<72x28xf32>
    %c0_117 = arith.constant 0 : index
    %c0_118 = arith.constant 0 : index
    %105 = vector.load %arg11[%c0_117, %c0_118] : memref<8x72xf32, #tpu.memory_space<vmem>>, vector<8x72xf32>
    %cst_119 = arith.constant dense<0.000000e+00> : vector<8x28xf32>
    %106 = tpu.matmul %105, %104, %cst_119 {dimension_numbers = #tpu.dot_dimension_numbers<[1], [0], [0], [1], [0, 0, 1, 1], [], []>} : vector<8x72xf32>, vector<72x28xf32>, vector<8x28xf32> -> vector<8x28xf32>
    %c0_120 = arith.constant 0 : index
    %c0_121 = arith.constant 0 : index
    %107 = vector.load %arg12[%c0_120, %c0_121] : memref<8x1xf32, #tpu.memory_space<vmem>>, vector<8x1xf32>
    %108 = vector.broadcast %107 : vector<8x1xf32> to vector<8x28xf32>
    %109 = arith.addf %106, %108 : vector<8x28xf32>
    %cst_122 = arith.constant 0.000000e+00 : f32
    %110 = vector.broadcast %cst_122 : f32 to vector<8x28xf32>
    %111 = arith.maximumf %109, %110 : vector<8x28xf32>
    %c0_123 = arith.constant 0 : index
    %c0_124 = arith.constant 0 : index
    %112 = vector.load %arg13[%c0_123, %c0_124] : memref<8x72xf32, #tpu.memory_space<vmem>>, vector<8x72xf32>
    %cst_125 = arith.constant dense<0.000000e+00> : vector<8x28xf32>
    %113 = tpu.matmul %112, %104, %cst_125 {dimension_numbers = #tpu.dot_dimension_numbers<[1], [0], [0], [1], [0, 0, 1, 1], [], []>} : vector<8x72xf32>, vector<72x28xf32>, vector<8x28xf32> -> vector<8x28xf32>
    %c0_126 = arith.constant 0 : index
    %c0_127 = arith.constant 0 : index
    %114 = vector.load %arg14[%c0_126, %c0_127] : memref<8x1xf32, #tpu.memory_space<vmem>>, vector<8x1xf32>
    %115 = vector.broadcast %114 : vector<8x1xf32> to vector<8x28xf32>
    %116 = arith.addf %113, %115 : vector<8x28xf32>
    %c0_128 = arith.constant 0 : index
    %c0_129 = arith.constant 0 : index
    %c0_130 = arith.constant 0 : index
    %117 = vector.load %arg15[%c0_128, %c0_129, %c0_130] : memref<9x28x28xf32, #tpu.memory_space<vmem>>, vector<1x28x28xf32>
    %118 = vector.shape_cast %117 : vector<1x28x28xf32> to vector<28x28xf32>
    %cst_131 = arith.constant dense<0.000000e+00> : vector<8x28xf32>
    %119 = tpu.matmul %111, %118, %cst_131 {dimension_numbers = #tpu.dot_dimension_numbers<[1], [0], [0], [1], [0, 0, 1, 1], [], []>} : vector<8x28xf32>, vector<28x28xf32>, vector<8x28xf32> -> vector<8x28xf32>
    %c1_132 = arith.constant 1 : index
    %c0_133 = arith.constant 0 : index
    %c0_134 = arith.constant 0 : index
    %120 = vector.load %arg15[%c1_132, %c0_133, %c0_134] : memref<9x28x28xf32, #tpu.memory_space<vmem>>, vector<1x28x28xf32>
    %121 = vector.shape_cast %120 : vector<1x28x28xf32> to vector<28x28xf32>
    %cst_135 = arith.constant dense<0.000000e+00> : vector<8x28xf32>
    %122 = tpu.matmul %111, %121, %cst_135 {dimension_numbers = #tpu.dot_dimension_numbers<[1], [0], [0], [1], [0, 0, 1, 1], [], []>} : vector<8x28xf32>, vector<28x28xf32>, vector<8x28xf32> -> vector<8x28xf32>
    %c2_136 = arith.constant 2 : index
    %c0_137 = arith.constant 0 : index
    %c0_138 = arith.constant 0 : index
    %123 = vector.load %arg15[%c2_136, %c0_137, %c0_138] : memref<9x28x28xf32, #tpu.memory_space<vmem>>, vector<1x28x28xf32>
    %124 = vector.shape_cast %123 : vector<1x28x28xf32> to vector<28x28xf32>
    %cst_139 = arith.constant dense<0.000000e+00> : vector<8x28xf32>
    %125 = tpu.matmul %111, %124, %cst_139 {dimension_numbers = #tpu.dot_dimension_numbers<[1], [0], [0], [1], [0, 0, 1, 1], [], []>} : vector<8x28xf32>, vector<28x28xf32>, vector<8x28xf32> -> vector<8x28xf32>
    %c3_140 = arith.constant 3 : index
    %c0_141 = arith.constant 0 : index
    %c0_142 = arith.constant 0 : index
    %126 = vector.load %arg15[%c3_140, %c0_141, %c0_142] : memref<9x28x28xf32, #tpu.memory_space<vmem>>, vector<1x28x28xf32>
    %127 = vector.shape_cast %126 : vector<1x28x28xf32> to vector<28x28xf32>
    %cst_143 = arith.constant dense<0.000000e+00> : vector<8x28xf32>
    %128 = tpu.matmul %111, %127, %cst_143 {dimension_numbers = #tpu.dot_dimension_numbers<[1], [0], [0], [1], [0, 0, 1, 1], [], []>} : vector<8x28xf32>, vector<28x28xf32>, vector<8x28xf32> -> vector<8x28xf32>
    %c4_144 = arith.constant 4 : index
    %c0_145 = arith.constant 0 : index
    %c0_146 = arith.constant 0 : index
    %129 = vector.load %arg15[%c4_144, %c0_145, %c0_146] : memref<9x28x28xf32, #tpu.memory_space<vmem>>, vector<1x28x28xf32>
    %130 = vector.shape_cast %129 : vector<1x28x28xf32> to vector<28x28xf32>
    %cst_147 = arith.constant dense<0.000000e+00> : vector<8x28xf32>
    %131 = tpu.matmul %111, %130, %cst_147 {dimension_numbers = #tpu.dot_dimension_numbers<[1], [0], [0], [1], [0, 0, 1, 1], [], []>} : vector<8x28xf32>, vector<28x28xf32>, vector<8x28xf32> -> vector<8x28xf32>
    %c5_148 = arith.constant 5 : index
    %c0_149 = arith.constant 0 : index
    %c0_150 = arith.constant 0 : index
    %132 = vector.load %arg15[%c5_148, %c0_149, %c0_150] : memref<9x28x28xf32, #tpu.memory_space<vmem>>, vector<1x28x28xf32>
    %133 = vector.shape_cast %132 : vector<1x28x28xf32> to vector<28x28xf32>
    %cst_151 = arith.constant dense<0.000000e+00> : vector<8x28xf32>
    %134 = tpu.matmul %111, %133, %cst_151 {dimension_numbers = #tpu.dot_dimension_numbers<[1], [0], [0], [1], [0, 0, 1, 1], [], []>} : vector<8x28xf32>, vector<28x28xf32>, vector<8x28xf32> -> vector<8x28xf32>
    %c6_152 = arith.constant 6 : index
    %c0_153 = arith.constant 0 : index
    %c0_154 = arith.constant 0 : index
    %135 = vector.load %arg15[%c6_152, %c0_153, %c0_154] : memref<9x28x28xf32, #tpu.memory_space<vmem>>, vector<1x28x28xf32>
    %136 = vector.shape_cast %135 : vector<1x28x28xf32> to vector<28x28xf32>
    %cst_155 = arith.constant dense<0.000000e+00> : vector<8x28xf32>
    %137 = tpu.matmul %111, %136, %cst_155 {dimension_numbers = #tpu.dot_dimension_numbers<[1], [0], [0], [1], [0, 0, 1, 1], [], []>} : vector<8x28xf32>, vector<28x28xf32>, vector<8x28xf32> -> vector<8x28xf32>
    %c7_156 = arith.constant 7 : index
    %c0_157 = arith.constant 0 : index
    %c0_158 = arith.constant 0 : index
    %138 = vector.load %arg15[%c7_156, %c0_157, %c0_158] : memref<9x28x28xf32, #tpu.memory_space<vmem>>, vector<1x28x28xf32>
    %139 = vector.shape_cast %138 : vector<1x28x28xf32> to vector<28x28xf32>
    %cst_159 = arith.constant dense<0.000000e+00> : vector<8x28xf32>
    %140 = tpu.matmul %111, %139, %cst_159 {dimension_numbers = #tpu.dot_dimension_numbers<[1], [0], [0], [1], [0, 0, 1, 1], [], []>} : vector<8x28xf32>, vector<28x28xf32>, vector<8x28xf32> -> vector<8x28xf32>
    %c8_160 = arith.constant 8 : index
    %c0_161 = arith.constant 0 : index
    %c0_162 = arith.constant 0 : index
    %141 = vector.load %arg15[%c8_160, %c0_161, %c0_162] : memref<9x28x28xf32, #tpu.memory_space<vmem>>, vector<1x28x28xf32>
    %142 = vector.shape_cast %141 : vector<1x28x28xf32> to vector<28x28xf32>
    %cst_163 = arith.constant dense<0.000000e+00> : vector<8x28xf32>
    %143 = tpu.matmul %111, %142, %cst_163 {dimension_numbers = #tpu.dot_dimension_numbers<[1], [0], [0], [1], [0, 0, 1, 1], [], []>} : vector<8x28xf32>, vector<28x28xf32>, vector<8x28xf32> -> vector<8x28xf32>
    %144 = tpu.concatenate %119, %122, %125, %128, %131, %134, %137, %140, %143 in 0 : vector<8x28xf32>, vector<8x28xf32>, vector<8x28xf32>, vector<8x28xf32>, vector<8x28xf32>, vector<8x28xf32>, vector<8x28xf32>, vector<8x28xf32>, vector<8x28xf32> -> vector<72x28xf32>
    %c0_164 = arith.constant 0 : index
    %c0_165 = arith.constant 0 : index
    %145 = vector.load %arg16[%c0_164, %c0_165] : memref<8x72xf32, #tpu.memory_space<vmem>>, vector<8x72xf32>
    %cst_166 = arith.constant dense<0.000000e+00> : vector<8x28xf32>
    %146 = tpu.matmul %145, %144, %cst_166 {dimension_numbers = #tpu.dot_dimension_numbers<[1], [0], [0], [1], [0, 0, 1, 1], [], []>} : vector<8x72xf32>, vector<72x28xf32>, vector<8x28xf32> -> vector<8x28xf32>
    %c0_167 = arith.constant 0 : index
    %c0_168 = arith.constant 0 : index
    %147 = vector.load %arg17[%c0_167, %c0_168] : memref<8x1xf32, #tpu.memory_space<vmem>>, vector<8x1xf32>
    %148 = vector.broadcast %147 : vector<8x1xf32> to vector<8x28xf32>
    %149 = arith.addf %146, %148 : vector<8x28xf32>
    %150 = arith.addf %149, %116 : vector<8x28xf32>
    %cst_169 = arith.constant 0.000000e+00 : f32
    %151 = vector.broadcast %cst_169 : f32 to vector<8x28xf32>
    %152 = arith.maximumf %150, %151 : vector<8x28xf32>
    %c0_170 = arith.constant 0 : index
    %c0_171 = arith.constant 0 : index
    %c0_172 = arith.constant 0 : index
    %153 = vector.load %arg18[%c0_170, %c0_171, %c0_172] : memref<9x28x8xf32, #tpu.memory_space<vmem>>, vector<1x28x8xf32>
    %154 = vector.shape_cast %153 : vector<1x28x8xf32> to vector<28x8xf32>
    %cst_173 = arith.constant dense<0.000000e+00> : vector<8x8xf32>
    %155 = tpu.matmul %152, %154, %cst_173 {dimension_numbers = #tpu.dot_dimension_numbers<[1], [0], [0], [1], [0, 0, 1, 1], [], []>} : vector<8x28xf32>, vector<28x8xf32>, vector<8x8xf32> -> vector<8x8xf32>
    %c1_174 = arith.constant 1 : index
    %c0_175 = arith.constant 0 : index
    %c0_176 = arith.constant 0 : index
    %156 = vector.load %arg18[%c1_174, %c0_175, %c0_176] : memref<9x28x8xf32, #tpu.memory_space<vmem>>, vector<1x28x8xf32>
    %157 = vector.shape_cast %156 : vector<1x28x8xf32> to vector<28x8xf32>
    %cst_177 = arith.constant dense<0.000000e+00> : vector<8x8xf32>
    %158 = tpu.matmul %152, %157, %cst_177 {dimension_numbers = #tpu.dot_dimension_numbers<[1], [0], [0], [1], [0, 0, 1, 1], [], []>} : vector<8x28xf32>, vector<28x8xf32>, vector<8x8xf32> -> vector<8x8xf32>
    %c2_178 = arith.constant 2 : index
    %c0_179 = arith.constant 0 : index
    %c0_180 = arith.constant 0 : index
    %159 = vector.load %arg18[%c2_178, %c0_179, %c0_180] : memref<9x28x8xf32, #tpu.memory_space<vmem>>, vector<1x28x8xf32>
    %160 = vector.shape_cast %159 : vector<1x28x8xf32> to vector<28x8xf32>
    %cst_181 = arith.constant dense<0.000000e+00> : vector<8x8xf32>
    %161 = tpu.matmul %152, %160, %cst_181 {dimension_numbers = #tpu.dot_dimension_numbers<[1], [0], [0], [1], [0, 0, 1, 1], [], []>} : vector<8x28xf32>, vector<28x8xf32>, vector<8x8xf32> -> vector<8x8xf32>
    %c3_182 = arith.constant 3 : index
    %c0_183 = arith.constant 0 : index
    %c0_184 = arith.constant 0 : index
    %162 = vector.load %arg18[%c3_182, %c0_183, %c0_184] : memref<9x28x8xf32, #tpu.memory_space<vmem>>, vector<1x28x8xf32>
    %163 = vector.shape_cast %162 : vector<1x28x8xf32> to vector<28x8xf32>
    %cst_185 = arith.constant dense<0.000000e+00> : vector<8x8xf32>
    %164 = tpu.matmul %152, %163, %cst_185 {dimension_numbers = #tpu.dot_dimension_numbers<[1], [0], [0], [1], [0, 0, 1, 1], [], []>} : vector<8x28xf32>, vector<28x8xf32>, vector<8x8xf32> -> vector<8x8xf32>
    %c4_186 = arith.constant 4 : index
    %c0_187 = arith.constant 0 : index
    %c0_188 = arith.constant 0 : index
    %165 = vector.load %arg18[%c4_186, %c0_187, %c0_188] : memref<9x28x8xf32, #tpu.memory_space<vmem>>, vector<1x28x8xf32>
    %166 = vector.shape_cast %165 : vector<1x28x8xf32> to vector<28x8xf32>
    %cst_189 = arith.constant dense<0.000000e+00> : vector<8x8xf32>
    %167 = tpu.matmul %152, %166, %cst_189 {dimension_numbers = #tpu.dot_dimension_numbers<[1], [0], [0], [1], [0, 0, 1, 1], [], []>} : vector<8x28xf32>, vector<28x8xf32>, vector<8x8xf32> -> vector<8x8xf32>
    %c5_190 = arith.constant 5 : index
    %c0_191 = arith.constant 0 : index
    %c0_192 = arith.constant 0 : index
    %168 = vector.load %arg18[%c5_190, %c0_191, %c0_192] : memref<9x28x8xf32, #tpu.memory_space<vmem>>, vector<1x28x8xf32>
    %169 = vector.shape_cast %168 : vector<1x28x8xf32> to vector<28x8xf32>
    %cst_193 = arith.constant dense<0.000000e+00> : vector<8x8xf32>
    %170 = tpu.matmul %152, %169, %cst_193 {dimension_numbers = #tpu.dot_dimension_numbers<[1], [0], [0], [1], [0, 0, 1, 1], [], []>} : vector<8x28xf32>, vector<28x8xf32>, vector<8x8xf32> -> vector<8x8xf32>
    %c6_194 = arith.constant 6 : index
    %c0_195 = arith.constant 0 : index
    %c0_196 = arith.constant 0 : index
    %171 = vector.load %arg18[%c6_194, %c0_195, %c0_196] : memref<9x28x8xf32, #tpu.memory_space<vmem>>, vector<1x28x8xf32>
    %172 = vector.shape_cast %171 : vector<1x28x8xf32> to vector<28x8xf32>
    %cst_197 = arith.constant dense<0.000000e+00> : vector<8x8xf32>
    %173 = tpu.matmul %152, %172, %cst_197 {dimension_numbers = #tpu.dot_dimension_numbers<[1], [0], [0], [1], [0, 0, 1, 1], [], []>} : vector<8x28xf32>, vector<28x8xf32>, vector<8x8xf32> -> vector<8x8xf32>
    %c7_198 = arith.constant 7 : index
    %c0_199 = arith.constant 0 : index
    %c0_200 = arith.constant 0 : index
    %174 = vector.load %arg18[%c7_198, %c0_199, %c0_200] : memref<9x28x8xf32, #tpu.memory_space<vmem>>, vector<1x28x8xf32>
    %175 = vector.shape_cast %174 : vector<1x28x8xf32> to vector<28x8xf32>
    %cst_201 = arith.constant dense<0.000000e+00> : vector<8x8xf32>
    %176 = tpu.matmul %152, %175, %cst_201 {dimension_numbers = #tpu.dot_dimension_numbers<[1], [0], [0], [1], [0, 0, 1, 1], [], []>} : vector<8x28xf32>, vector<28x8xf32>, vector<8x8xf32> -> vector<8x8xf32>
    %c8_202 = arith.constant 8 : index
    %c0_203 = arith.constant 0 : index
    %c0_204 = arith.constant 0 : index
    %177 = vector.load %arg18[%c8_202, %c0_203, %c0_204] : memref<9x28x8xf32, #tpu.memory_space<vmem>>, vector<1x28x8xf32>
    %178 = vector.shape_cast %177 : vector<1x28x8xf32> to vector<28x8xf32>
    %cst_205 = arith.constant dense<0.000000e+00> : vector<8x8xf32>
    %179 = tpu.matmul %152, %178, %cst_205 {dimension_numbers = #tpu.dot_dimension_numbers<[1], [0], [0], [1], [0, 0, 1, 1], [], []>} : vector<8x28xf32>, vector<28x8xf32>, vector<8x8xf32> -> vector<8x8xf32>
    %180 = tpu.concatenate %155, %158, %161, %164, %167, %170, %173, %176, %179 in 0 : vector<8x8xf32>, vector<8x8xf32>, vector<8x8xf32>, vector<8x8xf32>, vector<8x8xf32>, vector<8x8xf32>, vector<8x8xf32>, vector<8x8xf32>, vector<8x8xf32> -> vector<72x8xf32>
    %c0_206 = arith.constant 0 : index
    %c0_207 = arith.constant 0 : index
    %181 = vector.load %arg19[%c0_206, %c0_207] : memref<8x72xf32, #tpu.memory_space<vmem>>, vector<8x72xf32>
    %cst_208 = arith.constant dense<0.000000e+00> : vector<8x8xf32>
    %182 = tpu.matmul %181, %180, %cst_208 {dimension_numbers = #tpu.dot_dimension_numbers<[1], [0], [0], [1], [0, 0, 1, 1], [], []>} : vector<8x72xf32>, vector<72x8xf32>, vector<8x8xf32> -> vector<8x8xf32>
    %c0_209 = arith.constant 0 : index
    %c0_210 = arith.constant 0 : index
    %183 = vector.load %arg20[%c0_209, %c0_210] : memref<8x1xf32, #tpu.memory_space<vmem>>, vector<8x1xf32>
    %184 = vector.broadcast %183 : vector<8x1xf32> to vector<8x8xf32>
    %185 = arith.addf %182, %184 : vector<8x8xf32>
    %cst_211 = arith.constant 0.000000e+00 : f32
    %186 = vector.broadcast %cst_211 : f32 to vector<8x8xf32>
    %187 = arith.maximumf %185, %186 : vector<8x8xf32>
    %c0_212 = arith.constant 0 : index
    %c0_213 = arith.constant 0 : index
    %188 = vector.load %arg21[%c0_212, %c0_213] : memref<8x72xf32, #tpu.memory_space<vmem>>, vector<8x72xf32>
    %cst_214 = arith.constant dense<0.000000e+00> : vector<8x8xf32>
    %189 = tpu.matmul %188, %180, %cst_214 {dimension_numbers = #tpu.dot_dimension_numbers<[1], [0], [0], [1], [0, 0, 1, 1], [], []>} : vector<8x72xf32>, vector<72x8xf32>, vector<8x8xf32> -> vector<8x8xf32>
    %c0_215 = arith.constant 0 : index
    %c0_216 = arith.constant 0 : index
    %190 = vector.load %arg22[%c0_215, %c0_216] : memref<8x1xf32, #tpu.memory_space<vmem>>, vector<8x1xf32>
    %191 = vector.broadcast %190 : vector<8x1xf32> to vector<8x8xf32>
    %192 = arith.addf %189, %191 : vector<8x8xf32>
    %c0_217 = arith.constant 0 : index
    %c0_218 = arith.constant 0 : index
    %c0_219 = arith.constant 0 : index
    %193 = vector.load %arg23[%c0_217, %c0_218, %c0_219] : memref<9x8x8xf32, #tpu.memory_space<vmem>>, vector<1x8x8xf32>
    %194 = vector.shape_cast %193 : vector<1x8x8xf32> to vector<8x8xf32>
    %cst_220 = arith.constant dense<0.000000e+00> : vector<8x8xf32>
    %195 = tpu.matmul %187, %194, %cst_220 {dimension_numbers = #tpu.dot_dimension_numbers<[1], [0], [0], [1], [0, 0, 1, 1], [], []>} : vector<8x8xf32>, vector<8x8xf32>, vector<8x8xf32> -> vector<8x8xf32>
    %c1_221 = arith.constant 1 : index
    %c0_222 = arith.constant 0 : index
    %c0_223 = arith.constant 0 : index
    %196 = vector.load %arg23[%c1_221, %c0_222, %c0_223] : memref<9x8x8xf32, #tpu.memory_space<vmem>>, vector<1x8x8xf32>
    %197 = vector.shape_cast %196 : vector<1x8x8xf32> to vector<8x8xf32>
    %cst_224 = arith.constant dense<0.000000e+00> : vector<8x8xf32>
    %198 = tpu.matmul %187, %197, %cst_224 {dimension_numbers = #tpu.dot_dimension_numbers<[1], [0], [0], [1], [0, 0, 1, 1], [], []>} : vector<8x8xf32>, vector<8x8xf32>, vector<8x8xf32> -> vector<8x8xf32>
    %c2_225 = arith.constant 2 : index
    %c0_226 = arith.constant 0 : index
    %c0_227 = arith.constant 0 : index
    %199 = vector.load %arg23[%c2_225, %c0_226, %c0_227] : memref<9x8x8xf32, #tpu.memory_space<vmem>>, vector<1x8x8xf32>
    %200 = vector.shape_cast %199 : vector<1x8x8xf32> to vector<8x8xf32>
    %cst_228 = arith.constant dense<0.000000e+00> : vector<8x8xf32>
    %201 = tpu.matmul %187, %200, %cst_228 {dimension_numbers = #tpu.dot_dimension_numbers<[1], [0], [0], [1], [0, 0, 1, 1], [], []>} : vector<8x8xf32>, vector<8x8xf32>, vector<8x8xf32> -> vector<8x8xf32>
    %c3_229 = arith.constant 3 : index
    %c0_230 = arith.constant 0 : index
    %c0_231 = arith.constant 0 : index
    %202 = vector.load %arg23[%c3_229, %c0_230, %c0_231] : memref<9x8x8xf32, #tpu.memory_space<vmem>>, vector<1x8x8xf32>
    %203 = vector.shape_cast %202 : vector<1x8x8xf32> to vector<8x8xf32>
    %cst_232 = arith.constant dense<0.000000e+00> : vector<8x8xf32>
    %204 = tpu.matmul %187, %203, %cst_232 {dimension_numbers = #tpu.dot_dimension_numbers<[1], [0], [0], [1], [0, 0, 1, 1], [], []>} : vector<8x8xf32>, vector<8x8xf32>, vector<8x8xf32> -> vector<8x8xf32>
    %c4_233 = arith.constant 4 : index
    %c0_234 = arith.constant 0 : index
    %c0_235 = arith.constant 0 : index
    %205 = vector.load %arg23[%c4_233, %c0_234, %c0_235] : memref<9x8x8xf32, #tpu.memory_space<vmem>>, vector<1x8x8xf32>
    %206 = vector.shape_cast %205 : vector<1x8x8xf32> to vector<8x8xf32>
    %cst_236 = arith.constant dense<0.000000e+00> : vector<8x8xf32>
    %207 = tpu.matmul %187, %206, %cst_236 {dimension_numbers = #tpu.dot_dimension_numbers<[1], [0], [0], [1], [0, 0, 1, 1], [], []>} : vector<8x8xf32>, vector<8x8xf32>, vector<8x8xf32> -> vector<8x8xf32>
    %c5_237 = arith.constant 5 : index
    %c0_238 = arith.constant 0 : index
    %c0_239 = arith.constant 0 : index
    %208 = vector.load %arg23[%c5_237, %c0_238, %c0_239] : memref<9x8x8xf32, #tpu.memory_space<vmem>>, vector<1x8x8xf32>
    %209 = vector.shape_cast %208 : vector<1x8x8xf32> to vector<8x8xf32>
    %cst_240 = arith.constant dense<0.000000e+00> : vector<8x8xf32>
    %210 = tpu.matmul %187, %209, %cst_240 {dimension_numbers = #tpu.dot_dimension_numbers<[1], [0], [0], [1], [0, 0, 1, 1], [], []>} : vector<8x8xf32>, vector<8x8xf32>, vector<8x8xf32> -> vector<8x8xf32>
    %c6_241 = arith.constant 6 : index
    %c0_242 = arith.constant 0 : index
    %c0_243 = arith.constant 0 : index
    %211 = vector.load %arg23[%c6_241, %c0_242, %c0_243] : memref<9x8x8xf32, #tpu.memory_space<vmem>>, vector<1x8x8xf32>
    %212 = vector.shape_cast %211 : vector<1x8x8xf32> to vector<8x8xf32>
    %cst_244 = arith.constant dense<0.000000e+00> : vector<8x8xf32>
    %213 = tpu.matmul %187, %212, %cst_244 {dimension_numbers = #tpu.dot_dimension_numbers<[1], [0], [0], [1], [0, 0, 1, 1], [], []>} : vector<8x8xf32>, vector<8x8xf32>, vector<8x8xf32> -> vector<8x8xf32>
    %c7_245 = arith.constant 7 : index
    %c0_246 = arith.constant 0 : index
    %c0_247 = arith.constant 0 : index
    %214 = vector.load %arg23[%c7_245, %c0_246, %c0_247] : memref<9x8x8xf32, #tpu.memory_space<vmem>>, vector<1x8x8xf32>
    %215 = vector.shape_cast %214 : vector<1x8x8xf32> to vector<8x8xf32>
    %cst_248 = arith.constant dense<0.000000e+00> : vector<8x8xf32>
    %216 = tpu.matmul %187, %215, %cst_248 {dimension_numbers = #tpu.dot_dimension_numbers<[1], [0], [0], [1], [0, 0, 1, 1], [], []>} : vector<8x8xf32>, vector<8x8xf32>, vector<8x8xf32> -> vector<8x8xf32>
    %c8_249 = arith.constant 8 : index
    %c0_250 = arith.constant 0 : index
    %c0_251 = arith.constant 0 : index
    %217 = vector.load %arg23[%c8_249, %c0_250, %c0_251] : memref<9x8x8xf32, #tpu.memory_space<vmem>>, vector<1x8x8xf32>
    %218 = vector.shape_cast %217 : vector<1x8x8xf32> to vector<8x8xf32>
    %cst_252 = arith.constant dense<0.000000e+00> : vector<8x8xf32>
    %219 = tpu.matmul %187, %218, %cst_252 {dimension_numbers = #tpu.dot_dimension_numbers<[1], [0], [0], [1], [0, 0, 1, 1], [], []>} : vector<8x8xf32>, vector<8x8xf32>, vector<8x8xf32> -> vector<8x8xf32>
    %220 = tpu.concatenate %195, %198, %201, %204, %207, %210, %213, %216, %219 in 0 : vector<8x8xf32>, vector<8x8xf32>, vector<8x8xf32>, vector<8x8xf32>, vector<8x8xf32>, vector<8x8xf32>, vector<8x8xf32>, vector<8x8xf32>, vector<8x8xf32> -> vector<72x8xf32>
    %c0_253 = arith.constant 0 : index
    %c0_254 = arith.constant 0 : index
    %221 = vector.load %arg24[%c0_253, %c0_254] : memref<8x72xf32, #tpu.memory_space<vmem>>, vector<8x72xf32>
    %cst_255 = arith.constant dense<0.000000e+00> : vector<8x8xf32>
    %222 = tpu.matmul %221, %220, %cst_255 {dimension_numbers = #tpu.dot_dimension_numbers<[1], [0], [0], [1], [0, 0, 1, 1], [], []>} : vector<8x72xf32>, vector<72x8xf32>, vector<8x8xf32> -> vector<8x8xf32>
    %c0_256 = arith.constant 0 : index
    %c0_257 = arith.constant 0 : index
    %223 = vector.load %arg25[%c0_256, %c0_257] : memref<8x1xf32, #tpu.memory_space<vmem>>, vector<8x1xf32>
    %224 = vector.broadcast %223 : vector<8x1xf32> to vector<8x8xf32>
    %225 = arith.addf %222, %224 : vector<8x8xf32>
    %226 = arith.addf %225, %192 : vector<8x8xf32>
    %cst_258 = arith.constant 0.000000e+00 : f32
    %227 = vector.broadcast %cst_258 : f32 to vector<8x8xf32>
    %228 = arith.maximumf %226, %227 : vector<8x8xf32>
    %c0_259 = arith.constant 0 : index
    %c0_260 = arith.constant 0 : index
    %c0_261 = arith.constant 0 : index
    %229 = vector.load %arg26[%c0_259, %c0_260, %c0_261] : memref<9x8x4xf32, #tpu.memory_space<vmem>>, vector<1x8x4xf32>
    %230 = vector.shape_cast %229 : vector<1x8x4xf32> to vector<8x4xf32>
    %cst_262 = arith.constant dense<0.000000e+00> : vector<8x4xf32>
    %231 = tpu.matmul %228, %230, %cst_262 {dimension_numbers = #tpu.dot_dimension_numbers<[1], [0], [0], [1], [0, 0, 1, 1], [], []>} : vector<8x8xf32>, vector<8x4xf32>, vector<8x4xf32> -> vector<8x4xf32>
    %c1_263 = arith.constant 1 : index
    %c0_264 = arith.constant 0 : index
    %c0_265 = arith.constant 0 : index
    %232 = vector.load %arg26[%c1_263, %c0_264, %c0_265] : memref<9x8x4xf32, #tpu.memory_space<vmem>>, vector<1x8x4xf32>
    %233 = vector.shape_cast %232 : vector<1x8x4xf32> to vector<8x4xf32>
    %cst_266 = arith.constant dense<0.000000e+00> : vector<8x4xf32>
    %234 = tpu.matmul %228, %233, %cst_266 {dimension_numbers = #tpu.dot_dimension_numbers<[1], [0], [0], [1], [0, 0, 1, 1], [], []>} : vector<8x8xf32>, vector<8x4xf32>, vector<8x4xf32> -> vector<8x4xf32>
    %c2_267 = arith.constant 2 : index
    %c0_268 = arith.constant 0 : index
    %c0_269 = arith.constant 0 : index
    %235 = vector.load %arg26[%c2_267, %c0_268, %c0_269] : memref<9x8x4xf32, #tpu.memory_space<vmem>>, vector<1x8x4xf32>
    %236 = vector.shape_cast %235 : vector<1x8x4xf32> to vector<8x4xf32>
    %cst_270 = arith.constant dense<0.000000e+00> : vector<8x4xf32>
    %237 = tpu.matmul %228, %236, %cst_270 {dimension_numbers = #tpu.dot_dimension_numbers<[1], [0], [0], [1], [0, 0, 1, 1], [], []>} : vector<8x8xf32>, vector<8x4xf32>, vector<8x4xf32> -> vector<8x4xf32>
    %c3_271 = arith.constant 3 : index
    %c0_272 = arith.constant 0 : index
    %c0_273 = arith.constant 0 : index
    %238 = vector.load %arg26[%c3_271, %c0_272, %c0_273] : memref<9x8x4xf32, #tpu.memory_space<vmem>>, vector<1x8x4xf32>
    %239 = vector.shape_cast %238 : vector<1x8x4xf32> to vector<8x4xf32>
    %cst_274 = arith.constant dense<0.000000e+00> : vector<8x4xf32>
    %240 = tpu.matmul %228, %239, %cst_274 {dimension_numbers = #tpu.dot_dimension_numbers<[1], [0], [0], [1], [0, 0, 1, 1], [], []>} : vector<8x8xf32>, vector<8x4xf32>, vector<8x4xf32> -> vector<8x4xf32>
    %c4_275 = arith.constant 4 : index
    %c0_276 = arith.constant 0 : index
    %c0_277 = arith.constant 0 : index
    %241 = vector.load %arg26[%c4_275, %c0_276, %c0_277] : memref<9x8x4xf32, #tpu.memory_space<vmem>>, vector<1x8x4xf32>
    %242 = vector.shape_cast %241 : vector<1x8x4xf32> to vector<8x4xf32>
    %cst_278 = arith.constant dense<0.000000e+00> : vector<8x4xf32>
    %243 = tpu.matmul %228, %242, %cst_278 {dimension_numbers = #tpu.dot_dimension_numbers<[1], [0], [0], [1], [0, 0, 1, 1], [], []>} : vector<8x8xf32>, vector<8x4xf32>, vector<8x4xf32> -> vector<8x4xf32>
    %c5_279 = arith.constant 5 : index
    %c0_280 = arith.constant 0 : index
    %c0_281 = arith.constant 0 : index
    %244 = vector.load %arg26[%c5_279, %c0_280, %c0_281] : memref<9x8x4xf32, #tpu.memory_space<vmem>>, vector<1x8x4xf32>
    %245 = vector.shape_cast %244 : vector<1x8x4xf32> to vector<8x4xf32>
    %cst_282 = arith.constant dense<0.000000e+00> : vector<8x4xf32>
    %246 = tpu.matmul %228, %245, %cst_282 {dimension_numbers = #tpu.dot_dimension_numbers<[1], [0], [0], [1], [0, 0, 1, 1], [], []>} : vector<8x8xf32>, vector<8x4xf32>, vector<8x4xf32> -> vector<8x4xf32>
    %c6_283 = arith.constant 6 : index
    %c0_284 = arith.constant 0 : index
    %c0_285 = arith.constant 0 : index
    %247 = vector.load %arg26[%c6_283, %c0_284, %c0_285] : memref<9x8x4xf32, #tpu.memory_space<vmem>>, vector<1x8x4xf32>
    %248 = vector.shape_cast %247 : vector<1x8x4xf32> to vector<8x4xf32>
    %cst_286 = arith.constant dense<0.000000e+00> : vector<8x4xf32>
    %249 = tpu.matmul %228, %248, %cst_286 {dimension_numbers = #tpu.dot_dimension_numbers<[1], [0], [0], [1], [0, 0, 1, 1], [], []>} : vector<8x8xf32>, vector<8x4xf32>, vector<8x4xf32> -> vector<8x4xf32>
    %c7_287 = arith.constant 7 : index
    %c0_288 = arith.constant 0 : index
    %c0_289 = arith.constant 0 : index
    %250 = vector.load %arg26[%c7_287, %c0_288, %c0_289] : memref<9x8x4xf32, #tpu.memory_space<vmem>>, vector<1x8x4xf32>
    %251 = vector.shape_cast %250 : vector<1x8x4xf32> to vector<8x4xf32>
    %cst_290 = arith.constant dense<0.000000e+00> : vector<8x4xf32>
    %252 = tpu.matmul %228, %251, %cst_290 {dimension_numbers = #tpu.dot_dimension_numbers<[1], [0], [0], [1], [0, 0, 1, 1], [], []>} : vector<8x8xf32>, vector<8x4xf32>, vector<8x4xf32> -> vector<8x4xf32>
    %c8_291 = arith.constant 8 : index
    %c0_292 = arith.constant 0 : index
    %c0_293 = arith.constant 0 : index
    %253 = vector.load %arg26[%c8_291, %c0_292, %c0_293] : memref<9x8x4xf32, #tpu.memory_space<vmem>>, vector<1x8x4xf32>
    %254 = vector.shape_cast %253 : vector<1x8x4xf32> to vector<8x4xf32>
    %cst_294 = arith.constant dense<0.000000e+00> : vector<8x4xf32>
    %255 = tpu.matmul %228, %254, %cst_294 {dimension_numbers = #tpu.dot_dimension_numbers<[1], [0], [0], [1], [0, 0, 1, 1], [], []>} : vector<8x8xf32>, vector<8x4xf32>, vector<8x4xf32> -> vector<8x4xf32>
    %256 = tpu.concatenate %231, %234, %237, %240, %243, %246, %249, %252, %255 in 0 : vector<8x4xf32>, vector<8x4xf32>, vector<8x4xf32>, vector<8x4xf32>, vector<8x4xf32>, vector<8x4xf32>, vector<8x4xf32>, vector<8x4xf32>, vector<8x4xf32> -> vector<72x4xf32>
    %c0_295 = arith.constant 0 : index
    %c0_296 = arith.constant 0 : index
    %257 = vector.load %arg27[%c0_295, %c0_296] : memref<16x72xf32, #tpu.memory_space<vmem>>, vector<16x72xf32>
    %cst_297 = arith.constant dense<0.000000e+00> : vector<16x4xf32>
    %258 = tpu.matmul %257, %256, %cst_297 {dimension_numbers = #tpu.dot_dimension_numbers<[1], [0], [0], [1], [0, 0, 1, 1], [], []>} : vector<16x72xf32>, vector<72x4xf32>, vector<16x4xf32> -> vector<16x4xf32>
    %c0_298 = arith.constant 0 : index
    %c0_299 = arith.constant 0 : index
    %259 = vector.load %arg28[%c0_298, %c0_299] : memref<16x1xf32, #tpu.memory_space<vmem>>, vector<16x1xf32>
    %260 = vector.broadcast %259 : vector<16x1xf32> to vector<16x4xf32>
    %261 = arith.addf %258, %260 : vector<16x4xf32>
    %cst_300 = arith.constant 0.000000e+00 : f32
    %262 = vector.broadcast %cst_300 : f32 to vector<16x4xf32>
    %263 = arith.maximumf %261, %262 : vector<16x4xf32>
    %c0_301 = arith.constant 0 : index
    %c0_302 = arith.constant 0 : index
    %264 = vector.load %arg29[%c0_301, %c0_302] : memref<16x72xf32, #tpu.memory_space<vmem>>, vector<16x72xf32>
    %cst_303 = arith.constant dense<0.000000e+00> : vector<16x4xf32>
    %265 = tpu.matmul %264, %256, %cst_303 {dimension_numbers = #tpu.dot_dimension_numbers<[1], [0], [0], [1], [0, 0, 1, 1], [], []>} : vector<16x72xf32>, vector<72x4xf32>, vector<16x4xf32> -> vector<16x4xf32>
    %c0_304 = arith.constant 0 : index
    %c0_305 = arith.constant 0 : index
    %266 = vector.load %arg30[%c0_304, %c0_305] : memref<16x1xf32, #tpu.memory_space<vmem>>, vector<16x1xf32>
    %267 = vector.broadcast %266 : vector<16x1xf32> to vector<16x4xf32>
    %268 = arith.addf %265, %267 : vector<16x4xf32>
    %c0_306 = arith.constant 0 : index
    %c0_307 = arith.constant 0 : index
    %c0_308 = arith.constant 0 : index
    %269 = vector.load %arg31[%c0_306, %c0_307, %c0_308] : memref<9x4x4xf32, #tpu.memory_space<vmem>>, vector<1x4x4xf32>
    %270 = vector.shape_cast %269 : vector<1x4x4xf32> to vector<4x4xf32>
    %cst_309 = arith.constant dense<0.000000e+00> : vector<16x4xf32>
    %271 = tpu.matmul %263, %270, %cst_309 {dimension_numbers = #tpu.dot_dimension_numbers<[1], [0], [0], [1], [0, 0, 1, 1], [], []>} : vector<16x4xf32>, vector<4x4xf32>, vector<16x4xf32> -> vector<16x4xf32>
    %c1_310 = arith.constant 1 : index
    %c0_311 = arith.constant 0 : index
    %c0_312 = arith.constant 0 : index
    %272 = vector.load %arg31[%c1_310, %c0_311, %c0_312] : memref<9x4x4xf32, #tpu.memory_space<vmem>>, vector<1x4x4xf32>
    %273 = vector.shape_cast %272 : vector<1x4x4xf32> to vector<4x4xf32>
    %cst_313 = arith.constant dense<0.000000e+00> : vector<16x4xf32>
    %274 = tpu.matmul %263, %273, %cst_313 {dimension_numbers = #tpu.dot_dimension_numbers<[1], [0], [0], [1], [0, 0, 1, 1], [], []>} : vector<16x4xf32>, vector<4x4xf32>, vector<16x4xf32> -> vector<16x4xf32>
    %c2_314 = arith.constant 2 : index
    %c0_315 = arith.constant 0 : index
    %c0_316 = arith.constant 0 : index
    %275 = vector.load %arg31[%c2_314, %c0_315, %c0_316] : memref<9x4x4xf32, #tpu.memory_space<vmem>>, vector<1x4x4xf32>
    %276 = vector.shape_cast %275 : vector<1x4x4xf32> to vector<4x4xf32>
    %cst_317 = arith.constant dense<0.000000e+00> : vector<16x4xf32>
    %277 = tpu.matmul %263, %276, %cst_317 {dimension_numbers = #tpu.dot_dimension_numbers<[1], [0], [0], [1], [0, 0, 1, 1], [], []>} : vector<16x4xf32>, vector<4x4xf32>, vector<16x4xf32> -> vector<16x4xf32>
    %c3_318 = arith.constant 3 : index
    %c0_319 = arith.constant 0 : index
    %c0_320 = arith.constant 0 : index
    %278 = vector.load %arg31[%c3_318, %c0_319, %c0_320] : memref<9x4x4xf32, #tpu.memory_space<vmem>>, vector<1x4x4xf32>
    %279 = vector.shape_cast %278 : vector<1x4x4xf32> to vector<4x4xf32>
    %cst_321 = arith.constant dense<0.000000e+00> : vector<16x4xf32>
    %280 = tpu.matmul %263, %279, %cst_321 {dimension_numbers = #tpu.dot_dimension_numbers<[1], [0], [0], [1], [0, 0, 1, 1], [], []>} : vector<16x4xf32>, vector<4x4xf32>, vector<16x4xf32> -> vector<16x4xf32>
    %c4_322 = arith.constant 4 : index
    %c0_323 = arith.constant 0 : index
    %c0_324 = arith.constant 0 : index
    %281 = vector.load %arg31[%c4_322, %c0_323, %c0_324] : memref<9x4x4xf32, #tpu.memory_space<vmem>>, vector<1x4x4xf32>
    %282 = vector.shape_cast %281 : vector<1x4x4xf32> to vector<4x4xf32>
    %cst_325 = arith.constant dense<0.000000e+00> : vector<16x4xf32>
    %283 = tpu.matmul %263, %282, %cst_325 {dimension_numbers = #tpu.dot_dimension_numbers<[1], [0], [0], [1], [0, 0, 1, 1], [], []>} : vector<16x4xf32>, vector<4x4xf32>, vector<16x4xf32> -> vector<16x4xf32>
    %c5_326 = arith.constant 5 : index
    %c0_327 = arith.constant 0 : index
    %c0_328 = arith.constant 0 : index
    %284 = vector.load %arg31[%c5_326, %c0_327, %c0_328] : memref<9x4x4xf32, #tpu.memory_space<vmem>>, vector<1x4x4xf32>
    %285 = vector.shape_cast %284 : vector<1x4x4xf32> to vector<4x4xf32>
    %cst_329 = arith.constant dense<0.000000e+00> : vector<16x4xf32>
    %286 = tpu.matmul %263, %285, %cst_329 {dimension_numbers = #tpu.dot_dimension_numbers<[1], [0], [0], [1], [0, 0, 1, 1], [], []>} : vector<16x4xf32>, vector<4x4xf32>, vector<16x4xf32> -> vector<16x4xf32>
    %c6_330 = arith.constant 6 : index
    %c0_331 = arith.constant 0 : index
    %c0_332 = arith.constant 0 : index
    %287 = vector.load %arg31[%c6_330, %c0_331, %c0_332] : memref<9x4x4xf32, #tpu.memory_space<vmem>>, vector<1x4x4xf32>
    %288 = vector.shape_cast %287 : vector<1x4x4xf32> to vector<4x4xf32>
    %cst_333 = arith.constant dense<0.000000e+00> : vector<16x4xf32>
    %289 = tpu.matmul %263, %288, %cst_333 {dimension_numbers = #tpu.dot_dimension_numbers<[1], [0], [0], [1], [0, 0, 1, 1], [], []>} : vector<16x4xf32>, vector<4x4xf32>, vector<16x4xf32> -> vector<16x4xf32>
    %c7_334 = arith.constant 7 : index
    %c0_335 = arith.constant 0 : index
    %c0_336 = arith.constant 0 : index
    %290 = vector.load %arg31[%c7_334, %c0_335, %c0_336] : memref<9x4x4xf32, #tpu.memory_space<vmem>>, vector<1x4x4xf32>
    %291 = vector.shape_cast %290 : vector<1x4x4xf32> to vector<4x4xf32>
    %cst_337 = arith.constant dense<0.000000e+00> : vector<16x4xf32>
    %292 = tpu.matmul %263, %291, %cst_337 {dimension_numbers = #tpu.dot_dimension_numbers<[1], [0], [0], [1], [0, 0, 1, 1], [], []>} : vector<16x4xf32>, vector<4x4xf32>, vector<16x4xf32> -> vector<16x4xf32>
    %c8_338 = arith.constant 8 : index
    %c0_339 = arith.constant 0 : index
    %c0_340 = arith.constant 0 : index
    %293 = vector.load %arg31[%c8_338, %c0_339, %c0_340] : memref<9x4x4xf32, #tpu.memory_space<vmem>>, vector<1x4x4xf32>
    %294 = vector.shape_cast %293 : vector<1x4x4xf32> to vector<4x4xf32>
    %cst_341 = arith.constant dense<0.000000e+00> : vector<16x4xf32>
    %295 = tpu.matmul %263, %294, %cst_341 {dimension_numbers = #tpu.dot_dimension_numbers<[1], [0], [0], [1], [0, 0, 1, 1], [], []>} : vector<16x4xf32>, vector<4x4xf32>, vector<16x4xf32> -> vector<16x4xf32>
    %296 = tpu.concatenate %271, %274, %277, %280, %283, %286, %289, %292, %295 in 0 : vector<16x4xf32>, vector<16x4xf32>, vector<16x4xf32>, vector<16x4xf32>, vector<16x4xf32>, vector<16x4xf32>, vector<16x4xf32>, vector<16x4xf32>, vector<16x4xf32> -> vector<144x4xf32>
    %c0_342 = arith.constant 0 : index
    %c0_343 = arith.constant 0 : index
    %297 = vector.load %arg32[%c0_342, %c0_343] : memref<16x144xf32, #tpu.memory_space<vmem>>, vector<16x144xf32>
    %cst_344 = arith.constant dense<0.000000e+00> : vector<16x4xf32>
    %298 = tpu.matmul %297, %296, %cst_344 {dimension_numbers = #tpu.dot_dimension_numbers<[1], [0], [0], [1], [0, 0, 1, 1], [], []>} : vector<16x144xf32>, vector<144x4xf32>, vector<16x4xf32> -> vector<16x4xf32>
    %c0_345 = arith.constant 0 : index
    %c0_346 = arith.constant 0 : index
    %299 = vector.load %arg33[%c0_345, %c0_346] : memref<16x1xf32, #tpu.memory_space<vmem>>, vector<16x1xf32>
    %300 = vector.broadcast %299 : vector<16x1xf32> to vector<16x4xf32>
    %301 = arith.addf %298, %300 : vector<16x4xf32>
    %302 = arith.addf %301, %268 : vector<16x4xf32>
    %cst_347 = arith.constant 0.000000e+00 : f32
    %303 = vector.broadcast %cst_347 : f32 to vector<16x4xf32>
    %304 = arith.maximumf %302, %303 : vector<16x4xf32>
    %305 = tpu.iota {dimensions = array<i32: 1>} : vector<16x4xi32>
    %cst_348 = arith.constant 0.000000e+00 : f32
    %306 = vector.broadcast %cst_348 : f32 to vector<16x2xf32>
    %c0_i32 = arith.constant 0 : i32
    %307 = vector.broadcast %c0_i32 : i32 to vector<16x4xi32>
    %308 = arith.cmpi sge, %305, %307 : vector<16x4xi32>
    %c2_i32 = arith.constant 2 : i32
    %309 = vector.broadcast %c2_i32 : i32 to vector<16x4xi32>
    %310 = arith.cmpi slt, %305, %309 : vector<16x4xi32>
    %311 = arith.andi %308, %310 : vector<16x4xi1>
    %cst_349 = arith.constant 0xFF800000 : f32
    %312 = vector.broadcast %cst_349 : f32 to vector<16x4xf32>
    %313 = arith.select %311, %304, %312 : vector<16x4xi1>, vector<16x4xf32>
    %cst_350 = arith.constant dense<0xFF800000> : vector<16xf32>
    %314 = vector.multi_reduction <maximumf>, %313, %cst_350 [1] : vector<16x4xf32> to vector<16xf32>
    %315 = vector.shape_cast %314 : vector<16xf32> to vector<16x1xf32>
    %316 = tpu.iota {dimensions = array<i32: 1>} : vector<1x2xi32>
    %c0_i32_351 = arith.constant 0 : i32
    %317 = vector.broadcast %c0_i32_351 : i32 to vector<1x2xi32>
    %318 = arith.cmpi eq, %316, %317 : vector<1x2xi32>
    %319 = arith.extui %318 : vector<1x2xi1> to vector<1x2xi32>
    %320 = arith.sitofp %319 : vector<1x2xi32> to vector<1x2xf32>
    %321 = vector.broadcast %315 : vector<16x1xf32> to vector<16x2xf32>
    %322 = vector.broadcast %320 : vector<1x2xf32> to vector<16x2xf32>
    %323 = arith.mulf %321, %322 : vector<16x2xf32>
    %324 = arith.addf %306, %323 : vector<16x2xf32>
    %c2_i32_352 = arith.constant 2 : i32
    %325 = vector.broadcast %c2_i32_352 : i32 to vector<16x4xi32>
    %326 = arith.cmpi sge, %305, %325 : vector<16x4xi32>
    %c4_i32 = arith.constant 4 : i32
    %327 = vector.broadcast %c4_i32 : i32 to vector<16x4xi32>
    %328 = arith.cmpi slt, %305, %327 : vector<16x4xi32>
    %329 = arith.andi %326, %328 : vector<16x4xi1>
    %cst_353 = arith.constant 0xFF800000 : f32
    %330 = vector.broadcast %cst_353 : f32 to vector<16x4xf32>
    %331 = arith.select %329, %304, %330 : vector<16x4xi1>, vector<16x4xf32>
    %cst_354 = arith.constant dense<0xFF800000> : vector<16xf32>
    %332 = vector.multi_reduction <maximumf>, %331, %cst_354 [1] : vector<16x4xf32> to vector<16xf32>
    %333 = vector.shape_cast %332 : vector<16xf32> to vector<16x1xf32>
    %334 = tpu.iota {dimensions = array<i32: 1>} : vector<1x2xi32>
    %c1_i32 = arith.constant 1 : i32
    %335 = vector.broadcast %c1_i32 : i32 to vector<1x2xi32>
    %336 = arith.cmpi eq, %334, %335 : vector<1x2xi32>
    %337 = arith.extui %336 : vector<1x2xi1> to vector<1x2xi32>
    %338 = arith.sitofp %337 : vector<1x2xi32> to vector<1x2xf32>
    %339 = vector.broadcast %333 : vector<16x1xf32> to vector<16x2xf32>
    %340 = vector.broadcast %338 : vector<1x2xf32> to vector<16x2xf32>
    %341 = arith.mulf %339, %340 : vector<16x2xf32>
    %342 = arith.addf %324, %341 : vector<16x2xf32>
    %c0_355 = arith.constant 0 : index
    %c0_356 = arith.constant 0 : index
    %343 = vector.load %arg34[%c0_355, %c0_356] : memref<16x16xf32, #tpu.memory_space<vmem>>, vector<16x16xf32>
    %cst_357 = arith.constant dense<0.000000e+00> : vector<16x2xf32>
    %344 = tpu.matmul %343, %342, %cst_357 {dimension_numbers = #tpu.dot_dimension_numbers<[1], [0], [0], [1], [0, 0, 1, 1], [], []>} : vector<16x16xf32>, vector<16x2xf32>, vector<16x2xf32> -> vector<16x2xf32>
    %c0_358 = arith.constant 0 : index
    %c0_359 = arith.constant 0 : index
    %345 = vector.load %arg35[%c0_358, %c0_359] : memref<16x1xf32, #tpu.memory_space<vmem>>, vector<16x1xf32>
    %346 = vector.broadcast %345 : vector<16x1xf32> to vector<16x2xf32>
    %347 = arith.addf %344, %346 : vector<16x2xf32>
    %cst_360 = arith.constant 0.000000e+00 : f32
    %348 = vector.broadcast %cst_360 : f32 to vector<16x2xf32>
    %349 = arith.maximumf %347, %348 : vector<16x2xf32>
    %c0_361 = arith.constant 0 : index
    %c0_362 = arith.constant 0 : index
    %350 = vector.load %arg36[%c0_361, %c0_362] : memref<10x16xf32, #tpu.memory_space<vmem>>, vector<10x16xf32>
    %cst_363 = arith.constant dense<0.000000e+00> : vector<10x2xf32>
    %351 = tpu.matmul %350, %349, %cst_363 {dimension_numbers = #tpu.dot_dimension_numbers<[1], [0], [0], [1], [0, 0, 1, 1], [], []>} : vector<10x16xf32>, vector<16x2xf32>, vector<10x2xf32> -> vector<10x2xf32>
    %c0_364 = arith.constant 0 : index
    %c0_365 = arith.constant 0 : index
    %352 = vector.load %arg37[%c0_364, %c0_365] : memref<10x1xf32, #tpu.memory_space<vmem>>, vector<10x1xf32>
    %353 = vector.broadcast %352 : vector<10x1xf32> to vector<10x2xf32>
    %354 = arith.addf %351, %353 : vector<10x2xf32>
    %cst_366 = arith.constant 5.000000e-01 : f32
    %355 = vector.broadcast %cst_366 : f32 to vector<10x2xf32>
    %356 = arith.mulf %355, %354 : vector<10x2xf32>
    %357 = math.tanh %356 : vector<10x2xf32>
    %cst_367 = arith.constant 1.000000e+00 : f32
    %358 = vector.broadcast %cst_367 : f32 to vector<10x2xf32>
    %359 = arith.addf %357, %358 : vector<10x2xf32>
    %cst_368 = arith.constant 5.000000e-01 : f32
    %360 = vector.broadcast %cst_368 : f32 to vector<10x2xf32>
    %361 = arith.mulf %360, %359 : vector<10x2xf32>
    %c0_369 = arith.constant 0 : index
    %c0_370 = arith.constant 0 : index
    %362 = vector.load %arg38[%c0_369, %c0_370] : memref<10x2xf32, #tpu.memory_space<vmem>>, vector<10x2xf32>
    tpu.vector_store %arg38[%c0_369, %c0_370], %361 {strides = array<i32>} : memref<10x2xf32, #tpu.memory_space<vmem>>, vector<10x2xf32>,
    return
  }
  func.func @transform_0(%arg0: i32) -> (i32, i32) {
    %c0_i32 = arith.constant 0 : i32
    %c0_i32_0 = arith.constant 0 : i32
    %c0_i32_1 = arith.constant 0 : i32
    return %c0_i32, %c0_i32_0 : i32, i32
  }
  func.func @transform_1(%arg0: i32) -> (i32, i32, i32) {
    %c0_i32 = arith.constant 0 : i32
    %c0_i32_0 = arith.constant 0 : i32
    %c0_i32_1 = arith.constant 0 : i32
    %c0_i32_2 = arith.constant 0 : i32
    return %c0_i32, %c0_i32_0, %c0_i32_1 : i32, i32, i32
  }
  func.func @transform_2(%arg0: i32) -> (i32, i32) {
    %c0_i32 = arith.constant 0 : i32
    %c0_i32_0 = arith.constant 0 : i32
    %c0_i32_1 = arith.constant 0 : i32
    return %c0_i32, %c0_i32_0 : i32, i32
  }
  func.func @transform_3(%arg0: i32) -> (i32, i32) {
    %c0_i32 = arith.constant 0 : i32
    %c0_i32_0 = arith.constant 0 : i32
    %c0_i32_1 = arith.constant 0 : i32
    return %c0_i32, %c0_i32_0 : i32, i32
  }
  func.func @transform_4(%arg0: i32) -> (i32, i32) {
    %c0_i32 = arith.constant 0 : i32
    %c0_i32_0 = arith.constant 0 : i32
    %c0_i32_1 = arith.constant 0 : i32
    return %c0_i32, %c0_i32_0 : i32, i32
  }
  func.func @transform_5(%arg0: i32) -> (i32, i32) {
    %c0_i32 = arith.constant 0 : i32
    %c0_i32_0 = arith.constant 0 : i32
    %c0_i32_1 = arith.constant 0 : i32
    return %c0_i32, %c0_i32_0 : i32, i32
  }
  func.func @transform_6(%arg0: i32) -> (i32, i32, i32) {
    %c0_i32 = arith.constant 0 : i32
    %c0_i32_0 = arith.constant 0 : i32
    %c0_i32_1 = arith.constant 0 : i32
    %c0_i32_2 = arith.constant 0 : i32
    return %c0_i32, %c0_i32_0, %c0_i32_1 : i32, i32, i32
  }
  func.func @transform_7(%arg0: i32) -> (i32, i32) {
    %c0_i32 = arith.constant 0 : i32
    %c0_i32_0 = arith.constant 0 : i32
    %c0_i32_1 = arith.constant 0 : i32
    return %c0_i32, %c0_i32_0 : i32, i32
  }
  func.func @transform_8(%arg0: i32) -> (i32, i32) {
    %c0_i32 = arith.constant 0 : i32
    %c0_i32_0 = arith.constant 0 : i32
    %c0_i32_1 = arith.constant 0 : i32
    return %c0_i32, %c0_i32_0 : i32, i32
  }
  func.func @transform_9(%arg0: i32) -> (i32, i32, i32) {
    %c0_i32 = arith.constant 0 : i32
    %c0_i32_0 = arith.constant 0 : i32
    %c0_i32_1 = arith.constant 0 : i32
    %c0_i32_2 = arith.constant 0 : i32
    return %c0_i32, %c0_i32_0, %c0_i32_1 : i32, i32, i32
  }
  func.func @transform_10(%arg0: i32) -> (i32, i32) {
    %c0_i32 = arith.constant 0 : i32
    %c0_i32_0 = arith.constant 0 : i32
    %c0_i32_1 = arith.constant 0 : i32
    return %c0_i32, %c0_i32_0 : i32, i32
  }
  func.func @transform_11(%arg0: i32) -> (i32, i32) {
    %c0_i32 = arith.constant 0 : i32
    %c0_i32_0 = arith.constant 0 : i32
    %c0_i32_1 = arith.constant 0 : i32
    return %c0_i32, %c0_i32_0 : i32, i32
  }
  func.func @transform_12(%arg0: i32) -> (i32, i32) {
    %c0_i32 = arith.constant 0 : i32
    %c0_i32_0 = arith.constant 0 : i32
    %c0_i32_1 = arith.constant 0 : i32
    return %c0_i32, %c0_i32_0 : i32, i32
  }
  func.func @transform_13(%arg0: i32) -> (i32, i32) {
    %c0_i32 = arith.constant 0 : i32
    %c0_i32_0 = arith.constant 0 : i32
    %c0_i32_1 = arith.constant 0 : i32
    return %c0_i32, %c0_i32_0 : i32, i32
  }
  func.func @transform_14(%arg0: i32) -> (i32, i32, i32) {
    %c0_i32 = arith.constant 0 : i32
    %c0_i32_0 = arith.constant 0 : i32
    %c0_i32_1 = arith.constant 0 : i32
    %c0_i32_2 = arith.constant 0 : i32
    return %c0_i32, %c0_i32_0, %c0_i32_1 : i32, i32, i32
  }
  func.func @transform_15(%arg0: i32) -> (i32, i32) {
    %c0_i32 = arith.constant 0 : i32
    %c0_i32_0 = arith.constant 0 : i32
    %c0_i32_1 = arith.constant 0 : i32
    return %c0_i32, %c0_i32_0 : i32, i32
  }
  func.func @transform_16(%arg0: i32) -> (i32, i32) {
    %c0_i32 = arith.constant 0 : i32
    %c0_i32_0 = arith.constant 0 : i32
    %c0_i32_1 = arith.constant 0 : i32
    return %c0_i32, %c0_i32_0 : i32, i32
  }
  func.func @transform_17(%arg0: i32) -> (i32, i32, i32) {
    %c0_i32 = arith.constant 0 : i32
    %c0_i32_0 = arith.constant 0 : i32
    %c0_i32_1 = arith.constant 0 : i32
    %c0_i32_2 = arith.constant 0 : i32
    return %c0_i32, %c0_i32_0, %c0_i32_1 : i32, i32, i32
  }
  func.func @transform_18(%arg0: i32) -> (i32, i32) {
    %c0_i32 = arith.constant 0 : i32
    %c0_i32_0 = arith.constant 0 : i32
    %c0_i32_1 = arith.constant 0 : i32
    return %c0_i32, %c0_i32_0 : i32, i32
  }
  func.func @transform_19(%arg0: i32) -> (i32, i32) {
    %c0_i32 = arith.constant 0 : i32
    %c0_i32_0 = arith.constant 0 : i32
    %c0_i32_1 = arith.constant 0 : i32
    return %c0_i32, %c0_i32_0 : i32, i32
  }
  func.func @transform_20(%arg0: i32) -> (i32, i32) {
    %c0_i32 = arith.constant 0 : i32
    %c0_i32_0 = arith.constant 0 : i32
    %c0_i32_1 = arith.constant 0 : i32
    return %c0_i32, %c0_i32_0 : i32, i32
  }
  func.func @transform_21(%arg0: i32) -> (i32, i32) {
    %c0_i32 = arith.constant 0 : i32
    %c0_i32_0 = arith.constant 0 : i32
    %c0_i32_1 = arith.constant 0 : i32
    return %c0_i32, %c0_i32_0 : i32, i32
  }
  func.func @transform_22(%arg0: i32) -> (i32, i32, i32) {
    %c0_i32 = arith.constant 0 : i32
    %c0_i32_0 = arith.constant 0 : i32
    %c0_i32_1 = arith.constant 0 : i32
    %c0_i32_2 = arith.constant 0 : i32
    return %c0_i32, %c0_i32_0, %c0_i32_1 : i32, i32, i32
  }
  func.func @transform_23(%arg0: i32) -> (i32, i32) {
    %c0_i32 = arith.constant 0 : i32
    %c0_i32_0 = arith.constant 0 : i32
    %c0_i32_1 = arith.constant 0 : i32
    return %c0_i32, %c0_i32_0 : i32, i32
  }
  func.func @transform_24(%arg0: i32) -> (i32, i32) {
    %c0_i32 = arith.constant 0 : i32
    %c0_i32_0 = arith.constant 0 : i32
    %c0_i32_1 = arith.constant 0 : i32
    return %c0_i32, %c0_i32_0 : i32, i32
  }
  func.func @transform_25(%arg0: i32) -> (i32, i32, i32) {
    %c0_i32 = arith.constant 0 : i32
    %c0_i32_0 = arith.constant 0 : i32
    %c0_i32_1 = arith.constant 0 : i32
    %c0_i32_2 = arith.constant 0 : i32
    return %c0_i32, %c0_i32_0, %c0_i32_1 : i32, i32, i32
  }
  func.func @transform_26(%arg0: i32) -> (i32, i32) {
    %c0_i32 = arith.constant 0 : i32
    %c0_i32_0 = arith.constant 0 : i32
    %c0_i32_1 = arith.constant 0 : i32
    return %c0_i32, %c0_i32_0 : i32, i32
  }
  func.func @transform_27(%arg0: i32) -> (i32, i32) {
    %c0_i32 = arith.constant 0 : i32
    %c0_i32_0 = arith.constant 0 : i32
    %c0_i32_1 = arith.constant 0 : i32
    return %c0_i32, %c0_i32_0 : i32, i32
  }
  func.func @transform_28(%arg0: i32) -> (i32, i32) {
    %c0_i32 = arith.constant 0 : i32
    %c0_i32_0 = arith.constant 0 : i32
    %c0_i32_1 = arith.constant 0 : i32
    return %c0_i32, %c0_i32_0 : i32, i32
  }
  func.func @transform_29(%arg0: i32) -> (i32, i32) {
    %c0_i32 = arith.constant 0 : i32
    %c0_i32_0 = arith.constant 0 : i32
    %c0_i32_1 = arith.constant 0 : i32
    return %c0_i32, %c0_i32_0 : i32, i32
  }
  func.func @transform_30(%arg0: i32) -> (i32, i32, i32) {
    %c0_i32 = arith.constant 0 : i32
    %c0_i32_0 = arith.constant 0 : i32
    %c0_i32_1 = arith.constant 0 : i32
    %c0_i32_2 = arith.constant 0 : i32
    return %c0_i32, %c0_i32_0, %c0_i32_1 : i32, i32, i32
  }
  func.func @transform_31(%arg0: i32) -> (i32, i32) {
    %c0_i32 = arith.constant 0 : i32
    %c0_i32_0 = arith.constant 0 : i32
    %c0_i32_1 = arith.constant 0 : i32
    return %c0_i32, %c0_i32_0 : i32, i32
  }
  func.func @transform_32(%arg0: i32) -> (i32, i32) {
    %c0_i32 = arith.constant 0 : i32
    %c0_i32_0 = arith.constant 0 : i32
    %c0_i32_1 = arith.constant 0 : i32
    return %c0_i32, %c0_i32_0 : i32, i32
  }
  func.func @transform_33(%arg0: i32) -> (i32, i32) {
    %c0_i32 = arith.constant 0 : i32
    %c0_i32_0 = arith.constant 0 : i32
    %c0_i32_1 = arith.constant 0 : i32
    return %c0_i32, %c0_i32_0 : i32, i32
  }
  func.func @transform_34(%arg0: i32) -> (i32, i32) {
    %c0_i32 = arith.constant 0 : i32
    %c0_i32_0 = arith.constant 0 : i32
    %c0_i32_1 = arith.constant 0 : i32
    return %c0_i32, %c0_i32_0 : i32, i32
  }
  func.func @transform_35(%arg0: i32) -> (i32, i32) {
    %c0_i32 = arith.constant 0 : i32
    %c0_i32_0 = arith.constant 0 : i32
    %c0_i32_1 = arith.constant 0 : i32
    return %c0_i32, %c0_i32_0 : i32, i32
  }
  func.func @transform_36(%arg0: i32) -> (i32, i32) {
    %c0_i32 = arith.constant 0 : i32
    %c0_i32_0 = arith.constant 0 : i32
    %c0_i32_1 = arith.constant 0 : i32
    return %c0_i32, %c0_i32_0 : i32, i32
  }
  func.func @transform_37(%arg0: i32) -> (i32, i32) {
    %c0_i32 = arith.constant 0 : i32
    %c0_i32_0 = arith.constant 0 : i32
    %c0_i32_1 = arith.constant 0 : i32
    return %c0_i32, %c0_i32_0 : i32, i32
  }
}

</mosaic_0001>

<bundles_post_ra>
// kernel: _lambda_.8
= control target key start
LH: loop header
LB: loop body
LE: loop exit
PB: predicated region body
PF: predicated region fallthrough
CT: control target
= control target key end

     0   :  { %v1758_v3 = vmov 0.0   ;;  %vm1759_vm0 = vmmov 0   ;;  %s2582_s2 = inlined_call_operand.vmem [shape: f32[128,256], index: 2, kind: input, shape index: {}]   ;;  %s2583_s0 = inlined_call_operand.vmem [shape: f32[408,128], index: 0, kind: input, shape index: {}]   ;;  %s2584_s1 = inlined_call_operand.vmem [shape: f32[1,128], index: 1, kind: input, shape index: {}]   ;;  %s2585_s3 = inlined_call_operand.vmem [shape: f32[128,128], index: 3, kind: input, shape index: {}]   ;;  %s2586_s4 = inlined_call_operand.vmem [shape: f32[1,128], index: 4, kind: input, shape index: {}]   ;;  %s2587_s5 = inlined_call_operand.vmem [shape: f32[1,128], index: 5, kind: input, shape index: {}]   ;;  %s2588_s6 = inlined_call_operand.vmem [shape: f32[408,128], index: 6, kind: output, shape index: {}]  }
   0x1   :  { %v163_v0 = vld [vmem:[%s2582_s2 + $0xf8] sm:$0xff]  ;;  %v162_v1 = vld [vmem:[%s2582_s2 + $0xf0] sm:$0xff]  ;;  %v161_v2 = vld [vmem:[%s2582_s2 + $0xe8] sm:$0xff]  ;;  %228 = vmatprep.mubr.f32.mxu0 %v1758_v3  ;;  %1469 = vmatprep.subr.mxu1 %v1758_v3 }
   0x2   :  { %164 = vmatprep.subr.mxu0 %v163_v0  ;;  %v160_v4 = vld [vmem:[%s2582_s2 + $0xe0] sm:$0xff]  ;;  %v159_v5 = vld [vmem:[%s2582_s2 + $0xd8] sm:$0xff]  ;;  %v158_v6 = vld [vmem:[%s2582_s2 + $0xd0] sm:$0xff]  ;;  %1501 = vmatprep.mubr.msk.f32.mxu1 %vm1759_vm0, %v1758_v3 }
   0x3   :  { %165 = vmatpush1.msra.mxu0 %v162_v1  ;;  %v157_v7 = vld [vmem:[%s2582_s2 + $0xc8] sm:$0xff]  ;;  %v156_v8 = vld [vmem:[%s2582_s2 + $0xc0] sm:$0xff]  ;;  %v155_v9 = vld [vmem:[%s2582_s2 + $0xb8] sm:$0xff] }
   0x4   :  { %166 = vmatprep.subr.mxu0 %v161_v2  ;;  %v154_v10 = vld [vmem:[%s2582_s2 + $0xb0] sm:$0xff]  ;;  %v153_v11 = vld [vmem:[%s2582_s2 + $0xa8] sm:$0xff]  ;;  %v152_v12 = vld [vmem:[%s2582_s2 + $0xa0] sm:$0xff] }
   0x5   :  { %167 = vmatpush1.msra.mxu0 %v160_v4  ;;  %v151_v13 = vld [vmem:[%s2582_s2 + $0x98] sm:$0xff]  ;;  %v150_v14 = vld [vmem:[%s2582_s2 + $0x90] sm:$0xff]  ;;  %v149_v15 = vld [vmem:[%s2582_s2 + $0x88] sm:$0xff] }
   0x6   :  { %168 = vmatprep.subr.mxu0 %v159_v5  ;;  %v148_v16 = vld [vmem:[%s2582_s2 + $0x80] sm:$0xff]  ;;  %v147_v17 = vld [vmem:[%s2582_s2 + $0x78] sm:$0xff]  ;;  %v146_v18 = vld [vmem:[%s2582_s2 + $0x70] sm:$0xff] }
   0x7   :  { %169 = vmatpush1.msra.mxu0 %v158_v6  ;;  %v145_v19 = vld [vmem:[%s2582_s2 + $0x68] sm:$0xff]  ;;  %v144_v20 = vld [vmem:[%s2582_s2 + $0x60] sm:$0xff]  ;;  %v143_v21 = vld [vmem:[%s2582_s2 + $0x58] sm:$0xff] }
   0x8   :  { %170 = vmatprep.subr.mxu0 %v157_v7  ;;  %v142_v22 = vld [vmem:[%s2582_s2 + $0x50] sm:$0xff]  ;;  %v141_v23 = vld [vmem:[%s2582_s2 + $0x48] sm:$0xff]  ;;  %v140_v24 = vld [vmem:[%s2582_s2 + $0x40] sm:$0xff] }
   0x9   :  { %171 = vmatpush1.msra.mxu0 %v156_v8  ;;  %v139_v25 = vld [vmem:[%s2582_s2 + $0x38] sm:$0xff]  ;;  %v138_v26 = vld [vmem:[%s2582_s2 + $0x30] sm:$0xff]  ;;  %v137_v27 = vld [vmem:[%s2582_s2 + $0x28] sm:$0xff] }
   0xa   :  { %172 = vmatprep.subr.mxu0 %v155_v9  ;;  %v136_v28 = vld [vmem:[%s2582_s2 + $0x20] sm:$0xff]  ;;  %v135_v29 = vld [vmem:[%s2582_s2 + $0x18] sm:$0xff]  ;;  %v134_v32 = vld [vmem:[%s2582_s2 + $0x10] sm:$0xff] }
   0xb   :  { %173 = vmatpush1.msra.mxu0 %v154_v10  ;;  %v23_v30 = vld [vmem:[%s2583_s0] sm:$0xff]  ;;  %v133_v33 = vld [vmem:[%s2582_s2 + $0x8] sm:$0xff]  ;;  %v25_v38 = vld [vmem:[%s2583_s0 + $0x10] sm:$0xff] }
   0xc   :  { %174 = vmatprep.subr.mxu0 %v153_v11  ;;  %v1890_v31 = vld [vmem:[%s2584_s1] ss:$0 sm:$0xff]  ;;  %v24_v36 = vld [vmem:[%s2583_s0 + $0x8] sm:$0xff]  ;;  %v26_v40 = vld [vmem:[%s2583_s0 + $0x18] sm:$0xff] }
   0xd   :  { %175 = vmatpush1.msra.mxu0 %v152_v12  ;;  %v132_v34 = vld [vmem:[%s2582_s2] sm:$0xff]  ;;  %v81_v35 = vmul.f32 %v1890_v31, %v23_v30  ;;  %v82_v37 = vmul.f32 %v1890_v31, %v24_v36  ;;  %v83_v39 = vmul.f32 %v1890_v31, %v25_v38  ;;  %v84_v41 = vmul.f32 %v1890_v31, %v26_v40  ;;  %v28_v44 = vld [vmem:[%s2583_s0 + $0x28] sm:$0xff]  ;;  %v29_v46 = vld [vmem:[%s2583_s0 + $0x30] sm:$0xff] }
   0xe   :  { %176 = vmatprep.subr.mxu0 %v151_v13  ;;  %v27_v42 = vld [vmem:[%s2583_s0 + $0x20] sm:$0xff]  ;;  %v86_v45 = vmul.f32 %v1890_v31, %v28_v44  ;;  %v87_v47 = vmul.f32 %v1890_v31, %v29_v46  ;;  %v30_v48 = vld [vmem:[%s2583_s0 + $0x38] sm:$0xff]  ;;  %v32_v52 = vld [vmem:[%s2583_s0 + $0x48] sm:$0xff] }
   0xf   :  { %177 = vmatpush1.msra.mxu0 %v150_v14  ;;  %v85_v43 = vmul.f32 %v1890_v31, %v27_v42  ;;  %v88_v49 = vmul.f32 %v1890_v31, %v30_v48  ;;  %v31_v50 = vld [vmem:[%s2583_s0 + $0x40] sm:$0xff]  ;;  %v90_v53 = vmul.f32 %v1890_v31, %v32_v52  ;;  %v33_v54 = vld [vmem:[%s2583_s0 + $0x50] sm:$0xff]  ;;  %v34_v56 = vld [vmem:[%s2583_s0 + $0x58] sm:$0xff] }
  0x10   :  { %178 = vmatprep.subr.mxu0 %v149_v15  ;;  %v89_v51 = vmul.f32 %v1890_v31, %v31_v50  ;;  %v91_v55 = vmul.f32 %v1890_v31, %v33_v54  ;;  %v703_v57 = vld [vmem:[%s2585_s3 + $0x78] sm:$0xff]  ;;  %v92_v58 = vmul.f32 %v1890_v31, %v34_v56  ;;  %v702_v59 = vld [vmem:[%s2585_s3 + $0x70] sm:$0xff]  ;;  %v35_v60 = vld [vmem:[%s2583_s0 + $0x60] sm:$0xff] }
  0x11   :  { %179 = vmatpush1.msra.mxu0 %v148_v16  ;;  %1470 = vmatpush3.msra.mxu1 %v703_v57  ;;  %v701_v61 = vld [vmem:[%s2585_s3 + $0x68] sm:$0xff]  ;;  %v93_v62 = vmul.f32 %v1890_v31, %v35_v60  ;;  %v700_v63 = vld [vmem:[%s2585_s3 + $0x60] sm:$0xff]  ;;  %v699_v1 = vld [vmem:[%s2585_s3 + $0x58] sm:$0xff] }
  0x12   :  { %180 = vmatprep.subr.mxu0 %v147_v17  ;;  %1471 = vmatprep.subr.mxu1 %v1758_v3  ;;  %v36_v0 = vld [vmem:[%s2583_s0 + $0x68] sm:$0xff]  ;;  %v698_v4 = vld [vmem:[%s2585_s3 + $0x50] sm:$0xff]  ;;  %v696_v8 = vld [vmem:[%s2585_s3 + $0x40] sm:$0xff] }
  0x13   :  { %181 = vmatpush1.msra.mxu0 %v146_v18  ;;  %1472 = vmatpush3.msra.mxu1 %v702_v59  ;;  %v94_v2 = vmul.f32 %v1890_v31, %v36_v0  ;;  %v37_v5 = vld [vmem:[%s2583_s0 + $0x70] sm:$0xff]  ;;  %v697_v6 = vld [vmem:[%s2585_s3 + $0x48] sm:$0xff]  ;;  %v38_v9 = vld [vmem:[%s2583_s0 + $0x78] sm:$0xff] }
  0x14   :  { %182 = vmatprep.subr.mxu0 %v145_v19  ;;  %1473 = vmatprep.subr.mxu1 %v1758_v3  ;;  %v95_v7 = vmul.f32 %v1890_v31, %v37_v5  ;;  %v695_v10 = vld [vmem:[%s2585_s3 + $0x38] sm:$0xff]  ;;  %v96_v11 = vmul.f32 %v1890_v31, %v38_v9  ;;  %v694_v12 = vld [vmem:[%s2585_s3 + $0x30] sm:$0xff]  ;;  %v39_v13 = vld [vmem:[%s2583_s0 + $0x80] sm:$0xff] }
  0x15   :  { %183 = vmatpush1.msra.mxu0 %v144_v20  ;;  %1474 = vmatpush3.msra.mxu1 %v701_v61  ;;  %v693_v14 = vld [vmem:[%s2585_s3 + $0x28] sm:$0xff]  ;;  %v97_v15 = vmul.f32 %v1890_v31, %v39_v13  ;;  %v692_v16 = vld [vmem:[%s2585_s3 + $0x20] sm:$0xff]  ;;  %v691_v18 = vld [vmem:[%s2585_s3 + $0x18] sm:$0xff] }
  0x16   :  { %184 = vmatprep.subr.mxu0 %v143_v21  ;;  %1475 = vmatprep.subr.mxu1 %v1758_v3  ;;  %v40_v17 = vld [vmem:[%s2583_s0 + $0x88] sm:$0xff]  ;;  %v41_v20 = vld [vmem:[%s2583_s0 + $0x90] sm:$0xff]  ;;  %v47_v36 = vld [vmem:[%s2583_s0 + $0xc0] sm:$0xff] }
  0x17   :  { %185 = vmatpush1.msra.mxu0 %v142_v22  ;;  %1476 = vmatpush3.msra.mxu1 %v700_v63  ;;  %v98_v19 = vmul.f32 %v1890_v31, %v40_v17  ;;  %v690_v21 = vld [vmem:[%s2585_s3 + $0x10] sm:$0xff]  ;;  %v689_v22 = vld [vmem:[%s2585_s3 + $0x8] sm:$0xff]  ;;  %v50_v42 = vld [vmem:[%s2583_s0 + $0xd8] sm:$0xff] }
  0x18   :  { %186 = vmatprep.subr.mxu0 %v141_v23  ;;  %1477 = vmatprep.subr.mxu1 %v1758_v3  ;;  %v99_v23 = vmul.f32 %v1890_v31, %v41_v20  ;;  %v48_v38 = vld [vmem:[%s2583_s0 + $0xc8] sm:$0xff]  ;;  %v49_v40 = vld [vmem:[%s2583_s0 + $0xd0] sm:$0xff]  ;;  %v51_v44 = vld [vmem:[%s2583_s0 + $0xe0] sm:$0xff] }
  0x19   :  { %187 = vmatpush1.msra.mxu0 %v140_v24  ;;  %1478 = vmatpush3.msra.mxu1 %v699_v1  ;;  %v42_v24 = vld [vmem:[%s2583_s0 + $0x98] sm:$0xff]  ;;  %v52_v46 = vld [vmem:[%s2583_s0 + $0xe8] sm:$0xff]  ;;  %v53_v48 = vld [vmem:[%s2583_s0 + $0xf0] sm:$0xff] }
  0x1a   :  { %188 = vmatprep.subr.mxu0 %v139_v25  ;;  %1479 = vmatprep.subr.mxu1 %v1758_v3  ;;  %v688_v25 = vld [vmem:[%s2585_s3] sm:$0xff]  ;;  %v54_v50 = vld [vmem:[%s2583_s0 + $0xf8] sm:$0xff]  ;;  %v56_v54 = vld [vmem:[%s2583_s0 + $0x108] sm:$0xff] }
  0x1b   :  { %189 = vmatpush1.msra.mxu0 %v138_v26  ;;  %1480 = vmatpush3.msra.mxu1 %v698_v4  ;;  %v100_v26 = vmul.f32 %v1890_v31, %v42_v24  ;;  %v55_v52 = vld [vmem:[%s2583_s0 + $0x100] sm:$0xff]  ;;  %v57_v56 = vld [vmem:[%s2583_s0 + $0x110] sm:$0xff] }
  0x1c   :  { %190 = vmatprep.subr.mxu0 %v137_v27  ;;  %1481 = vmatprep.subr.mxu1 %v1758_v3  ;;  %v43_v27 = vld [vmem:[%s2583_s0 + $0xa0] sm:$0xff]  ;;  %v115_v57 = vmul.f32 %v1890_v31, %v57_v56  ;;  %v61_v0 = vld [vmem:[%s2583_s0 + $0x130] sm:$0xff] }
  0x1d   :  { %191 = vmatpush1.msra.mxu0 %v136_v28  ;;  %1482 = vmatpush3.msra.mxu1 %v697_v6  ;;  %v101_v28 = vmul.f32 %v1890_v31, %v43_v27  ;;  %v59_v60 = vld [vmem:[%s2583_s0 + $0x120] sm:$0xff]  ;;  %v119_v1 = vmul.f32 %v1890_v31, %v61_v0  ;;  %v65_v9 = vld [vmem:[%s2583_s0 + $0x150] sm:$0xff] }
  0x1e   :  { %192 = vmatprep.subr.mxu0 %v135_v29  ;;  %1483 = vmatprep.subr.mxu1 %v1758_v3  ;;  %v44_v29 = vld [vmem:[%s2583_s0 + $0xa8] sm:$0xff]  ;;  %v117_v61 = vmul.f32 %v1890_v31, %v59_v60  ;;  %v63_v5 = vld [vmem:[%s2583_s0 + $0x140] sm:$0xff]  ;;  %v69_v17 = vld [vmem:[%s2583_s0 + $0x170] sm:$0xff] }
  0x1f   :  { %193 = vmatpush1.msra.mxu0 %v134_v32  ;;  %1484 = vmatpush3.msra.mxu1 %v696_v8  ;;  %v102_v30 = vmul.f32 %v1890_v31, %v44_v29  ;;  %v45_v32 = vld [vmem:[%s2583_s0 + $0xb0] sm:$0xff]  ;;  %v121_v6 = vmul.f32 %v1890_v31, %v63_v5  ;;  %v67_v13 = vld [vmem:[%s2583_s0 + $0x160] sm:$0xff] }
  0x20   :  { %194 = vmatprep.subr.mxu0 %v133_v33  ;;  %1485 = vmatprep.subr.mxu1 %v1758_v3  ;;  %v103_v33 = vmul.f32 %v1890_v31, %v45_v32 }
  0x21   :  { %195 = vmatpush1.msra.mxu0 %v132_v34  ;;  %1486 = vmatpush3.msra.mxu1 %v695_v10  ;;  %v46_v34 = vld [vmem:[%s2583_s0 + $0xb8] sm:$0xff]  ;;  %v123_v10 = vmul.f32 %v1890_v31, %v65_v9 }
  0x22   :  { %229 = vmatmul.mubr.f32.vlgmr.msra.gmra.mxu0 %v81_v35  ;;  %1487 = vmatprep.subr.mxu1 %v1758_v3  ;;  %v104_v35 = vmul.f32 %v1890_v31, %v46_v34 }
  0x23   :  { %234 = vmatprep.mubr.f32.mxu0 %v1758_v3  ;;  %1488 = vmatpush3.msra.mxu1 %v694_v12 }
  0x24   :  { %1489 = vmatprep.subr.mxu1 %v1758_v3 }
  0x25   :  { %1490 = vmatpush3.msra.mxu1 %v693_v14  ;;  %v125_v14 = vmul.f32 %v1890_v31, %v67_v13 }
  0x26   :  { %235 = vmatmul.mubr.f32.gmra.mxu0 %v82_v37  ;;  %1491 = vmatprep.subr.mxu1 %v1758_v3  ;;  %v105_v37 = vmul.f32 %v1890_v31, %v47_v36 }
  0x27   :  { %240 = vmatprep.mubr.f32.mxu0 %v1758_v3  ;;  %1492 = vmatpush3.msra.mxu1 %v692_v16 }
  0x28   :  { %1493 = vmatprep.subr.mxu1 %v1758_v3 }
  0x29   :  { %1494 = vmatpush3.msra.mxu1 %v691_v18  ;;  %v127_v18 = vmul.f32 %v1890_v31, %v69_v17 }
  0x2a   :  { %241 = vmatmul.mubr.f32.gmra.mxu0 %v83_v39  ;;  %1495 = vmatprep.subr.mxu1 %v1758_v3  ;;  %v106_v39 = vmul.f32 %v1890_v31, %v48_v38 }
  0x2b   :  { %246 = vmatprep.mubr.f32.mxu0 %v1758_v3  ;;  %1496 = vmatpush3.msra.mxu1 %v690_v21  ;;  %v71_v21 = vld [vmem:[%s2583_s0 + $0x180] sm:$0xff] }
  0x2c   :  { %1497 = vmatprep.subr.mxu1 %v1758_v3 }
  0x2d   :  { %1498 = vmatpush3.msra.mxu1 %v689_v22  ;;  %v129_v22 = vmul.f32 %v1890_v31, %v71_v21 }
  0x2e   :  { %247 = vmatmul.mubr.f32.gmra.mxu0 %v84_v41  ;;  %1499 = vmatprep.subr.mxu1 %v1758_v3  ;;  %v107_v41 = vmul.f32 %v1890_v31, %v49_v40 }
  0x2f   :  { %252 = vmatprep.mubr.f32.mxu0 %v1758_v3  ;;  %1500 = vmatpush3.msra.mxu1 %v688_v25 }
  0x32   :  { %253 = vmatmul.mubr.f32.gmra.mxu0 %v85_v43  ;;  %v108_v43 = vmul.f32 %v1890_v31, %v50_v42 }
  0x33   :  { %258 = vmatprep.mubr.f32.mxu0 %v1758_v3 }
  0x36   :  { %259 = vmatmul.mubr.f32.gmra.mxu0 %v86_v45  ;;  %v109_v45 = vmul.f32 %v1890_v31, %v51_v44 }
  0x37   :  { %264 = vmatprep.mubr.f32.mxu0 %v1758_v3 }
  0x3a   :  { %265 = vmatmul.mubr.f32.gmra.mxu0 %v87_v47  ;;  %v110_v47 = vmul.f32 %v1890_v31, %v52_v46 }
  0x3b   :  { %270 = vmatprep.mubr.f32.mxu0 %v1758_v3 }
  0x3e   :  { %271 = vmatmul.mubr.f32.gmra.mxu0 %v88_v49  ;;  %v111_v49 = vmul.f32 %v1890_v31, %v53_v48 }
  0x3f   :  { %276 = vmatprep.mubr.f32.mxu0 %v1758_v3 }
  0x42   :  { %277 = vmatmul.mubr.f32.gmra.mxu0 %v89_v51  ;;  %v112_v51 = vmul.f32 %v1890_v31, %v54_v50 }
  0x43   :  { %282 = vmatprep.mubr.f32.mxu0 %v1758_v3 }
  0x46   :  { %283 = vmatmul.mubr.f32.gmra.mxu0 %v90_v53  ;;  %v113_v53 = vmul.f32 %v1890_v31, %v55_v52 }
  0x47   :  { %288 = vmatprep.mubr.f32.mxu0 %v1758_v3 }
  0x4a   :  { %289 = vmatmul.mubr.f32.gmra.mxu0 %v91_v55  ;;  %v114_v55 = vmul.f32 %v1890_v31, %v56_v54 }
  0x4b   :  { %294 = vmatprep.mubr.f32.mxu0 %v1758_v3 }
  0x4e   :  { %295 = vmatmul.mubr.f32.gmra.mxu0 %v92_v58  ;;  %v58_v58 = vld [vmem:[%s2583_s0 + $0x118] sm:$0xff] }
  0x4f   :  { %300 = vmatprep.mubr.f32.mxu0 %v1758_v3  ;;  %v116_v59 = vmul.f32 %v1890_v31, %v58_v58 }
  0x52   :  { %301 = vmatmul.mubr.f32.gmra.mxu0 %v93_v62  ;;  %v60_v62 = vld [vmem:[%s2583_s0 + $0x128] sm:$0xff] }
  0x53   :  { %306 = vmatprep.mubr.f32.mxu0 %v1758_v3  ;;  %v118_v63 = vmul.f32 %v1890_v31, %v60_v62 }
  0x56   :  { %307 = vmatmul.mubr.f32.gmra.mxu0 %v94_v2  ;;  %v62_v2 = vld [vmem:[%s2583_s0 + $0x138] sm:$0xff] }
  0x57   :  { %312 = vmatprep.mubr.f32.mxu0 %v1758_v3  ;;  %v120_v4 = vmul.f32 %v1890_v31, %v62_v2 }
  0x5a   :  { %313 = vmatmul.mubr.f32.gmra.mxu0 %v95_v7  ;;  %v64_v7 = vld [vmem:[%s2583_s0 + $0x148] sm:$0xff] }
  0x5b   :  { %318 = vmatprep.mubr.f32.mxu0 %v1758_v3  ;;  %v122_v8 = vmul.f32 %v1890_v31, %v64_v7 }
  0x5e   :  { %319 = vmatmul.mubr.f32.gmra.mxu0 %v96_v11  ;;  %v66_v11 = vld [vmem:[%s2583_s0 + $0x158] sm:$0xff] }
  0x5f   :  { %324 = vmatprep.mubr.f32.mxu0 %v1758_v3  ;;  %v124_v12 = vmul.f32 %v1890_v31, %v66_v11 }
  0x62   :  { %325 = vmatmul.mubr.f32.gmra.mxu0 %v97_v15  ;;  %v68_v15 = vld [vmem:[%s2583_s0 + $0x168] sm:$0xff] }
  0x63   :  { %330 = vmatprep.mubr.f32.mxu0 %v1758_v3  ;;  %v126_v16 = vmul.f32 %v1890_v31, %v68_v15 }
  0x66   :  { %331 = vmatmul.mubr.f32.gmra.mxu0 %v98_v19  ;;  %v70_v19 = vld [vmem:[%s2583_s0 + $0x178] sm:$0xff] }
  0x67   :  { %336 = vmatprep.mubr.f32.mxu0 %v1758_v3  ;;  %v128_v20 = vmul.f32 %v1890_v31, %v70_v19 }
  0x6a   :  { %337 = vmatmul.mubr.f32.gmra.mxu0 %v99_v23  ;;  %v72_v23 = vld [vmem:[%s2583_s0 + $0x188] sm:$0xff] }
  0x6b   :  { %342 = vmatprep.mubr.f32.mxu0 %v1758_v3  ;;  %v130_v25 = vmul.f32 %v1890_v31, %v72_v23 }
  0x6e   :  { %343 = vmatmul.mubr.f32.gmra.mxu0 %v100_v26  ;;  %v73_v26 = vld [vmem:[%s2583_s0 + $0x190] sm:$0xff] }
  0x6f   :  { %348 = vmatprep.mubr.f32.mxu0 %v1758_v3  ;;  %v131_v32 = vmul.f32 %v1890_v31, %v73_v26 }
  0x72   :  { %349 = vmatmul.mubr.f32.gmra.mxu0 %v101_v28 }
  0x73   :  { %354 = vmatprep.mubr.f32.mxu0 %v1758_v3 }
  0x76   :  { %355 = vmatmul.mubr.f32.gmra.mxu0 %v102_v30 }
  0x77   :  { %360 = vmatprep.mubr.f32.mxu0 %v1758_v3 }
  0x7a   :  { %361 = vmatmul.mubr.f32.gmra.mxu0 %v103_v33 }
  0x7b   :  { %366 = vmatprep.mubr.f32.mxu0 %v1758_v3 }
  0x7e   :  { %367 = vmatmul.mubr.f32.gmra.mxu0 %v104_v35 }
  0x7f   :  { %372 = vmatprep.mubr.f32.mxu0 %v1758_v3 }
  0x82   :  { %373 = vmatmul.mubr.f32.gmra.mxu0 %v105_v37 }
  0x83   :  { %378 = vmatprep.mubr.f32.mxu0 %v1758_v3 }
  0x86   :  { %379 = vmatmul.mubr.f32.gmra.mxu0 %v106_v39 }
  0x87   :  { %384 = vmatprep.mubr.f32.mxu0 %v1758_v3 }
  0x8a   :  { %385 = vmatmul.mubr.f32.gmra.mxu0 %v107_v41 }
  0x8b   :  { %390 = vmatprep.mubr.f32.mxu0 %v1758_v3 }
  0x8e   :  { %391 = vmatmul.mubr.f32.gmra.mxu0 %v108_v43 }
  0x8f   :  { %396 = vmatprep.mubr.f32.mxu0 %v1758_v3 }
  0x92   :  { %397 = vmatmul.mubr.f32.gmra.mxu0 %v109_v45 }
  0x93   :  { %402 = vmatprep.mubr.f32.mxu0 %v1758_v3 }
  0x96   :  { %403 = vmatmul.mubr.f32.gmra.mxu0 %v110_v47 }
  0x97   :  { %408 = vmatprep.mubr.f32.mxu0 %v1758_v3 }
  0x9a   :  { %409 = vmatmul.mubr.f32.gmra.mxu0 %v111_v49 }
  0x9b   :  { %414 = vmatprep.mubr.f32.mxu0 %v1758_v3 }
  0x9e   :  { %415 = vmatmul.mubr.f32.gmra.mxu0 %v112_v51 }
  0x9f   :  { %420 = vmatprep.mubr.f32.mxu0 %v1758_v3 }
  0xa2   :  { %421 = vmatmul.mubr.f32.gmra.mxu0 %v113_v53 }
  0xa3   :  { %426 = vmatprep.mubr.f32.mxu0 %v1758_v3 }
  0xa6   :  { %427 = vmatmul.mubr.f32.gmra.mxu0 %v114_v55 }
  0xa7   :  { %432 = vmatprep.mubr.f32.mxu0 %v1758_v3 }
  0xaa   :  { %433 = vmatmul.mubr.f32.gmra.mxu0 %v115_v57 }
  0xab   :  { %438 = vmatprep.mubr.f32.mxu0 %v1758_v3 }
  0xae   :  { %439 = vmatmul.mubr.f32.gmra.mxu0 %v116_v59 }
  0xaf   :  { %444 = vmatprep.mubr.f32.mxu0 %v1758_v3 }
  0xb2   :  { %445 = vmatmul.mubr.f32.gmra.mxu0 %v117_v61 }
  0xb3   :  { %450 = vmatprep.mubr.f32.mxu0 %v1758_v3 }
  0xb6   :  { %451 = vmatmul.mubr.f32.gmra.mxu0 %v118_v63 }
  0xb7   :  { %456 = vmatprep.mubr.f32.mxu0 %v1758_v3 }
  0xba   :  { %457 = vmatmul.mubr.f32.gmra.mxu0 %v119_v1 }
  0xbb   :  { %462 = vmatprep.mubr.f32.mxu0 %v1758_v3 }
  0xbe   :  { %463 = vmatmul.mubr.f32.gmra.mxu0 %v120_v4 }
  0xbf   :  { %468 = vmatprep.mubr.f32.mxu0 %v1758_v3 }
  0xc2   :  { %469 = vmatmul.mubr.f32.gmra.mxu0 %v121_v6 }
  0xc3   :  { %474 = vmatprep.mubr.f32.mxu0 %v1758_v3 }
  0xc6   :  { %475 = vmatmul.mubr.f32.gmra.mxu0 %v122_v8 }
  0xc7   :  { %480 = vmatprep.mubr.f32.mxu0 %v1758_v3 }
  0xca   :  { %481 = vmatmul.mubr.f32.gmra.mxu0 %v123_v10 }
  0xcb   :  { %486 = vmatprep.mubr.f32.mxu0 %v1758_v3 }
  0xce   :  { %487 = vmatmul.mubr.f32.gmra.mxu0 %v124_v12 }
  0xcf   :  { %492 = vmatprep.mubr.f32.mxu0 %v1758_v3 }
  0xd2   :  { %493 = vmatmul.mubr.f32.gmra.mxu0 %v125_v14 }
  0xd3   :  { %498 = vmatprep.mubr.f32.mxu0 %v1758_v3 }
  0xd6   :  { %499 = vmatmul.mubr.f32.gmra.mxu0 %v126_v16 }
  0xd7   :  { %504 = vmatprep.mubr.f32.mxu0 %v1758_v3 }
  0xda   :  { %505 = vmatmul.mubr.f32.gmra.mxu0 %v127_v18 }
  0xdb   :  { %510 = vmatprep.mubr.f32.mxu0 %v1758_v3 }
  0xde   :  { %511 = vmatmul.mubr.f32.gmra.mxu0 %v128_v20 }
  0xdf   :  { %516 = vmatprep.mubr.f32.mxu0 %v1758_v3 }
  0xe2   :  { %v230_v24 = vpop.f32.mrf.mxu0  ;;  %517 = vmatmul.mubr.f32.gmra.mxu0 %v129_v22 }
  0xe3   :  { %522 = vmatprep.mubr.f32.mxu0 %v1758_v3  ;;  %v535_v28 = vmul.f32 %v230_v24, %v230_v24 }
  0xe4   :  { %v232_v27 = vpop.f32.mrf.mxu0 }
  0xe5   :  { %v586_v29 = vmul.f32 %v232_v27, %v232_v27 }
  0xe6   :  { %v236_v30 = vpop.f32.mrf.mxu0  ;;  %523 = vmatmul.mubr.f32.gmra.mxu0 %v130_v25 }
  0xe7   :  { %v637_v33 = vadd.f32 %v586_v29, %v535_v28  ;;  %528 = vmatprep.mubr.f32.mxu0 %v1758_v3  ;;  %v536_v35 = vmul.f32 %v236_v30, %v236_v30 }
  0xe8   :  { %v238_v34 = vpop.f32.mrf.mxu0 }
  0xe9   :  { %v587_v36 = vmul.f32 %v238_v34, %v238_v34  ;;  %1502 = vmatmul.mubr.f32.vlgmr.msra.gmra.mxu1 %v637_v33 }
  0xea   :  { %v242_v37 = vpop.f32.mrf.mxu0  ;;  %529 = vmatmul.mubr.f32.gmra.mxu0 %v131_v32  ;;  %1504 = vmatprep.mubr.msk.f32.mxu1 %vm1759_vm0, %v1758_v3 }
  0xeb   :  { %v638_v38 = vadd.f32 %v587_v36, %v536_v35  ;;  %v537_v40 = vmul.f32 %v242_v37, %v242_v37 }
  0xec   :  { %v244_v39 = vpop.f32.mrf.mxu0 }
  0xed   :  { %v588_v41 = vmul.f32 %v244_v39, %v244_v39  ;;  %1505 = vmatmul.mubr.f32.gmra.mxu1 %v638_v38 }
  0xee   :  { %v248_v42 = vpop.f32.mrf.mxu0  ;;  %1507 = vmatprep.mubr.msk.f32.mxu1 %vm1759_vm0, %v1758_v3 }
  0xef   :  { %v639_v31 = vadd.f32 %v588_v41, %v537_v40  ;;  %v538_v44 = vmul.f32 %v248_v42, %v248_v42 }
  0xf0   :  { %v250_v43 = vpop.f32.mrf.mxu0 }
  0xf1   :  { %v589_v45 = vmul.f32 %v250_v43, %v250_v43  ;;  %1508 = vmatmul.mubr.f32.gmra.mxu1 %v639_v31 }
  0xf2   :  { %v254_v46 = vpop.f32.mrf.mxu0  ;;  %1510 = vmatprep.mubr.msk.f32.mxu1 %vm1759_vm0, %v1758_v3 }
  0xf3   :  { %v640_v47 = vadd.f32 %v589_v45, %v538_v44  ;;  %v539_v49 = vmul.f32 %v254_v46, %v254_v46 }
  0xf4   :  { %v256_v48 = vpop.f32.mrf.mxu0 }
  0xf5   :  { %v590_v50 = vmul.f32 %v256_v48, %v256_v48  ;;  %1511 = vmatmul.mubr.f32.gmra.mxu1 %v640_v47 }
  0xf6   :  { %v260_v51 = vpop.f32.mrf.mxu0  ;;  %1513 = vmatprep.mubr.msk.f32.mxu1 %vm1759_vm0, %v1758_v3 }
  0xf7   :  { %v641_v52 = vadd.f32 %v590_v50, %v539_v49  ;;  %v540_v54 = vmul.f32 %v260_v51, %v260_v51 }
  0xf8   :  { %v262_v53 = vpop.f32.mrf.mxu0 }
  0xf9   :  { %v591_v55 = vmul.f32 %v262_v53, %v262_v53  ;;  %1514 = vmatmul.mubr.f32.gmra.mxu1 %v641_v52 }
  0xfa   :  { %v266_v56 = vpop.f32.mrf.mxu0  ;;  %1516 = vmatprep.mubr.msk.f32.mxu1 %vm1759_vm0, %v1758_v3 }
  0xfb   :  { %v642_v57 = vadd.f32 %v591_v55, %v540_v54  ;;  %v541_v59 = vmul.f32 %v266_v56, %v266_v56 }
  0xfc   :  { %v268_v58 = vpop.f32.mrf.mxu0 }
  0xfd   :  { %v592_v60 = vmul.f32 %v268_v58, %v268_v58  ;;  %1517 = vmatmul.mubr.f32.gmra.mxu1 %v642_v57 }
  0xfe   :  { %v272_v61 = vpop.f32.mrf.mxu0  ;;  %1519 = vmatprep.mubr.msk.f32.mxu1 %vm1759_vm0, %v1758_v3 }
  0xff   :  { %v643_v62 = vadd.f32 %v592_v60, %v541_v59  ;;  %v542_v0 = vmul.f32 %v272_v61, %v272_v61 }
 0x100   :  { %v274_v63 = vpop.f32.mrf.mxu0 }
 0x101   :  { %v593_v1 = vmul.f32 %v274_v63, %v274_v63  ;;  %1520 = vmatmul.mubr.f32.gmra.mxu1 %v643_v62 }
 0x102   :  { %v278_v2 = vpop.f32.mrf.mxu0  ;;  %1522 = vmatprep.mubr.msk.f32.mxu1 %vm1759_vm0, %v1758_v3 }
 0x103   :  { %v644_v4 = vadd.f32 %v593_v1, %v542_v0  ;;  %v543_v6 = vmul.f32 %v278_v2, %v278_v2 }
 0x104   :  { %v280_v5 = vpop.f32.mrf.mxu0 }
 0x105   :  { %v594_v7 = vmul.f32 %v280_v5, %v280_v5  ;;  %1523 = vmatmul.mubr.f32.gmra.mxu1 %v644_v4 }
 0x106   :  { %v284_v8 = vpop.f32.mrf.mxu0  ;;  %1525 = vmatprep.mubr.msk.f32.mxu1 %vm1759_vm0, %v1758_v3 }
 0x107   :  { %v645_v9 = vadd.f32 %v594_v7, %v543_v6  ;;  %v544_v11 = vmul.f32 %v284_v8, %v284_v8 }
 0x108   :  { %v286_v10 = vpop.f32.mrf.mxu0 }
 0x109   :  { %v595_v12 = vmul.f32 %v286_v10, %v286_v10  ;;  %1526 = vmatmul.mubr.f32.gmra.mxu1 %v645_v9 }
 0x10a   :  { %v290_v13 = vpop.f32.mrf.mxu0  ;;  %1528 = vmatprep.mubr.msk.f32.mxu1 %vm1759_vm0, %v1758_v3 }
 0x10b   :  { %v646_v14 = vadd.f32 %v595_v12, %v544_v11  ;;  %v545_v16 = vmul.f32 %v290_v13, %v290_v13 }
 0x10c   :  { %v292_v15 = vpop.f32.mrf.mxu0 }
 0x10d   :  { %v596_v17 = vmul.f32 %v292_v15, %v292_v15  ;;  %1529 = vmatmul.mubr.f32.gmra.mxu1 %v646_v14 }
 0x10e   :  { %v296_v18 = vpop.f32.mrf.mxu0  ;;  %1531 = vmatprep.mubr.msk.f32.mxu1 %vm1759_vm0, %v1758_v3 }
 0x10f   :  { %v647_v19 = vadd.f32 %v596_v17, %v545_v16  ;;  %v546_v21 = vmul.f32 %v296_v18, %v296_v18 }
 0x110   :  { %v298_v20 = vpop.f32.mrf.mxu0 }
 0x111   :  { %v597_v22 = vmul.f32 %v298_v20, %v298_v20  ;;  %1532 = vmatmul.mubr.f32.gmra.mxu1 %v647_v19 }
 0x112   :  { %v302_v23 = vpop.f32.mrf.mxu0  ;;  %1534 = vmatprep.mubr.msk.f32.mxu1 %vm1759_vm0, %v1758_v3 }
 0x113   :  { %v648_v24 = vadd.f32 %v597_v22, %v546_v21  ;;  %v547_v26 = vmul.f32 %v302_v23, %v302_v23 }
 0x114   :  { %v304_v25 = vpop.f32.mrf.mxu0 }
 0x115   :  { %v598_v27 = vmul.f32 %v304_v25, %v304_v25  ;;  %1535 = vmatmul.mubr.f32.gmra.mxu1 %v648_v24 }
 0x116   :  { %v308_v28 = vpop.f32.mrf.mxu0  ;;  %1537 = vmatprep.mubr.msk.f32.mxu1 %vm1759_vm0, %v1758_v3 }
 0x117   :  { %v649_v29 = vadd.f32 %v598_v27, %v547_v26  ;;  %v548_v32 = vmul.f32 %v308_v28, %v308_v28 }
 0x118   :  { %v310_v30 = vpop.f32.mrf.mxu0 }
 0x119   :  { %v599_v33 = vmul.f32 %v310_v30, %v310_v30  ;;  %1538 = vmatmul.mubr.f32.gmra.mxu1 %v649_v29 }
 0x11a   :  { %v314_v34 = vpop.f32.mrf.mxu0  ;;  %1540 = vmatprep.mubr.msk.f32.mxu1 %vm1759_vm0, %v1758_v3 }
 0x11b   :  { %v650_v35 = vadd.f32 %v599_v33, %v548_v32  ;;  %v549_v37 = vmul.f32 %v314_v34, %v314_v34 }
 0x11c   :  { %v316_v36 = vpop.f32.mrf.mxu0 }
 0x11d   :  { %v600_v38 = vmul.f32 %v316_v36, %v316_v36  ;;  %1541 = vmatmul.mubr.f32.gmra.mxu1 %v650_v35 }
 0x11e   :  { %v320_v39 = vpop.f32.mrf.mxu0  ;;  %1543 = vmatprep.mubr.msk.f32.mxu1 %vm1759_vm0, %v1758_v3 }
 0x11f   :  { %v651_v40 = vadd.f32 %v600_v38, %v549_v37  ;;  %v550_v42 = vmul.f32 %v320_v39, %v320_v39 }
 0x120   :  { %v322_v41 = vpop.f32.mrf.mxu0 }
 0x121   :  { %v601_v31 = vmul.f32 %v322_v41, %v322_v41  ;;  %1544 = vmatmul.mubr.f32.gmra.mxu1 %v651_v40 }
 0x122   :  { %v326_v43 = vpop.f32.mrf.mxu0  ;;  %1546 = vmatprep.mubr.msk.f32.mxu1 %vm1759_vm0, %v1758_v3 }
 0x123   :  { %v652_v44 = vadd.f32 %v601_v31, %v550_v42  ;;  %v551_v46 = vmul.f32 %v326_v43, %v326_v43 }
 0x124   :  { %v328_v45 = vpop.f32.mrf.mxu0 }
 0x125   :  { %v602_v47 = vmul.f32 %v328_v45, %v328_v45  ;;  %1547 = vmatmul.mubr.f32.gmra.mxu1 %v652_v44 }
 0x126   :  { %v332_v48 = vpop.f32.mrf.mxu0  ;;  %1549 = vmatprep.mubr.msk.f32.mxu1 %vm1759_vm0, %v1758_v3 }
 0x127   :  { %v653_v49 = vadd.f32 %v602_v47, %v551_v46  ;;  %v552_v51 = vmul.f32 %v332_v48, %v332_v48 }
 0x128   :  { %v334_v50 = vpop.f32.mrf.mxu0 }
 0x129   :  { %v603_v52 = vmul.f32 %v334_v50, %v334_v50  ;;  %1550 = vmatmul.mubr.f32.gmra.mxu1 %v653_v49 }
 0x12a   :  { %v338_v53 = vpop.f32.mrf.mxu0  ;;  %1552 = vmatprep.mubr.msk.f32.mxu1 %vm1759_vm0, %v1758_v3 }
 0x12b   :  { %v654_v54 = vadd.f32 %v603_v52, %v552_v51  ;;  %v553_v56 = vmul.f32 %v338_v53, %v338_v53 }
 0x12c   :  { %v340_v55 = vpop.f32.mrf.mxu0 }
 0x12d   :  { %v604_v57 = vmul.f32 %v340_v55, %v340_v55  ;;  %1553 = vmatmul.mubr.f32.gmra.mxu1 %v654_v54 }
 0x12e   :  { %v344_v58 = vpop.f32.mrf.mxu0  ;;  %1555 = vmatprep.mubr.msk.f32.mxu1 %vm1759_vm0, %v1758_v3 }
 0x12f   :  { %v655_v59 = vadd.f32 %v604_v57, %v553_v56  ;;  %v554_v61 = vmul.f32 %v344_v58, %v344_v58 }
 0x130   :  { %v346_v60 = vpop.f32.mrf.mxu0 }
 0x131   :  { %v605_v62 = vmul.f32 %v346_v60, %v346_v60  ;;  %1556 = vmatmul.mubr.f32.gmra.mxu1 %v655_v59 }
 0x132   :  { %v350_v63 = vpop.f32.mrf.mxu0  ;;  %1558 = vmatprep.mubr.msk.f32.mxu1 %vm1759_vm0, %v1758_v3 }
 0x133   :  { %v656_v0 = vadd.f32 %v605_v62, %v554_v61  ;;  %v555_v2 = vmul.f32 %v350_v63, %v350_v63 }
 0x134   :  { %v352_v1 = vpop.f32.mrf.mxu0 }
 0x135   :  { %v606_v4 = vmul.f32 %v352_v1, %v352_v1  ;;  %1559 = vmatmul.mubr.f32.gmra.mxu1 %v656_v0 }
 0x136   :  { %v356_v5 = vpop.f32.mrf.mxu0  ;;  %1561 = vmatprep.mubr.msk.f32.mxu1 %vm1759_vm0, %v1758_v3 }
 0x137   :  { %v657_v6 = vadd.f32 %v606_v4, %v555_v2  ;;  %v556_v8 = vmul.f32 %v356_v5, %v356_v5 }
 0x138   :  { %v358_v7 = vpop.f32.mrf.mxu0 }
 0x139   :  { %v607_v9 = vmul.f32 %v358_v7, %v358_v7  ;;  %1562 = vmatmul.mubr.f32.gmra.mxu1 %v657_v6 }
 0x13a   :  { %v362_v10 = vpop.f32.mrf.mxu0  ;;  %1564 = vmatprep.mubr.msk.f32.mxu1 %vm1759_vm0, %v1758_v3 }
 0x13b   :  { %v658_v11 = vadd.f32 %v607_v9, %v556_v8  ;;  %v557_v13 = vmul.f32 %v362_v10, %v362_v10 }
 0x13c   :  { %v364_v12 = vpop.f32.mrf.mxu0 }
 0x13d   :  { %v608_v14 = vmul.f32 %v364_v12, %v364_v12  ;;  %1565 = vmatmul.mubr.f32.gmra.mxu1 %v658_v11 }
 0x13e   :  { %v368_v15 = vpop.f32.mrf.mxu0  ;;  %1567 = vmatprep.mubr.msk.f32.mxu1 %vm1759_vm0, %v1758_v3 }
 0x13f   :  { %v659_v16 = vadd.f32 %v608_v14, %v557_v13  ;;  %v558_v18 = vmul.f32 %v368_v15, %v368_v15 }
 0x140   :  { %v370_v17 = vpop.f32.mrf.mxu0 }
 0x141   :  { %v609_v19 = vmul.f32 %v370_v17, %v370_v17  ;;  %1568 = vmatmul.mubr.f32.gmra.mxu1 %v659_v16 }
 0x142   :  { %v374_v20 = vpop.f32.mrf.mxu0  ;;  %1570 = vmatprep.mubr.msk.f32.mxu1 %vm1759_vm0, %v1758_v3 }
 0x143   :  { %v660_v21 = vadd.f32 %v609_v19, %v558_v18  ;;  %v559_v23 = vmul.f32 %v374_v20, %v374_v20 }
 0x144   :  { %v376_v22 = vpop.f32.mrf.mxu0 }
 0x145   :  { %v610_v24 = vmul.f32 %v376_v22, %v376_v22  ;;  %1571 = vmatmul.mubr.f32.gmra.mxu1 %v660_v21 }
 0x146   :  { %v380_v25 = vpop.f32.mrf.mxu0  ;;  %1573 = vmatprep.mubr.msk.f32.mxu1 %vm1759_vm0, %v1758_v3 }
 0x147   :  { %v661_v26 = vadd.f32 %v610_v24, %v559_v23  ;;  %v560_v28 = vmul.f32 %v380_v25, %v380_v25 }
 0x148   :  { %v382_v27 = vpop.f32.mrf.mxu0 }
 0x149   :  { %v611_v29 = vmul.f32 %v382_v27, %v382_v27  ;;  %1574 = vmatmul.mubr.f32.gmra.mxu1 %v661_v26 }
 0x14a   :  { %v386_v30 = vpop.f32.mrf.mxu0  ;;  %1576 = vmatprep.mubr.msk.f32.mxu1 %vm1759_vm0, %v1758_v3 }
 0x14b   :  { %v662_v32 = vadd.f32 %v611_v29, %v560_v28  ;;  %v561_v34 = vmul.f32 %v386_v30, %v386_v30 }
 0x14c   :  { %v388_v33 = vpop.f32.mrf.mxu0 }
 0x14d   :  { %v612_v35 = vmul.f32 %v388_v33, %v388_v33  ;;  %1577 = vmatmul.mubr.f32.gmra.mxu1 %v662_v32 }
 0x14e   :  { %v392_v36 = vpop.f32.mrf.mxu0  ;;  %1579 = vmatprep.mubr.msk.f32.mxu1 %vm1759_vm0, %v1758_v3 }
 0x14f   :  { %v663_v37 = vadd.f32 %v612_v35, %v561_v34  ;;  %v562_v39 = vmul.f32 %v392_v36, %v392_v36 }
 0x150   :  { %v394_v38 = vpop.f32.mrf.mxu0 }
 0x151   :  { %v613_v40 = vmul.f32 %v394_v38, %v394_v38  ;;  %1580 = vmatmul.mubr.f32.gmra.mxu1 %v663_v37 }
 0x152   :  { %v398_v41 = vpop.f32.mrf.mxu0  ;;  %1582 = vmatprep.mubr.msk.f32.mxu1 %vm1759_vm0, %v1758_v3 }
 0x153   :  { %v664_v42 = vadd.f32 %v613_v40, %v562_v39  ;;  %v563_v43 = vmul.f32 %v398_v41, %v398_v41 }
 0x154   :  { %v400_v31 = vpop.f32.mrf.mxu0 }
 0x155   :  { %v614_v44 = vmul.f32 %v400_v31, %v400_v31  ;;  %1583 = vmatmul.mubr.f32.gmra.mxu1 %v664_v42 }
 0x156   :  { %v404_v45 = vpop.f32.mrf.mxu0  ;;  %1585 = vmatprep.mubr.msk.f32.mxu1 %vm1759_vm0, %v1758_v3 }
 0x157   :  { %v665_v46 = vadd.f32 %v614_v44, %v563_v43  ;;  %v564_v48 = vmul.f32 %v404_v45, %v404_v45 }
 0x158   :  { %v406_v47 = vpop.f32.mrf.mxu0 }
 0x159   :  { %v615_v49 = vmul.f32 %v406_v47, %v406_v47  ;;  %1586 = vmatmul.mubr.f32.gmra.mxu1 %v665_v46 }
 0x15a   :  { %v410_v50 = vpop.f32.mrf.mxu0  ;;  %1588 = vmatprep.mubr.msk.f32.mxu1 %vm1759_vm0, %v1758_v3 }
 0x15b   :  { %v666_v51 = vadd.f32 %v615_v49, %v564_v48  ;;  %v565_v53 = vmul.f32 %v410_v50, %v410_v50 }
 0x15c   :  { %v412_v52 = vpop.f32.mrf.mxu0 }
 0x15d   :  { %v616_v54 = vmul.f32 %v412_v52, %v412_v52  ;;  %1589 = vmatmul.mubr.f32.gmra.mxu1 %v666_v51 }
 0x15e   :  { %v416_v55 = vpop.f32.mrf.mxu0  ;;  %1591 = vmatprep.mubr.msk.f32.mxu1 %vm1759_vm0, %v1758_v3 }
 0x15f   :  { %v667_v56 = vadd.f32 %v616_v54, %v565_v53  ;;  %v566_v58 = vmul.f32 %v416_v55, %v416_v55 }
 0x160   :  { %v418_v57 = vpop.f32.mrf.mxu0 }
 0x161   :  { %v617_v59 = vmul.f32 %v418_v57, %v418_v57  ;;  %1592 = vmatmul.mubr.f32.gmra.mxu1 %v667_v56 }
 0x162   :  { %v422_v60 = vpop.f32.mrf.mxu0  ;;  %1594 = vmatprep.mubr.msk.f32.mxu1 %vm1759_vm0, %v1758_v3 }
 0x163   :  { %v668_v61 = vadd.f32 %v617_v59, %v566_v58  ;;  %v567_v63 = vmul.f32 %v422_v60, %v422_v60 }
 0x164   :  { %v424_v62 = vpop.f32.mrf.mxu0 }
 0x165   :  { %v618_v0 = vmul.f32 %v424_v62, %v424_v62  ;;  %1595 = vmatmul.mubr.f32.gmra.mxu1 %v668_v61 }
 0x166   :  { %v428_v1 = vpop.f32.mrf.mxu0  ;;  %1597 = vmatprep.mubr.msk.f32.mxu1 %vm1759_vm0, %v1758_v3 }
 0x167   :  { %v669_v2 = vadd.f32 %v618_v0, %v567_v63  ;;  %v568_v5 = vmul.f32 %v428_v1, %v428_v1 }
 0x168   :  { %v430_v4 = vpop.f32.mrf.mxu0 }
 0x169   :  { %v619_v6 = vmul.f32 %v430_v4, %v430_v4  ;;  %1598 = vmatmul.mubr.f32.gmra.mxu1 %v669_v2 }
 0x16a   :  { %v434_v7 = vpop.f32.mrf.mxu0  ;;  %1600 = vmatprep.mubr.msk.f32.mxu1 %vm1759_vm0, %v1758_v3 }
 0x16b   :  { %v670_v8 = vadd.f32 %v619_v6, %v568_v5  ;;  %v569_v10 = vmul.f32 %v434_v7, %v434_v7 }
 0x16c   :  { %v436_v9 = vpop.f32.mrf.mxu0 }
 0x16d   :  { %v620_v11 = vmul.f32 %v436_v9, %v436_v9  ;;  %1601 = vmatmul.mubr.f32.gmra.mxu1 %v670_v8 }
 0x16e   :  { %v440_v12 = vpop.f32.mrf.mxu0  ;;  %1603 = vmatprep.mubr.msk.f32.mxu1 %vm1759_vm0, %v1758_v3 }
 0x16f   :  { %v671_v13 = vadd.f32 %v620_v11, %v569_v10  ;;  %v570_v15 = vmul.f32 %v440_v12, %v440_v12 }
 0x170   :  { %v442_v14 = vpop.f32.mrf.mxu0 }
 0x171   :  { %v621_v16 = vmul.f32 %v442_v14, %v442_v14  ;;  %1604 = vmatmul.mubr.f32.gmra.mxu1 %v671_v13 }
 0x172   :  { %v446_v17 = vpop.f32.mrf.mxu0  ;;  %1606 = vmatprep.mubr.msk.f32.mxu1 %vm1759_vm0, %v1758_v3 }
 0x173   :  { %v672_v18 = vadd.f32 %v621_v16, %v570_v15  ;;  %v571_v20 = vmul.f32 %v446_v17, %v446_v17 }
 0x174   :  { %v448_v19 = vpop.f32.mrf.mxu0 }
 0x175   :  { %v622_v21 = vmul.f32 %v448_v19, %v448_v19  ;;  %1607 = vmatmul.mubr.f32.gmra.mxu1 %v672_v18 }
 0x176   :  { %v452_v22 = vpop.f32.mrf.mxu0  ;;  %1609 = vmatprep.mubr.msk.f32.mxu1 %vm1759_vm0, %v1758_v3 }
 0x177   :  { %v673_v23 = vadd.f32 %v622_v21, %v571_v20  ;;  %v572_v25 = vmul.f32 %v452_v22, %v452_v22 }
 0x178   :  { %v454_v24 = vpop.f32.mrf.mxu0 }
 0x179   :  { %v623_v26 = vmul.f32 %v454_v24, %v454_v24  ;;  %1610 = vmatmul.mubr.f32.gmra.mxu1 %v673_v23 }
 0x17a   :  { %v458_v27 = vpop.f32.mrf.mxu0  ;;  %1612 = vmatprep.mubr.msk.f32.mxu1 %vm1759_vm0, %v1758_v3 }
 0x17b   :  { %v674_v28 = vadd.f32 %v623_v26, %v572_v25  ;;  %v573_v30 = vmul.f32 %v458_v27, %v458_v27 }
 0x17c   :  { %v460_v29 = vpop.f32.mrf.mxu0 }
 0x17d   :  { %v624_v32 = vmul.f32 %v460_v29, %v460_v29  ;;  %1613 = vmatmul.mubr.f32.gmra.mxu1 %v674_v28 }
 0x17e   :  { %v464_v33 = vpop.f32.mrf.mxu0  ;;  %1615 = vmatprep.mubr.msk.f32.mxu1 %vm1759_vm0, %v1758_v3 }
 0x17f   :  { %v675_v34 = vadd.f32 %v624_v32, %v573_v30  ;;  %v574_v36 = vmul.f32 %v464_v33, %v464_v33 }
 0x180   :  { %v466_v35 = vpop.f32.mrf.mxu0 }
 0x181   :  { %v625_v37 = vmul.f32 %v466_v35, %v466_v35  ;;  %1616 = vmatmul.mubr.f32.gmra.mxu1 %v675_v34 }
 0x182   :  { %v470_v38 = vpop.f32.mrf.mxu0  ;;  %1618 = vmatprep.mubr.msk.f32.mxu1 %vm1759_vm0, %v1758_v3 }
 0x183   :  { %v676_v39 = vadd.f32 %v625_v37, %v574_v36  ;;  %v575_v41 = vmul.f32 %v470_v38, %v470_v38 }
 0x184   :  { %v472_v40 = vpop.f32.mrf.mxu0 }
 0x185   :  { %v626_v42 = vmul.f32 %v472_v40, %v472_v40  ;;  %1619 = vmatmul.mubr.f32.gmra.mxu1 %v676_v39 }
 0x186   :  { %v476_v31 = vpop.f32.mrf.mxu0  ;;  %1621 = vmatprep.mubr.msk.f32.mxu1 %vm1759_vm0, %v1758_v3 }
 0x187   :  { %v677_v43 = vadd.f32 %v626_v42, %v575_v41  ;;  %v576_v45 = vmul.f32 %v476_v31, %v476_v31 }
 0x188   :  { %v478_v44 = vpop.f32.mrf.mxu0 }
 0x189   :  { %v627_v46 = vmul.f32 %v478_v44, %v478_v44  ;;  %1622 = vmatmul.mubr.f32.gmra.mxu1 %v677_v43 }
 0x18a   :  { %v482_v47 = vpop.f32.mrf.mxu0  ;;  %1624 = vmatprep.mubr.msk.f32.mxu1 %vm1759_vm0, %v1758_v3 }
 0x18b   :  { %v678_v48 = vadd.f32 %v627_v46, %v576_v45  ;;  %v577_v50 = vmul.f32 %v482_v47, %v482_v47 }
 0x18c   :  { %v484_v49 = vpop.f32.mrf.mxu0 }
 0x18d   :  { %v628_v51 = vmul.f32 %v484_v49, %v484_v49  ;;  %1625 = vmatmul.mubr.f32.gmra.mxu1 %v678_v48  ;;  %v2325_v49 = vld [vmem:[%s2587_s5] ss:$0 sm:$0xff] }
 0x18e   :  { %v488_v52 = vpop.f32.mrf.mxu0  ;;  %1627 = vmatprep.mubr.msk.f32.mxu1 %vm1759_vm0, %v1758_v3 }
 0x18f   :  { %v679_v53 = vadd.f32 %v628_v51, %v577_v50  ;;  %v578_v55 = vmul.f32 %v488_v52, %v488_v52 }
 0x190   :  { %v490_v54 = vpop.f32.mrf.mxu0 }
 0x191   :  { %v629_v56 = vmul.f32 %v490_v54, %v490_v54  ;;  %1628 = vmatmul.mubr.f32.gmra.mxu1 %v679_v53 }
 0x192   :  { %v494_v57 = vpop.f32.mrf.mxu0  ;;  %1630 = vmatprep.mubr.msk.f32.mxu1 %vm1759_vm0, %v1758_v3 }
 0x193   :  { %v680_v58 = vadd.f32 %v629_v56, %v578_v55  ;;  %v579_v60 = vmul.f32 %v494_v57, %v494_v57 }
 0x194   :  { %v496_v59 = vpop.f32.mrf.mxu0 }
 0x195   :  { %v630_v61 = vmul.f32 %v496_v59, %v496_v59  ;;  %1631 = vmatmul.mubr.f32.gmra.mxu1 %v680_v58 }
 0x196   :  { %v500_v62 = vpop.f32.mrf.mxu0  ;;  %1633 = vmatprep.mubr.msk.f32.mxu1 %vm1759_vm0, %v1758_v3 }
 0x197   :  { %v681_v63 = vadd.f32 %v630_v61, %v579_v60  ;;  %v580_v1 = vmul.f32 %v500_v62, %v500_v62 }
 0x198   :  { %v502_v0 = vpop.f32.mrf.mxu0 }
 0x199   :  { %v631_v2 = vmul.f32 %v502_v0, %v502_v0  ;;  %1634 = vmatmul.mubr.f32.gmra.mxu1 %v681_v63 }
 0x19a   :  { %v506_v4 = vpop.f32.mrf.mxu0  ;;  %1636 = vmatprep.mubr.msk.f32.mxu1 %vm1759_vm0, %v1758_v3 }
 0x19b   :  { %v682_v5 = vadd.f32 %v631_v2, %v580_v1  ;;  %v581_v7 = vmul.f32 %v506_v4, %v506_v4 }
 0x19c   :  { %v508_v6 = vpop.f32.mrf.mxu0 }
 0x19d   :  { %v632_v8 = vmul.f32 %v508_v6, %v508_v6  ;;  %1637 = vmatmul.mubr.f32.gmra.mxu1 %v682_v5 }
 0x19e   :  { %v512_v9 = vpop.f32.mrf.mxu0  ;;  %1639 = vmatprep.mubr.msk.f32.mxu1 %vm1759_vm0, %v1758_v3 }
 0x19f   :  { %v683_v10 = vadd.f32 %v632_v8, %v581_v7  ;;  %v582_v12 = vmul.f32 %v512_v9, %v512_v9 }
 0x1a0   :  { %v514_v11 = vpop.f32.mrf.mxu0 }
 0x1a1   :  { %v633_v13 = vmul.f32 %v514_v11, %v514_v11  ;;  %1640 = vmatmul.mubr.f32.gmra.mxu1 %v683_v10 }
 0x1a2   :  { %v518_v14 = vpop.f32.mrf.mxu0  ;;  %1642 = vmatprep.mubr.msk.f32.mxu1 %vm1759_vm0, %v1758_v3 }
 0x1a3   :  { %v684_v15 = vadd.f32 %v633_v13, %v582_v12  ;;  %v583_v17 = vmul.f32 %v518_v14, %v518_v14 }
 0x1a4   :  { %v520_v16 = vpop.f32.mrf.mxu0 }
 0x1a5   :  { %v634_v18 = vmul.f32 %v520_v16, %v520_v16  ;;  %1643 = vmatmul.mubr.f32.gmra.mxu1 %v684_v15 }
 0x1a6   :  { %v524_v19 = vpop.f32.mrf.mxu0  ;;  %1645 = vmatprep.mubr.msk.f32.mxu1 %vm1759_vm0, %v1758_v3 }
 0x1a7   :  { %v685_v20 = vadd.f32 %v634_v18, %v583_v17  ;;  %v584_v22 = vmul.f32 %v524_v19, %v524_v19 }
 0x1a8   :  { %v526_v21 = vpop.f32.mrf.mxu0 }
 0x1a9   :  { %v635_v23 = vmul.f32 %v526_v21, %v526_v21  ;;  %v770_v24 = vpop.f32.mrf.mxu1  ;;  %1646 = vmatmul.mubr.f32.gmra.mxu1 %v685_v20 }
 0x1aa   :  { %v1024_v25 = vmax.f32 %v770_v24, 1e-10  ;;  %v530_v26 = vpop.f32.mrf.mxu0  ;;  %1648 = vmatprep.mubr.msk.f32.mxu1 %vm1759_vm0, %v1758_v3 }
 0x1ab   :  { %v686_v27 = vadd.f32 %v635_v23, %v584_v22  ;;  %v1503_v28 = vpop.f32.mrf.mxu1  ;;  %v585_v30 = vmul.f32 %v530_v26, %v530_v26 }
 0x1ac   :  { %1656 = vlog2.f32 %v1024_v25  ;;  %v532_v29 = vpop.f32.mrf.mxu0 }
 0x1ad   :  { %v636_v32 = vmul.f32 %v532_v29, %v532_v29  ;;  %v775_v33 = vpop.f32.mrf.mxu1  ;;  %1649 = vmatmul.mubr.f32.gmra.mxu1 %v686_v27 }
 0x1ae   :  { %v1025_v34 = vmax.f32 %v775_v33, 1e-10  ;;  %1651 = vmatprep.mubr.msk.f32.mxu1 %vm1759_vm0, %v1758_v3  ;;  %v2320_v3 = vld [vmem:[%s2586_s4] ss:$0 sm:$0xff] }
 0x1af   :  { %v687_v35 = vadd.f32 %v636_v32, %v585_v30  ;;  %v1506_v36 = vpop.f32.mrf.mxu1 }
 0x1b0   :  { %1658 = vlog2.f32 %v1025_v34 }
 0x1b1   :  { %v780_v37 = vpop.f32.mrf.mxu1  ;;  %1652 = vmatmul.mubr.f32.gmra.mxu1 %v687_v35 }
 0x1b2   :  { %v1026_v38 = vmax.f32 %v780_v37, 1e-10 }
 0x1b3   :  { %v1509_v39 = vpop.f32.mrf.mxu1 }
 0x1b4   :  { %1660 = vlog2.f32 %v1026_v38 }
 0x1b5   :  { %v785_v40 = vpop.f32.mrf.mxu1 }
 0x1b6   :  { %v1027_v41 = vmax.f32 %v785_v40, 1e-10 }
 0x1b7   :  { %v1512_v42 = vpop.f32.mrf.mxu1 }
 0x1b8   :  { %1662 = vlog2.f32 %v1027_v41 }
 0x1b9   :  { %v1657_v31 = vpop.eup %1656  ;;  %v790_v43 = vpop.f32.mrf.mxu1 }
 0x1ba   :  { %v1076_v44 = vmul.f32 0.6931472, %v1657_v31  ;;  %v1028_v45 = vmax.f32 %v790_v43, 1e-10 }
 0x1bb   :  { %v1515_v46 = vpop.f32.mrf.mxu1 }
 0x1bc   :  { %v1177_v47 = vmul.f32 4.3429446, %v1076_v44  ;;  %1664 = vlog2.f32 %v1028_v45 }
 0x1bd   :  { %v1659_v48 = vpop.eup %1658  ;;  %v795_v50 = vpop.f32.mrf.mxu1 }
 0x1be   :  { %v1235_v51 = vmul.f32 %v2320_v3, %v1177_v47  ;;  %v1078_v52 = vmul.f32 0.6931472, %v1659_v48  ;;  %v1029_v53 = vmax.f32 %v795_v50, 1e-10 }
 0x1bf   :  { %v1518_v54 = vpop.f32.mrf.mxu1 }
 0x1c0   :  { %v1293_v55 = vadd.f32 %v2325_v49, %v1235_v51  ;;  %v1178_v56 = vmul.f32 4.3429446, %v1078_v52  ;;  %1666 = vlog2.f32 %v1029_v53 }
 0x1c1   :  { %v1661_v57 = vpop.eup %1660  ;;  %v800_v58 = vpop.f32.mrf.mxu1 }
 0x1c2   :  { %1344 = vst [vmem:[%s2588_s6] sm:$0xff] %v1293_v55  ;;  %v1236_v59 = vmul.f32 %v2320_v3, %v1178_v56  ;;  %v1080_v60 = vmul.f32 0.6931472, %v1661_v57  ;;  %v1030_v61 = vmax.f32 %v800_v58, 1e-10 }
 0x1c3   :  { %v1521_v62 = vpop.f32.mrf.mxu1 }
 0x1c4   :  { %v1294_v63 = vadd.f32 %v2325_v49, %v1236_v59  ;;  %v1179_v0 = vmul.f32 4.3429446, %v1080_v60  ;;  %1668 = vlog2.f32 %v1030_v61 }
 0x1c5   :  { %v1663_v1 = vpop.eup %1662  ;;  %v805_v2 = vpop.f32.mrf.mxu1 }
 0x1c6   :  { %1345 = vst [vmem:[%s2588_s6 + $0x8] sm:$0xff] %v1294_v63  ;;  %v1237_v4 = vmul.f32 %v2320_v3, %v1179_v0  ;;  %v1082_v5 = vmul.f32 0.6931472, %v1663_v1  ;;  %v1031_v6 = vmax.f32 %v805_v2, 1e-10 }
 0x1c7   :  { %v1524_v7 = vpop.f32.mrf.mxu1 }
 0x1c8   :  { %v1295_v8 = vadd.f32 %v2325_v49, %v1237_v4  ;;  %v1180_v9 = vmul.f32 4.3429446, %v1082_v5  ;;  %1670 = vlog2.f32 %v1031_v6 }
 0x1c9   :  { %v1665_v10 = vpop.eup %1664  ;;  %v810_v11 = vpop.f32.mrf.mxu1 }
 0x1ca   :  { %1346 = vst [vmem:[%s2588_s6 + $0x10] sm:$0xff] %v1295_v8  ;;  %v1238_v12 = vmul.f32 %v2320_v3, %v1180_v9  ;;  %v1084_v13 = vmul.f32 0.6931472, %v1665_v10  ;;  %v1032_v14 = vmax.f32 %v810_v11, 1e-10 }
 0x1cb   :  { %v1527_v15 = vpop.f32.mrf.mxu1 }
 0x1cc   :  { %v1296_v16 = vadd.f32 %v2325_v49, %v1238_v12  ;;  %v1181_v17 = vmul.f32 4.3429446, %v1084_v13  ;;  %1672 = vlog2.f32 %v1032_v14 }
 0x1cd   :  { %v1667_v18 = vpop.eup %1666  ;;  %v815_v19 = vpop.f32.mrf.mxu1 }
 0x1ce   :  { %1347 = vst [vmem:[%s2588_s6 + $0x18] sm:$0xff] %v1296_v16  ;;  %v1239_v20 = vmul.f32 %v2320_v3, %v1181_v17  ;;  %v1086_v21 = vmul.f32 0.6931472, %v1667_v18  ;;  %v1033_v22 = vmax.f32 %v815_v19, 1e-10 }
 0x1cf   :  { %v1530_v23 = vpop.f32.mrf.mxu1 }
 0x1d0   :  { %v1297_v24 = vadd.f32 %v2325_v49, %v1239_v20  ;;  %v1182_v25 = vmul.f32 4.3429446, %v1086_v21  ;;  %1674 = vlog2.f32 %v1033_v22 }
 0x1d1   :  { %v1669_v26 = vpop.eup %1668  ;;  %v820_v27 = vpop.f32.mrf.mxu1 }
 0x1d2   :  { %1348 = vst [vmem:[%s2588_s6 + $0x20] sm:$0xff] %v1297_v24  ;;  %v1240_v28 = vmul.f32 %v2320_v3, %v1182_v25  ;;  %v1088_v29 = vmul.f32 0.6931472, %v1669_v26  ;;  %v1034_v30 = vmax.f32 %v820_v27, 1e-10 }
 0x1d3   :  { %v1533_v32 = vpop.f32.mrf.mxu1 }
 0x1d4   :  { %v1298_v33 = vadd.f32 %v2325_v49, %v1240_v28  ;;  %v1183_v34 = vmul.f32 4.3429446, %v1088_v29  ;;  %1676 = vlog2.f32 %v1034_v30 }
 0x1d5   :  { %v1671_v35 = vpop.eup %1670  ;;  %v825_v36 = vpop.f32.mrf.mxu1 }
 0x1d6   :  { %1349 = vst [vmem:[%s2588_s6 + $0x28] sm:$0xff] %v1298_v33  ;;  %v1241_v37 = vmul.f32 %v2320_v3, %v1183_v34  ;;  %v1090_v38 = vmul.f32 0.6931472, %v1671_v35  ;;  %v1035_v39 = vmax.f32 %v825_v36, 1e-10 }
 0x1d7   :  { %v1536_v40 = vpop.f32.mrf.mxu1 }
 0x1d8   :  { %v1299_v41 = vadd.f32 %v2325_v49, %v1241_v37  ;;  %v1184_v42 = vmul.f32 4.3429446, %v1090_v38  ;;  %1678 = vlog2.f32 %v1035_v39 }
 0x1d9   :  { %v1673_v31 = vpop.eup %1672  ;;  %v830_v43 = vpop.f32.mrf.mxu1 }
 0x1da   :  { %1350 = vst [vmem:[%s2588_s6 + $0x30] sm:$0xff] %v1299_v41  ;;  %v1242_v44 = vmul.f32 %v2320_v3, %v1184_v42  ;;  %v1092_v45 = vmul.f32 0.6931472, %v1673_v31  ;;  %v1036_v46 = vmax.f32 %v830_v43, 1e-10 }
 0x1db   :  { %v1539_v47 = vpop.f32.mrf.mxu1 }
 0x1dc   :  { %v1300_v48 = vadd.f32 %v2325_v49, %v1242_v44  ;;  %v1185_v50 = vmul.f32 4.3429446, %v1092_v45  ;;  %1680 = vlog2.f32 %v1036_v46 }
 0x1dd   :  { %v1675_v51 = vpop.eup %1674  ;;  %v835_v52 = vpop.f32.mrf.mxu1 }
 0x1de   :  { %1351 = vst [vmem:[%s2588_s6 + $0x38] sm:$0xff] %v1300_v48  ;;  %v1243_v53 = vmul.f32 %v2320_v3, %v1185_v50  ;;  %v1094_v54 = vmul.f32 0.6931472, %v1675_v51  ;;  %v1037_v55 = vmax.f32 %v835_v52, 1e-10 }
 0x1df   :  { %v1542_v56 = vpop.f32.mrf.mxu1 }
 0x1e0   :  { %v1301_v57 = vadd.f32 %v2325_v49, %v1243_v53  ;;  %v1186_v58 = vmul.f32 4.3429446, %v1094_v54  ;;  %1682 = vlog2.f32 %v1037_v55 }
 0x1e1   :  { %v1677_v59 = vpop.eup %1676  ;;  %v840_v60 = vpop.f32.mrf.mxu1 }
 0x1e2   :  { %1352 = vst [vmem:[%s2588_s6 + $0x40] sm:$0xff] %v1301_v57  ;;  %v1244_v61 = vmul.f32 %v2320_v3, %v1186_v58  ;;  %v1096_v62 = vmul.f32 0.6931472, %v1677_v59  ;;  %v1038_v63 = vmax.f32 %v840_v60, 1e-10 }
 0x1e3   :  { %v1545_v0 = vpop.f32.mrf.mxu1 }
 0x1e4   :  { %v1302_v1 = vadd.f32 %v2325_v49, %v1244_v61  ;;  %v1187_v2 = vmul.f32 4.3429446, %v1096_v62  ;;  %1684 = vlog2.f32 %v1038_v63 }
 0x1e5   :  { %v1679_v4 = vpop.eup %1678  ;;  %v845_v5 = vpop.f32.mrf.mxu1 }
 0x1e6   :  { %1353 = vst [vmem:[%s2588_s6 + $0x48] sm:$0xff] %v1302_v1  ;;  %v1245_v6 = vmul.f32 %v2320_v3, %v1187_v2  ;;  %v1098_v7 = vmul.f32 0.6931472, %v1679_v4  ;;  %v1039_v8 = vmax.f32 %v845_v5, 1e-10 }
 0x1e7   :  { %v1548_v9 = vpop.f32.mrf.mxu1 }
 0x1e8   :  { %v1303_v10 = vadd.f32 %v2325_v49, %v1245_v6  ;;  %v1188_v11 = vmul.f32 4.3429446, %v1098_v7  ;;  %1686 = vlog2.f32 %v1039_v8 }
 0x1e9   :  { %v1681_v12 = vpop.eup %1680  ;;  %v850_v13 = vpop.f32.mrf.mxu1 }
 0x1ea   :  { %1354 = vst [vmem:[%s2588_s6 + $0x50] sm:$0xff] %v1303_v10  ;;  %v1246_v14 = vmul.f32 %v2320_v3, %v1188_v11  ;;  %v1100_v15 = vmul.f32 0.6931472, %v1681_v12  ;;  %v1040_v16 = vmax.f32 %v850_v13, 1e-10 }
 0x1eb   :  { %v1551_v17 = vpop.f32.mrf.mxu1 }
 0x1ec   :  { %v1304_v18 = vadd.f32 %v2325_v49, %v1246_v14  ;;  %v1189_v19 = vmul.f32 4.3429446, %v1100_v15  ;;  %1688 = vlog2.f32 %v1040_v16 }
 0x1ed   :  { %v1683_v20 = vpop.eup %1682  ;;  %v855_v21 = vpop.f32.mrf.mxu1 }
 0x1ee   :  { %1355 = vst [vmem:[%s2588_s6 + $0x58] sm:$0xff] %v1304_v18  ;;  %v1247_v22 = vmul.f32 %v2320_v3, %v1189_v19  ;;  %v1102_v23 = vmul.f32 0.6931472, %v1683_v20  ;;  %v1041_v24 = vmax.f32 %v855_v21, 1e-10 }
 0x1ef   :  { %v1554_v25 = vpop.f32.mrf.mxu1 }
 0x1f0   :  { %v1305_v26 = vadd.f32 %v2325_v49, %v1247_v22  ;;  %v1190_v27 = vmul.f32 4.3429446, %v1102_v23  ;;  %1690 = vlog2.f32 %v1041_v24 }
 0x1f1   :  { %v1685_v28 = vpop.eup %1684  ;;  %v860_v29 = vpop.f32.mrf.mxu1 }
 0x1f2   :  { %1356 = vst [vmem:[%s2588_s6 + $0x60] sm:$0xff] %v1305_v26  ;;  %v1248_v30 = vmul.f32 %v2320_v3, %v1190_v27  ;;  %v1104_v32 = vmul.f32 0.6931472, %v1685_v28  ;;  %v1042_v33 = vmax.f32 %v860_v29, 1e-10 }
 0x1f3   :  { %v1557_v34 = vpop.f32.mrf.mxu1 }
 0x1f4   :  { %v1306_v35 = vadd.f32 %v2325_v49, %v1248_v30  ;;  %v1191_v36 = vmul.f32 4.3429446, %v1104_v32  ;;  %1692 = vlog2.f32 %v1042_v33 }
 0x1f5   :  { %v1687_v37 = vpop.eup %1686  ;;  %v865_v38 = vpop.f32.mrf.mxu1 }
 0x1f6   :  { %1357 = vst [vmem:[%s2588_s6 + $0x68] sm:$0xff] %v1306_v35  ;;  %v1249_v39 = vmul.f32 %v2320_v3, %v1191_v36  ;;  %v1106_v40 = vmul.f32 0.6931472, %v1687_v37  ;;  %v1043_v41 = vmax.f32 %v865_v38, 1e-10 }
 0x1f7   :  { %v1560_v42 = vpop.f32.mrf.mxu1 }
 0x1f8   :  { %v1307_v31 = vadd.f32 %v2325_v49, %v1249_v39  ;;  %v1192_v43 = vmul.f32 4.3429446, %v1106_v40  ;;  %1694 = vlog2.f32 %v1043_v41 }
 0x1f9   :  { %v1689_v44 = vpop.eup %1688  ;;  %v870_v45 = vpop.f32.mrf.mxu1 }
 0x1fa   :  { %1358 = vst [vmem:[%s2588_s6 + $0x70] sm:$0xff] %v1307_v31  ;;  %v1250_v46 = vmul.f32 %v2320_v3, %v1192_v43  ;;  %v1108_v47 = vmul.f32 0.6931472, %v1689_v44  ;;  %v1044_v48 = vmax.f32 %v870_v45, 1e-10 }
 0x1fb   :  { %v1563_v50 = vpop.f32.mrf.mxu1 }
 0x1fc   :  { %v1308_v51 = vadd.f32 %v2325_v49, %v1250_v46  ;;  %v1193_v52 = vmul.f32 4.3429446, %v1108_v47  ;;  %1696 = vlog2.f32 %v1044_v48 }
 0x1fd   :  { %v1691_v53 = vpop.eup %1690  ;;  %v875_v54 = vpop.f32.mrf.mxu1 }
 0x1fe   :  { %1359 = vst [vmem:[%s2588_s6 + $0x78] sm:$0xff] %v1308_v51  ;;  %v1251_v55 = vmul.f32 %v2320_v3, %v1193_v52  ;;  %v1110_v56 = vmul.f32 0.6931472, %v1691_v53  ;;  %v1045_v57 = vmax.f32 %v875_v54, 1e-10 }
 0x1ff   :  { %v1566_v58 = vpop.f32.mrf.mxu1 }
 0x200   :  { %v1309_v59 = vadd.f32 %v2325_v49, %v1251_v55  ;;  %v1194_v60 = vmul.f32 4.3429446, %v1110_v56  ;;  %1698 = vlog2.f32 %v1045_v57 }
 0x201   :  { %v1693_v61 = vpop.eup %1692  ;;  %v880_v62 = vpop.f32.mrf.mxu1 }
 0x202   :  { %1360 = vst [vmem:[%s2588_s6 + $0x80] sm:$0xff] %v1309_v59  ;;  %v1252_v63 = vmul.f32 %v2320_v3, %v1194_v60  ;;  %v1112_v0 = vmul.f32 0.6931472, %v1693_v61  ;;  %v1046_v1 = vmax.f32 %v880_v62, 1e-10 }
 0x203   :  { %v1569_v2 = vpop.f32.mrf.mxu1 }
 0x204   :  { %v1310_v4 = vadd.f32 %v2325_v49, %v1252_v63  ;;  %v1195_v5 = vmul.f32 4.3429446, %v1112_v0  ;;  %1700 = vlog2.f32 %v1046_v1 }
 0x205   :  { %v1695_v6 = vpop.eup %1694  ;;  %v885_v7 = vpop.f32.mrf.mxu1 }
 0x206   :  { %1361 = vst [vmem:[%s2588_s6 + $0x88] sm:$0xff] %v1310_v4  ;;  %v1253_v8 = vmul.f32 %v2320_v3, %v1195_v5  ;;  %v1114_v9 = vmul.f32 0.6931472, %v1695_v6  ;;  %v1047_v10 = vmax.f32 %v885_v7, 1e-10 }
 0x207   :  { %v1572_v11 = vpop.f32.mrf.mxu1 }
 0x208   :  { %v1311_v12 = vadd.f32 %v2325_v49, %v1253_v8  ;;  %v1196_v13 = vmul.f32 4.3429446, %v1114_v9  ;;  %1702 = vlog2.f32 %v1047_v10 }
 0x209   :  { %v1697_v14 = vpop.eup %1696  ;;  %v890_v15 = vpop.f32.mrf.mxu1 }
 0x20a   :  { %1362 = vst [vmem:[%s2588_s6 + $0x90] sm:$0xff] %v1311_v12  ;;  %v1254_v16 = vmul.f32 %v2320_v3, %v1196_v13  ;;  %v1116_v17 = vmul.f32 0.6931472, %v1697_v14  ;;  %v1048_v18 = vmax.f32 %v890_v15, 1e-10 }
 0x20b   :  { %v1575_v19 = vpop.f32.mrf.mxu1 }
 0x20c   :  { %v1312_v20 = vadd.f32 %v2325_v49, %v1254_v16  ;;  %v1197_v21 = vmul.f32 4.3429446, %v1116_v17  ;;  %1704 = vlog2.f32 %v1048_v18 }
 0x20d   :  { %v1699_v22 = vpop.eup %1698  ;;  %v895_v23 = vpop.f32.mrf.mxu1 }
 0x20e   :  { %1363 = vst [vmem:[%s2588_s6 + $0x98] sm:$0xff] %v1312_v20  ;;  %v1255_v24 = vmul.f32 %v2320_v3, %v1197_v21  ;;  %v1118_v25 = vmul.f32 0.6931472, %v1699_v22  ;;  %v1049_v26 = vmax.f32 %v895_v23, 1e-10 }
 0x20f   :  { %v1578_v27 = vpop.f32.mrf.mxu1 }
 0x210   :  { %v1313_v28 = vadd.f32 %v2325_v49, %v1255_v24  ;;  %v1198_v29 = vmul.f32 4.3429446, %v1118_v25  ;;  %1706 = vlog2.f32 %v1049_v26 }
 0x211   :  { %v1701_v30 = vpop.eup %1700  ;;  %v900_v32 = vpop.f32.mrf.mxu1 }
 0x212   :  { %1364 = vst [vmem:[%s2588_s6 + $0xa0] sm:$0xff] %v1313_v28  ;;  %v1256_v33 = vmul.f32 %v2320_v3, %v1198_v29  ;;  %v1120_v34 = vmul.f32 0.6931472, %v1701_v30  ;;  %v1050_v35 = vmax.f32 %v900_v32, 1e-10 }
 0x213   :  { %v1581_v36 = vpop.f32.mrf.mxu1 }
 0x214   :  { %v1314_v37 = vadd.f32 %v2325_v49, %v1256_v33  ;;  %v1199_v38 = vmul.f32 4.3429446, %v1120_v34  ;;  %1708 = vlog2.f32 %v1050_v35 }
 0x215   :  { %v1703_v39 = vpop.eup %1702  ;;  %v905_v40 = vpop.f32.mrf.mxu1 }
 0x216   :  { %1365 = vst [vmem:[%s2588_s6 + $0xa8] sm:$0xff] %v1314_v37  ;;  %v1257_v41 = vmul.f32 %v2320_v3, %v1199_v38  ;;  %v1122_v42 = vmul.f32 0.6931472, %v1703_v39  ;;  %v1051_v31 = vmax.f32 %v905_v40, 1e-10 }
 0x217   :  { %v1584_v43 = vpop.f32.mrf.mxu1 }
 0x218   :  { %v1315_v44 = vadd.f32 %v2325_v49, %v1257_v41  ;;  %v1200_v45 = vmul.f32 4.3429446, %v1122_v42  ;;  %1710 = vlog2.f32 %v1051_v31 }
 0x219   :  { %v1705_v46 = vpop.eup %1704  ;;  %v910_v47 = vpop.f32.mrf.mxu1 }
 0x21a   :  { %1366 = vst [vmem:[%s2588_s6 + $0xb0] sm:$0xff] %v1315_v44  ;;  %v1258_v48 = vmul.f32 %v2320_v3, %v1200_v45  ;;  %v1124_v50 = vmul.f32 0.6931472, %v1705_v46  ;;  %v1052_v51 = vmax.f32 %v910_v47, 1e-10 }
 0x21b   :  { %v1587_v52 = vpop.f32.mrf.mxu1 }
 0x21c   :  { %v1316_v53 = vadd.f32 %v2325_v49, %v1258_v48  ;;  %v1201_v54 = vmul.f32 4.3429446, %v1124_v50  ;;  %1712 = vlog2.f32 %v1052_v51 }
 0x21d   :  { %v1707_v55 = vpop.eup %1706  ;;  %v915_v56 = vpop.f32.mrf.mxu1 }
 0x21e   :  { %1367 = vst [vmem:[%s2588_s6 + $0xb8] sm:$0xff] %v1316_v53  ;;  %v1259_v57 = vmul.f32 %v2320_v3, %v1201_v54  ;;  %v1126_v58 = vmul.f32 0.6931472, %v1707_v55  ;;  %v1053_v59 = vmax.f32 %v915_v56, 1e-10 }
 0x21f   :  { %v1590_v60 = vpop.f32.mrf.mxu1 }
 0x220   :  { %v1317_v61 = vadd.f32 %v2325_v49, %v1259_v57  ;;  %v1202_v62 = vmul.f32 4.3429446, %v1126_v58  ;;  %1714 = vlog2.f32 %v1053_v59 }
 0x221   :  { %v1709_v63 = vpop.eup %1708  ;;  %v920_v0 = vpop.f32.mrf.mxu1 }
 0x222   :  { %1368 = vst [vmem:[%s2588_s6 + $0xc0] sm:$0xff] %v1317_v61  ;;  %v1260_v1 = vmul.f32 %v2320_v3, %v1202_v62  ;;  %v1128_v2 = vmul.f32 0.6931472, %v1709_v63  ;;  %v1054_v4 = vmax.f32 %v920_v0, 1e-10 }
 0x223   :  { %v1593_v5 = vpop.f32.mrf.mxu1 }
 0x224   :  { %v1318_v6 = vadd.f32 %v2325_v49, %v1260_v1  ;;  %v1203_v7 = vmul.f32 4.3429446, %v1128_v2  ;;  %1716 = vlog2.f32 %v1054_v4 }
 0x225   :  { %v1711_v8 = vpop.eup %1710  ;;  %v925_v9 = vpop.f32.mrf.mxu1 }
 0x226   :  { %1369 = vst [vmem:[%s2588_s6 + $0xc8] sm:$0xff] %v1318_v6  ;;  %v1261_v10 = vmul.f32 %v2320_v3, %v1203_v7  ;;  %v1130_v11 = vmul.f32 0.6931472, %v1711_v8  ;;  %v1055_v12 = vmax.f32 %v925_v9, 1e-10 }
 0x227   :  { %v1596_v13 = vpop.f32.mrf.mxu1 }
 0x228   :  { %v1319_v14 = vadd.f32 %v2325_v49, %v1261_v10  ;;  %v1204_v15 = vmul.f32 4.3429446, %v1130_v11  ;;  %1718 = vlog2.f32 %v1055_v12 }
 0x229   :  { %v1713_v16 = vpop.eup %1712  ;;  %v930_v17 = vpop.f32.mrf.mxu1 }
 0x22a   :  { %1370 = vst [vmem:[%s2588_s6 + $0xd0] sm:$0xff] %v1319_v14  ;;  %v1262_v18 = vmul.f32 %v2320_v3, %v1204_v15  ;;  %v1132_v19 = vmul.f32 0.6931472, %v1713_v16  ;;  %v1056_v20 = vmax.f32 %v930_v17, 1e-10 }
 0x22b   :  { %v1599_v21 = vpop.f32.mrf.mxu1 }
 0x22c   :  { %v1320_v22 = vadd.f32 %v2325_v49, %v1262_v18  ;;  %v1205_v23 = vmul.f32 4.3429446, %v1132_v19  ;;  %1720 = vlog2.f32 %v1056_v20 }
 0x22d   :  { %v1715_v24 = vpop.eup %1714  ;;  %v935_v25 = vpop.f32.mrf.mxu1 }
 0x22e   :  { %1371 = vst [vmem:[%s2588_s6 + $0xd8] sm:$0xff] %v1320_v22  ;;  %v1263_v26 = vmul.f32 %v2320_v3, %v1205_v23  ;;  %v1134_v27 = vmul.f32 0.6931472, %v1715_v24  ;;  %v1057_v28 = vmax.f32 %v935_v25, 1e-10 }
 0x22f   :  { %v1602_v29 = vpop.f32.mrf.mxu1 }
 0x230   :  { %v1321_v30 = vadd.f32 %v2325_v49, %v1263_v26  ;;  %v1206_v32 = vmul.f32 4.3429446, %v1134_v27  ;;  %1722 = vlog2.f32 %v1057_v28 }
 0x231   :  { %v1717_v33 = vpop.eup %1716  ;;  %v940_v34 = vpop.f32.mrf.mxu1 }
 0x232   :  { %1372 = vst [vmem:[%s2588_s6 + $0xe0] sm:$0xff] %v1321_v30  ;;  %v1264_v35 = vmul.f32 %v2320_v3, %v1206_v32  ;;  %v1136_v36 = vmul.f32 0.6931472, %v1717_v33  ;;  %v1058_v37 = vmax.f32 %v940_v34, 1e-10 }
 0x233   :  { %v1605_v38 = vpop.f32.mrf.mxu1 }
 0x234   :  { %v1322_v39 = vadd.f32 %v2325_v49, %v1264_v35  ;;  %v1207_v40 = vmul.f32 4.3429446, %v1136_v36  ;;  %1724 = vlog2.f32 %v1058_v37 }
 0x235   :  { %v1719_v41 = vpop.eup %1718  ;;  %v945_v42 = vpop.f32.mrf.mxu1 }
 0x236   :  { %1373 = vst [vmem:[%s2588_s6 + $0xe8] sm:$0xff] %v1322_v39  ;;  %v1265_v31 = vmul.f32 %v2320_v3, %v1207_v40  ;;  %v1138_v43 = vmul.f32 0.6931472, %v1719_v41  ;;  %v1059_v44 = vmax.f32 %v945_v42, 1e-10 }
 0x237   :  { %v1608_v45 = vpop.f32.mrf.mxu1 }
 0x238   :  { %v1323_v46 = vadd.f32 %v2325_v49, %v1265_v31  ;;  %v1208_v47 = vmul.f32 4.3429446, %v1138_v43  ;;  %1726 = vlog2.f32 %v1059_v44 }
 0x239   :  { %v1721_v48 = vpop.eup %1720  ;;  %v950_v50 = vpop.f32.mrf.mxu1 }
 0x23a   :  { %1374 = vst [vmem:[%s2588_s6 + $0xf0] sm:$0xff] %v1323_v46  ;;  %v1266_v51 = vmul.f32 %v2320_v3, %v1208_v47  ;;  %v1140_v52 = vmul.f32 0.6931472, %v1721_v48  ;;  %v1060_v53 = vmax.f32 %v950_v50, 1e-10 }
 0x23b   :  { %v1611_v54 = vpop.f32.mrf.mxu1 }
 0x23c   :  { %v1324_v55 = vadd.f32 %v2325_v49, %v1266_v51  ;;  %v1209_v56 = vmul.f32 4.3429446, %v1140_v52  ;;  %1728 = vlog2.f32 %v1060_v53 }
 0x23d   :  { %v1723_v57 = vpop.eup %1722  ;;  %v955_v58 = vpop.f32.mrf.mxu1 }
 0x23e   :  { %1375 = vst [vmem:[%s2588_s6 + $0xf8] sm:$0xff] %v1324_v55  ;;  %v1267_v59 = vmul.f32 %v2320_v3, %v1209_v56  ;;  %v1142_v60 = vmul.f32 0.6931472, %v1723_v57  ;;  %v1061_v61 = vmax.f32 %v955_v58, 1e-10 }
 0x23f   :  { %v1614_v62 = vpop.f32.mrf.mxu1 }
 0x240   :  { %v1325_v63 = vadd.f32 %v2325_v49, %v1267_v59  ;;  %v1210_v0 = vmul.f32 4.3429446, %v1142_v60  ;;  %1730 = vlog2.f32 %v1061_v61 }
 0x241   :  { %v1725_v1 = vpop.eup %1724  ;;  %v960_v2 = vpop.f32.mrf.mxu1 }
 0x242   :  { %1376 = vst [vmem:[%s2588_s6 + $0x100] sm:$0xff] %v1325_v63  ;;  %v1268_v4 = vmul.f32 %v2320_v3, %v1210_v0  ;;  %v1144_v5 = vmul.f32 0.6931472, %v1725_v1  ;;  %v1062_v6 = vmax.f32 %v960_v2, 1e-10 }
 0x243   :  { %v1617_v7 = vpop.f32.mrf.mxu1 }
 0x244   :  { %v1326_v8 = vadd.f32 %v2325_v49, %v1268_v4  ;;  %v1211_v9 = vmul.f32 4.3429446, %v1144_v5  ;;  %1732 = vlog2.f32 %v1062_v6 }
 0x245   :  { %v1727_v10 = vpop.eup %1726  ;;  %v965_v11 = vpop.f32.mrf.mxu1 }
 0x246   :  { %1377 = vst [vmem:[%s2588_s6 + $0x108] sm:$0xff] %v1326_v8  ;;  %v1269_v12 = vmul.f32 %v2320_v3, %v1211_v9  ;;  %v1146_v13 = vmul.f32 0.6931472, %v1727_v10  ;;  %v1063_v14 = vmax.f32 %v965_v11, 1e-10 }
 0x247   :  { %v1620_v15 = vpop.f32.mrf.mxu1 }
 0x248   :  { %v1327_v16 = vadd.f32 %v2325_v49, %v1269_v12  ;;  %v1212_v17 = vmul.f32 4.3429446, %v1146_v13  ;;  %1734 = vlog2.f32 %v1063_v14 }
 0x249   :  { %v1729_v18 = vpop.eup %1728  ;;  %v970_v19 = vpop.f32.mrf.mxu1 }
 0x24a   :  { %1378 = vst [vmem:[%s2588_s6 + $0x110] sm:$0xff] %v1327_v16  ;;  %v1270_v20 = vmul.f32 %v2320_v3, %v1212_v17  ;;  %v1148_v21 = vmul.f32 0.6931472, %v1729_v18  ;;  %v1064_v22 = vmax.f32 %v970_v19, 1e-10 }
 0x24b   :  { %v1623_v23 = vpop.f32.mrf.mxu1 }
 0x24c   :  { %v1328_v24 = vadd.f32 %v2325_v49, %v1270_v20  ;;  %v1213_v25 = vmul.f32 4.3429446, %v1148_v21  ;;  %1736 = vlog2.f32 %v1064_v22 }
 0x24d   :  { %v1731_v26 = vpop.eup %1730  ;;  %v975_v27 = vpop.f32.mrf.mxu1 }
 0x24e   :  { %1379 = vst [vmem:[%s2588_s6 + $0x118] sm:$0xff] %v1328_v24  ;;  %v1271_v28 = vmul.f32 %v2320_v3, %v1213_v25  ;;  %v1150_v29 = vmul.f32 0.6931472, %v1731_v26  ;;  %v1065_v30 = vmax.f32 %v975_v27, 1e-10 }
 0x24f   :  { %v1626_v32 = vpop.f32.mrf.mxu1 }
 0x250   :  { %v1329_v33 = vadd.f32 %v2325_v49, %v1271_v28  ;;  %v1214_v34 = vmul.f32 4.3429446, %v1150_v29  ;;  %1738 = vlog2.f32 %v1065_v30 }
 0x251   :  { %v1733_v35 = vpop.eup %1732  ;;  %v980_v36 = vpop.f32.mrf.mxu1 }
 0x252   :  { %1380 = vst [vmem:[%s2588_s6 + $0x120] sm:$0xff] %v1329_v33  ;;  %v1272_v37 = vmul.f32 %v2320_v3, %v1214_v34  ;;  %v1152_v38 = vmul.f32 0.6931472, %v1733_v35  ;;  %v1066_v39 = vmax.f32 %v980_v36, 1e-10 }
 0x253   :  { %v1629_v40 = vpop.f32.mrf.mxu1 }
 0x254   :  { %v1330_v41 = vadd.f32 %v2325_v49, %v1272_v37  ;;  %v1215_v42 = vmul.f32 4.3429446, %v1152_v38  ;;  %1740 = vlog2.f32 %v1066_v39 }
 0x255   :  { %v1735_v31 = vpop.eup %1734  ;;  %v985_v43 = vpop.f32.mrf.mxu1 }
 0x256   :  { %1381 = vst [vmem:[%s2588_s6 + $0x128] sm:$0xff] %v1330_v41  ;;  %v1273_v44 = vmul.f32 %v2320_v3, %v1215_v42  ;;  %v1154_v45 = vmul.f32 0.6931472, %v1735_v31  ;;  %v1067_v46 = vmax.f32 %v985_v43, 1e-10 }
 0x257   :  { %v1632_v47 = vpop.f32.mrf.mxu1 }
 0x258   :  { %v1331_v48 = vadd.f32 %v2325_v49, %v1273_v44  ;;  %v1216_v50 = vmul.f32 4.3429446, %v1154_v45  ;;  %1742 = vlog2.f32 %v1067_v46 }
 0x259   :  { %v1737_v51 = vpop.eup %1736  ;;  %v990_v52 = vpop.f32.mrf.mxu1 }
 0x25a   :  { %1382 = vst [vmem:[%s2588_s6 + $0x130] sm:$0xff] %v1331_v48  ;;  %v1274_v53 = vmul.f32 %v2320_v3, %v1216_v50  ;;  %v1156_v54 = vmul.f32 0.6931472, %v1737_v51  ;;  %v1068_v55 = vmax.f32 %v990_v52, 1e-10 }
 0x25b   :  { %v1635_v56 = vpop.f32.mrf.mxu1 }
 0x25c   :  { %v1332_v57 = vadd.f32 %v2325_v49, %v1274_v53  ;;  %v1217_v58 = vmul.f32 4.3429446, %v1156_v54  ;;  %1744 = vlog2.f32 %v1068_v55 }
 0x25d   :  { %v1739_v59 = vpop.eup %1738  ;;  %v995_v60 = vpop.f32.mrf.mxu1 }
 0x25e   :  { %1383 = vst [vmem:[%s2588_s6 + $0x138] sm:$0xff] %v1332_v57  ;;  %v1275_v61 = vmul.f32 %v2320_v3, %v1217_v58  ;;  %v1158_v62 = vmul.f32 0.6931472, %v1739_v59  ;;  %v1069_v63 = vmax.f32 %v995_v60, 1e-10 }
 0x25f   :  { %v1638_v0 = vpop.f32.mrf.mxu1 }
 0x260   :  { %v1333_v1 = vadd.f32 %v2325_v49, %v1275_v61  ;;  %v1218_v2 = vmul.f32 4.3429446, %v1158_v62  ;;  %1746 = vlog2.f32 %v1069_v63 }
 0x261   :  { %v1741_v4 = vpop.eup %1740  ;;  %v1000_v5 = vpop.f32.mrf.mxu1 }
 0x262   :  { %1384 = vst [vmem:[%s2588_s6 + $0x140] sm:$0xff] %v1333_v1  ;;  %v1276_v6 = vmul.f32 %v2320_v3, %v1218_v2  ;;  %v1160_v7 = vmul.f32 0.6931472, %v1741_v4  ;;  %v1070_v8 = vmax.f32 %v1000_v5, 1e-10 }
 0x263   :  { %v1641_v9 = vpop.f32.mrf.mxu1 }
 0x264   :  { %v1334_v10 = vadd.f32 %v2325_v49, %v1276_v6  ;;  %v1219_v11 = vmul.f32 4.3429446, %v1160_v7  ;;  %1748 = vlog2.f32 %v1070_v8 }
 0x265   :  { %v1743_v12 = vpop.eup %1742  ;;  %v1005_v13 = vpop.f32.mrf.mxu1 }
 0x266   :  { %1385 = vst [vmem:[%s2588_s6 + $0x148] sm:$0xff] %v1334_v10  ;;  %v1277_v14 = vmul.f32 %v2320_v3, %v1219_v11  ;;  %v1162_v15 = vmul.f32 0.6931472, %v1743_v12  ;;  %v1071_v16 = vmax.f32 %v1005_v13, 1e-10 }
 0x267   :  { %v1644_v17 = vpop.f32.mrf.mxu1 }
 0x268   :  { %v1335_v18 = vadd.f32 %v2325_v49, %v1277_v14  ;;  %v1220_v19 = vmul.f32 4.3429446, %v1162_v15  ;;  %1750 = vlog2.f32 %v1071_v16 }
 0x269   :  { %v1745_v20 = vpop.eup %1744  ;;  %v1010_v21 = vpop.f32.mrf.mxu1 }
 0x26a   :  { %1386 = vst [vmem:[%s2588_s6 + $0x150] sm:$0xff] %v1335_v18  ;;  %v1278_v22 = vmul.f32 %v2320_v3, %v1220_v19  ;;  %v1164_v23 = vmul.f32 0.6931472, %v1745_v20  ;;  %v1072_v24 = vmax.f32 %v1010_v21, 1e-10 }
 0x26b   :  { %v1647_v25 = vpop.f32.mrf.mxu1 }
 0x26c   :  { %v1336_v26 = vadd.f32 %v2325_v49, %v1278_v22  ;;  %v1221_v27 = vmul.f32 4.3429446, %v1164_v23  ;;  %1752 = vlog2.f32 %v1072_v24 }
 0x26d   :  { %v1747_v28 = vpop.eup %1746  ;;  %v1015_v29 = vpop.f32.mrf.mxu1 }
 0x26e   :  { %1387 = vst [vmem:[%s2588_s6 + $0x158] sm:$0xff] %v1336_v26  ;;  %v1279_v30 = vmul.f32 %v2320_v3, %v1221_v27  ;;  %v1166_v32 = vmul.f32 0.6931472, %v1747_v28  ;;  %v1073_v33 = vmax.f32 %v1015_v29, 1e-10 }
 0x26f   :  { %v1650_v34 = vpop.f32.mrf.mxu1 }
 0x270   :  { %v1337_v35 = vadd.f32 %v2325_v49, %v1279_v30  ;;  %v1222_v36 = vmul.f32 4.3429446, %v1166_v32  ;;  %1754 = vlog2.f32 %v1073_v33 }
 0x271   :  { %v1749_v37 = vpop.eup %1748  ;;  %v1020_v38 = vpop.f32.mrf.mxu1 }
 0x272   :  { %1388 = vst [vmem:[%s2588_s6 + $0x160] sm:$0xff] %v1337_v35  ;;  %v1280_v39 = vmul.f32 %v2320_v3, %v1222_v36  ;;  %v1168_v40 = vmul.f32 0.6931472, %v1749_v37  ;;  %v1074_v41 = vmax.f32 %v1020_v38, 1e-10 }
 0x273   :  { %v1653_v42 = vpop.f32.mrf.mxu1 }
 0x274   :  { %v1338_v31 = vadd.f32 %v2325_v49, %v1280_v39  ;;  %v1223_v43 = vmul.f32 4.3429446, %v1168_v40  ;;  %1756 = vlog2.f32 %v1074_v41 }
 0x275   :  { %v1751_v44 = vpop.eup %1750 }
 0x276   :  { %1389 = vst [vmem:[%s2588_s6 + $0x168] sm:$0xff] %v1338_v31  ;;  %v1281_v45 = vmul.f32 %v2320_v3, %v1223_v43  ;;  %v1170_v46 = vmul.f32 0.6931472, %v1751_v44 }
 0x278   :  { %v1339_v47 = vadd.f32 %v2325_v49, %v1281_v45  ;;  %v1224_v48 = vmul.f32 4.3429446, %v1170_v46 }
 0x279   :  { %v1753_v50 = vpop.eup %1752 }
 0x27a   :  { %1390 = vst [vmem:[%s2588_s6 + $0x170] sm:$0xff] %v1339_v47  ;;  %v1282_v51 = vmul.f32 %v2320_v3, %v1224_v48  ;;  %v1172_v52 = vmul.f32 0.6931472, %v1753_v50 }
 0x27c   :  { %v1340_v53 = vadd.f32 %v2325_v49, %v1282_v51  ;;  %v1225_v54 = vmul.f32 4.3429446, %v1172_v52 }
 0x27d   :  { %v1755_v55 = vpop.eup %1754 }
 0x27e   :  { %1391 = vst [vmem:[%s2588_s6 + $0x178] sm:$0xff] %v1340_v53  ;;  %v1283_v56 = vmul.f32 %v2320_v3, %v1225_v54  ;;  %v1174_v57 = vmul.f32 0.6931472, %v1755_v55 }
 0x280   :  { %v1341_v58 = vadd.f32 %v2325_v49, %v1283_v56  ;;  %v1226_v59 = vmul.f32 4.3429446, %v1174_v57 }
 0x281   :  { %v1757_v60 = vpop.eup %1756 }
 0x282   :  { %1392 = vst [vmem:[%s2588_s6 + $0x180] sm:$0xff] %v1341_v58  ;;  %v1284_v61 = vmul.f32 %v2320_v3, %v1226_v59  ;;  %v1176_v62 = vmul.f32 0.6931472, %v1757_v60 }
 0x284   :  { %v1342_v63 = vadd.f32 %v2325_v49, %v1284_v61  ;;  %v1227_v0 = vmul.f32 4.3429446, %v1176_v62 }
 0x286   :  { %1393 = vst [vmem:[%s2588_s6 + $0x188] sm:$0xff] %v1342_v63  ;;  %v1285_v1 = vmul.f32 %v2320_v3, %v1227_v0 }
 0x288   :  { %v1343_v2 = vadd.f32 %v2325_v49, %v1285_v1 }
 0x28a   :  { %1394 = vst [vmem:[%s2588_s6 + $0x190] sm:$0xff] %v1343_v2 }

// kernel: _lambda_.9
= control target key start
LH: loop header
LB: loop body
LE: loop exit
PB: predicated region body
PF: predicated region fallthrough
CT: control target
= control target key end

     0   :  { %s1248_s12 = smov 0   ;;  %s1250_s13 = smov 0   ;;  %s1543_s0 = inlined_call_operand.vmem [shape: bf16[8,16], index: 0, kind: input, shape index: {}]   ;;  %s1544_s1 = inlined_call_operand.vmem [shape: f32[8,1], index: 1, kind: input, shape index: {}]   ;;  %s1545_s2 = inlined_call_operand.vmem [shape: bf16[16,6656], index: 2, kind: input, shape index: {}]   ;;  %s1546_s3 = inlined_call_operand.vmem [shape: f32[8,6656], index: 3, kind: output, shape index: {}]  }
   0x1   :  { %s1252_s14 = smov 0  }
   0x2 LB: > { %s1087_s15 = sadd.s32 4294967295, %s1225_s14   ;;  %s1265_s16 = sadd.s32 1, %s1225_s14   ;;  %s1225_s14 = sphi %s1252_s14, %s1549_s14   ;;  %s1221_s13 = sphi %s1250_s13, %s1548_s13   ;;  %s1217_s12 = sphi %s1248_s12, %s1547_s12  }
   0x3   : > { %s59_s17 = ssub.s32 %s1225_s14, %s1265_s16  ;;  %s62_s18 = sadd.s32 1, %s1221_s13 }
   0x4   : > { %p60_p0 = scmp.eq.s32.totalorder %s59_s17, 0  ;;  %p69_p1 = scmp.ne.s32.totalorder %s1221_s13, %s1217_s12 }
   0x5   : > { %p70_p2 = scmp.eq.s32.totalorder %s1225_s14, 0  ;;  %p1090_p4 = scmp.ge.s32.totalorder %s1225_s14, 2 }
   0x6   : > { %s1274_s19 = scalar_select %p60_p0, %s1221_s13, %s62_s18  }
   0x7   : > { %p71_p3 = por %p70_p2, %p69_p1  ;;  %127 = sbr.rel (%p1090_p4) target bundleno = 30 (0x1e), region = 24 }
   0xc   : > { %130 = sbr.rel (!%p71_p3) target bundleno = 30 (0x1e), region = 28  ;;  %s132_s20 = sand.u32 (%p71_p3), 1, %s1221_s13  }
   0xd   : > { %s1135_s21 = smul.u32 (%p71_p3), 104, %s1225_s14 }
   0xe   : > { %s1136_s22 = smul.u32 (%p71_p3), 208, %s132_s20 }
   0xf   : > { %s1282_s25 = scalar_lea.vmem (%p71_p3), %s1545_s2, %s1135_s21 }
  0x10   : > { %v150_v0 = vld [vmem:[%s1282_s25] sm:$0xff] (%p71_p3)  ;;  %v152_v1 = vld [vmem:[%s1282_s25 + $0x8] sm:$0xff] (%p71_p3)  ;;  %v154_v2 = vld [vmem:[%s1282_s25 + $0x10] sm:$0xff] (%p71_p3)  ;;  %s1287_s26 = scalar_lea.vmem (%p71_p3), [#allocation2], %s1136_s22 }
  0x11   : > { %151 = vst [vmem:[%s1287_s26] sm:$0xff] %v150_v0  ;;  %153 = vst [vmem:[%s1287_s26 + $0x8] sm:$0xff] %v152_v1  ;;  %v156_v3 = vld [vmem:[%s1282_s25 + $0x18] sm:$0xff]  ;;  %v158_v4 = vld [vmem:[%s1282_s25 + $0x20] sm:$0xff] }
  0x12   : > { %155 = vst [vmem:[%s1287_s26 + $0x10] sm:$0xff] %v154_v2  ;;  %v160_v5 = vld [vmem:[%s1282_s25 + $0x28] sm:$0xff]  ;;  %157 = vst [vmem:[%s1287_s26 + $0x18] sm:$0xff] %v156_v3  ;;  %v162_v6 = vld [vmem:[%s1282_s25 + $0x30] sm:$0xff] }
  0x13   : > { %159 = vst [vmem:[%s1287_s26 + $0x20] sm:$0xff] %v158_v4  ;;  %161 = vst [vmem:[%s1287_s26 + $0x28] sm:$0xff] %v160_v5  ;;  %v164_v7 = vld [vmem:[%s1282_s25 + $0x38] sm:$0xff]  ;;  %v166_v8 = vld [vmem:[%s1282_s25 + $0x40] sm:$0xff] }
  0x14   : > { %163 = vst [vmem:[%s1287_s26 + $0x30] sm:$0xff] %v162_v6  ;;  %165 = vst [vmem:[%s1287_s26 + $0x38] sm:$0xff] %v164_v7  ;;  %v168_v9 = vld [vmem:[%s1282_s25 + $0x48] sm:$0xff]  ;;  %v170_v10 = vld [vmem:[%s1282_s25 + $0x50] sm:$0xff] }
  0x15   : > { %167 = vst [vmem:[%s1287_s26 + $0x40] sm:$0xff] %v166_v8  ;;  %v172_v11 = vld [vmem:[%s1282_s25 + $0x58] sm:$0xff]  ;;  %169 = vst [vmem:[%s1287_s26 + $0x48] sm:$0xff] %v168_v9  ;;  %v174_v12 = vld [vmem:[%s1282_s25 + $0x60] sm:$0xff] }
  0x16   : > { %171 = vst [vmem:[%s1287_s26 + $0x50] sm:$0xff] %v170_v10  ;;  %173 = vst [vmem:[%s1287_s26 + $0x58] sm:$0xff] %v172_v11  ;;  %v176_v13 = vld [vmem:[%s1282_s25 + $0xd0] sm:$0xff]  ;;  %v178_v14 = vld [vmem:[%s1282_s25 + $0xd8] sm:$0xff] }
  0x17   : > { %175 = vst [vmem:[%s1287_s26 + $0x60] sm:$0xff] %v174_v12  ;;  %177 = vst [vmem:[%s1287_s26 + $0x68] sm:$0xff] %v176_v13  ;;  %v180_v15 = vld [vmem:[%s1282_s25 + $0xe0] sm:$0xff]  ;;  %v182_v16 = vld [vmem:[%s1282_s25 + $0xe8] sm:$0xff] }
  0x18   : > { %179 = vst [vmem:[%s1287_s26 + $0x70] sm:$0xff] %v178_v14  ;;  %v184_v17 = vld [vmem:[%s1282_s25 + $0xf0] sm:$0xff]  ;;  %181 = vst [vmem:[%s1287_s26 + $0x78] sm:$0xff] %v180_v15  ;;  %v186_v18 = vld [vmem:[%s1282_s25 + $0xf8] sm:$0xff] }
  0x19   : > { %183 = vst [vmem:[%s1287_s26 + $0x80] sm:$0xff] %v182_v16  ;;  %185 = vst [vmem:[%s1287_s26 + $0x88] sm:$0xff] %v184_v17  ;;  %v188_v19 = vld [vmem:[%s1282_s25 + $0x100] sm:$0xff]  ;;  %v190_v20 = vld [vmem:[%s1282_s25 + $0x108] sm:$0xff] }
  0x1a   : > { %187 = vst [vmem:[%s1287_s26 + $0x90] sm:$0xff] %v186_v18  ;;  %189 = vst [vmem:[%s1287_s26 + $0x98] sm:$0xff] %v188_v19  ;;  %v192_v21 = vld [vmem:[%s1282_s25 + $0x110] sm:$0xff]  ;;  %v194_v22 = vld [vmem:[%s1282_s25 + $0x118] sm:$0xff] }
  0x1b   : > { %191 = vst [vmem:[%s1287_s26 + $0xa0] sm:$0xff] %v190_v20  ;;  %v196_v23 = vld [vmem:[%s1282_s25 + $0x120] sm:$0xff]  ;;  %193 = vst [vmem:[%s1287_s26 + $0xa8] sm:$0xff] %v192_v21  ;;  %v198_v24 = vld [vmem:[%s1282_s25 + $0x128] sm:$0xff] }
  0x1c   : > { %195 = vst [vmem:[%s1287_s26 + $0xb0] sm:$0xff] %v194_v22  ;;  %197 = vst [vmem:[%s1287_s26 + $0xb8] sm:$0xff] %v196_v23  ;;  %v200_v25 = vld [vmem:[%s1282_s25 + $0x130] sm:$0xff] }
  0x1d   : > { %199 = vst [vmem:[%s1287_s26 + $0xc0] sm:$0xff] %v198_v24  ;;  %201 = vst [vmem:[%s1287_s26 + $0xc8] sm:$0xff] %v200_v25 }
  0x1e PF: > { %p1092_p5 = scmp.ge.s32.totalorder %s1225_s14, 1  ;;  %p206_p6 = scmp.lt.s32.totalorder %s1225_s14, 3 }
  0x20   : > { %p207_p7 = pnand %p1092_p5, %p206_p6 }
  0x21   : > { %s213_s27 = sand.u32 (!%p207_p7), 1, %s1217_s12   ;;  %s237_s7 = smul.u32 (!%p207_p7), 26, %s1087_s15 }
  0x22   : > { %210 = sbr.rel (%p207_p7) target bundleno = 294 (0x126), region = 51 }
  0x23   : > { %s1137_s30 = smul.u32 (!%p207_p7), 208, %s213_s27  ;;  %p238_p8 = scmp.lt.s32.totalorder (!%p207_p7), %s237_s7, 51 }
  0x25   : > { %s1347_s4 = scalar_lea.vmem (!%p207_p7), [#allocation2], %s1137_s30 }
  0x27   : > { %v271_v26 = vld [vmem:[%s1544_s1] sm:$0xff]  ;;  %v1227_v27 = vmov 0   ;;  %vm407_vm0 = vcmask 130048   ;;  %v944_v55 = vlaneseq  ;;  %s1551_s7 = smov (!%p238_p8, %s237_s7), 51 }
  0x28   : > { %443 = vmatprep.mubr.bf16.mxu0 %v1227_v27  ;;  %484 = vmatprep.mubr.bf16.mxu1 %v1227_v27  ;;  %v1164_v28 = vld [vmem:[%s1347_s4 + $0x4] ss:$104 sps:$4 sm:$0xff]   ;;  %v1166_v29 = vld [vmem:[%s1347_s4] ss:$104 sps:$4 sm:$0xff]   ;;  %v1170_v33 = vld [vmem:[%s1347_s4 + $0x10] ss:$104 sps:$4 sm:$0xff]  }
  0x29   : > { %1163 = vset.pattern.permute.xlu0 %v1227_v27  ;;  %v1354_v30 = vld [vmem:[%s1543_s0] sm:$0xf]  ;;  %425 = vmatprep.subr.bf16.mxu0 %v1164_v28  ;;  %v1167_v31 = vld [vmem:[%s1347_s4 + $0xc] ss:$104 sps:$4 sm:$0xff]   ;;  %v1175_v36 = vld [vmem:[%s1347_s4 + $0x1c] ss:$104 sps:$4 sm:$0xff]  }
  0x2a   : > { %274 = vperm.xlu0 %1163, %v271_v26   ;;  %v1169_v32 = vld [vmem:[%s1347_s4 + $0x8] ss:$104 sps:$4 sm:$0xff]   ;;  %426 = vmatpush1.bf16.msra.mxu0 %v1166_v29  ;;  %v1172_v34 = vld [vmem:[%s1347_s4 + $0x14] ss:$104 sps:$4 sm:$0xff]   ;;  %v1173_v35 = vld [vmem:[%s1347_s4 + $0x18] ss:$104 sps:$4 sm:$0xff]  }
  0x2b   : > { %466 = vmatprep.subr.bf16.mxu1 %v1167_v31  ;;  %507 = vmatprep.subr.bf16.mxu0 %v1172_v34  ;;  %v1178_v37 = vld [vmem:[%s1347_s4 + $0x24] ss:$104 sps:$4 sm:$0xff]   ;;  %v1176_v39 = vld [vmem:[%s1347_s4 + $0x20] ss:$104 sps:$4 sm:$0xff]   ;;  %v1184_v40 = vld [vmem:[%s1347_s4 + $0x34] ss:$104 sps:$4 sm:$0xff]  }
  0x2c   : > { %467 = vmatpush1.bf16.msra.mxu1 %v1169_v32  ;;  %v1181_v38 = vld [vmem:[%s1347_s4 + $0x2c] ss:$104 sps:$4 sm:$0xff]   ;;  %v1179_v41 = vld [vmem:[%s1347_s4 + $0x28] ss:$104 sps:$4 sm:$0xff]   ;;  %v1187_v42 = vld [vmem:[%s1347_s4 + $0x3c] ss:$104 sps:$4 sm:$0xff]  }
  0x2d   : > { %1120 = vmatmul.mubr.msk.bf16.vlgmr.msra.gmra.mxu0 %vm407_vm0, %v1354_v30  ;;  %548 = vmatprep.subr.bf16.mxu1 %v1175_v36  ;;  %v1182_v43 = vld [vmem:[%s1347_s4 + $0x30] ss:$104 sps:$4 sm:$0xff]   ;;  %v1190_v44 = vld [vmem:[%s1347_s4 + $0x44] ss:$104 sps:$4 sm:$0xff]   ;;  %v1188_v47 = vld [vmem:[%s1347_s4 + $0x40] ss:$104 sps:$4 sm:$0xff]  }
  0x2e   : > { %508 = vmatpush1.bf16.msra.mxu0 %v1170_v33  ;;  %525 = vmatprep.mubr.bf16.mxu0 %v1227_v27  ;;  %v1185_v45 = vld [vmem:[%s1347_s4 + $0x38] ss:$104 sps:$4 sm:$0xff]   ;;  %v1193_v46 = vld [vmem:[%s1347_s4 + $0x4c] ss:$104 sps:$4 sm:$0xff]   ;;  %v1191_v49 = vld [vmem:[%s1347_s4 + $0x48] ss:$104 sps:$4 sm:$0xff]  }
  0x2f   : > { %1121 = vmatmul.mubr.msk.bf16.vlgmr.msra.gmra.mxu1 %vm407_vm0, %v1354_v30  ;;  %589 = vmatprep.subr.bf16.mxu0 %v1178_v37  ;;  %v1196_v48 = vld [vmem:[%s1347_s4 + $0x54] ss:$104 sps:$4 sm:$0xff]   ;;  %v1194_v51 = vld [vmem:[%s1347_s4 + $0x50] ss:$104 sps:$4 sm:$0xff]   ;;  %v1202_v52 = vld [vmem:[%s1347_s4 + $0x64] ss:$104 sps:$4 sm:$0xff]  }
  0x30   : > { %549 = vmatpush1.bf16.msra.mxu1 %v1173_v35  ;;  %566 = vmatprep.mubr.bf16.mxu1 %v1227_v27  ;;  %v1199_v50 = vld [vmem:[%s1347_s4 + $0x5c] ss:$104 sps:$4 sm:$0xff]   ;;  %v1197_v53 = vld [vmem:[%s1347_s4 + $0x58] ss:$104 sps:$4 sm:$0xff]   ;;  %v1421_v57 = vshrl.u32 %v944_v55, 7  ;;  %s1093_s8 = sshll.u32 %s1551_s7, 3 }
  0x31   : > { %630 = vmatprep.subr.bf16.mxu1 %v1181_v38  ;;  %v1200_v54 = vld [vmem:[%s1347_s4 + $0x60] ss:$104 sps:$4 sm:$0xff]   ;;  %s1428_s11 = scalar_lea.vmem %s1546_s3, %s1093_s8 }
  0x32   : > { %vm946_vm1 = vcmp.lt.s32.totalorder %v1421_v57, 4 }
  0x35   : > { %1122 = vmatmul.mubr.msk.bf16.vlgmr.msra.gmra.mxu0 %vm407_vm0, %v1354_v30 }
  0x36   : > { %590 = vmatpush1.bf16.msra.mxu0 %v1176_v39  ;;  %607 = vmatprep.mubr.bf16.mxu0 %v1227_v27 }
  0x37   : > { %1123 = vmatmul.mubr.msk.bf16.vlgmr.msra.gmra.mxu1 %vm407_vm0, %v1354_v30  ;;  %671 = vmatprep.subr.bf16.mxu0 %v1184_v40 }
  0x38   : > { %631 = vmatpush1.bf16.msra.mxu1 %v1179_v41  ;;  %648 = vmatprep.mubr.bf16.mxu1 %v1227_v27 }
  0x39   : > { %712 = vmatprep.subr.bf16.mxu1 %v1187_v42 }
  0x3d   : > { %1124 = vmatmul.mubr.msk.bf16.vlgmr.msra.gmra.mxu0 %vm407_vm0, %v1354_v30 }
  0x3e   : > { %672 = vmatpush1.bf16.msra.mxu0 %v1182_v43  ;;  %689 = vmatprep.mubr.bf16.mxu0 %v1227_v27 }
  0x3f   : > { %1125 = vmatmul.mubr.msk.bf16.vlgmr.msra.gmra.mxu1 %vm407_vm0, %v1354_v30  ;;  %753 = vmatprep.subr.bf16.mxu0 %v1190_v44 }
  0x40   : > { %713 = vmatpush1.bf16.msra.mxu1 %v1185_v45  ;;  %730 = vmatprep.mubr.bf16.mxu1 %v1227_v27 }
  0x41   : > { %794 = vmatprep.subr.bf16.mxu1 %v1193_v46 }
  0x45   : > { %1126 = vmatmul.mubr.msk.bf16.vlgmr.msra.gmra.mxu0 %vm407_vm0, %v1354_v30 }
  0x46   : > { %754 = vmatpush1.bf16.msra.mxu0 %v1188_v47  ;;  %771 = vmatprep.mubr.bf16.mxu0 %v1227_v27 }
  0x47   : > { %1127 = vmatmul.mubr.msk.bf16.vlgmr.msra.gmra.mxu1 %vm407_vm0, %v1354_v30  ;;  %835 = vmatprep.subr.bf16.mxu0 %v1196_v48 }
  0x48   : > { %795 = vmatpush1.bf16.msra.mxu1 %v1191_v49  ;;  %812 = vmatprep.mubr.bf16.mxu1 %v1227_v27 }
  0x49   : > { %876 = vmatprep.subr.bf16.mxu1 %v1199_v50 }
  0x4d   : > { %1128 = vmatmul.mubr.msk.bf16.vlgmr.msra.gmra.mxu0 %vm407_vm0, %v1354_v30 }
  0x4e   : > { %836 = vmatpush1.bf16.msra.mxu0 %v1194_v51  ;;  %853 = vmatprep.mubr.bf16.mxu0 %v1227_v27 }
  0x4f   : > { %1129 = vmatmul.mubr.msk.bf16.vlgmr.msra.gmra.mxu1 %vm407_vm0, %v1354_v30  ;;  %917 = vmatprep.subr.bf16.mxu0 %v1202_v52 }
  0x50   : > { %877 = vmatpush1.bf16.msra.mxu1 %v1197_v53  ;;  %894 = vmatprep.mubr.bf16.mxu1 %v1227_v27 }
  0x55   : > { %1130 = vmatmul.mubr.msk.bf16.vlgmr.msra.gmra.mxu0 %vm407_vm0, %v1354_v30 }
  0x56   : > { %918 = vmatpush1.bf16.msra.mxu0 %v1200_v54  ;;  %935 = vmatprep.mubr.bf16.mxu0 %v1227_v27 }
  0x57   : > { %1131 = vmatmul.mubr.msk.bf16.vlgmr.msra.gmra.mxu1 %vm407_vm0, %v1354_v30 }
  0x5d   : > { %1132 = vmatmul.mubr.msk.bf16.vlgmr.msra.gmra.mxu0 %vm407_vm0, %v1354_v30 }
  0xa5   : > { %v1419_v56 = vpop.permute.xlu0 %274 }
  0xed   : > { %v445_v58 = vpop.f32.mrf.mxu0 }
  0xee   : > { %v446_v59 = vadd.f32 %v445_v58, %v1419_v56 }
  0xef   : > { %v447_v60 = vpop.f32.mrf.mxu0  ;;  %v486_v61 = vpop.f32.mrf.mxu1 }
  0xf0   : > { %v947_v62 = vmax.f32 %v446_v59, 0.0  ;;  %v448_v63 = vadd.f32 %v447_v60, %v1419_v56  ;;  %v487_v0 = vadd.f32 %v486_v61, %v1419_v56 }
  0xf1   : > { %v449_v1 = vpop.f32.mrf.mxu0  ;;  %v488_v2 = vpop.f32.mrf.mxu1 }
  0xf2   : > { %v973_v3 = vsel %vm946_vm1, %v947_v62, %v446_v59  ;;  %v948_v4 = vmax.f32 %v448_v63, 0.0  ;;  %v949_v5 = vmax.f32 %v487_v0, 0.0  ;;  %v489_v6 = vadd.f32 %v488_v2, %v1419_v56 }
  0xf3   : > { %999 = vst [vmem:[%s1428_s11] sm:$0xff] %v973_v3  ;;  %v450_v7 = vpop.f32.mrf.mxu0  ;;  %v490_v8 = vpop.f32.mrf.mxu1 }
  0xf4   : > { %v974_v9 = vsel %vm946_vm1, %v948_v4, %v448_v63  ;;  %v975_v10 = vsel %vm946_vm1, %v949_v5, %v487_v0  ;;  %v950_v11 = vmax.f32 %v489_v6, 0.0 }
  0xf5   : > { %1000 = vst [vmem:[%s1428_s11 + $0x8] sm:$0xff] %v974_v9  ;;  %1001 = vst [vmem:[%s1428_s11 + $0x10] sm:$0xff] %v975_v10  ;;  %v527_v12 = vpop.f32.mrf.mxu0  ;;  %v491_v13 = vpop.f32.mrf.mxu1 }
  0xf6   : > { %v976_v14 = vsel %vm946_vm1, %v950_v11, %v489_v6  ;;  %v528_v15 = vadd.f32 %v527_v12, %v1419_v56 }
  0xf7   : > { %1002 = vst [vmem:[%s1428_s11 + $0x18] sm:$0xff] %v976_v14  ;;  %v529_v16 = vpop.f32.mrf.mxu0  ;;  %v568_v17 = vpop.f32.mrf.mxu1 }
  0xf8   : > { %v951_v18 = vmax.f32 %v528_v15, 0.0  ;;  %v530_v19 = vadd.f32 %v529_v16, %v1419_v56  ;;  %v569_v20 = vadd.f32 %v568_v17, %v1419_v56 }
  0xf9   : > { %v531_v21 = vpop.f32.mrf.mxu0  ;;  %v570_v22 = vpop.f32.mrf.mxu1 }
  0xfa   : > { %v977_v23 = vsel %vm946_vm1, %v951_v18, %v528_v15  ;;  %v952_v24 = vmax.f32 %v530_v19, 0.0  ;;  %v953_v25 = vmax.f32 %v569_v20, 0.0  ;;  %v571_v26 = vadd.f32 %v570_v22, %v1419_v56 }
  0xfb   : > { %1003 = vst [vmem:[%s1428_s11 + $0x20] sm:$0xff] %v977_v23  ;;  %v532_v27 = vpop.f32.mrf.mxu0  ;;  %v572_v28 = vpop.f32.mrf.mxu1 }
  0xfc   : > { %v978_v29 = vsel %vm946_vm1, %v952_v24, %v530_v19  ;;  %v979_v30 = vsel %vm946_vm1, %v953_v25, %v569_v20  ;;  %v954_v31 = vmax.f32 %v571_v26, 0.0 }
  0xfd   : > { %1004 = vst [vmem:[%s1428_s11 + $0x28] sm:$0xff] %v978_v29  ;;  %1005 = vst [vmem:[%s1428_s11 + $0x30] sm:$0xff] %v979_v30  ;;  %v609_v32 = vpop.f32.mrf.mxu0  ;;  %v573_v33 = vpop.f32.mrf.mxu1 }
  0xfe   : > { %v980_v34 = vsel %vm946_vm1, %v954_v31, %v571_v26  ;;  %v610_v35 = vadd.f32 %v609_v32, %v1419_v56 }
  0xff   : > { %1006 = vst [vmem:[%s1428_s11 + $0x38] sm:$0xff] %v980_v34  ;;  %v611_v36 = vpop.f32.mrf.mxu0  ;;  %v650_v37 = vpop.f32.mrf.mxu1 }
 0x100   : > { %v955_v38 = vmax.f32 %v610_v35, 0.0  ;;  %v612_v39 = vadd.f32 %v611_v36, %v1419_v56  ;;  %v651_v40 = vadd.f32 %v650_v37, %v1419_v56 }
 0x101   : > { %v613_v41 = vpop.f32.mrf.mxu0  ;;  %v652_v42 = vpop.f32.mrf.mxu1 }
 0x102   : > { %v981_v43 = vsel %vm946_vm1, %v955_v38, %v610_v35  ;;  %v956_v44 = vmax.f32 %v612_v39, 0.0  ;;  %v957_v45 = vmax.f32 %v651_v40, 0.0  ;;  %v653_v46 = vadd.f32 %v652_v42, %v1419_v56 }
 0x103   : > { %1007 = vst [vmem:[%s1428_s11 + $0x40] sm:$0xff] %v981_v43  ;;  %v614_v47 = vpop.f32.mrf.mxu0  ;;  %v654_v48 = vpop.f32.mrf.mxu1 }
 0x104   : > { %v982_v49 = vsel %vm946_vm1, %v956_v44, %v612_v39  ;;  %v983_v50 = vsel %vm946_vm1, %v957_v45, %v651_v40  ;;  %v958_v51 = vmax.f32 %v653_v46, 0.0 }
 0x105   : > { %1008 = vst [vmem:[%s1428_s11 + $0x48] sm:$0xff] %v982_v49  ;;  %1009 = vst [vmem:[%s1428_s11 + $0x50] sm:$0xff] %v983_v50  ;;  %v691_v52 = vpop.f32.mrf.mxu0  ;;  %v655_v53 = vpop.f32.mrf.mxu1 }
 0x106   : > { %v984_v54 = vsel %vm946_vm1, %v958_v51, %v653_v46  ;;  %v692_v55 = vadd.f32 %v691_v52, %v1419_v56 }
 0x107   : > { %1010 = vst [vmem:[%s1428_s11 + $0x58] sm:$0xff] %v984_v54  ;;  %v693_v58 = vpop.f32.mrf.mxu0  ;;  %v732_v59 = vpop.f32.mrf.mxu1 }
 0x108   : > { %v959_v60 = vmax.f32 %v692_v55, 0.0  ;;  %v694_v61 = vadd.f32 %v693_v58, %v1419_v56  ;;  %v733_v62 = vadd.f32 %v732_v59, %v1419_v56 }
 0x109   : > { %v695_v63 = vpop.f32.mrf.mxu0  ;;  %v734_v0 = vpop.f32.mrf.mxu1 }
 0x10a   : > { %v985_v1 = vsel %vm946_vm1, %v959_v60, %v692_v55  ;;  %v960_v2 = vmax.f32 %v694_v61, 0.0  ;;  %v961_v3 = vmax.f32 %v733_v62, 0.0  ;;  %v735_v4 = vadd.f32 %v734_v0, %v1419_v56 }
 0x10b   : > { %1011 = vst [vmem:[%s1428_s11 + $0x60] sm:$0xff] %v985_v1  ;;  %v696_v5 = vpop.f32.mrf.mxu0  ;;  %v736_v6 = vpop.f32.mrf.mxu1 }
 0x10c   : > { %v986_v7 = vsel %vm946_vm1, %v960_v2, %v694_v61  ;;  %v987_v8 = vsel %vm946_vm1, %v961_v3, %v733_v62  ;;  %v962_v9 = vmax.f32 %v735_v4, 0.0 }
 0x10d   : > { %1012 = vst [vmem:[%s1428_s11 + $0x68] sm:$0xff] %v986_v7  ;;  %1013 = vst [vmem:[%s1428_s11 + $0x70] sm:$0xff] %v987_v8  ;;  %v773_v10 = vpop.f32.mrf.mxu0  ;;  %v737_v11 = vpop.f32.mrf.mxu1 }
 0x10e   : > { %v988_v12 = vsel %vm946_vm1, %v962_v9, %v735_v4  ;;  %v774_v13 = vadd.f32 %v773_v10, %v1419_v56 }
 0x10f   : > { %1014 = vst [vmem:[%s1428_s11 + $0x78] sm:$0xff] %v988_v12  ;;  %v775_v14 = vpop.f32.mrf.mxu0  ;;  %v814_v15 = vpop.f32.mrf.mxu1 }
 0x110   : > { %v963_v16 = vmax.f32 %v774_v13, 0.0  ;;  %v776_v17 = vadd.f32 %v775_v14, %v1419_v56  ;;  %v815_v18 = vadd.f32 %v814_v15, %v1419_v56 }
 0x111   : > { %v777_v19 = vpop.f32.mrf.mxu0  ;;  %v816_v20 = vpop.f32.mrf.mxu1 }
 0x112   : > { %v989_v21 = vsel %vm946_vm1, %v963_v16, %v774_v13  ;;  %v964_v22 = vmax.f32 %v776_v17, 0.0  ;;  %v965_v23 = vmax.f32 %v815_v18, 0.0  ;;  %v817_v24 = vadd.f32 %v816_v20, %v1419_v56 }
 0x113   : > { %1015 = vst [vmem:[%s1428_s11 + $0x80] sm:$0xff] %v989_v21  ;;  %v778_v25 = vpop.f32.mrf.mxu0  ;;  %v818_v26 = vpop.f32.mrf.mxu1 }
 0x114   : > { %v990_v27 = vsel %vm946_vm1, %v964_v22, %v776_v17  ;;  %v991_v28 = vsel %vm946_vm1, %v965_v23, %v815_v18  ;;  %v966_v29 = vmax.f32 %v817_v24, 0.0 }
 0x115   : > { %1016 = vst [vmem:[%s1428_s11 + $0x88] sm:$0xff] %v990_v27  ;;  %1017 = vst [vmem:[%s1428_s11 + $0x90] sm:$0xff] %v991_v28  ;;  %v855_v30 = vpop.f32.mrf.mxu0  ;;  %v819_v31 = vpop.f32.mrf.mxu1 }
 0x116   : > { %v992_v32 = vsel %vm946_vm1, %v966_v29, %v817_v24  ;;  %v856_v33 = vadd.f32 %v855_v30, %v1419_v56 }
 0x117   : > { %1018 = vst [vmem:[%s1428_s11 + $0x98] sm:$0xff] %v992_v32  ;;  %v857_v34 = vpop.f32.mrf.mxu0  ;;  %v896_v35 = vpop.f32.mrf.mxu1 }
 0x118   : > { %v967_v36 = vmax.f32 %v856_v33, 0.0  ;;  %v858_v37 = vadd.f32 %v857_v34, %v1419_v56  ;;  %v897_v38 = vadd.f32 %v896_v35, %v1419_v56 }
 0x119   : > { %v859_v39 = vpop.f32.mrf.mxu0  ;;  %v898_v40 = vpop.f32.mrf.mxu1 }
 0x11a   : > { %v993_v41 = vsel %vm946_vm1, %v967_v36, %v856_v33  ;;  %v968_v42 = vmax.f32 %v858_v37, 0.0  ;;  %v969_v43 = vmax.f32 %v897_v38, 0.0  ;;  %v899_v44 = vadd.f32 %v898_v40, %v1419_v56 }
 0x11b   : > { %1019 = vst [vmem:[%s1428_s11 + $0xa0] sm:$0xff] %v993_v41  ;;  %v860_v45 = vpop.f32.mrf.mxu0  ;;  %v900_v46 = vpop.f32.mrf.mxu1 }
 0x11c   : > { %v994_v47 = vsel %vm946_vm1, %v968_v42, %v858_v37  ;;  %v995_v48 = vsel %vm946_vm1, %v969_v43, %v897_v38  ;;  %v970_v49 = vmax.f32 %v899_v44, 0.0 }
 0x11d   : > { %1020 = vst [vmem:[%s1428_s11 + $0xa8] sm:$0xff] %v994_v47  ;;  %1021 = vst [vmem:[%s1428_s11 + $0xb0] sm:$0xff] %v995_v48  ;;  %v937_v50 = vpop.f32.mrf.mxu0  ;;  %v901_v51 = vpop.f32.mrf.mxu1 }
 0x11e   : > { %v996_v52 = vsel %vm946_vm1, %v970_v49, %v899_v44  ;;  %v938_v53 = vadd.f32 %v937_v50, %v1419_v56 }
 0x11f   : > { %1022 = vst [vmem:[%s1428_s11 + $0xb8] sm:$0xff] %v996_v52  ;;  %v939_v54 = vpop.f32.mrf.mxu0 }
 0x120   : > { %v971_v55 = vmax.f32 %v938_v53, 0.0  ;;  %v940_v58 = vadd.f32 %v939_v54, %v1419_v56 }
 0x121   : > { %v941_v59 = vpop.f32.mrf.mxu0 }
 0x122   : > { %v997_v60 = vsel %vm946_vm1, %v971_v55, %v938_v53  ;;  %v972_v61 = vmax.f32 %v940_v58, 0.0 }
 0x123   : > { %1023 = vst [vmem:[%s1428_s11 + $0xc0] sm:$0xff] %v997_v60  ;;  %v942_v62 = vpop.f32.mrf.mxu0 }
 0x124   : > { %v998_v63 = vsel %vm946_vm1, %v972_v61, %v940_v58 }
 0x125   : > { %1024 = vst [vmem:[%s1428_s11 + $0xc8] sm:$0xff] %v998_v63 }
 0x126 PF: > { %p10_p9 = scmp.ge.s32.totalorder %s1265_s16, 4   ;;  %s1547_s12 = smov %s1221_s13 }
 0x127   : > { %s1548_s13 = smov %s1274_s19  ;;  %s1549_s14 = smov %s1265_s16 }
 0x128   :  { %12 = sbr.rel (!%p10_p9) target bundleno = 2 (0x2), region = 90 }

// kernel: _lambda_.10
= control target key start
LH: loop header
LB: loop body
LE: loop exit
PB: predicated region body
PF: predicated region fallthrough
CT: control target
= control target key end

     0   :  { %s2089_s15 = smov 0   ;;  %s2091_s16 = smov 0   ;;  %s2502_s0 = inlined_call_operand.vmem [shape: bf16[4,48], index: 0, kind: input, shape index: {}]   ;;  %s2503_s1 = inlined_call_operand.vmem [shape: f32[4,1], index: 1, kind: input, shape index: {}]   ;;  %s2504_s2 = inlined_call_operand.vmem [shape: bf16[48,6656], index: 2, kind: input, shape index: {}]   ;;  %s2505_s3 = inlined_call_operand.vmem [shape: f32[4,6656], index: 3, kind: input, shape index: {}]   ;;  %s2506_s4 = inlined_call_operand.vmem [shape: bf16[4,6656], index: 4, kind: output, shape index: {}]  }
   0x1   :  { %s2093_s17 = smov 0  }
   0x2 LB: > { %s1763_s18 = sadd.s32 4294967295, %s2060_s17   ;;  %s2106_s19 = sadd.s32 1, %s2060_s17   ;;  %s2060_s17 = sphi %s2093_s17, %s2509_s17   ;;  %s2056_s16 = sphi %s2091_s16, %s2508_s16   ;;  %s2052_s15 = sphi %s2089_s15, %s2507_s15  }
   0x3   : > { %s60_s20 = ssub.s32 %s2060_s17, %s2106_s19  ;;  %s63_s21 = sadd.s32 1, %s2056_s16 }
   0x4   : > { %p61_p0 = scmp.eq.s32.totalorder %s60_s20, 0  ;;  %p70_p1 = scmp.ne.s32.totalorder %s2056_s16, %s2052_s15 }
   0x5   : > { %p71_p2 = scmp.eq.s32.totalorder %s2060_s17, 0  ;;  %p1766_p4 = scmp.ge.s32.totalorder %s2060_s17, 2 }
   0x6   : > { %s2115_s22 = scalar_select %p61_p0, %s2056_s16, %s63_s21  }
   0x7   : > { %p72_p3 = por %p71_p2, %p70_p1  ;;  %154 = sbr.rel (%p1766_p4) target bundleno = 56 (0x38), region = 24 }
   0xc   : > { %157 = sbr.rel (!%p72_p3) target bundleno = 56 (0x38), region = 28  ;;  %s159_s23 = sand.u32 (%p72_p3), 1, %s2056_s16  }
   0xd   : > { %s1878_s24 = smul.u32 (%p72_p3), 104, %s2060_s17 }
   0xe   : > { %s1879_s25 = smul.u32 (%p72_p3), 624, %s159_s23 }
   0xf   : > { %s2123_s28 = scalar_lea.vmem (%p72_p3), %s2504_s2, %s1878_s24 }
  0x10   : > { %v177_v0 = vld [vmem:[%s2123_s28] sm:$0xff] (%p72_p3)  ;;  %v179_v1 = vld [vmem:[%s2123_s28 + $0x8] sm:$0xff] (%p72_p3)  ;;  %v181_v2 = vld [vmem:[%s2123_s28 + $0x10] sm:$0xff] (%p72_p3)  ;;  %s2128_s29 = scalar_lea.vmem (%p72_p3), [#allocation2], %s1879_s25 }
  0x11   : > { %178 = vst [vmem:[%s2128_s29] sm:$0xff] %v177_v0  ;;  %180 = vst [vmem:[%s2128_s29 + $0x8] sm:$0xff] %v179_v1  ;;  %v183_v3 = vld [vmem:[%s2123_s28 + $0x18] sm:$0xff]  ;;  %v185_v4 = vld [vmem:[%s2123_s28 + $0x20] sm:$0xff] }
  0x12   : > { %182 = vst [vmem:[%s2128_s29 + $0x10] sm:$0xff] %v181_v2  ;;  %v187_v5 = vld [vmem:[%s2123_s28 + $0x28] sm:$0xff]  ;;  %184 = vst [vmem:[%s2128_s29 + $0x18] sm:$0xff] %v183_v3  ;;  %v189_v6 = vld [vmem:[%s2123_s28 + $0x30] sm:$0xff] }
  0x13   : > { %186 = vst [vmem:[%s2128_s29 + $0x20] sm:$0xff] %v185_v4  ;;  %188 = vst [vmem:[%s2128_s29 + $0x28] sm:$0xff] %v187_v5  ;;  %v191_v7 = vld [vmem:[%s2123_s28 + $0x38] sm:$0xff]  ;;  %v193_v8 = vld [vmem:[%s2123_s28 + $0x40] sm:$0xff] }
  0x14   : > { %190 = vst [vmem:[%s2128_s29 + $0x30] sm:$0xff] %v189_v6  ;;  %192 = vst [vmem:[%s2128_s29 + $0x38] sm:$0xff] %v191_v7  ;;  %v195_v9 = vld [vmem:[%s2123_s28 + $0x48] sm:$0xff]  ;;  %v197_v10 = vld [vmem:[%s2123_s28 + $0x50] sm:$0xff] }
  0x15   : > { %194 = vst [vmem:[%s2128_s29 + $0x40] sm:$0xff] %v193_v8  ;;  %v199_v11 = vld [vmem:[%s2123_s28 + $0x58] sm:$0xff]  ;;  %196 = vst [vmem:[%s2128_s29 + $0x48] sm:$0xff] %v195_v9  ;;  %v201_v12 = vld [vmem:[%s2123_s28 + $0x60] sm:$0xff] }
  0x16   : > { %198 = vst [vmem:[%s2128_s29 + $0x50] sm:$0xff] %v197_v10  ;;  %200 = vst [vmem:[%s2128_s29 + $0x58] sm:$0xff] %v199_v11  ;;  %v203_v13 = vld [vmem:[%s2123_s28 + $0xd0] sm:$0xff]  ;;  %v205_v14 = vld [vmem:[%s2123_s28 + $0xd8] sm:$0xff] }
  0x17   : > { %202 = vst [vmem:[%s2128_s29 + $0x60] sm:$0xff] %v201_v12  ;;  %204 = vst [vmem:[%s2128_s29 + $0x68] sm:$0xff] %v203_v13  ;;  %v207_v15 = vld [vmem:[%s2123_s28 + $0xe0] sm:$0xff]  ;;  %v209_v16 = vld [vmem:[%s2123_s28 + $0xe8] sm:$0xff] }
  0x18   : > { %206 = vst [vmem:[%s2128_s29 + $0x70] sm:$0xff] %v205_v14  ;;  %v211_v17 = vld [vmem:[%s2123_s28 + $0xf0] sm:$0xff]  ;;  %208 = vst [vmem:[%s2128_s29 + $0x78] sm:$0xff] %v207_v15  ;;  %v213_v18 = vld [vmem:[%s2123_s28 + $0xf8] sm:$0xff] }
  0x19   : > { %210 = vst [vmem:[%s2128_s29 + $0x80] sm:$0xff] %v209_v16  ;;  %212 = vst [vmem:[%s2128_s29 + $0x88] sm:$0xff] %v211_v17  ;;  %v215_v19 = vld [vmem:[%s2123_s28 + $0x100] sm:$0xff]  ;;  %v217_v20 = vld [vmem:[%s2123_s28 + $0x108] sm:$0xff] }
  0x1a   : > { %214 = vst [vmem:[%s2128_s29 + $0x90] sm:$0xff] %v213_v18  ;;  %216 = vst [vmem:[%s2128_s29 + $0x98] sm:$0xff] %v215_v19  ;;  %v219_v21 = vld [vmem:[%s2123_s28 + $0x110] sm:$0xff]  ;;  %v221_v22 = vld [vmem:[%s2123_s28 + $0x118] sm:$0xff] }
  0x1b   : > { %218 = vst [vmem:[%s2128_s29 + $0xa0] sm:$0xff] %v217_v20  ;;  %v223_v23 = vld [vmem:[%s2123_s28 + $0x120] sm:$0xff]  ;;  %220 = vst [vmem:[%s2128_s29 + $0xa8] sm:$0xff] %v219_v21  ;;  %v225_v24 = vld [vmem:[%s2123_s28 + $0x128] sm:$0xff] }
  0x1c   : > { %222 = vst [vmem:[%s2128_s29 + $0xb0] sm:$0xff] %v221_v22  ;;  %224 = vst [vmem:[%s2128_s29 + $0xb8] sm:$0xff] %v223_v23  ;;  %v227_v25 = vld [vmem:[%s2123_s28 + $0x130] sm:$0xff]  ;;  %v229_v26 = vld [vmem:[%s2123_s28 + $0x1a0] sm:$0xff] }
  0x1d   : > { %226 = vst [vmem:[%s2128_s29 + $0xc0] sm:$0xff] %v225_v24  ;;  %228 = vst [vmem:[%s2128_s29 + $0xc8] sm:$0xff] %v227_v25  ;;  %v231_v27 = vld [vmem:[%s2123_s28 + $0x1a8] sm:$0xff]  ;;  %v233_v28 = vld [vmem:[%s2123_s28 + $0x1b0] sm:$0xff] }
  0x1e   : > { %230 = vst [vmem:[%s2128_s29 + $0xd0] sm:$0xff] %v229_v26  ;;  %v235_v29 = vld [vmem:[%s2123_s28 + $0x1b8] sm:$0xff]  ;;  %232 = vst [vmem:[%s2128_s29 + $0xd8] sm:$0xff] %v231_v27  ;;  %v237_v30 = vld [vmem:[%s2123_s28 + $0x1c0] sm:$0xff] }
  0x1f   : > { %234 = vst [vmem:[%s2128_s29 + $0xe0] sm:$0xff] %v233_v28  ;;  %236 = vst [vmem:[%s2128_s29 + $0xe8] sm:$0xff] %v235_v29  ;;  %v239_v31 = vld [vmem:[%s2123_s28 + $0x1c8] sm:$0xff]  ;;  %v241_v32 = vld [vmem:[%s2123_s28 + $0x1d0] sm:$0xff] }
  0x20   : > { %238 = vst [vmem:[%s2128_s29 + $0xf0] sm:$0xff] %v237_v30  ;;  %240 = vst [vmem:[%s2128_s29 + $0xf8] sm:$0xff] %v239_v31  ;;  %v243_v33 = vld [vmem:[%s2123_s28 + $0x1d8] sm:$0xff]  ;;  %v245_v34 = vld [vmem:[%s2123_s28 + $0x1e0] sm:$0xff] }
  0x21   : > { %242 = vst [vmem:[%s2128_s29 + $0x100] sm:$0xff] %v241_v32  ;;  %v247_v35 = vld [vmem:[%s2123_s28 + $0x1e8] sm:$0xff]  ;;  %244 = vst [vmem:[%s2128_s29 + $0x108] sm:$0xff] %v243_v33  ;;  %v249_v36 = vld [vmem:[%s2123_s28 + $0x1f0] sm:$0xff] }
  0x22   : > { %246 = vst [vmem:[%s2128_s29 + $0x110] sm:$0xff] %v245_v34  ;;  %248 = vst [vmem:[%s2128_s29 + $0x118] sm:$0xff] %v247_v35  ;;  %v251_v37 = vld [vmem:[%s2123_s28 + $0x1f8] sm:$0xff]  ;;  %v253_v38 = vld [vmem:[%s2123_s28 + $0x200] sm:$0xff] }
  0x23   : > { %250 = vst [vmem:[%s2128_s29 + $0x120] sm:$0xff] %v249_v36  ;;  %252 = vst [vmem:[%s2128_s29 + $0x128] sm:$0xff] %v251_v37  ;;  %v255_v39 = vld [vmem:[%s2123_s28 + $0x270] sm:$0xff]  ;;  %v257_v40 = vld [vmem:[%s2123_s28 + $0x278] sm:$0xff] }
  0x24   : > { %254 = vst [vmem:[%s2128_s29 + $0x130] sm:$0xff] %v253_v38  ;;  %v259_v41 = vld [vmem:[%s2123_s28 + $0x280] sm:$0xff]  ;;  %256 = vst [vmem:[%s2128_s29 + $0x138] sm:$0xff] %v255_v39  ;;  %v261_v42 = vld [vmem:[%s2123_s28 + $0x288] sm:$0xff] }
  0x25   : > { %258 = vst [vmem:[%s2128_s29 + $0x140] sm:$0xff] %v257_v40  ;;  %260 = vst [vmem:[%s2128_s29 + $0x148] sm:$0xff] %v259_v41  ;;  %v263_v43 = vld [vmem:[%s2123_s28 + $0x290] sm:$0xff]  ;;  %v265_v44 = vld [vmem:[%s2123_s28 + $0x298] sm:$0xff] }
  0x26   : > { %262 = vst [vmem:[%s2128_s29 + $0x150] sm:$0xff] %v261_v42  ;;  %264 = vst [vmem:[%s2128_s29 + $0x158] sm:$0xff] %v263_v43  ;;  %v267_v45 = vld [vmem:[%s2123_s28 + $0x2a0] sm:$0xff]  ;;  %v269_v46 = vld [vmem:[%s2123_s28 + $0x2a8] sm:$0xff] }
  0x27   : > { %266 = vst [vmem:[%s2128_s29 + $0x160] sm:$0xff] %v265_v44  ;;  %v271_v47 = vld [vmem:[%s2123_s28 + $0x2b0] sm:$0xff]  ;;  %268 = vst [vmem:[%s2128_s29 + $0x168] sm:$0xff] %v267_v45  ;;  %v273_v48 = vld [vmem:[%s2123_s28 + $0x2b8] sm:$0xff] }
  0x28   : > { %270 = vst [vmem:[%s2128_s29 + $0x170] sm:$0xff] %v269_v46  ;;  %272 = vst [vmem:[%s2128_s29 + $0x178] sm:$0xff] %v271_v47  ;;  %v275_v49 = vld [vmem:[%s2123_s28 + $0x2c0] sm:$0xff]  ;;  %v277_v50 = vld [vmem:[%s2123_s28 + $0x2c8] sm:$0xff] }
  0x29   : > { %274 = vst [vmem:[%s2128_s29 + $0x180] sm:$0xff] %v273_v48  ;;  %276 = vst [vmem:[%s2128_s29 + $0x188] sm:$0xff] %v275_v49  ;;  %v279_v51 = vld [vmem:[%s2123_s28 + $0x2d0] sm:$0xff]  ;;  %v281_v52 = vld [vmem:[%s2123_s28 + $0x340] sm:$0xff] }
  0x2a   : > { %278 = vst [vmem:[%s2128_s29 + $0x190] sm:$0xff] %v277_v50  ;;  %v283_v53 = vld [vmem:[%s2123_s28 + $0x348] sm:$0xff]  ;;  %280 = vst [vmem:[%s2128_s29 + $0x198] sm:$0xff] %v279_v51  ;;  %v285_v54 = vld [vmem:[%s2123_s28 + $0x350] sm:$0xff] }
  0x2b   : > { %282 = vst [vmem:[%s2128_s29 + $0x1a0] sm:$0xff] %v281_v52  ;;  %284 = vst [vmem:[%s2128_s29 + $0x1a8] sm:$0xff] %v283_v53  ;;  %v287_v55 = vld [vmem:[%s2123_s28 + $0x358] sm:$0xff]  ;;  %v289_v56 = vld [vmem:[%s2123_s28 + $0x360] sm:$0xff] }
  0x2c   : > { %286 = vst [vmem:[%s2128_s29 + $0x1b0] sm:$0xff] %v285_v54  ;;  %288 = vst [vmem:[%s2128_s29 + $0x1b8] sm:$0xff] %v287_v55  ;;  %v291_v57 = vld [vmem:[%s2123_s28 + $0x368] sm:$0xff]  ;;  %v293_v58 = vld [vmem:[%s2123_s28 + $0x370] sm:$0xff] }
  0x2d   : > { %290 = vst [vmem:[%s2128_s29 + $0x1c0] sm:$0xff] %v289_v56  ;;  %v295_v59 = vld [vmem:[%s2123_s28 + $0x378] sm:$0xff]  ;;  %292 = vst [vmem:[%s2128_s29 + $0x1c8] sm:$0xff] %v291_v57  ;;  %v297_v60 = vld [vmem:[%s2123_s28 + $0x380] sm:$0xff] }
  0x2e   : > { %294 = vst [vmem:[%s2128_s29 + $0x1d0] sm:$0xff] %v293_v58  ;;  %296 = vst [vmem:[%s2128_s29 + $0x1d8] sm:$0xff] %v295_v59  ;;  %v299_v61 = vld [vmem:[%s2123_s28 + $0x388] sm:$0xff]  ;;  %v301_v62 = vld [vmem:[%s2123_s28 + $0x390] sm:$0xff] }
  0x2f   : > { %298 = vst [vmem:[%s2128_s29 + $0x1e0] sm:$0xff] %v297_v60  ;;  %300 = vst [vmem:[%s2128_s29 + $0x1e8] sm:$0xff] %v299_v61  ;;  %v303_v63 = vld [vmem:[%s2123_s28 + $0x398] sm:$0xff]  ;;  %v305_v0 = vld [vmem:[%s2123_s28 + $0x3a0] sm:$0xff] }
  0x30   : > { %302 = vst [vmem:[%s2128_s29 + $0x1f0] sm:$0xff] %v301_v62  ;;  %v307_v1 = vld [vmem:[%s2123_s28 + $0x410] sm:$0xff]  ;;  %304 = vst [vmem:[%s2128_s29 + $0x1f8] sm:$0xff] %v303_v63  ;;  %v309_v2 = vld [vmem:[%s2123_s28 + $0x418] sm:$0xff] }
  0x31   : > { %306 = vst [vmem:[%s2128_s29 + $0x200] sm:$0xff] %v305_v0  ;;  %308 = vst [vmem:[%s2128_s29 + $0x208] sm:$0xff] %v307_v1  ;;  %v311_v3 = vld [vmem:[%s2123_s28 + $0x420] sm:$0xff]  ;;  %v313_v4 = vld [vmem:[%s2123_s28 + $0x428] sm:$0xff] }
  0x32   : > { %310 = vst [vmem:[%s2128_s29 + $0x210] sm:$0xff] %v309_v2  ;;  %312 = vst [vmem:[%s2128_s29 + $0x218] sm:$0xff] %v311_v3  ;;  %v315_v5 = vld [vmem:[%s2123_s28 + $0x430] sm:$0xff]  ;;  %v317_v6 = vld [vmem:[%s2123_s28 + $0x438] sm:$0xff] }
  0x33   : > { %314 = vst [vmem:[%s2128_s29 + $0x220] sm:$0xff] %v313_v4  ;;  %v319_v7 = vld [vmem:[%s2123_s28 + $0x440] sm:$0xff]  ;;  %316 = vst [vmem:[%s2128_s29 + $0x228] sm:$0xff] %v315_v5  ;;  %v321_v8 = vld [vmem:[%s2123_s28 + $0x448] sm:$0xff] }
  0x34   : > { %318 = vst [vmem:[%s2128_s29 + $0x230] sm:$0xff] %v317_v6  ;;  %320 = vst [vmem:[%s2128_s29 + $0x238] sm:$0xff] %v319_v7  ;;  %v323_v9 = vld [vmem:[%s2123_s28 + $0x450] sm:$0xff]  ;;  %v325_v10 = vld [vmem:[%s2123_s28 + $0x458] sm:$0xff] }
  0x35   : > { %322 = vst [vmem:[%s2128_s29 + $0x240] sm:$0xff] %v321_v8  ;;  %324 = vst [vmem:[%s2128_s29 + $0x248] sm:$0xff] %v323_v9  ;;  %v327_v11 = vld [vmem:[%s2123_s28 + $0x460] sm:$0xff]  ;;  %v329_v12 = vld [vmem:[%s2123_s28 + $0x468] sm:$0xff] }
  0x36   : > { %326 = vst [vmem:[%s2128_s29 + $0x250] sm:$0xff] %v325_v10  ;;  %v331_v13 = vld [vmem:[%s2123_s28 + $0x470] sm:$0xff]  ;;  %328 = vst [vmem:[%s2128_s29 + $0x258] sm:$0xff] %v327_v11 }
  0x37   : > { %330 = vst [vmem:[%s2128_s29 + $0x260] sm:$0xff] %v329_v12  ;;  %332 = vst [vmem:[%s2128_s29 + $0x268] sm:$0xff] %v331_v13 }
  0x38 PF: > { %p1768_p5 = scmp.ge.s32.totalorder %s2060_s17, 1  ;;  %p346_p6 = scmp.lt.s32.totalorder %s2060_s17, 3 }
  0x3a   : > { %p347_p7 = pnand %p1768_p5, %p346_p6 }
  0x3b   : > { %s353_s30 = sand.u32 (!%p347_p7), 1, %s2052_s15   ;;  %s384_s11 = smul.u32 (!%p347_p7), 26, %s1763_s18 }
  0x3c   : > { %350 = sbr.rel (%p347_p7) target bundleno = 356 (0x164), region = 55 }
  0x3d   : > { %s1880_s5 = smul.u32 (!%p347_p7), 624, %s353_s30  ;;  %p385_p8 = scmp.lt.s32.totalorder (!%p347_p7), %s384_s11, 51 }
  0x3f   : > { %s2292_s8 = scalar_lea.vmem (!%p347_p7), [#allocation2], %s1880_s5 }
  0x41   : > { %v2062_v14 = vmov 0   ;;  %v476_v15 = vld [vmem:[%s2503_s1] sm:$0xf]  ;;  %v1908_v16 = vld [vmem:[%s2292_s8 + $0x1a4] ss:$104 sps:$4 sm:$0xff]   ;;  %vm872_vm0 = vcmask 392192  }
  0x42   : > { %908 = vmatprep.mubr.bf16.mxu0 %v2062_v14  ;;  %949 = vmatprep.mubr.bf16.mxu1 %v2062_v14  ;;  %v1910_v17 = vld [vmem:[%s2292_s8 + $0x1ac] ss:$104 sps:$4 sm:$0xff]   ;;  %v1912_v18 = vld [vmem:[%s2292_s8 + $0x1a0] ss:$104 sps:$4 sm:$0xff]   ;;  %v1916_v21 = vld [vmem:[%s2292_s8 + $0xdc] ss:$104 sps:$4 sm:$0xff]  }
  0x43   : > { %1907 = vset.pattern.permute.xlu0 %v2062_v14  ;;  %886 = vmatprep.subr.bf16.mxu0 %v1908_v16  ;;  %v1913_v19 = vld [vmem:[%s2292_s8 + $0x1a8] ss:$104 sps:$4 sm:$0xff]   ;;  %v1914_v20 = vld [vmem:[%s2292_s8 + $0xd4] ss:$104 sps:$4 sm:$0xff]   ;;  %v1919_v23 = vld [vmem:[%s2292_s8 + $0xd8] ss:$104 sps:$4 sm:$0xff]  }
  0x44   : > { %479 = vperm.xlu0 %1907, %v476_v15   ;;  %927 = vmatprep.subr.bf16.mxu1 %v1910_v17  ;;  %v1918_v22 = vld [vmem:[%s2292_s8 + $0xd0] ss:$104 sps:$4 sm:$0xff]   ;;  %v1920_v24 = vld [vmem:[%s2292_s8 + $0x4] ss:$104 sps:$4 sm:$0xff]   ;;  %v1924_v26 = vld [vmem:[%s2292_s8] ss:$104 sps:$4 sm:$0xff]  }
  0x45   : > { %887 = vmatpush1.bf16.msra.mxu0 %v1912_v18  ;;  %928 = vmatpush1.bf16.msra.mxu1 %v1913_v19  ;;  %v1922_v25 = vld [vmem:[%s2292_s8 + $0xc] ss:$104 sps:$4 sm:$0xff]   ;;  %v1925_v27 = vld [vmem:[%s2292_s8 + $0x8] ss:$104 sps:$4 sm:$0xff]   ;;  %v1931_v30 = vld [vmem:[%s2292_s8 + $0x1bc] ss:$104 sps:$4 sm:$0xff]  }
  0x46   : > { %888 = vmatprep.subr.bf16.mxu0 %v1914_v20  ;;  %929 = vmatprep.subr.bf16.mxu1 %v1916_v21  ;;  %v1928_v28 = vld [vmem:[%s2292_s8 + $0x1b4] ss:$104 sps:$4 sm:$0xff]   ;;  %v2310_v29 = vld [vmem:[%s2502_s0] sm:$0x3]  ;;  %v1934_v33 = vld [vmem:[%s2292_s8 + $0xe4] ss:$104 sps:$4 sm:$0xff]  }
  0x47   : > { %v1926_v31 = vld [vmem:[%s2292_s8 + $0x1b0] ss:$104 sps:$4 sm:$0xff]   ;;  %v1937_v34 = vld [vmem:[%s2292_s8 + $0xec] ss:$104 sps:$4 sm:$0xff]   ;;  %v1932_v35 = vld [vmem:[%s2292_s8 + $0xe0] ss:$104 sps:$4 sm:$0xff]  }
  0x48   : > { %v1929_v32 = vld [vmem:[%s2292_s8 + $0x1b8] ss:$104 sps:$4 sm:$0xff]   ;;  %v1935_v36 = vld [vmem:[%s2292_s8 + $0xe8] ss:$104 sps:$4 sm:$0xff]   ;;  %v1940_v37 = vld [vmem:[%s2292_s8 + $0x14] ss:$104 sps:$4 sm:$0xff]  }
  0x49   : > { %889 = vmatpush1.bf16.msra.mxu0 %v1918_v22  ;;  %930 = vmatpush1.bf16.msra.mxu1 %v1919_v23  ;;  %v1943_v38 = vld [vmem:[%s2292_s8 + $0x1c] ss:$104 sps:$4 sm:$0xff]   ;;  %v1938_v39 = vld [vmem:[%s2292_s8 + $0x10] ss:$104 sps:$4 sm:$0xff]   ;;  %v1949_v42 = vld [vmem:[%s2292_s8 + $0x1cc] ss:$104 sps:$4 sm:$0xff]  }
  0x4a   : > { %890 = vmatprep.subr.bf16.mxu0 %v1920_v24  ;;  %931 = vmatprep.subr.bf16.mxu1 %v1922_v25  ;;  %v1941_v40 = vld [vmem:[%s2292_s8 + $0x18] ss:$104 sps:$4 sm:$0xff]   ;;  %v1946_v41 = vld [vmem:[%s2292_s8 + $0x1c4] ss:$104 sps:$4 sm:$0xff]   ;;  %v1947_v44 = vld [vmem:[%s2292_s8 + $0x1c8] ss:$104 sps:$4 sm:$0xff]  }
  0x4b   : > { %v1944_v43 = vld [vmem:[%s2292_s8 + $0x1c0] ss:$104 sps:$4 sm:$0xff]   ;;  %v1952_v45 = vld [vmem:[%s2292_s8 + $0xf4] ss:$104 sps:$4 sm:$0xff]   ;;  %v1950_v47 = vld [vmem:[%s2292_s8 + $0xf0] ss:$104 sps:$4 sm:$0xff]  }
  0x4c   : > { %v1955_v46 = vld [vmem:[%s2292_s8 + $0xfc] ss:$104 sps:$4 sm:$0xff]   ;;  %v1953_v48 = vld [vmem:[%s2292_s8 + $0xf8] ss:$104 sps:$4 sm:$0xff]   ;;  %v1961_v50 = vld [vmem:[%s2292_s8 + $0x2c] ss:$104 sps:$4 sm:$0xff]  }
  0x4d   : > { %891 = vmatpush1.bf16.msra.mxu0 %v1924_v26  ;;  %932 = vmatpush1.bf16.msra.mxu1 %v1925_v27  ;;  %v1958_v49 = vld [vmem:[%s2292_s8 + $0x24] ss:$104 sps:$4 sm:$0xff]   ;;  %v1956_v51 = vld [vmem:[%s2292_s8 + $0x20] ss:$104 sps:$4 sm:$0xff]   ;;  %v1964_v53 = vld [vmem:[%s2292_s8 + $0x1d4] ss:$104 sps:$4 sm:$0xff]  }
  0x4e   : > { %968 = vmatprep.subr.bf16.mxu0 %v1928_v28  ;;  %1009 = vmatprep.subr.bf16.mxu1 %v1931_v30  ;;  %v1959_v52 = vld [vmem:[%s2292_s8 + $0x28] ss:$104 sps:$4 sm:$0xff]   ;;  %v1967_v54 = vld [vmem:[%s2292_s8 + $0x1dc] ss:$104 sps:$4 sm:$0xff]   ;;  %v1965_v56 = vld [vmem:[%s2292_s8 + $0x1d8] ss:$104 sps:$4 sm:$0xff]  }
  0x4f   : > { %v1962_v55 = vld [vmem:[%s2292_s8 + $0x1d0] ss:$104 sps:$4 sm:$0xff]   ;;  %v1970_v57 = vld [vmem:[%s2292_s8 + $0x104] ss:$104 sps:$4 sm:$0xff]   ;;  %v1968_v59 = vld [vmem:[%s2292_s8 + $0x100] ss:$104 sps:$4 sm:$0xff]  }
  0x50   : > { %1849 = vmatmul.mubr.msk.bf16.vlgmr.msra.gmra.mxu0 %vm872_vm0, %v2310_v29  ;;  %1850 = vmatmul.mubr.msk.bf16.vlgmr.msra.gmra.mxu1 %vm872_vm0, %v2310_v29  ;;  %v1973_v58 = vld [vmem:[%s2292_s8 + $0x10c] ss:$104 sps:$4 sm:$0xff]   ;;  %v1971_v60 = vld [vmem:[%s2292_s8 + $0x108] ss:$104 sps:$4 sm:$0xff]   ;;  %v1979_v62 = vld [vmem:[%s2292_s8 + $0x3c] ss:$104 sps:$4 sm:$0xff]  }
  0x51   : > { %969 = vmatpush1.bf16.msra.mxu0 %v1926_v31  ;;  %1010 = vmatpush1.bf16.msra.mxu1 %v1929_v32  ;;  %v1976_v61 = vld [vmem:[%s2292_s8 + $0x34] ss:$104 sps:$4 sm:$0xff]   ;;  %v1974_v63 = vld [vmem:[%s2292_s8 + $0x30] ss:$104 sps:$4 sm:$0xff]   ;;  %v1982_v1 = vld [vmem:[%s2292_s8 + $0x1e4] ss:$104 sps:$4 sm:$0xff]  }
  0x52   : > { %970 = vmatprep.subr.bf16.mxu0 %v1934_v33  ;;  %1011 = vmatprep.subr.bf16.mxu1 %v1937_v34  ;;  %v1977_v0 = vld [vmem:[%s2292_s8 + $0x38] ss:$104 sps:$4 sm:$0xff]   ;;  %v1985_v2 = vld [vmem:[%s2292_s8 + $0x1ec] ss:$104 sps:$4 sm:$0xff]   ;;  %v1983_v4 = vld [vmem:[%s2292_s8 + $0x1e8] ss:$104 sps:$4 sm:$0xff]  }
  0x53   : > { %990 = vmatprep.mubr.bf16.mxu0 %v2062_v14  ;;  %1031 = vmatprep.mubr.bf16.mxu1 %v2062_v14  ;;  %v1980_v3 = vld [vmem:[%s2292_s8 + $0x1e0] ss:$104 sps:$4 sm:$0xff]   ;;  %v1988_v5 = vld [vmem:[%s2292_s8 + $0x114] ss:$104 sps:$4 sm:$0xff]   ;;  %v1986_v7 = vld [vmem:[%s2292_s8 + $0x110] ss:$104 sps:$4 sm:$0xff]  }
  0x54   : > { %v1991_v6 = vld [vmem:[%s2292_s8 + $0x11c] ss:$104 sps:$4 sm:$0xff]   ;;  %v1989_v8 = vld [vmem:[%s2292_s8 + $0x118] ss:$104 sps:$4 sm:$0xff]   ;;  %v1997_v10 = vld [vmem:[%s2292_s8 + $0x4c] ss:$104 sps:$4 sm:$0xff]  }
  0x55   : > { %971 = vmatpush1.bf16.msra.mxu0 %v1932_v35  ;;  %1012 = vmatpush1.bf16.msra.mxu1 %v1935_v36  ;;  %v1994_v9 = vld [vmem:[%s2292_s8 + $0x44] ss:$104 sps:$4 sm:$0xff]   ;;  %v1992_v11 = vld [vmem:[%s2292_s8 + $0x40] ss:$104 sps:$4 sm:$0xff]   ;;  %v2000_v13 = vld [vmem:[%s2292_s8 + $0x1f4] ss:$104 sps:$4 sm:$0xff]  }
  0x56   : > { %972 = vmatprep.subr.bf16.mxu0 %v1940_v37  ;;  %1013 = vmatprep.subr.bf16.mxu1 %v1943_v38  ;;  %v1995_v12 = vld [vmem:[%s2292_s8 + $0x48] ss:$104 sps:$4 sm:$0xff]   ;;  %v2003_v15 = vld [vmem:[%s2292_s8 + $0x1fc] ss:$104 sps:$4 sm:$0xff]   ;;  %v2001_v17 = vld [vmem:[%s2292_s8 + $0x1f8] ss:$104 sps:$4 sm:$0xff]  }
  0x57   : > { %v1998_v16 = vld [vmem:[%s2292_s8 + $0x1f0] ss:$104 sps:$4 sm:$0xff]   ;;  %v2006_v18 = vld [vmem:[%s2292_s8 + $0x124] ss:$104 sps:$4 sm:$0xff]   ;;  %v2004_v20 = vld [vmem:[%s2292_s8 + $0x120] ss:$104 sps:$4 sm:$0xff]  }
  0x58   : > { %v2009_v19 = vld [vmem:[%s2292_s8 + $0x12c] ss:$104 sps:$4 sm:$0xff]   ;;  %v2007_v21 = vld [vmem:[%s2292_s8 + $0x128] ss:$104 sps:$4 sm:$0xff]   ;;  %v2015_v23 = vld [vmem:[%s2292_s8 + $0x5c] ss:$104 sps:$4 sm:$0xff]  }
  0x59   : > { %973 = vmatpush1.bf16.msra.mxu0 %v1938_v39  ;;  %1014 = vmatpush1.bf16.msra.mxu1 %v1941_v40  ;;  %v2012_v22 = vld [vmem:[%s2292_s8 + $0x54] ss:$104 sps:$4 sm:$0xff]   ;;  %v2010_v24 = vld [vmem:[%s2292_s8 + $0x50] ss:$104 sps:$4 sm:$0xff]   ;;  %v2018_v26 = vld [vmem:[%s2292_s8 + $0x204] ss:$104 sps:$4 sm:$0xff]  }
  0x5a   : > { %1050 = vmatprep.subr.bf16.mxu0 %v1946_v41  ;;  %1091 = vmatprep.subr.bf16.mxu1 %v1949_v42  ;;  %v2013_v25 = vld [vmem:[%s2292_s8 + $0x58] ss:$104 sps:$4 sm:$0xff]   ;;  %v2021_v28 = vld [vmem:[%s2292_s8 + $0x134] ss:$104 sps:$4 sm:$0xff]   ;;  %v2024_v31 = vld [vmem:[%s2292_s8 + $0x64] ss:$104 sps:$4 sm:$0xff]  }
  0x5b   : > { %v2016_v27 = vld [vmem:[%s2292_s8 + $0x200] ss:$104 sps:$4 sm:$0xff]   ;;  %v2019_v30 = vld [vmem:[%s2292_s8 + $0x130] ss:$104 sps:$4 sm:$0xff]   ;;  %s2511_s11 = smov (!%p385_p8, %s384_s11), 51 }
  0x5c   : > { %1851 = vmatmul.mubr.msk.bf16.vlgmr.msra.gmra.mxu0 %vm872_vm0, %v2310_v29  ;;  %1852 = vmatmul.mubr.msk.bf16.vlgmr.msra.gmra.mxu1 %vm872_vm0, %v2310_v29  ;;  %v2022_v32 = vld [vmem:[%s2292_s8 + $0x60] ss:$104 sps:$4 sm:$0xff]   ;;  %s1769_s12 = sshll.u32 %s2511_s11, 2  ;;  %v2063_v34 = vmov 1983009808   ;;  %s1770_s17 = sshll.u32 %s2511_s11, 1 }
  0x5d   : > { %1051 = vmatpush1.bf16.msra.mxu0 %v1944_v43  ;;  %1092 = vmatpush1.bf16.msra.mxu1 %v1947_v44  ;;  %s2422_s15 = scalar_lea.vmem %s2505_s3, %s1769_s12  ;;  %v1568_v35 = vunpack.c.l.s4 %v2063_v34  ;;  %s2442_s21 = scalar_lea.vmem %s2506_s4, %s1770_s17 }
  0x5e   : > { %1052 = vmatprep.subr.bf16.mxu0 %v1952_v45  ;;  %1093 = vmatprep.subr.bf16.mxu1 %v1955_v46  ;;  %v1409_v33 = vld [vmem:[%s2422_s15] sm:$0xff]  ;;  %v1410_v36 = vld [vmem:[%s2422_s15 + $0x8] sm:$0xff] }
  0x5f   : > { %1072 = vmatprep.mubr.bf16.mxu0 %v2062_v14  ;;  %1113 = vmatprep.mubr.bf16.mxu1 %v2062_v14  ;;  %v1435_v40 = vcombine.high %v1409_v33, %v1409_v33  ;;  %v1436_v42 = vcombine.high %v1410_v36, %v1410_v36  ;;  %v1569_v44 = vunpack.c.0.s8 %v1568_v35 }
  0x61   : > { %1053 = vmatpush1.bf16.msra.mxu0 %v1950_v47  ;;  %1094 = vmatpush1.bf16.msra.mxu1 %v1953_v48 }
  0x62   : > { %1054 = vmatprep.subr.bf16.mxu0 %v1958_v49  ;;  %1095 = vmatprep.subr.bf16.mxu1 %v1961_v50 }
  0x65   : > { %1055 = vmatpush1.bf16.msra.mxu0 %v1956_v51  ;;  %1096 = vmatpush1.bf16.msra.mxu1 %v1959_v52 }
  0x66   : > { %1132 = vmatprep.subr.bf16.mxu0 %v1964_v53  ;;  %1173 = vmatprep.subr.bf16.mxu1 %v1967_v54 }
  0x68   : > { %1853 = vmatmul.mubr.msk.bf16.vlgmr.msra.gmra.mxu0 %vm872_vm0, %v2310_v29  ;;  %1854 = vmatmul.mubr.msk.bf16.vlgmr.msra.gmra.mxu1 %vm872_vm0, %v2310_v29 }
  0x69   : > { %1133 = vmatpush1.bf16.msra.mxu0 %v1962_v55  ;;  %1174 = vmatpush1.bf16.msra.mxu1 %v1965_v56 }
  0x6a   : > { %1134 = vmatprep.subr.bf16.mxu0 %v1970_v57  ;;  %1175 = vmatprep.subr.bf16.mxu1 %v1973_v58 }
  0x6b   : > { %1154 = vmatprep.mubr.bf16.mxu0 %v2062_v14  ;;  %1195 = vmatprep.mubr.bf16.mxu1 %v2062_v14 }
  0x6d   : > { %1135 = vmatpush1.bf16.msra.mxu0 %v1968_v59  ;;  %1176 = vmatpush1.bf16.msra.mxu1 %v1971_v60 }
  0x6e   : > { %1136 = vmatprep.subr.bf16.mxu0 %v1976_v61  ;;  %1177 = vmatprep.subr.bf16.mxu1 %v1979_v62 }
  0x71   : > { %1137 = vmatpush1.bf16.msra.mxu0 %v1974_v63  ;;  %1178 = vmatpush1.bf16.msra.mxu1 %v1977_v0  ;;  %v1411_v0 = vld [vmem:[%s2422_s15 + $0x10] sm:$0xff] }
  0x72   : > { %1214 = vmatprep.subr.bf16.mxu0 %v1982_v1  ;;  %1255 = vmatprep.subr.bf16.mxu1 %v1985_v2  ;;  %v1412_v1 = vld [vmem:[%s2422_s15 + $0x18] sm:$0xff] }
  0x74   : > { %1855 = vmatmul.mubr.msk.bf16.vlgmr.msra.gmra.mxu0 %vm872_vm0, %v2310_v29  ;;  %1856 = vmatmul.mubr.msk.bf16.vlgmr.msra.gmra.mxu1 %vm872_vm0, %v2310_v29 }
  0x75   : > { %1215 = vmatpush1.bf16.msra.mxu0 %v1980_v3  ;;  %1256 = vmatpush1.bf16.msra.mxu1 %v1983_v4 }
  0x76   : > { %1216 = vmatprep.subr.bf16.mxu0 %v1988_v5  ;;  %1257 = vmatprep.subr.bf16.mxu1 %v1991_v6  ;;  %v1437_v6 = vcombine.high %v1411_v0, %v1411_v0 }
  0x77   : > { %1236 = vmatprep.mubr.bf16.mxu0 %v2062_v14  ;;  %1277 = vmatprep.mubr.bf16.mxu1 %v2062_v14 }
  0x79   : > { %1217 = vmatpush1.bf16.msra.mxu0 %v1986_v7  ;;  %1258 = vmatpush1.bf16.msra.mxu1 %v1989_v8 }
  0x7a   : > { %1218 = vmatprep.subr.bf16.mxu0 %v1994_v9  ;;  %1259 = vmatprep.subr.bf16.mxu1 %v1997_v10  ;;  %v1438_v10 = vcombine.high %v1412_v1, %v1412_v1 }
  0x7d   : > { %1219 = vmatpush1.bf16.msra.mxu0 %v1992_v11  ;;  %1260 = vmatpush1.bf16.msra.mxu1 %v1995_v12 }
  0x7e   : > { %1296 = vmatprep.subr.bf16.mxu0 %v2000_v13  ;;  %1337 = vmatprep.subr.bf16.mxu1 %v2003_v15 }
  0x80   : > { %1857 = vmatmul.mubr.msk.bf16.vlgmr.msra.gmra.mxu0 %vm872_vm0, %v2310_v29  ;;  %1858 = vmatmul.mubr.msk.bf16.vlgmr.msra.gmra.mxu1 %vm872_vm0, %v2310_v29 }
  0x81   : > { %1297 = vmatpush1.bf16.msra.mxu0 %v1998_v16  ;;  %1338 = vmatpush1.bf16.msra.mxu1 %v2001_v17 }
  0x82   : > { %1298 = vmatprep.subr.bf16.mxu0 %v2006_v18  ;;  %1339 = vmatprep.subr.bf16.mxu1 %v2009_v19 }
  0x83   : > { %1318 = vmatprep.mubr.bf16.mxu0 %v2062_v14  ;;  %1359 = vmatprep.mubr.bf16.mxu1 %v2062_v14 }
  0x85   : > { %1299 = vmatpush1.bf16.msra.mxu0 %v2004_v20  ;;  %1340 = vmatpush1.bf16.msra.mxu1 %v2007_v21 }
  0x86   : > { %1300 = vmatprep.subr.bf16.mxu0 %v2012_v22  ;;  %1341 = vmatprep.subr.bf16.mxu1 %v2015_v23 }
  0x89   : > { %1301 = vmatpush1.bf16.msra.mxu0 %v2010_v24  ;;  %1342 = vmatpush1.bf16.msra.mxu1 %v2013_v25 }
  0x8a   : > { %1378 = vmatprep.subr.bf16.mxu0 %v2018_v26 }
  0x8c   : > { %1859 = vmatmul.mubr.msk.bf16.vlgmr.msra.gmra.mxu0 %vm872_vm0, %v2310_v29  ;;  %1860 = vmatmul.mubr.msk.bf16.vlgmr.msra.gmra.mxu1 %vm872_vm0, %v2310_v29 }
  0x8d   : > { %1379 = vmatpush1.bf16.msra.mxu0 %v2016_v27  ;;  %1400 = vmatprep.mubr.bf16.mxu0 %v2062_v14 }
  0x8e   : > { %1380 = vmatprep.subr.bf16.mxu0 %v2021_v28 }
  0x91   : > { %1381 = vmatpush1.bf16.msra.mxu0 %v2019_v30 }
  0x92   : > { %1382 = vmatprep.subr.bf16.mxu0 %v2024_v31  ;;  %v1413_v31 = vld [vmem:[%s2422_s15 + $0x20] sm:$0xff] }
  0x95   : > { %1383 = vmatpush1.bf16.msra.mxu0 %v2022_v32  ;;  %v1414_v32 = vld [vmem:[%s2422_s15 + $0x28] sm:$0xff] }
  0x98   : > { %1861 = vmatmul.mubr.msk.bf16.vlgmr.msra.gmra.mxu0 %vm872_vm0, %v2310_v29  ;;  %v1570_v29 = vlaneseq }
  0x9a   : > { %v1571_v45 = vshrl.u32 %v1570_v29, 7 }
  0x9c   : > { %v2432_v60 = vsub.s32 %v1569_v44, %v1571_v45 }
  0xbf   : > { %v2424_v14 = vpop.permute.xlu0 %479 }
 0x110   : > { %v910_v37 = vpop.f32.mrf.mxu0  ;;  %v951_v38 = vpop.f32.mrf.mxu1 }
 0x111   : > { %v911_v39 = vadd.f32 %v910_v37, %v2424_v14  ;;  %v952_v41 = vadd.f32 %v951_v38, %v2424_v14 }
 0x112   : > { %v912_v43 = vpop.f32.mrf.mxu0  ;;  %v953_v46 = vpop.f32.mrf.mxu1 }
 0x113   : > { %v913_v47 = vadd.f32 %v912_v43, %v2424_v14  ;;  %v1461_v48 = vadd.f32 %v1409_v33, %v911_v39  ;;  %v954_v49 = vadd.f32 %v953_v46, %v2424_v14  ;;  %v1463_v50 = vadd.f32 %v1410_v36, %v952_v41 }
 0x114   : > { %v914_v51 = vpop.f32.mrf.mxu0  ;;  %v955_v52 = vpop.f32.mrf.mxu1  ;;  %v1439_v36 = vcombine.high %v1413_v31, %v1413_v31 }
 0x115   : > { %v1462_v53 = vadd.f32 %v1435_v40, %v913_v47  ;;  %v1487_v54 = vmax.f32 %v1461_v48, 0.0  ;;  %v1464_v55 = vadd.f32 %v1436_v42, %v954_v49  ;;  %v1489_v56 = vmax.f32 %v1463_v50, 0.0 }
 0x116   : > { %v915_v57 = vpop.f32.mrf.mxu0  ;;  %v956_v58 = vpop.f32.mrf.mxu1  ;;  %v1440_v40 = vcombine.high %v1414_v32, %v1414_v32 }
 0x117   : > { %v1488_v59 = vmax.f32 %v1462_v53, 0.0  ;;  %v1490_v61 = vmax.f32 %v1464_v55, 0.0 }
 0x119   : > { %v1862_v62 = vpack.c.bf16 %v1488_v59, %v1487_v54  ;;  %v1863_v63 = vpack.c.bf16 %v1490_v61, %v1489_v56  ;;  %v1415_v59 = vld [vmem:[%s2422_s15 + $0x30] sm:$0xff]  ;;  %v1416_v61 = vld [vmem:[%s2422_s15 + $0x38] sm:$0xff] }
 0x11b   : > { %v1573_v2 = vrot.slane %v1862_v62, %v2432_v60  ;;  %v1580_v3 = vrot.slane %v1863_v63, %v2432_v60 }
 0x11c   : > { %v992_v4 = vpop.f32.mrf.mxu0  ;;  %v1033_v5 = vpop.f32.mrf.mxu1 }
 0x11d   : > { %v1581_v7 = vcombine.low %v1573_v2, %v1580_v3  ;;  %v993_v8 = vadd.f32 %v992_v4, %v2424_v14  ;;  %v1034_v9 = vadd.f32 %v1033_v5, %v2424_v14  ;;  %v1441_v2 = vcombine.high %v1415_v59, %v1415_v59 }
 0x11e   : > { %v994_v11 = vpop.f32.mrf.mxu0  ;;  %v1035_v12 = vpop.f32.mrf.mxu1 }
 0x11f   : > { %1682 = vst [vmem:[%s2442_s21] sm:$0xff] %v1581_v7  ;;  %v1465_v13 = vadd.f32 %v1411_v0, %v993_v8  ;;  %v1467_v15 = vadd.f32 %v1412_v1, %v1034_v9  ;;  %v995_v16 = vadd.f32 %v994_v11, %v2424_v14  ;;  %v1036_v17 = vadd.f32 %v1035_v12, %v2424_v14 }
 0x120   : > { %v996_v18 = vpop.f32.mrf.mxu0  ;;  %v1037_v19 = vpop.f32.mrf.mxu1 }
 0x121   : > { %v1491_v20 = vmax.f32 %v1465_v13, 0.0  ;;  %v1493_v21 = vmax.f32 %v1467_v15, 0.0  ;;  %v1466_v22 = vadd.f32 %v1437_v6, %v995_v16  ;;  %v1468_v23 = vadd.f32 %v1438_v10, %v1036_v17 }
 0x122   : > { %v997_v24 = vpop.f32.mrf.mxu0  ;;  %v1038_v25 = vpop.f32.mrf.mxu1  ;;  %v1442_v6 = vcombine.high %v1416_v61, %v1416_v61 }
 0x123   : > { %v1492_v26 = vmax.f32 %v1466_v22, 0.0  ;;  %v1494_v27 = vmax.f32 %v1468_v23, 0.0 }
 0x125   : > { %v1864_v28 = vpack.c.bf16 %v1492_v26, %v1491_v20  ;;  %v1865_v30 = vpack.c.bf16 %v1494_v27, %v1493_v21  ;;  %v1417_v26 = vld [vmem:[%s2422_s15 + $0x40] sm:$0xff]  ;;  %v1418_v27 = vld [vmem:[%s2422_s15 + $0x48] sm:$0xff] }
 0x127   : > { %v1590_v33 = vrot.slane %v1864_v28, %v2432_v60  ;;  %v1597_v34 = vrot.slane %v1865_v30, %v2432_v60 }
 0x128   : > { %v1074_v35 = vpop.f32.mrf.mxu0  ;;  %v1115_v29 = vpop.f32.mrf.mxu1 }
 0x129   : > { %v1598_v37 = vcombine.low %v1590_v33, %v1597_v34  ;;  %v1075_v38 = vadd.f32 %v1074_v35, %v2424_v14  ;;  %v1116_v39 = vadd.f32 %v1115_v29, %v2424_v14  ;;  %v1443_v33 = vcombine.high %v1417_v26, %v1417_v26 }
 0x12a   : > { %v1076_v41 = vpop.f32.mrf.mxu0  ;;  %v1117_v42 = vpop.f32.mrf.mxu1 }
 0x12b   : > { %1683 = vst [vmem:[%s2442_s21 + $0x8] sm:$0xff] %v1598_v37  ;;  %v1469_v43 = vadd.f32 %v1413_v31, %v1075_v38  ;;  %v1471_v44 = vadd.f32 %v1414_v32, %v1116_v39  ;;  %v1077_v45 = vadd.f32 %v1076_v41, %v2424_v14  ;;  %v1118_v46 = vadd.f32 %v1117_v42, %v2424_v14 }
 0x12c   : > { %v1078_v47 = vpop.f32.mrf.mxu0  ;;  %v1119_v48 = vpop.f32.mrf.mxu1 }
 0x12d   : > { %v1495_v49 = vmax.f32 %v1469_v43, 0.0  ;;  %v1497_v50 = vmax.f32 %v1471_v44, 0.0  ;;  %v1470_v51 = vadd.f32 %v1439_v36, %v1077_v45  ;;  %v1472_v52 = vadd.f32 %v1440_v40, %v1118_v46 }
 0x12e   : > { %v1079_v53 = vpop.f32.mrf.mxu0  ;;  %v1120_v54 = vpop.f32.mrf.mxu1  ;;  %v1444_v36 = vcombine.high %v1418_v27, %v1418_v27 }
 0x12f   : > { %v1496_v55 = vmax.f32 %v1470_v51, 0.0  ;;  %v1498_v56 = vmax.f32 %v1472_v52, 0.0 }
 0x131   : > { %v1866_v57 = vpack.c.bf16 %v1496_v55, %v1495_v49  ;;  %v1867_v58 = vpack.c.bf16 %v1498_v56, %v1497_v50  ;;  %v1419_v55 = vld [vmem:[%s2422_s15 + $0x50] sm:$0xff]  ;;  %v1420_v56 = vld [vmem:[%s2422_s15 + $0x58] sm:$0xff] }
 0x133   : > { %v1607_v62 = vrot.slane %v1866_v57, %v2432_v60  ;;  %v1614_v63 = vrot.slane %v1867_v58, %v2432_v60 }
 0x134   : > { %v1156_v0 = vpop.f32.mrf.mxu0  ;;  %v1197_v1 = vpop.f32.mrf.mxu1 }
 0x135   : > { %v1615_v3 = vcombine.low %v1607_v62, %v1614_v63  ;;  %v1157_v4 = vadd.f32 %v1156_v0, %v2424_v14  ;;  %v1198_v5 = vadd.f32 %v1197_v1, %v2424_v14  ;;  %v1445_v62 = vcombine.high %v1419_v55, %v1419_v55 }
 0x136   : > { %v1158_v7 = vpop.f32.mrf.mxu0  ;;  %v1199_v8 = vpop.f32.mrf.mxu1 }
 0x137   : > { %1684 = vst [vmem:[%s2442_s21 + $0x10] sm:$0xff] %v1615_v3  ;;  %v1473_v9 = vadd.f32 %v1415_v59, %v1157_v4  ;;  %v1475_v10 = vadd.f32 %v1416_v61, %v1198_v5  ;;  %v1159_v11 = vadd.f32 %v1158_v7, %v2424_v14  ;;  %v1200_v12 = vadd.f32 %v1199_v8, %v2424_v14 }
 0x138   : > { %v1160_v13 = vpop.f32.mrf.mxu0  ;;  %v1201_v15 = vpop.f32.mrf.mxu1 }
 0x139   : > { %v1499_v16 = vmax.f32 %v1473_v9, 0.0  ;;  %v1501_v17 = vmax.f32 %v1475_v10, 0.0  ;;  %v1474_v18 = vadd.f32 %v1441_v2, %v1159_v11  ;;  %v1476_v19 = vadd.f32 %v1442_v6, %v1200_v12 }
 0x13a   : > { %v1161_v20 = vpop.f32.mrf.mxu0  ;;  %v1202_v21 = vpop.f32.mrf.mxu1  ;;  %v1446_v2 = vcombine.high %v1420_v56, %v1420_v56 }
 0x13b   : > { %v1500_v22 = vmax.f32 %v1474_v18, 0.0  ;;  %v1502_v23 = vmax.f32 %v1476_v19, 0.0 }
 0x13d   : > { %v1868_v24 = vpack.c.bf16 %v1500_v22, %v1499_v16  ;;  %v1869_v25 = vpack.c.bf16 %v1502_v23, %v1501_v17  ;;  %v1421_v22 = vld [vmem:[%s2422_s15 + $0x60] sm:$0xff] }
 0x13f   : > { %v1624_v28 = vrot.slane %v1868_v24, %v2432_v60  ;;  %v1631_v30 = vrot.slane %v1869_v25, %v2432_v60 }
 0x140   : > { %v1238_v31 = vpop.f32.mrf.mxu0  ;;  %v1279_v32 = vpop.f32.mrf.mxu1 }
 0x141   : > { %v1632_v34 = vcombine.low %v1624_v28, %v1631_v30  ;;  %v1239_v35 = vadd.f32 %v1238_v31, %v2424_v14  ;;  %v1280_v29 = vadd.f32 %v1279_v32, %v2424_v14  ;;  %v1447_v28 = vcombine.high %v1421_v22, %v1421_v22 }
 0x142   : > { %v1240_v37 = vpop.f32.mrf.mxu0  ;;  %v1281_v38 = vpop.f32.mrf.mxu1 }
 0x143   : > { %1685 = vst [vmem:[%s2442_s21 + $0x18] sm:$0xff] %v1632_v34  ;;  %v1477_v39 = vadd.f32 %v1417_v26, %v1239_v35  ;;  %v1479_v40 = vadd.f32 %v1418_v27, %v1280_v29  ;;  %v1241_v41 = vadd.f32 %v1240_v37, %v2424_v14  ;;  %v1282_v42 = vadd.f32 %v1281_v38, %v2424_v14 }
 0x144   : > { %v1242_v43 = vpop.f32.mrf.mxu0  ;;  %v1283_v44 = vpop.f32.mrf.mxu1 }
 0x145   : > { %v1503_v45 = vmax.f32 %v1477_v39, 0.0  ;;  %v1505_v46 = vmax.f32 %v1479_v40, 0.0  ;;  %v1478_v47 = vadd.f32 %v1443_v33, %v1241_v41  ;;  %v1480_v48 = vadd.f32 %v1444_v36, %v1282_v42 }
 0x146   : > { %v1243_v49 = vpop.f32.mrf.mxu0  ;;  %v1284_v50 = vpop.f32.mrf.mxu1 }
 0x147   : > { %v1504_v51 = vmax.f32 %v1478_v47, 0.0  ;;  %v1506_v52 = vmax.f32 %v1480_v48, 0.0 }
 0x149   : > { %v1870_v53 = vpack.c.bf16 %v1504_v51, %v1503_v45  ;;  %v1871_v54 = vpack.c.bf16 %v1506_v52, %v1505_v46 }
 0x14b   : > { %v1641_v57 = vrot.slane %v1870_v53, %v2432_v60  ;;  %v1648_v58 = vrot.slane %v1871_v54, %v2432_v60 }
 0x14c   : > { %v1320_v59 = vpop.f32.mrf.mxu0  ;;  %v1361_v61 = vpop.f32.mrf.mxu1 }
 0x14d   : > { %v1649_v63 = vcombine.low %v1641_v57, %v1648_v58  ;;  %v1321_v0 = vadd.f32 %v1320_v59, %v2424_v14  ;;  %v1362_v1 = vadd.f32 %v1361_v61, %v2424_v14 }
 0x14e   : > { %v1322_v3 = vpop.f32.mrf.mxu0  ;;  %v1363_v4 = vpop.f32.mrf.mxu1 }
 0x14f   : > { %1686 = vst [vmem:[%s2442_s21 + $0x20] sm:$0xff] %v1649_v63  ;;  %v1481_v5 = vadd.f32 %v1419_v55, %v1321_v0  ;;  %v1483_v6 = vadd.f32 %v1420_v56, %v1362_v1  ;;  %v1323_v7 = vadd.f32 %v1322_v3, %v2424_v14  ;;  %v1364_v8 = vadd.f32 %v1363_v4, %v2424_v14 }
 0x150   : > { %v1324_v9 = vpop.f32.mrf.mxu0  ;;  %v1365_v10 = vpop.f32.mrf.mxu1 }
 0x151   : > { %v1507_v11 = vmax.f32 %v1481_v5, 0.0  ;;  %v1509_v12 = vmax.f32 %v1483_v6, 0.0  ;;  %v1482_v13 = vadd.f32 %v1445_v62, %v1323_v7  ;;  %v1484_v15 = vadd.f32 %v1446_v2, %v1364_v8 }
 0x152   : > { %v1325_v16 = vpop.f32.mrf.mxu0  ;;  %v1366_v17 = vpop.f32.mrf.mxu1 }
 0x153   : > { %v1508_v18 = vmax.f32 %v1482_v13, 0.0  ;;  %v1510_v19 = vmax.f32 %v1484_v15, 0.0 }
 0x155   : > { %v1872_v20 = vpack.c.bf16 %v1508_v18, %v1507_v11  ;;  %v1873_v21 = vpack.c.bf16 %v1510_v19, %v1509_v12 }
 0x157   : > { %v1658_v23 = vrot.slane %v1872_v20, %v2432_v60  ;;  %v1665_v24 = vrot.slane %v1873_v21, %v2432_v60 }
 0x158   : > { %v1402_v25 = vpop.f32.mrf.mxu0 }
 0x159   : > { %v1666_v26 = vcombine.low %v1658_v23, %v1665_v24  ;;  %v1403_v27 = vadd.f32 %v1402_v25, %v2424_v14 }
 0x15a   : > { %v1404_v30 = vpop.f32.mrf.mxu0 }
 0x15b   : > { %1687 = vst [vmem:[%s2442_s21 + $0x28] sm:$0xff] %v1666_v26  ;;  %v1485_v31 = vadd.f32 %v1421_v22, %v1403_v27  ;;  %v1405_v32 = vadd.f32 %v1404_v30, %v2424_v14 }
 0x15c   : > { %v1406_v33 = vpop.f32.mrf.mxu0 }
 0x15d   : > { %v1486_v34 = vadd.f32 %v1447_v28, %v1405_v32  ;;  %v1511_v29 = vmax.f32 %v1485_v31, 0.0 }
 0x15e   : > { %v1407_v35 = vpop.f32.mrf.mxu0 }
 0x15f   : > { %v1512_v36 = vmax.f32 %v1486_v34, 0.0 }
 0x161   : > { %v1874_v37 = vpack.c.bf16 %v1512_v36, %v1511_v29 }
 0x163   : > { %1875 = vst.sshfl [vmem:[%s2442_s21 + $0x30] sm:$0x33 pattern:$0x76325410] %v1874_v37 }
 0x164 PF: > { %p11_p9 = scmp.ge.s32.totalorder %s2106_s19, 4   ;;  %s2507_s15 = smov %s2056_s16 }
 0x165   : > { %s2508_s16 = smov %s2115_s22  ;;  %s2509_s17 = smov %s2106_s19 }
 0x166   :  { %13 = sbr.rel (!%p11_p9) target bundleno = 2 (0x2), region = 97 }

// kernel: _lambda_.11
= control target key start
LH: loop header
LB: loop body
LE: loop exit
PB: predicated region body
PF: predicated region fallthrough
CT: control target
= control target key end

     0   :  { %v719_v1 = vmov 0   ;;  %vm262_vm0 = vcmask 392192   ;;  %v720_v40 = vmov 0.0   ;;  %vm721_vm1 = vmmov 0   ;;  %s971_s2 = inlined_call_operand.vmem [shape: bf16[48,1664], index: 2, kind: input, shape index: {}]   ;;  %s972_s0 = inlined_call_operand.vmem [shape: bf16[8,48], index: 0, kind: input, shape index: {}]   ;;  %s973_s1 = inlined_call_operand.vmem [shape: f32[8,1], index: 1, kind: input, shape index: {}]   ;;  %s974_s3 = inlined_call_operand.vmem [shape: f32[8,1664], index: 3, kind: output, shape index: {}]  }
   0x1   :  { %v662_v0 = vld [vmem:[%s971_s2 + $0xd4] ss:$52 sps:$4 sm:$0xff]   ;;  %298 = vmatprep.mubr.bf16.mxu0 %v719_v1  ;;  %339 = vmatprep.mubr.bf16.mxu1 %v719_v1  ;;  %v664_v2 = vld [vmem:[%s971_s2 + $0xd0] ss:$52 sps:$4 sm:$0xff]   ;;  %v665_v3 = vld [vmem:[%s971_s2 + $0x6c] ss:$52 sps:$4 sm:$0xff]   ;;  %v552_v43 = vlaneseq }
   0x2   :  { %661 = vset.pattern.permute.xlu0 %v719_v1  ;;  %276 = vmatprep.subr.bf16.mxu0 %v662_v0  ;;  %v667_v4 = vld [vmem:[%s971_s2 + $0xdc] ss:$52 sps:$4 sm:$0xff]   ;;  %v670_v6 = vld [vmem:[%s971_s2 + $0xd8] ss:$52 sps:$4 sm:$0xff]   ;;  %v673_v8 = vld [vmem:[%s971_s2 + $0x74] ss:$52 sps:$4 sm:$0xff]  }
   0x3   :  { %277 = vmatpush1.bf16.msra.mxu0 %v664_v2  ;;  %v669_v5 = vld [vmem:[%s971_s2 + $0x68] ss:$52 sps:$4 sm:$0xff]   ;;  %v671_v7 = vld [vmem:[%s971_s2 + $0x4] ss:$52 sps:$4 sm:$0xff]   ;;  %317 = vmatprep.subr.bf16.mxu1 %v667_v4  ;;  %v675_v9 = vld [vmem:[%s971_s2] ss:$52 sps:$4 sm:$0xff]  }
   0x4   :  { %278 = vmatprep.subr.bf16.mxu0 %v665_v3  ;;  %318 = vmatpush1.bf16.msra.mxu1 %v670_v6  ;;  %v676_v10 = vld [vmem:[%s971_s2 + $0x70] ss:$52 sps:$4 sm:$0xff]   ;;  %v677_v11 = vld [vmem:[%s971_s2 + $0xc] ss:$52 sps:$4 sm:$0xff]   ;;  %v682_v15 = vld [vmem:[%s971_s2 + $0x8] ss:$52 sps:$4 sm:$0xff]  }
   0x5   :  { %319 = vmatprep.subr.bf16.mxu1 %v673_v8  ;;  %v781_v12 = vld [vmem:[%s972_s0] sm:$0xf]  ;;  %v681_v13 = vld [vmem:[%s971_s2 + $0xe4] ss:$52 sps:$4 sm:$0xff]   ;;  %v685_v16 = vld [vmem:[%s971_s2 + $0x7c] ss:$52 sps:$4 sm:$0xff]  }
   0x6   :  { %v679_v14 = vld [vmem:[%s971_s2 + $0xe0] ss:$52 sps:$4 sm:$0xff]   ;;  %v683_v18 = vld [vmem:[%s971_s2 + $0x78] ss:$52 sps:$4 sm:$0xff]   ;;  %v686_v19 = vld [vmem:[%s971_s2 + $0xe8] ss:$52 sps:$4 sm:$0xff]  }
   0x7   :  { %279 = vmatpush1.bf16.msra.mxu0 %v669_v5  ;;  %v688_v17 = vld [vmem:[%s971_s2 + $0xec] ss:$52 sps:$4 sm:$0xff]   ;;  %v694_v20 = vld [vmem:[%s971_s2 + $0x84] ss:$52 sps:$4 sm:$0xff]   ;;  %v691_v21 = vld [vmem:[%s971_s2 + $0x14] ss:$52 sps:$4 sm:$0xff]  }
   0x8   :  { %280 = vmatprep.subr.bf16.mxu0 %v671_v7  ;;  %320 = vmatpush1.bf16.msra.mxu1 %v676_v10  ;;  %v689_v22 = vld [vmem:[%s971_s2 + $0x10] ss:$52 sps:$4 sm:$0xff]   ;;  %v692_v23 = vld [vmem:[%s971_s2 + $0x80] ss:$52 sps:$4 sm:$0xff]   ;;  %v695_v26 = vld [vmem:[%s971_s2 + $0x18] ss:$52 sps:$4 sm:$0xff]  }
   0x9   :  { %321 = vmatprep.subr.bf16.mxu1 %v677_v11  ;;  %v697_v24 = vld [vmem:[%s971_s2 + $0x1c] ss:$52 sps:$4 sm:$0xff]   ;;  %v700_v25 = vld [vmem:[%s971_s2 + $0xf4] ss:$52 sps:$4 sm:$0xff]   ;;  %v703_v29 = vld [vmem:[%s971_s2 + $0x8c] ss:$52 sps:$4 sm:$0xff]  }
   0xa   :  { %v698_v27 = vld [vmem:[%s971_s2 + $0xf0] ss:$52 sps:$4 sm:$0xff]   ;;  %v704_v30 = vld [vmem:[%s971_s2 + $0xf8] ss:$52 sps:$4 sm:$0xff]   ;;  %v701_v31 = vld [vmem:[%s971_s2 + $0x88] ss:$52 sps:$4 sm:$0xff]  }
   0xb   :  { %281 = vmatpush1.bf16.msra.mxu0 %v675_v9  ;;  %v706_v28 = vld [vmem:[%s971_s2 + $0xfc] ss:$52 sps:$4 sm:$0xff]   ;;  %v712_v32 = vld [vmem:[%s971_s2 + $0x94] ss:$52 sps:$4 sm:$0xff]   ;;  %v58_v33 = vld [vmem:[%s973_s1] sm:$0xff]  ;;  %v890_v45 = vshrl.u32 %v552_v43, 7 }
   0xc   :  { %358 = vmatprep.subr.bf16.mxu0 %v681_v13  ;;  %322 = vmatpush1.bf16.msra.mxu1 %v682_v15  ;;  %v709_v34 = vld [vmem:[%s971_s2 + $0x24] ss:$52 sps:$4 sm:$0xff]   ;;  %v707_v36 = vld [vmem:[%s971_s2 + $0x20] ss:$52 sps:$4 sm:$0xff]   ;;  %v713_v38 = vld [vmem:[%s971_s2 + $0x28] ss:$52 sps:$4 sm:$0xff]  }
   0xd   :  { %399 = vmatprep.subr.bf16.mxu1 %v688_v17  ;;  %61 = vperm.xlu0 %661, %v58_v33   ;;  %v710_v35 = vld [vmem:[%s971_s2 + $0x90] ss:$52 sps:$4 sm:$0xff]   ;;  %v715_v37 = vld [vmem:[%s971_s2 + $0x2c] ss:$52 sps:$4 sm:$0xff]   ;;  %vm554_vm2 = vcmp.lt.s32.totalorder %v890_v45, 4 }
   0xe   :  { %637 = vmatmul.mubr.msk.bf16.vlgmr.msra.gmra.mxu0 %vm262_vm0, %v781_v12  ;;  %v716_v39 = vld [vmem:[%s971_s2 + $0x100] ss:$52 sps:$4 sm:$0xff]   ;;  %v717_v41 = vld [vmem:[%s971_s2 + $0x98] ss:$52 sps:$4 sm:$0xff]   ;;  %v718_v42 = vld [vmem:[%s971_s2 + $0x30] ss:$52 sps:$4 sm:$0xff]  }
   0xf   :  { %359 = vmatpush1.bf16.msra.mxu0 %v679_v14  ;;  %380 = vmatprep.mubr.bf16.mxu0 %v719_v1 }
  0x10   :  { %360 = vmatprep.subr.bf16.mxu0 %v685_v16  ;;  %638 = vmatmul.mubr.msk.bf16.vlgmr.msra.gmra.mxu1 %vm262_vm0, %v781_v12 }
  0x11   :  { %400 = vmatpush1.bf16.msra.mxu1 %v686_v19  ;;  %421 = vmatprep.mubr.bf16.mxu1 %v719_v1 }
  0x12   :  { %401 = vmatprep.subr.bf16.mxu1 %v694_v20 }
  0x13   :  { %361 = vmatpush1.bf16.msra.mxu0 %v683_v18 }
  0x14   :  { %362 = vmatprep.subr.bf16.mxu0 %v691_v21 }
  0x15   :  { %402 = vmatpush1.bf16.msra.mxu1 %v692_v23 }
  0x16   :  { %403 = vmatprep.subr.bf16.mxu1 %v697_v24 }
  0x17   :  { %363 = vmatpush1.bf16.msra.mxu0 %v689_v22 }
  0x18   :  { %440 = vmatprep.subr.bf16.mxu0 %v700_v25 }
  0x19   :  { %404 = vmatpush1.bf16.msra.mxu1 %v695_v26 }
  0x1a   :  { %639 = vmatmul.mubr.msk.bf16.vlgmr.msra.gmra.mxu0 %vm262_vm0, %v781_v12  ;;  %481 = vmatprep.subr.bf16.mxu1 %v706_v28 }
  0x1b   :  { %441 = vmatpush1.bf16.msra.mxu0 %v698_v27  ;;  %462 = vmatprep.mubr.bf16.mxu0 %v719_v1 }
  0x1c   :  { %442 = vmatprep.subr.bf16.mxu0 %v703_v29  ;;  %640 = vmatmul.mubr.msk.bf16.vlgmr.msra.gmra.mxu1 %vm262_vm0, %v781_v12 }
  0x1d   :  { %482 = vmatpush1.bf16.msra.mxu1 %v704_v30  ;;  %503 = vmatprep.mubr.bf16.mxu1 %v719_v1 }
  0x1e   :  { %483 = vmatprep.subr.bf16.mxu1 %v712_v32 }
  0x1f   :  { %443 = vmatpush1.bf16.msra.mxu0 %v701_v31 }
  0x20   :  { %444 = vmatprep.subr.bf16.mxu0 %v709_v34 }
  0x21   :  { %484 = vmatpush1.bf16.msra.mxu1 %v710_v35 }
  0x22   :  { %485 = vmatprep.subr.bf16.mxu1 %v715_v37 }
  0x23   :  { %445 = vmatpush1.bf16.msra.mxu0 %v707_v36 }
  0x24   :  { %648 = vmatprep.subr.bf16.mxu0 %v720_v40 }
  0x25   :  { %486 = vmatpush1.bf16.msra.mxu1 %v713_v38 }
  0x26   :  { %641 = vmatmul.mubr.msk.bf16.vlgmr.msra.gmra.mxu0 %vm262_vm0, %v781_v12 }
  0x27   :  { %649 = vmatpush3.bf16.msra.mxu0 %v716_v39  ;;  %654 = vmatprep.mubr.msk.bf16.mxu0 %vm721_vm1, %v720_v40 }
  0x28   :  { %650 = vmatprep.subr.bf16.mxu0 %v720_v40  ;;  %642 = vmatmul.mubr.msk.bf16.vlgmr.msra.gmra.mxu1 %vm262_vm0, %v781_v12 }
  0x2b   :  { %651 = vmatpush3.bf16.msra.mxu0 %v717_v41 }
  0x2c   :  { %652 = vmatprep.subr.bf16.mxu0 %v720_v40 }
  0x2f   :  { %653 = vmatpush3.bf16.msra.mxu0 %v718_v42 }
  0x32   :  { %655 = vmatmul.mubr.msk.bf16.vlgmr.msra.gmra.mxu0 %vm262_vm0, %v781_v12 }
  0x88   :  { %v888_v44 = vpop.permute.xlu0 %61 }
  0xce   :  { %v300_v46 = vpop.f32.mrf.mxu0 }
  0xcf   :  { %v301_v47 = vadd.f32 %v300_v46, %v888_v44 }
  0xd0   :  { %v302_v48 = vpop.f32.mrf.mxu0  ;;  %v341_v51 = vpop.f32.mrf.mxu1 }
  0xd1   :  { %v555_v49 = vmax.f32 %v301_v47, 0.0  ;;  %v303_v50 = vadd.f32 %v302_v48, %v888_v44  ;;  %v342_v53 = vadd.f32 %v341_v51, %v888_v44 }
  0xd2   :  { %v304_v52 = vpop.f32.mrf.mxu0  ;;  %v343_v56 = vpop.f32.mrf.mxu1 }
  0xd3   :  { %v568_v54 = vsel %vm554_vm2, %v555_v49, %v301_v47  ;;  %v556_v55 = vmax.f32 %v303_v50, 0.0  ;;  %v557_v57 = vmax.f32 %v342_v53, 0.0  ;;  %v344_v59 = vadd.f32 %v343_v56, %v888_v44 }
  0xd4   :  { %581 = vst [vmem:[%s974_s3] sm:$0xff] %v568_v54  ;;  %v305_v58 = vpop.f32.mrf.mxu0  ;;  %v345_v61 = vpop.f32.mrf.mxu1 }
  0xd5   :  { %v569_v60 = vsel %vm554_vm2, %v556_v55, %v303_v50  ;;  %v570_v62 = vsel %vm554_vm2, %v557_v57, %v342_v53  ;;  %v558_v63 = vmax.f32 %v344_v59, 0.0 }
  0xd6   :  { %582 = vst [vmem:[%s974_s3 + $0x8] sm:$0xff] %v569_v60  ;;  %583 = vst [vmem:[%s974_s3 + $0x10] sm:$0xff] %v570_v62  ;;  %v346_v0 = vpop.f32.mrf.mxu1 }
  0xd7   :  { %v571_v1 = vsel %vm554_vm2, %v558_v63, %v344_v59 }
  0xd8   :  { %584 = vst [vmem:[%s974_s3 + $0x18] sm:$0xff] %v571_v1 }
  0xda   :  { %v382_v2 = vpop.f32.mrf.mxu0 }
  0xdb   :  { %v383_v3 = vadd.f32 %v382_v2, %v888_v44 }
  0xdc   :  { %v384_v4 = vpop.f32.mrf.mxu0  ;;  %v423_v7 = vpop.f32.mrf.mxu1 }
  0xdd   :  { %v559_v5 = vmax.f32 %v383_v3, 0.0  ;;  %v385_v6 = vadd.f32 %v384_v4, %v888_v44  ;;  %v424_v9 = vadd.f32 %v423_v7, %v888_v44 }
  0xde   :  { %v386_v8 = vpop.f32.mrf.mxu0  ;;  %v425_v12 = vpop.f32.mrf.mxu1 }
  0xdf   :  { %v572_v10 = vsel %vm554_vm2, %v559_v5, %v383_v3  ;;  %v560_v11 = vmax.f32 %v385_v6, 0.0  ;;  %v561_v13 = vmax.f32 %v424_v9, 0.0  ;;  %v426_v15 = vadd.f32 %v425_v12, %v888_v44 }
  0xe0   :  { %585 = vst [vmem:[%s974_s3 + $0x20] sm:$0xff] %v572_v10  ;;  %v387_v14 = vpop.f32.mrf.mxu0  ;;  %v427_v17 = vpop.f32.mrf.mxu1 }
  0xe1   :  { %v573_v16 = vsel %vm554_vm2, %v560_v11, %v385_v6  ;;  %v574_v18 = vsel %vm554_vm2, %v561_v13, %v424_v9  ;;  %v562_v19 = vmax.f32 %v426_v15, 0.0 }
  0xe2   :  { %586 = vst [vmem:[%s974_s3 + $0x28] sm:$0xff] %v573_v16  ;;  %587 = vst [vmem:[%s974_s3 + $0x30] sm:$0xff] %v574_v18  ;;  %v428_v20 = vpop.f32.mrf.mxu1 }
  0xe3   :  { %v575_v21 = vsel %vm554_vm2, %v562_v19, %v426_v15 }
  0xe4   :  { %588 = vst [vmem:[%s974_s3 + $0x38] sm:$0xff] %v575_v21 }
  0xe6   :  { %v464_v22 = vpop.f32.mrf.mxu0 }
  0xe7   :  { %v465_v23 = vadd.f32 %v464_v22, %v888_v44 }
  0xe8   :  { %v466_v24 = vpop.f32.mrf.mxu0  ;;  %v505_v27 = vpop.f32.mrf.mxu1 }
  0xe9   :  { %v563_v25 = vmax.f32 %v465_v23, 0.0  ;;  %v467_v26 = vadd.f32 %v466_v24, %v888_v44  ;;  %v506_v29 = vadd.f32 %v505_v27, %v888_v44 }
  0xea   :  { %v468_v28 = vpop.f32.mrf.mxu0  ;;  %v507_v32 = vpop.f32.mrf.mxu1 }
  0xeb   :  { %v576_v30 = vsel %vm554_vm2, %v563_v25, %v465_v23  ;;  %v564_v31 = vmax.f32 %v467_v26, 0.0  ;;  %v565_v33 = vmax.f32 %v506_v29, 0.0  ;;  %v508_v35 = vadd.f32 %v507_v32, %v888_v44 }
  0xec   :  { %589 = vst [vmem:[%s974_s3 + $0x40] sm:$0xff] %v576_v30  ;;  %v469_v34 = vpop.f32.mrf.mxu0  ;;  %v509_v37 = vpop.f32.mrf.mxu1 }
  0xed   :  { %v577_v36 = vsel %vm554_vm2, %v564_v31, %v467_v26  ;;  %v578_v38 = vsel %vm554_vm2, %v565_v33, %v506_v29  ;;  %v566_v39 = vmax.f32 %v508_v35, 0.0 }
  0xee   :  { %590 = vst [vmem:[%s974_s3 + $0x48] sm:$0xff] %v577_v36  ;;  %591 = vst [vmem:[%s974_s3 + $0x50] sm:$0xff] %v578_v38  ;;  %v510_v40 = vpop.f32.mrf.mxu1 }
  0xef   :  { %v579_v41 = vsel %vm554_vm2, %v566_v39, %v508_v35 }
  0xf0   :  { %592 = vst [vmem:[%s974_s3 + $0x58] sm:$0xff] %v579_v41 }
  0xf2   :  { %v546_v42 = vpop.f32.mrf.mxu0 }
  0xf3   :  { %v547_v43 = vadd.f32 %v546_v42, %v888_v44 }
  0xf4   :  { %v656_v46 = vpop.f32.mrf.mxu0 }
  0xf5   :  { %v567_v47 = vmax.f32 %v547_v43, 0.0 }
  0xf6   :  { %v549_v48 = vpop.f32.mrf.mxu0 }
  0xf7   :  { %v580_v49 = vsel %vm554_vm2, %v567_v47, %v547_v43 }
  0xf8   :  { %593 = vst [vmem:[%s974_s3 + $0x60] sm:$0xff] %v580_v49  ;;  %v657_v50 = vpop.f32.mrf.mxu0 }

// kernel: _lambda_.12
= control target key start
LH: loop header
LB: loop body
LE: loop exit
PB: predicated region body
PF: predicated region fallthrough
CT: control target
= control target key end

     0   :  { %v837_v1 = vmov 0   ;;  %vm265_vm0 = vcmask 392192   ;;  %v838_v40 = vmov 0.0   ;;  %vm839_vm1 = vmmov 0   ;;  %s1068_s2 = inlined_call_operand.vmem [shape: bf16[48,1664], index: 2, kind: input, shape index: {}]   ;;  %s1069_s0 = inlined_call_operand.vmem [shape: bf16[4,48], index: 0, kind: input, shape index: {}]   ;;  %s1070_s1 = inlined_call_operand.vmem [shape: f32[4,1], index: 1, kind: input, shape index: {}]   ;;  %s1071_s3 = inlined_call_operand.vmem [shape: f32[4,1664], index: 3, kind: input, shape index: {}]   ;;  %s1072_s4 = inlined_call_operand.vmem [shape: bf16[4,1664], index: 4, kind: output, shape index: {}]  }
   0x1   :  { %v774_v0 = vld [vmem:[%s1068_s2 + $0xd4] ss:$52 sps:$4 sm:$0xff]   ;;  %301 = vmatprep.mubr.bf16.mxu0 %v837_v1  ;;  %342 = vmatprep.mubr.bf16.mxu1 %v837_v1  ;;  %v776_v2 = vld [vmem:[%s1068_s2 + $0xdc] ss:$52 sps:$4 sm:$0xff]   ;;  %v779_v4 = vld [vmem:[%s1068_s2 + $0xd8] ss:$52 sps:$4 sm:$0xff]   ;;  %v637_v47 = vlaneseq }
   0x2   :  { %773 = vset.pattern.permute.xlu0 %v837_v1  ;;  %279 = vmatprep.subr.bf16.mxu0 %v774_v0  ;;  %v778_v3 = vld [vmem:[%s1068_s2 + $0xd0] ss:$52 sps:$4 sm:$0xff]   ;;  %v780_v5 = vld [vmem:[%s1068_s2 + $0x6c] ss:$52 sps:$4 sm:$0xff]   ;;  %v782_v6 = vld [vmem:[%s1068_s2 + $0x74] ss:$52 sps:$4 sm:$0xff]  }
   0x3   :  { %320 = vmatprep.subr.bf16.mxu1 %v776_v2  ;;  %280 = vmatpush1.bf16.msra.mxu0 %v778_v3  ;;  %v784_v7 = vld [vmem:[%s1068_s2 + $0x68] ss:$52 sps:$4 sm:$0xff]   ;;  %v785_v8 = vld [vmem:[%s1068_s2 + $0x70] ss:$52 sps:$4 sm:$0xff]   ;;  %v788_v10 = vld [vmem:[%s1068_s2 + $0xc] ss:$52 sps:$4 sm:$0xff]  }
   0x4   :  { %321 = vmatpush1.bf16.msra.mxu1 %v779_v4  ;;  %281 = vmatprep.subr.bf16.mxu0 %v780_v5  ;;  %v786_v9 = vld [vmem:[%s1068_s2 + $0x4] ss:$52 sps:$4 sm:$0xff]   ;;  %v790_v11 = vld [vmem:[%s1068_s2] ss:$52 sps:$4 sm:$0xff]   ;;  %v791_v12 = vld [vmem:[%s1068_s2 + $0x8] ss:$52 sps:$4 sm:$0xff]  }
   0x5   :  { %322 = vmatprep.subr.bf16.mxu1 %v782_v6  ;;  %v794_v13 = vld [vmem:[%s1068_s2 + $0xe4] ss:$52 sps:$4 sm:$0xff]   ;;  %v911_v14 = vld [vmem:[%s1069_s0] sm:$0x3]  ;;  %v795_v17 = vld [vmem:[%s1068_s2 + $0xe8] ss:$52 sps:$4 sm:$0xff]  }
   0x6   :  { %v797_v15 = vld [vmem:[%s1068_s2 + $0xec] ss:$52 sps:$4 sm:$0xff]   ;;  %v800_v18 = vld [vmem:[%s1068_s2 + $0x7c] ss:$52 sps:$4 sm:$0xff]   ;;  %v803_v19 = vld [vmem:[%s1068_s2 + $0x84] ss:$52 sps:$4 sm:$0xff]  }
   0x7   :  { %282 = vmatpush1.bf16.msra.mxu0 %v784_v7  ;;  %v792_v16 = vld [vmem:[%s1068_s2 + $0xe0] ss:$52 sps:$4 sm:$0xff]   ;;  %v798_v20 = vld [vmem:[%s1068_s2 + $0x78] ss:$52 sps:$4 sm:$0xff]   ;;  %v809_v23 = vld [vmem:[%s1068_s2 + $0x1c] ss:$52 sps:$4 sm:$0xff]  }
   0x8   :  { %323 = vmatpush1.bf16.msra.mxu1 %v785_v8  ;;  %283 = vmatprep.subr.bf16.mxu0 %v786_v9  ;;  %v801_v21 = vld [vmem:[%s1068_s2 + $0x80] ss:$52 sps:$4 sm:$0xff]   ;;  %v804_v24 = vld [vmem:[%s1068_s2 + $0x10] ss:$52 sps:$4 sm:$0xff]   ;;  %v807_v25 = vld [vmem:[%s1068_s2 + $0x18] ss:$52 sps:$4 sm:$0xff]  }
   0x9   :  { %324 = vmatprep.subr.bf16.mxu1 %v788_v10  ;;  %v806_v22 = vld [vmem:[%s1068_s2 + $0x14] ss:$52 sps:$4 sm:$0xff]   ;;  %v815_v27 = vld [vmem:[%s1068_s2 + $0xfc] ss:$52 sps:$4 sm:$0xff]   ;;  %v813_v29 = vld [vmem:[%s1068_s2 + $0xf8] ss:$52 sps:$4 sm:$0xff]  }
   0xa   :  { %v812_v26 = vld [vmem:[%s1068_s2 + $0xf4] ss:$52 sps:$4 sm:$0xff]   ;;  %v810_v28 = vld [vmem:[%s1068_s2 + $0xf0] ss:$52 sps:$4 sm:$0xff]   ;;  %v818_v30 = vld [vmem:[%s1068_s2 + $0x8c] ss:$52 sps:$4 sm:$0xff]  }
   0xb   :  { %284 = vmatpush1.bf16.msra.mxu0 %v790_v11  ;;  %v821_v31 = vld [vmem:[%s1068_s2 + $0x94] ss:$52 sps:$4 sm:$0xff]   ;;  %v819_v33 = vld [vmem:[%s1068_s2 + $0x90] ss:$52 sps:$4 sm:$0xff]   ;;  %v61_v34 = vld [vmem:[%s1070_s1] sm:$0xf] }
   0xc   :  { %325 = vmatpush1.bf16.msra.mxu1 %v791_v12  ;;  %361 = vmatprep.subr.bf16.mxu0 %v794_v13  ;;  %v816_v32 = vld [vmem:[%s1068_s2 + $0x88] ss:$52 sps:$4 sm:$0xff]   ;;  %v824_v35 = vld [vmem:[%s1068_s2 + $0x24] ss:$52 sps:$4 sm:$0xff]   ;;  %v827_v36 = vld [vmem:[%s1068_s2 + $0x2c] ss:$52 sps:$4 sm:$0xff]  }
   0xd   :  { %402 = vmatprep.subr.bf16.mxu1 %v797_v15  ;;  %64 = vperm.xlu0 %773, %v61_v34   ;;  %v822_v37 = vld [vmem:[%s1068_s2 + $0x20] ss:$52 sps:$4 sm:$0xff]   ;;  %v825_v38 = vld [vmem:[%s1068_s2 + $0x28] ss:$52 sps:$4 sm:$0xff]   ;;  %v829_v41 = vld [vmem:[%s1068_s2 + $0x98] ss:$52 sps:$4 sm:$0xff]  }
   0xe   :  { %741 = vmatmul.mubr.msk.bf16.vlgmr.msra.gmra.mxu0 %vm265_vm0, %v911_v14  ;;  %v828_v39 = vld [vmem:[%s1068_s2 + $0x100] ss:$52 sps:$4 sm:$0xff]   ;;  %v830_v42 = vld [vmem:[%s1068_s2 + $0x30] ss:$52 sps:$4 sm:$0xff]   ;;  %v840_v45 = vmov 1983009808  }
   0xf   :  { %742 = vmatmul.mubr.msk.bf16.vlgmr.msra.gmra.mxu1 %vm265_vm0, %v911_v14  ;;  %362 = vmatpush1.bf16.msra.mxu0 %v792_v16  ;;  %v555_v44 = vld [vmem:[%s1071_s3] sm:$0xff]  ;;  %v635_v46 = vunpack.c.l.s4 %v840_v45  ;;  %v556_v48 = vld [vmem:[%s1071_s3 + $0x8] sm:$0xff]  ;;  %v638_v57 = vshrl.u32 %v637_v47, 7  ;;  %v557_v12 = vld [vmem:[%s1071_s3 + $0x10] sm:$0xff] }
  0x10   :  { %403 = vmatpush1.bf16.msra.mxu1 %v795_v17  ;;  %363 = vmatprep.subr.bf16.mxu0 %v800_v18  ;;  %v568_v52 = vcombine.high %v555_v44, %v555_v44  ;;  %v569_v54 = vcombine.high %v556_v48, %v556_v48  ;;  %v558_v13 = vld [vmem:[%s1071_s3 + $0x18] sm:$0xff]  ;;  %v570_v18 = vcombine.high %v557_v12, %v557_v12 }
  0x11   :  { %404 = vmatprep.subr.bf16.mxu1 %v803_v19  ;;  %383 = vmatprep.mubr.bf16.mxu0 %v837_v1  ;;  %v636_v56 = vunpack.c.0.s8 %v635_v46 }
  0x12   :  { %424 = vmatprep.mubr.bf16.mxu1 %v837_v1 }
  0x13   :  { %364 = vmatpush1.bf16.msra.mxu0 %v798_v20  ;;  %v1024_v8 = vsub.s32 %v636_v56, %v638_v57 }
  0x14   :  { %405 = vmatpush1.bf16.msra.mxu1 %v801_v21  ;;  %365 = vmatprep.subr.bf16.mxu0 %v806_v22  ;;  %v571_v22 = vcombine.high %v558_v13, %v558_v13 }
  0x15   :  { %406 = vmatprep.subr.bf16.mxu1 %v809_v23 }
  0x17   :  { %366 = vmatpush1.bf16.msra.mxu0 %v804_v24 }
  0x18   :  { %407 = vmatpush1.bf16.msra.mxu1 %v807_v25  ;;  %443 = vmatprep.subr.bf16.mxu0 %v812_v26 }
  0x19   :  { %484 = vmatprep.subr.bf16.mxu1 %v815_v27 }
  0x1a   :  { %743 = vmatmul.mubr.msk.bf16.vlgmr.msra.gmra.mxu0 %vm265_vm0, %v911_v14 }
  0x1b   :  { %744 = vmatmul.mubr.msk.bf16.vlgmr.msra.gmra.mxu1 %vm265_vm0, %v911_v14  ;;  %444 = vmatpush1.bf16.msra.mxu0 %v810_v28 }
  0x1c   :  { %485 = vmatpush1.bf16.msra.mxu1 %v813_v29  ;;  %445 = vmatprep.subr.bf16.mxu0 %v818_v30 }
  0x1d   :  { %486 = vmatprep.subr.bf16.mxu1 %v821_v31  ;;  %465 = vmatprep.mubr.bf16.mxu0 %v837_v1 }
  0x1e   :  { %506 = vmatprep.mubr.bf16.mxu1 %v837_v1 }
  0x1f   :  { %446 = vmatpush1.bf16.msra.mxu0 %v816_v32 }
  0x20   :  { %487 = vmatpush1.bf16.msra.mxu1 %v819_v33  ;;  %447 = vmatprep.subr.bf16.mxu0 %v824_v35 }
  0x21   :  { %488 = vmatprep.subr.bf16.mxu1 %v827_v36 }
  0x23   :  { %448 = vmatpush1.bf16.msra.mxu0 %v822_v37 }
  0x24   :  { %489 = vmatpush1.bf16.msra.mxu1 %v825_v38  ;;  %759 = vmatprep.subr.bf16.mxu0 %v838_v40 }
  0x26   :  { %745 = vmatmul.mubr.msk.bf16.vlgmr.msra.gmra.mxu0 %vm265_vm0, %v911_v14 }
  0x27   :  { %746 = vmatmul.mubr.msk.bf16.vlgmr.msra.gmra.mxu1 %vm265_vm0, %v911_v14  ;;  %760 = vmatpush3.bf16.msra.mxu0 %v828_v39 }
  0x28   :  { %765 = vmatprep.mubr.msk.bf16.mxu0 %vm839_vm1, %v838_v40  ;;  %761 = vmatprep.subr.bf16.mxu0 %v838_v40 }
  0x2b   :  { %762 = vmatpush3.bf16.msra.mxu0 %v829_v41  ;;  %v559_v41 = vld [vmem:[%s1071_s3 + $0x20] sm:$0xff] }
  0x2c   :  { %763 = vmatprep.subr.bf16.mxu0 %v838_v40 }
  0x2f   :  { %764 = vmatpush3.bf16.msra.mxu0 %v830_v42  ;;  %v560_v42 = vld [vmem:[%s1071_s3 + $0x28] sm:$0xff] }
  0x32   :  { %766 = vmatmul.mubr.msk.bf16.vlgmr.msra.gmra.mxu0 %vm265_vm0, %v911_v14 }
  0x88   :  { %v1012_v43 = vpop.permute.xlu0 %64 }
  0xce   :  { %v303_v49 = vpop.f32.mrf.mxu0 }
  0xcf   :  { %v344_v50 = vpop.f32.mrf.mxu1  ;;  %v304_v51 = vadd.f32 %v303_v49, %v1012_v43 }
  0xd0   :  { %v345_v53 = vadd.f32 %v344_v50, %v1012_v43  ;;  %v305_v55 = vpop.f32.mrf.mxu0 }
  0xd1   :  { %v346_v58 = vpop.f32.mrf.mxu1  ;;  %v306_v59 = vadd.f32 %v305_v55, %v1012_v43  ;;  %v580_v60 = vadd.f32 %v555_v44, %v304_v51 }
  0xd2   :  { %v347_v61 = vadd.f32 %v346_v58, %v1012_v43  ;;  %v582_v62 = vadd.f32 %v556_v48, %v345_v53  ;;  %v307_v63 = vpop.f32.mrf.mxu0  ;;  %v572_v48 = vcombine.high %v559_v41, %v559_v41 }
  0xd3   :  { %v348_v0 = vpop.f32.mrf.mxu1  ;;  %v581_v1 = vadd.f32 %v568_v52, %v306_v59  ;;  %v593_v2 = vmax.f32 %v580_v60, 0.0  ;;  %v573_v52 = vcombine.high %v560_v42, %v560_v42 }
  0xd4   :  { %v583_v3 = vadd.f32 %v569_v54, %v347_v61  ;;  %v595_v4 = vmax.f32 %v582_v62, 0.0  ;;  %v308_v5 = vpop.f32.mrf.mxu0 }
  0xd5   :  { %v349_v6 = vpop.f32.mrf.mxu1  ;;  %v594_v7 = vmax.f32 %v581_v1, 0.0 }
  0xd6   :  { %v596_v9 = vmax.f32 %v583_v3, 0.0 }
  0xd7   :  { %v748_v10 = vpack.c.bf16 %v594_v7, %v593_v2 }
  0xd8   :  { %v749_v11 = vpack.c.bf16 %v596_v9, %v595_v4 }
  0xd9   :  { %v640_v14 = vrot.slane %v748_v10, %v1024_v8 }
  0xda   :  { %v647_v15 = vrot.slane %v749_v11, %v1024_v8  ;;  %v385_v16 = vpop.f32.mrf.mxu0  ;;  %v561_v11 = vld [vmem:[%s1071_s3 + $0x30] sm:$0xf] }
  0xdb   :  { %v426_v17 = vpop.f32.mrf.mxu1  ;;  %v386_v20 = vadd.f32 %v385_v16, %v1012_v43 }
  0xdc   :  { %v648_v19 = vcombine.low %v640_v14, %v647_v15  ;;  %v427_v21 = vadd.f32 %v426_v17, %v1012_v43  ;;  %v387_v23 = vpop.f32.mrf.mxu0 }
  0xdd   :  { %v428_v24 = vpop.f32.mrf.mxu1  ;;  %v584_v25 = vadd.f32 %v557_v12, %v386_v20  ;;  %v388_v27 = vadd.f32 %v387_v23, %v1012_v43 }
  0xde   :  { %v586_v26 = vadd.f32 %v558_v13, %v427_v21  ;;  %v429_v28 = vadd.f32 %v428_v24, %v1012_v43  ;;  %694 = vst [vmem:[%s1072_s4] sm:$0xff] %v648_v19  ;;  %v389_v29 = vpop.f32.mrf.mxu0 }
  0xdf   :  { %v430_v30 = vpop.f32.mrf.mxu1  ;;  %v597_v31 = vmax.f32 %v584_v25, 0.0  ;;  %v585_v33 = vadd.f32 %v570_v18, %v388_v27 }
  0xe0   :  { %v599_v32 = vmax.f32 %v586_v26, 0.0  ;;  %v587_v34 = vadd.f32 %v571_v22, %v429_v28  ;;  %v390_v35 = vpop.f32.mrf.mxu0 }
  0xe1   :  { %v431_v36 = vpop.f32.mrf.mxu1  ;;  %v598_v37 = vmax.f32 %v585_v33, 0.0 }
  0xe2   :  { %v600_v38 = vmax.f32 %v587_v34, 0.0 }
  0xe3   :  { %v750_v39 = vpack.c.bf16 %v598_v37, %v597_v31 }
  0xe4   :  { %v751_v40 = vpack.c.bf16 %v600_v38, %v599_v32 }
  0xe5   :  { %v657_v44 = vrot.slane %v750_v39, %v1024_v8 }
  0xe6   :  { %v664_v45 = vrot.slane %v751_v40, %v1024_v8  ;;  %v467_v46 = vpop.f32.mrf.mxu0 }
  0xe7   :  { %v508_v47 = vpop.f32.mrf.mxu1  ;;  %v468_v50 = vadd.f32 %v467_v46, %v1012_v43 }
  0xe8   :  { %v665_v49 = vcombine.low %v657_v44, %v664_v45  ;;  %v509_v51 = vadd.f32 %v508_v47, %v1012_v43  ;;  %v469_v53 = vpop.f32.mrf.mxu0 }
  0xe9   :  { %v510_v54 = vpop.f32.mrf.mxu1  ;;  %v588_v55 = vadd.f32 %v559_v41, %v468_v50  ;;  %v470_v57 = vadd.f32 %v469_v53, %v1012_v43 }
  0xea   :  { %v590_v56 = vadd.f32 %v560_v42, %v509_v51  ;;  %v511_v58 = vadd.f32 %v510_v54, %v1012_v43  ;;  %695 = vst [vmem:[%s1072_s4 + $0x8] sm:$0xff] %v665_v49  ;;  %v471_v59 = vpop.f32.mrf.mxu0 }
  0xeb   :  { %v512_v60 = vpop.f32.mrf.mxu1  ;;  %v601_v61 = vmax.f32 %v588_v55, 0.0  ;;  %v589_v63 = vadd.f32 %v572_v48, %v470_v57 }
  0xec   :  { %v603_v62 = vmax.f32 %v590_v56, 0.0  ;;  %v591_v0 = vadd.f32 %v573_v52, %v511_v58  ;;  %v472_v1 = vpop.f32.mrf.mxu0 }
  0xed   :  { %v513_v2 = vpop.f32.mrf.mxu1  ;;  %v602_v3 = vmax.f32 %v589_v63, 0.0 }
  0xee   :  { %v604_v4 = vmax.f32 %v591_v0, 0.0 }
  0xef   :  { %v752_v5 = vpack.c.bf16 %v602_v3, %v601_v61 }
  0xf0   :  { %v753_v6 = vpack.c.bf16 %v604_v4, %v603_v62 }
  0xf1   :  { %v674_v7 = vrot.slane %v752_v5, %v1024_v8 }
  0xf2   :  { %v681_v9 = vrot.slane %v753_v6, %v1024_v8  ;;  %v549_v10 = vpop.f32.mrf.mxu0 }
  0xf3   :  { %v550_v13 = vadd.f32 %v549_v10, %v1012_v43 }
  0xf4   :  { %v682_v12 = vcombine.low %v674_v7, %v681_v9  ;;  %v767_v14 = vpop.f32.mrf.mxu0 }
  0xf5   :  { %v592_v15 = vadd.f32 %v561_v11, %v550_v13 }
  0xf6   :  { %696 = vst [vmem:[%s1072_s4 + $0x10] sm:$0xff] %v682_v12  ;;  %v552_v16 = vpop.f32.mrf.mxu0 }
  0xf7   :  { %v605_v17 = vmax.f32 %v592_v15, 0.0 }
  0xf8   :  { %v768_v18 = vpop.f32.mrf.mxu0 }
  0xf9   :  { %v618_v19 = vpack.c.bf16 %v605_v17, %v605_v17 }
  0xfb   :  { %754 = vst.sshfl [vmem:[%s1072_s4 + $0x18] sm:$0x3 pattern:$0x76325410] %v618_v19 }

// kernel: _lambda_.13
= control target key start
LH: loop header
LB: loop body
LE: loop exit
PB: predicated region body
PF: predicated region fallthrough
CT: control target
= control target key end

     0   :  { %v265_v1 = vmov 0   ;;  %vm106_vm0 = vcmask 392192   ;;  %s355_s2 = inlined_call_operand.vmem [shape: bf16[48,512], index: 2, kind: input, shape index: {}]   ;;  %s356_s1 = inlined_call_operand.vmem [shape: f32[16,1], index: 1, kind: input, shape index: {}]   ;;  %s357_s0 = inlined_call_operand.vmem [shape: bf16[16,48], index: 0, kind: input, shape index: {}]   ;;  %s358_s3 = inlined_call_operand.vmem [shape: f32[16,512], index: 3, kind: output, shape index: {}]  }
   0x1   :  { %v246_v0 = vld [vmem:[%s355_s2 + $0x44] ss:$16 sps:$4 sm:$0xff]   ;;  %142 = vmatprep.mubr.bf16.mxu0 %v265_v1  ;;  %185 = vmatprep.mubr.bf16.mxu1 %v265_v1  ;;  %v248_v2 = vld [vmem:[%s355_s2 + $0x4c] ss:$16 sps:$4 sm:$0xff]   ;;  %v250_v3 = vld [vmem:[%s355_s2 + $0x40] ss:$16 sps:$4 sm:$0xff]  }
   0x2   :  { %245 = vset.pattern.permute.xlu0 %v265_v1  ;;  %120 = vmatprep.subr.bf16.mxu0 %v246_v0  ;;  %v251_v4 = vld [vmem:[%s355_s2 + $0x48] ss:$16 sps:$4 sm:$0xff]   ;;  %v252_v5 = vld [vmem:[%s355_s2 + $0x24] ss:$16 sps:$4 sm:$0xff]   ;;  %v254_v6 = vld [vmem:[%s355_s2 + $0x2c] ss:$16 sps:$4 sm:$0xff]  }
   0x3   :  { %163 = vmatprep.subr.bf16.mxu1 %v248_v2  ;;  %121 = vmatpush1.bf16.msra.mxu0 %v250_v3  ;;  %v256_v7 = vld [vmem:[%s355_s2 + $0x20] ss:$16 sps:$4 sm:$0xff]   ;;  %v257_v8 = vld [vmem:[%s355_s2 + $0x28] ss:$16 sps:$4 sm:$0xff]   ;;  %v258_v9 = vld [vmem:[%s355_s2 + $0x4] ss:$16 sps:$4 sm:$0xff]  }
   0x4   :  { %164 = vmatpush1.bf16.msra.mxu1 %v251_v4  ;;  %122 = vmatprep.subr.bf16.mxu0 %v252_v5  ;;  %v260_v10 = vld [vmem:[%s355_s2 + $0xc] ss:$16 sps:$4 sm:$0xff]   ;;  %v262_v11 = vld [vmem:[%s355_s2] ss:$16 sps:$4 sm:$0xff]   ;;  %v263_v12 = vld [vmem:[%s355_s2 + $0x8] ss:$16 sps:$4 sm:$0xff]  }
   0x5   :  { %165 = vmatprep.subr.bf16.mxu1 %v254_v6  ;;  %v29_v13 = vld [vmem:[%s356_s1] sm:$0xff]  ;;  %v30_v15 = vld [vmem:[%s356_s1 + $0x8] sm:$0xff] }
   0x6   :  { %33 = vperm.xlu0 %245, %v29_v13   ;;  %v264_v14 = vld [vmem:[%s357_s0] sm:$0xff]  }
   0x7   :  { %123 = vmatpush1.bf16.msra.mxu0 %v256_v7 }
   0x8   :  { %166 = vmatpush1.bf16.msra.mxu1 %v257_v8  ;;  %124 = vmatprep.subr.bf16.mxu0 %v258_v9 }
   0x9   :  { %167 = vmatprep.subr.bf16.mxu1 %v260_v10 }
   0xa   :  { %38 = vperm.xlu0 %245, %v30_v15  }
   0xb   :  { %125 = vmatpush1.bf16.msra.mxu0 %v262_v11 }
   0xc   :  { %168 = vmatpush1.bf16.msra.mxu1 %v263_v12 }
   0xe   :  { %242 = vmatmul.mubr.msk.bf16.vlgmr.msra.gmra.mxu0 %vm106_vm0, %v264_v14 }
   0xf   :  { %243 = vmatmul.mubr.msk.bf16.vlgmr.msra.gmra.mxu1 %vm106_vm0, %v264_v14 }
  0x81   :  { %v34_v16 = vpop.permute.xlu0 %33 }
  0x85   :  { %v39_v25 = vpop.permute.xlu0 %38 }
  0xce   :  { %v144_v17 = vpop.f32.mrf.mxu0 }
  0xcf   :  { %v187_v18 = vpop.f32.mrf.mxu1  ;;  %v145_v19 = vadd.f32 %v144_v17, %v34_v16 }
  0xd0   :  { %v188_v20 = vadd.f32 %v187_v18, %v34_v16  ;;  %v146_v21 = vpop.f32.mrf.mxu0 }
  0xd1   :  { %v189_v22 = vpop.f32.mrf.mxu1  ;;  %v201_v23 = vmax.f32 %v145_v19, 0.0  ;;  %v147_v26 = vadd.f32 %v146_v21, %v34_v16 }
  0xd2   :  { %v203_v24 = vmax.f32 %v188_v20, 0.0  ;;  %v190_v27 = vadd.f32 %v189_v22, %v34_v16  ;;  %v148_v28 = vpop.f32.mrf.mxu0 }
  0xd3   :  { %v191_v29 = vpop.f32.mrf.mxu1  ;;  %217 = vst [vmem:[%s358_s3] sm:$0xff] %v201_v23  ;;  %v202_v30 = vmax.f32 %v147_v26, 0.0  ;;  %v149_v32 = vadd.f32 %v148_v28, %v39_v25 }
  0xd4   :  { %219 = vst [vmem:[%s358_s3 + $0x10] sm:$0xff] %v203_v24  ;;  %v204_v31 = vmax.f32 %v190_v27, 0.0  ;;  %v192_v33 = vadd.f32 %v191_v29, %v39_v25  ;;  %v150_v34 = vpop.f32.mrf.mxu0 }
  0xd5   :  { %v193_v35 = vpop.f32.mrf.mxu1  ;;  %218 = vst [vmem:[%s358_s3 + $0x8] sm:$0xff] %v202_v30  ;;  %221 = vst [vmem:[%s358_s3 + $0x20] sm:$0xff] %v149_v32  ;;  %v151_v36 = vadd.f32 %v150_v34, %v39_v25 }
  0xd6   :  { %220 = vst [vmem:[%s358_s3 + $0x18] sm:$0xff] %v204_v31  ;;  %223 = vst [vmem:[%s358_s3 + $0x30] sm:$0xff] %v192_v33  ;;  %v194_v37 = vadd.f32 %v193_v35, %v39_v25 }
  0xd7   :  { %222 = vst [vmem:[%s358_s3 + $0x28] sm:$0xff] %v151_v36 }
  0xd8   :  { %224 = vst [vmem:[%s358_s3 + $0x38] sm:$0xff] %v194_v37 }

// kernel: _lambda_.14
= control target key start
LH: loop header
LB: loop body
LE: loop exit
PB: predicated region body
PF: predicated region fallthrough
CT: control target
= control target key end

     0   :  { %v323_v1 = vmov 0   ;;  %vm145_vm0 = vcmask 654336   ;;  %s433_s2 = inlined_call_operand.vmem [shape: bf16[80,512], index: 2, kind: input, shape index: {}]   ;;  %s434_s1 = inlined_call_operand.vmem [shape: f32[8,1], index: 1, kind: input, shape index: {}]   ;;  %s435_s0 = inlined_call_operand.vmem [shape: bf16[8,80], index: 0, kind: input, shape index: {}]   ;;  %s436_s3 = inlined_call_operand.vmem [shape: f32[8,512], index: 3, kind: input, shape index: {}]   ;;  %s437_s4 = inlined_call_operand.vmem [shape: bf16[8,512], index: 4, kind: output, shape index: {}]  }
   0x1   :  { %v293_v0 = vld [vmem:[%s433_s2 + $0x84] ss:$16 sps:$4 sm:$0xff]   ;;  %181 = vmatprep.mubr.bf16.mxu0 %v323_v1  ;;  %222 = vmatprep.mubr.bf16.mxu1 %v323_v1  ;;  %v295_v2 = vld [vmem:[%s433_s2 + $0x8c] ss:$16 sps:$4 sm:$0xff]   ;;  %v297_v3 = vld [vmem:[%s433_s2 + $0x80] ss:$16 sps:$4 sm:$0xff]  }
   0x2   :  { %292 = vset.pattern.permute.xlu0 %v323_v1  ;;  %155 = vmatprep.subr.bf16.mxu0 %v293_v0  ;;  %v298_v4 = vld [vmem:[%s433_s2 + $0x88] ss:$16 sps:$4 sm:$0xff]   ;;  %v299_v5 = vld [vmem:[%s433_s2 + $0x64] ss:$16 sps:$4 sm:$0xff]   ;;  %v301_v6 = vld [vmem:[%s433_s2 + $0x6c] ss:$16 sps:$4 sm:$0xff]  }
   0x3   :  { %196 = vmatprep.subr.bf16.mxu1 %v295_v2  ;;  %156 = vmatpush1.bf16.msra.mxu0 %v297_v3  ;;  %v303_v7 = vld [vmem:[%s433_s2 + $0x60] ss:$16 sps:$4 sm:$0xff]   ;;  %v304_v8 = vld [vmem:[%s433_s2 + $0x68] ss:$16 sps:$4 sm:$0xff]   ;;  %v305_v9 = vld [vmem:[%s433_s2 + $0x44] ss:$16 sps:$4 sm:$0xff]  }
   0x4   :  { %197 = vmatpush1.bf16.msra.mxu1 %v298_v4  ;;  %157 = vmatprep.subr.bf16.mxu0 %v299_v5  ;;  %v307_v10 = vld [vmem:[%s433_s2 + $0x4c] ss:$16 sps:$4 sm:$0xff]   ;;  %v309_v11 = vld [vmem:[%s433_s2 + $0x40] ss:$16 sps:$4 sm:$0xff]   ;;  %v310_v12 = vld [vmem:[%s433_s2 + $0x48] ss:$16 sps:$4 sm:$0xff]  }
   0x5   :  { %198 = vmatprep.subr.bf16.mxu1 %v301_v6  ;;  %v311_v13 = vld [vmem:[%s433_s2 + $0x24] ss:$16 sps:$4 sm:$0xff]   ;;  %v313_v14 = vld [vmem:[%s433_s2 + $0x2c] ss:$16 sps:$4 sm:$0xff]   ;;  %v315_v15 = vld [vmem:[%s433_s2 + $0x20] ss:$16 sps:$4 sm:$0xff]  }
   0x6   :  { %v316_v16 = vld [vmem:[%s433_s2 + $0x28] ss:$16 sps:$4 sm:$0xff]   ;;  %v317_v17 = vld [vmem:[%s433_s2 + $0x4] ss:$16 sps:$4 sm:$0xff]   ;;  %v319_v18 = vld [vmem:[%s433_s2 + $0xc] ss:$16 sps:$4 sm:$0xff]  }
   0x7   :  { %158 = vmatpush1.bf16.msra.mxu0 %v303_v7  ;;  %v39_v19 = vld [vmem:[%s434_s1] sm:$0xff]  ;;  %v322_v21 = vld [vmem:[%s433_s2 + $0x8] ss:$16 sps:$4 sm:$0xff]   ;;  %v233_v27 = vld [vmem:[%s436_s3 + $0x10] sm:$0xff] }
   0x8   :  { %199 = vmatpush1.bf16.msra.mxu1 %v304_v8  ;;  %159 = vmatprep.subr.bf16.mxu0 %v305_v9  ;;  %v321_v20 = vld [vmem:[%s433_s2] ss:$16 sps:$4 sm:$0xff]   ;;  %v232_v31 = vld [vmem:[%s436_s3 + $0x8] sm:$0xff]  ;;  %v234_v33 = vld [vmem:[%s436_s3 + $0x18] sm:$0xff] }
   0x9   :  { %200 = vmatprep.subr.bf16.mxu1 %v307_v10  ;;  %42 = vperm.xlu0 %292, %v39_v19   ;;  %v18_v22 = vld [vmem:[%s435_s0] sm:$0xf] }
   0xa   :  { %v231_v25 = vld [vmem:[%s436_s3] sm:$0xff] }
   0xb   :  { %160 = vmatpush1.bf16.msra.mxu0 %v309_v11 }
   0xc   :  { %201 = vmatpush1.bf16.msra.mxu1 %v310_v12  ;;  %161 = vmatprep.subr.bf16.mxu0 %v311_v13 }
   0xd   :  { %202 = vmatprep.subr.bf16.mxu1 %v313_v14 }
   0xf   :  { %162 = vmatpush1.bf16.msra.mxu0 %v315_v15 }
  0x10   :  { %203 = vmatpush1.bf16.msra.mxu1 %v316_v16  ;;  %163 = vmatprep.subr.bf16.mxu0 %v317_v17 }
  0x11   :  { %204 = vmatprep.subr.bf16.mxu1 %v319_v18 }
  0x13   :  { %164 = vmatpush1.bf16.msra.mxu0 %v321_v20 }
  0x14   :  { %205 = vmatpush1.bf16.msra.mxu1 %v322_v21 }
  0x16   :  { %285 = vmatmul.mubr.msk.bf16.vlgmr.msra.gmra.mxu0 %vm145_vm0, %v18_v22 }
  0x17   :  { %286 = vmatmul.mubr.msk.bf16.vlgmr.msra.gmra.mxu1 %vm145_vm0, %v18_v22 }
  0x84   :  { %v43_v23 = vpop.permute.xlu0 %42 }
  0xd6   :  { %v183_v24 = vpop.f32.mrf.mxu0 }
  0xd7   :  { %v224_v26 = vpop.f32.mrf.mxu1  ;;  %v184_v28 = vadd.f32 %v183_v24, %v43_v23 }
  0xd8   :  { %v225_v29 = vadd.f32 %v224_v26, %v43_v23  ;;  %v185_v30 = vpop.f32.mrf.mxu0 }
  0xd9   :  { %v226_v32 = vpop.f32.mrf.mxu1  ;;  %v235_v34 = vadd.f32 %v231_v25, %v184_v28  ;;  %v186_v36 = vadd.f32 %v185_v30, %v43_v23 }
  0xda   :  { %v237_v35 = vadd.f32 %v233_v27, %v225_v29  ;;  %v227_v37 = vadd.f32 %v226_v32, %v43_v23  ;;  %v187_v38 = vpop.f32.mrf.mxu0 }
  0xdb   :  { %v228_v39 = vpop.f32.mrf.mxu1  ;;  %v236_v40 = vadd.f32 %v232_v31, %v186_v36  ;;  %v239_v44 = vmax.f32 %v235_v34, 0.0 }
  0xdc   :  { %v238_v41 = vadd.f32 %v234_v33, %v227_v37  ;;  %v188_v42 = vpop.f32.mrf.mxu0  ;;  %v241_v45 = vmax.f32 %v237_v35, 0.0 }
  0xdd   :  { %v229_v43 = vpop.f32.mrf.mxu1  ;;  %v240_v46 = vmax.f32 %v236_v40, 0.0 }
  0xde   :  { %v242_v47 = vmax.f32 %v238_v41, 0.0 }
  0xdf   :  { %v289_v48 = vpack.c.bf16 %v240_v46, %v239_v44 }
  0xe0   :  { %v290_v49 = vpack.c.bf16 %v242_v47, %v241_v45 }
  0xe1   :  { %259 = vst [vmem:[%s437_s4] sm:$0xff] %v289_v48 }
  0xe2   :  { %260 = vst [vmem:[%s437_s4 + $0x8] sm:$0xff] %v290_v49 }

// kernel: _lambda_.15
= control target key start
LH: loop header
LB: loop body
LE: loop exit
PB: predicated region body
PF: predicated region fallthrough
CT: control target
= control target key end

     0   :  { %v10990_v0 = vmov 0.0   ;;  %s10991_s3 = smov 1   ;;  %vm210_vm0 = vcmask 261120   ;;  %vm10992_vm1 = vmmov 0   ;;  %s10994_s10 = smov 3   ;;  %vm1905_vm2 = vcmask 588800   ;;  %s13017_s0 = inlined_call_operand.smem [shape: u32[38], index: -1, kind: input, shape index: {}] }
   0x1   :  { %284 = vmatprep.subr.mxu1 %v10990_v0  ;;  %s11039_s6 = sld [smem:[%s13017_s0 + %s10991_s3]]   ;;  %s10995_s14 = smov 5   ;;  %vm2073_vm3 = vcmask 850944   ;;  %vm3828_vm4 = vcmask 1043456   ;;  %vm3824_vm5 = vcmask 228352   ;;  %vm5474_vm6 = vcmask 64512  }
   0x2   :  { %s11090_s9 = sld [smem:[%s13017_s0]]   ;;  %s10996_s18 = smov 13   ;;  %vm7049_vm7 = vcmask 31744   ;;  %vm7790_vm8 = vcmask 130048   ;;  %vm8116_vm15 = vcmask 9216  }
   0x3   :  { %s8124_s13 = sld [smem:[%s13017_s0 + %s10994_s10]]   ;;  %s10997_s22 = smov 19  }
   0x4   :  { %s8126_s17 = sld [smem:[%s13017_s0 + %s10995_s14]]   ;;  %s10998_s26 = smov 24  }
   0x5   :  { %s8134_s21 = sld [smem:[%s13017_s0 + %s10996_s18]]   ;;  %s10999_s30 = smov 27  }
   0x6   :  { %s8140_s25 = sld [smem:[%s13017_s0 + %s10997_s22]]   ;;  %s11000_s4 = smov 32  }
   0x7   :  { %v189_v1 = vld [vmem:[%s11039_s6 + $0xf8] sm:$0xff]  ;;  %v188_v4 = vld [vmem:[%s11039_s6 + $0xf0] sm:$0xff]  ;;  %v187_v7 = vld [vmem:[%s11039_s6 + $0xe8] sm:$0xff]  ;;  %s8145_s29 = sld [smem:[%s13017_s0 + %s10998_s26]]   ;;  %s11001_s8 = smov 2  }
   0x8   :  { %v205_v2 = vld [vmem:[%s11039_s6 + $0x178] sm:$0xff]  ;;  %9000 = vmatprep.subr.mxu0 %v189_v1  ;;  %v204_v5 = vld [vmem:[%s11039_s6 + $0x170] sm:$0xff]  ;;  %v203_v8 = vld [vmem:[%s11039_s6 + $0x168] sm:$0xff]  ;;  %s11801_s3 = sld [smem:[%s13017_s0 + %s10999_s30]]   ;;  %s11002_s12 = smov 4  }
   0x9   :  { %v173_v3 = vld [vmem:[%s11039_s6 + $0x78] sm:$0xff]  ;;  %285 = vmatpush1.msra.mxu1 %v205_v2  ;;  %v172_v6 = vld [vmem:[%s11039_s6 + $0x70] sm:$0xff]  ;;  %v171_v9 = vld [vmem:[%s11039_s6 + $0x68] sm:$0xff]  ;;  %s8153_s7 = sld [smem:[%s13017_s0 + %s11000_s4]]   ;;  %s11003_s16 = smov 6  }
   0xa   :  { %9001 = vmatpush3.msra.mxu0 %v173_v3  ;;  %286 = vmatprep.subr.mxu1 %v10990_v0  ;;  %v186_v10 = vld [vmem:[%s11039_s6 + $0xe0] sm:$0xff]  ;;  %v185_v13 = vld [vmem:[%s11039_s6 + $0xd8] sm:$0xff]  ;;  %v184_v16 = vld [vmem:[%s11039_s6 + $0xd0] sm:$0xff]  ;;  %s8123_s11 = sld [smem:[%s13017_s0 + %s11001_s8]]   ;;  %s11004_s20 = smov 8  }
   0xb   :  { %9002 = vmatprep.subr.mxu0 %v188_v4  ;;  %287 = vmatpush1.msra.mxu1 %v204_v5  ;;  %v202_v11 = vld [vmem:[%s11039_s6 + $0x160] sm:$0xff]  ;;  %v201_v14 = vld [vmem:[%s11039_s6 + $0x158] sm:$0xff]  ;;  %v200_v17 = vld [vmem:[%s11039_s6 + $0x150] sm:$0xff]  ;;  %s8125_s15 = sld [smem:[%s13017_s0 + %s11002_s12]]   ;;  %s11005_s24 = smov 11  }
   0xc   :  { %9003 = vmatpush3.msra.mxu0 %v172_v6  ;;  %288 = vmatprep.subr.mxu1 %v10990_v0  ;;  %v170_v12 = vld [vmem:[%s11039_s6 + $0x60] sm:$0xff]  ;;  %v169_v15 = vld [vmem:[%s11039_s6 + $0x58] sm:$0xff]  ;;  %v168_v18 = vld [vmem:[%s11039_s6 + $0x50] sm:$0xff]  ;;  %s11828_s19 = sld [smem:[%s13017_s0 + %s11003_s16]]   ;;  %s11006_s28 = smov 16  }
   0xd   :  { %9004 = vmatprep.subr.mxu0 %v187_v7  ;;  %289 = vmatpush1.msra.mxu1 %v203_v8  ;;  %v183_v19 = vld [vmem:[%s11039_s6 + $0xc8] sm:$0xff]  ;;  %v182_v22 = vld [vmem:[%s11039_s6 + $0xc0] sm:$0xff]  ;;  %v181_v25 = vld [vmem:[%s11039_s6 + $0xb8] sm:$0xff]  ;;  %s8129_s23 = sld [smem:[%s13017_s0 + %s11004_s20]]   ;;  %s11007_s2 = smov 9  }
   0xe   :  { %9005 = vmatpush3.msra.mxu0 %v171_v9  ;;  %290 = vmatprep.subr.mxu1 %v10990_v0  ;;  %v199_v20 = vld [vmem:[%s11039_s6 + $0x148] sm:$0xff]  ;;  %v198_v23 = vld [vmem:[%s11039_s6 + $0x140] sm:$0xff]  ;;  %v197_v26 = vld [vmem:[%s11039_s6 + $0x138] sm:$0xff]  ;;  %s8132_s27 = sld [smem:[%s13017_s0 + %s11005_s24]]   ;;  %s11011_s18 = smov 14  }
   0xf   :  { %9006 = vmatprep.subr.mxu0 %v186_v10  ;;  %291 = vmatpush1.msra.mxu1 %v202_v11  ;;  %v167_v21 = vld [vmem:[%s11039_s6 + $0x48] sm:$0xff]  ;;  %v166_v24 = vld [vmem:[%s11039_s6 + $0x40] sm:$0xff]  ;;  %v165_v27 = vld [vmem:[%s11039_s6 + $0x38] sm:$0xff]  ;;  %s8137_s1 = sld [smem:[%s13017_s0 + %s11006_s28]]   ;;  %s11012_s22 = smov 10  }
  0x10   :  { %9007 = vmatpush3.msra.mxu0 %v170_v12  ;;  %292 = vmatprep.subr.mxu1 %v10990_v0  ;;  %v180_v28 = vld [vmem:[%s11039_s6 + $0xb0] sm:$0xff]  ;;  %v179_v31 = vld [vmem:[%s11039_s6 + $0xa8] sm:$0xff]  ;;  %v178_v34 = vld [vmem:[%s11039_s6 + $0xa0] sm:$0xff]  ;;  %s11013_s26 = smov 12   ;;  %s11014_s30 = smov 17  }
  0x11   :  { %9008 = vmatprep.subr.mxu0 %v185_v13  ;;  %293 = vmatpush1.msra.mxu1 %v201_v14  ;;  %v196_v29 = vld [vmem:[%s11039_s6 + $0x130] sm:$0xff]  ;;  %v195_v32 = vld [vmem:[%s11039_s6 + $0x128] sm:$0xff]  ;;  %v194_v35 = vld [vmem:[%s11039_s6 + $0x120] sm:$0xff]  ;;  %s12610_s4 = sld [smem:[%s13017_s0 + %s11014_s30]]   ;;  %s11015_s5 = smov 15  }
  0x12   :  { %9009 = vmatpush3.msra.mxu0 %v169_v15  ;;  %294 = vmatprep.subr.mxu1 %v10990_v0  ;;  %v164_v30 = vld [vmem:[%s11039_s6 + $0x30] sm:$0xff]  ;;  %v163_v33 = vld [vmem:[%s11039_s6 + $0x28] sm:$0xff]  ;;  %v162_v36 = vld [vmem:[%s11039_s6 + $0x20] sm:$0xff]  ;;  %s8136_s8 = sld [smem:[%s13017_s0 + %s11015_s5]]   ;;  %s11018_s16 = smov 22  }
  0x13   :  { %9010 = vmatprep.subr.mxu0 %v184_v16  ;;  %295 = vmatpush1.msra.mxu1 %v200_v17  ;;  %v177_v37 = vld [vmem:[%s11039_s6 + $0x98] sm:$0xff]  ;;  %v176_v40 = vld [vmem:[%s11039_s6 + $0x90] sm:$0xff]  ;;  %v175_v43 = vld [vmem:[%s11039_s6 + $0x88] sm:$0xff]  ;;  %s11019_s20 = smov 23   ;;  %s11020_s24 = smov 25  }
  0x14   :  { %9011 = vmatpush3.msra.mxu0 %v168_v18  ;;  %296 = vmatprep.subr.mxu1 %v10990_v0  ;;  %v193_v38 = vld [vmem:[%s11039_s6 + $0x118] sm:$0xff]  ;;  %v192_v41 = vld [vmem:[%s11039_s6 + $0x110] sm:$0xff]  ;;  %v191_v44 = vld [vmem:[%s11039_s6 + $0x108] sm:$0xff]  ;;  %s11021_s28 = smov 26   ;;  %s11029_s30 = smov 37  }
  0x15   :  { %9012 = vmatprep.subr.mxu0 %v183_v19  ;;  %297 = vmatpush1.msra.mxu1 %v199_v20  ;;  %v161_v39 = vld [vmem:[%s11039_s6 + $0x18] sm:$0xff]  ;;  %v160_v42 = vld [vmem:[%s11039_s6 + $0x10] sm:$0xff]  ;;  %v159_v45 = vld [vmem:[%s11039_s6 + $0x8] sm:$0xff] }
  0x16   :  { %9013 = vmatpush3.msra.mxu0 %v167_v21  ;;  %298 = vmatprep.subr.mxu1 %v10990_v0  ;;  %v174_v46 = vld [vmem:[%s11039_s6 + $0x80] sm:$0xff]  ;;  %v11109_v49 = vld [vmem:[%s11090_s9 + $0x8] sm:$0xff]  ;;  %v209_v51 = vld [vmem:[%s11039_s6 + $0x198] sm:$0xff] }
  0x17   :  { %9014 = vmatprep.subr.mxu0 %v182_v22  ;;  %299 = vmatpush1.msra.mxu1 %v198_v23  ;;  %v190_v47 = vld [vmem:[%s11039_s6 + $0x100] sm:$0xff]  ;;  %v8191_v52 = vld [vmem:[%s11039_s6 + $0x298] sm:$0xff]  ;;  %v208_v54 = vld [vmem:[%s11039_s6 + $0x190] sm:$0xff] }
  0x18   :  { %9015 = vmatpush3.msra.mxu0 %v166_v24  ;;  %300 = vmatprep.subr.mxu1 %v10990_v0  ;;  %v158_v48 = vld [vmem:[%s11039_s6] sm:$0xff]  ;;  %v8175_v53 = vld [vmem:[%s11039_s6 + $0x218] sm:$0xff]  ;;  %v8190_v55 = vld [vmem:[%s11039_s6 + $0x290] sm:$0xff] }
  0x19   :  { %9016 = vmatprep.subr.mxu0 %v181_v25  ;;  %301 = vmatpush1.msra.mxu1 %v197_v26  ;;  %v11113_v50 = vld [vmem:[%s11090_s9] sm:$0xff]  ;;  %v8174_v56 = vld [vmem:[%s11039_s6 + $0x210] sm:$0xff]  ;;  %v207_v57 = vld [vmem:[%s11039_s6 + $0x188] sm:$0xff] }
  0x1a   :  { %9017 = vmatpush3.msra.mxu0 %v165_v27  ;;  %302 = vmatprep.subr.mxu1 %v10990_v0  ;;  %v8189_v58 = vld [vmem:[%s11039_s6 + $0x288] sm:$0xff]  ;;  %v206_v60 = vld [vmem:[%s11039_s6 + $0x180] sm:$0xff]  ;;  %v11131_v61 = vld [vmem:[%s11090_s9 + $0x18] sm:$0xff] }
  0x1b   :  { %9018 = vmatprep.subr.mxu0 %v180_v28  ;;  %303 = vmatpush1.msra.mxu1 %v196_v29  ;;  %v8173_v59 = vld [vmem:[%s11039_s6 + $0x208] sm:$0xff]  ;;  %v8188_v62 = vld [vmem:[%s11039_s6 + $0x280] sm:$0xff]  ;;  %v11135_v63 = vld [vmem:[%s11090_s9 + $0x10] sm:$0xff] }
  0x1c   :  { %9019 = vmatpush3.msra.mxu0 %v164_v30  ;;  %304 = vmatprep.subr.mxu1 %v10990_v0  ;;  %v8172_v1 = vld [vmem:[%s11039_s6 + $0x200] sm:$0xff]  ;;  %v8187_v2 = vld [vmem:[%s11039_s6 + $0x278] sm:$0xff]  ;;  %v8186_v5 = vld [vmem:[%s11039_s6 + $0x270] sm:$0xff] }
  0x1d   :  { %9020 = vmatprep.subr.mxu0 %v179_v31  ;;  %305 = vmatpush1.msra.mxu1 %v195_v32  ;;  %v8207_v3 = vld [vmem:[%s11039_s6 + $0x318] sm:$0xff]  ;;  %v8206_v6 = vld [vmem:[%s11039_s6 + $0x310] sm:$0xff]  ;;  %v8185_v8 = vld [vmem:[%s11039_s6 + $0x268] sm:$0xff] }
  0x1e   :  { %9021 = vmatpush3.msra.mxu0 %v163_v33  ;;  %306 = vmatprep.subr.mxu1 %v10990_v0  ;;  %v8171_v4 = vld [vmem:[%s11039_s6 + $0x1f8] sm:$0xff]  ;;  %v8170_v7 = vld [vmem:[%s11039_s6 + $0x1f0] sm:$0xff]  ;;  %v8205_v9 = vld [vmem:[%s11039_s6 + $0x308] sm:$0xff] }
  0x1f   :  { %9022 = vmatprep.subr.mxu0 %v178_v34  ;;  %307 = vmatpush1.msra.mxu1 %v194_v35  ;;  %v8169_v10 = vld [vmem:[%s11039_s6 + $0x1e8] sm:$0xff]  ;;  %v8184_v11 = vld [vmem:[%s11039_s6 + $0x260] sm:$0xff]  ;;  %v8183_v14 = vld [vmem:[%s11039_s6 + $0x258] sm:$0xff] }
  0x20   :  { %9023 = vmatpush3.msra.mxu0 %v162_v36  ;;  %308 = vmatprep.subr.mxu1 %v10990_v0  ;;  %v8204_v12 = vld [vmem:[%s11039_s6 + $0x300] sm:$0xff]  ;;  %v8203_v15 = vld [vmem:[%s11039_s6 + $0x2f8] sm:$0xff]  ;;  %v8182_v17 = vld [vmem:[%s11039_s6 + $0x250] sm:$0xff] }
  0x21   :  { %9024 = vmatprep.subr.mxu0 %v177_v37  ;;  %309 = vmatpush1.msra.mxu1 %v193_v38  ;;  %v8168_v13 = vld [vmem:[%s11039_s6 + $0x1e0] sm:$0xff]  ;;  %v8167_v16 = vld [vmem:[%s11039_s6 + $0x1d8] sm:$0xff]  ;;  %v8202_v18 = vld [vmem:[%s11039_s6 + $0x2f0] sm:$0xff] }
  0x22   :  { %9025 = vmatpush3.msra.mxu0 %v161_v39  ;;  %310 = vmatprep.subr.mxu1 %v10990_v0  ;;  %v8166_v19 = vld [vmem:[%s11039_s6 + $0x1d0] sm:$0xff]  ;;  %v8181_v20 = vld [vmem:[%s11039_s6 + $0x248] sm:$0xff]  ;;  %v8180_v23 = vld [vmem:[%s11039_s6 + $0x240] sm:$0xff] }
  0x23   :  { %9026 = vmatprep.subr.mxu0 %v176_v40  ;;  %311 = vmatpush1.msra.mxu1 %v192_v41  ;;  %v8201_v21 = vld [vmem:[%s11039_s6 + $0x2e8] sm:$0xff]  ;;  %v8200_v24 = vld [vmem:[%s11039_s6 + $0x2e0] sm:$0xff]  ;;  %v8179_v26 = vld [vmem:[%s11039_s6 + $0x238] sm:$0xff] }
  0x24   :  { %9027 = vmatpush3.msra.mxu0 %v160_v42  ;;  %312 = vmatprep.subr.mxu1 %v10990_v0  ;;  %v8165_v22 = vld [vmem:[%s11039_s6 + $0x1c8] sm:$0xff]  ;;  %v8164_v25 = vld [vmem:[%s11039_s6 + $0x1c0] sm:$0xff]  ;;  %v8199_v27 = vld [vmem:[%s11039_s6 + $0x2d8] sm:$0xff] }
  0x25   :  { %9028 = vmatprep.subr.mxu0 %v175_v43  ;;  %313 = vmatpush1.msra.mxu1 %v191_v44  ;;  %v8163_v28 = vld [vmem:[%s11039_s6 + $0x1b8] sm:$0xff]  ;;  %v8178_v29 = vld [vmem:[%s11039_s6 + $0x230] sm:$0xff]  ;;  %v8177_v32 = vld [vmem:[%s11039_s6 + $0x228] sm:$0xff] }
  0x26   :  { %9029 = vmatpush3.msra.mxu0 %v159_v45  ;;  %314 = vmatprep.subr.mxu1 %v10990_v0  ;;  %v8198_v30 = vld [vmem:[%s11039_s6 + $0x2d0] sm:$0xff]  ;;  %v8197_v33 = vld [vmem:[%s11039_s6 + $0x2c8] sm:$0xff]  ;;  %v8176_v35 = vld [vmem:[%s11039_s6 + $0x220] sm:$0xff] }
  0x27   :  { %9030 = vmatprep.subr.mxu0 %v174_v46  ;;  %315 = vmatpush1.msra.mxu1 %v190_v47  ;;  %v8162_v31 = vld [vmem:[%s11039_s6 + $0x1b0] sm:$0xff]  ;;  %v8161_v34 = vld [vmem:[%s11039_s6 + $0x1a8] sm:$0xff]  ;;  %v8196_v36 = vld [vmem:[%s11039_s6 + $0x2c0] sm:$0xff] }
  0x28   :  { %9031 = vmatpush3.msra.mxu0 %v158_v48  ;;  %278 = vmatprep.mubr.f32.mxu0 %v11109_v49  ;;  %v8160_v37 = vld [vmem:[%s11039_s6 + $0x1a0] sm:$0xff]  ;;  %v8195_v38 = vld [vmem:[%s11039_s6 + $0x2b8] sm:$0xff]  ;;  %v8194_v41 = vld [vmem:[%s11039_s6 + $0x2b0] sm:$0xff] }
  0x29   :  { %340 = vmatprep.subr.mxu1 %v10990_v0  ;;  %279 = vmatmul.mubr.f32.vlgmr.msra.gmra.mxu0 %v11113_v50  ;;  %v8244_v39 = vld [vmem:[%s11039_s6 + $0x438] sm:$0xff]  ;;  %v8243_v42 = vld [vmem:[%s11039_s6 + $0x430] sm:$0xff]  ;;  %v8193_v44 = vld [vmem:[%s11039_s6 + $0x2a8] sm:$0xff] }
  0x2a   :  { %341 = vmatpush2.msra.mxu1 %v209_v51  ;;  %9035 = vmatprep.subr.mxu0 %v8191_v52  ;;  %v8228_v40 = vld [vmem:[%s11039_s6 + $0x3b8] sm:$0xff]  ;;  %v8227_v43 = vld [vmem:[%s11039_s6 + $0x3b0] sm:$0xff]  ;;  %v8242_v45 = vld [vmem:[%s11039_s6 + $0x428] sm:$0xff] }
  0x2b   :  { %342 = vmatprep.subr.mxu1 %v10990_v0  ;;  %9036 = vmatpush3.msra.mxu0 %v8175_v53  ;;  %v8226_v46 = vld [vmem:[%s11039_s6 + $0x3a8] sm:$0xff]  ;;  %v8192_v47 = vld [vmem:[%s11039_s6 + $0x2a0] sm:$0xff]  ;;  %v8211_v52 = vld [vmem:[%s11039_s6 + $0x338] sm:$0xff] }
  0x2c   :  { %343 = vmatpush2.msra.mxu1 %v208_v54  ;;  %9037 = vmatprep.subr.mxu0 %v8190_v55  ;;  %v8241_v48 = vld [vmem:[%s11039_s6 + $0x420] sm:$0xff]  ;;  %v8240_v53 = vld [vmem:[%s11039_s6 + $0x418] sm:$0xff]  ;;  %v8210_v55 = vld [vmem:[%s11039_s6 + $0x330] sm:$0xff] }
  0x2d   :  { %344 = vmatprep.subr.mxu1 %v10990_v0  ;;  %9038 = vmatpush3.msra.mxu0 %v8174_v56  ;;  %v8225_v51 = vld [vmem:[%s11039_s6 + $0x3a0] sm:$0xff]  ;;  %v8224_v54 = vld [vmem:[%s11039_s6 + $0x398] sm:$0xff]  ;;  %v8239_v56 = vld [vmem:[%s11039_s6 + $0x410] sm:$0xff] }
  0x2e   :  { %345 = vmatpush2.msra.mxu1 %v207_v57  ;;  %9039 = vmatprep.subr.mxu0 %v8189_v58  ;;  %v8223_v57 = vld [vmem:[%s11039_s6 + $0x390] sm:$0xff]  ;;  %v8209_v58 = vld [vmem:[%s11039_s6 + $0x328] sm:$0xff] }
  0x2f   :  { %346 = vmatprep.subr.mxu1 %v10990_v0  ;;  %9040 = vmatpush3.msra.mxu0 %v8173_v59  ;;  %v8238_v59 = vld [vmem:[%s11039_s6 + $0x408] sm:$0xff] }
  0x30   :  { %347 = vmatpush2.msra.mxu1 %v206_v60  ;;  %8159 = vmatprep.mubr.msk.f32.mxu1 %vm210_vm0, %v11131_v61  ;;  %v8222_v60 = vld [vmem:[%s11039_s6 + $0x388] sm:$0xff] }
  0x31   :  { %9041 = vmatprep.subr.mxu0 %v8188_v62  ;;  %349 = vmatmul.mubr.f32.vlgmr.msra.gmra.mxu1 %v11135_v63  ;;  %v8208_v62 = vld [vmem:[%s11039_s6 + $0x320] sm:$0xff] }
  0x32   :  { %9042 = vmatpush3.msra.mxu0 %v8172_v1  ;;  %477 = vmatprep.subr.mxu1 %v10990_v0  ;;  %v8237_v1 = vld [vmem:[%s11039_s6 + $0x400] sm:$0xff] }
  0x33   :  { %9043 = vmatprep.subr.mxu0 %v8187_v2  ;;  %478 = vmatpush1.msra.mxu1 %v8207_v3  ;;  %v8221_v2 = vld [vmem:[%s11039_s6 + $0x380] sm:$0xff]  ;;  %v8236_v3 = vld [vmem:[%s11039_s6 + $0x3f8] sm:$0xff] }
  0x34   :  { %9044 = vmatpush3.msra.mxu0 %v8171_v4  ;;  %479 = vmatprep.subr.mxu1 %v10990_v0  ;;  %v8260_v4 = vld [vmem:[%s11039_s6 + $0x4b8] sm:$0xff] }
  0x35   :  { %9045 = vmatprep.subr.mxu0 %v8186_v5  ;;  %480 = vmatpush1.msra.mxu1 %v8206_v6  ;;  %v8220_v5 = vld [vmem:[%s11039_s6 + $0x378] sm:$0xff]  ;;  %v8235_v6 = vld [vmem:[%s11039_s6 + $0x3f0] sm:$0xff] }
  0x36   :  { %9046 = vmatpush3.msra.mxu0 %v8170_v7  ;;  %481 = vmatprep.subr.mxu1 %v10990_v0  ;;  %v8259_v7 = vld [vmem:[%s11039_s6 + $0x4b0] sm:$0xff] }
  0x37   :  { %9047 = vmatprep.subr.mxu0 %v8185_v8  ;;  %482 = vmatpush1.msra.mxu1 %v8205_v9  ;;  %v8219_v8 = vld [vmem:[%s11039_s6 + $0x370] sm:$0xff]  ;;  %v8234_v9 = vld [vmem:[%s11039_s6 + $0x3e8] sm:$0xff] }
  0x38   :  { %9048 = vmatpush3.msra.mxu0 %v8169_v10  ;;  %483 = vmatprep.subr.mxu1 %v10990_v0  ;;  %v8258_v10 = vld [vmem:[%s11039_s6 + $0x4a8] sm:$0xff] }
  0x39   :  { %9049 = vmatprep.subr.mxu0 %v8184_v11  ;;  %484 = vmatpush1.msra.mxu1 %v8204_v12  ;;  %v8218_v11 = vld [vmem:[%s11039_s6 + $0x368] sm:$0xff]  ;;  %v8233_v12 = vld [vmem:[%s11039_s6 + $0x3e0] sm:$0xff] }
  0x3a   :  { %9050 = vmatpush3.msra.mxu0 %v8168_v13  ;;  %485 = vmatprep.subr.mxu1 %v10990_v0  ;;  %v8257_v13 = vld [vmem:[%s11039_s6 + $0x4a0] sm:$0xff] }
  0x3b   :  { %9051 = vmatprep.subr.mxu0 %v8183_v14  ;;  %486 = vmatpush1.msra.mxu1 %v8203_v15  ;;  %v8217_v14 = vld [vmem:[%s11039_s6 + $0x360] sm:$0xff]  ;;  %v8232_v15 = vld [vmem:[%s11039_s6 + $0x3d8] sm:$0xff] }
  0x3c   :  { %9052 = vmatpush3.msra.mxu0 %v8167_v16  ;;  %487 = vmatprep.subr.mxu1 %v10990_v0  ;;  %v8256_v16 = vld [vmem:[%s11039_s6 + $0x498] sm:$0xff] }
  0x3d   :  { %9053 = vmatprep.subr.mxu0 %v8182_v17  ;;  %488 = vmatpush1.msra.mxu1 %v8202_v18  ;;  %v8216_v17 = vld [vmem:[%s11039_s6 + $0x358] sm:$0xff]  ;;  %v8231_v18 = vld [vmem:[%s11039_s6 + $0x3d0] sm:$0xff] }
  0x3e   :  { %9054 = vmatpush3.msra.mxu0 %v8166_v19  ;;  %489 = vmatprep.subr.mxu1 %v10990_v0  ;;  %v8255_v19 = vld [vmem:[%s11039_s6 + $0x490] sm:$0xff] }
  0x3f   :  { %9055 = vmatprep.subr.mxu0 %v8181_v20  ;;  %490 = vmatpush1.msra.mxu1 %v8201_v21  ;;  %v8215_v20 = vld [vmem:[%s11039_s6 + $0x350] sm:$0xff]  ;;  %v8230_v21 = vld [vmem:[%s11039_s6 + $0x3c8] sm:$0xff] }
  0x40   :  { %9056 = vmatpush3.msra.mxu0 %v8165_v22  ;;  %491 = vmatprep.subr.mxu1 %v10990_v0  ;;  %v8254_v22 = vld [vmem:[%s11039_s6 + $0x488] sm:$0xff] }
  0x41   :  { %9057 = vmatprep.subr.mxu0 %v8180_v23  ;;  %492 = vmatpush1.msra.mxu1 %v8200_v24  ;;  %v8214_v23 = vld [vmem:[%s11039_s6 + $0x348] sm:$0xff]  ;;  %v8229_v24 = vld [vmem:[%s11039_s6 + $0x3c0] sm:$0xff] }
  0x42   :  { %9058 = vmatpush3.msra.mxu0 %v8164_v25  ;;  %493 = vmatprep.subr.mxu1 %v10990_v0  ;;  %v8253_v25 = vld [vmem:[%s11039_s6 + $0x480] sm:$0xff] }
  0x43   :  { %9059 = vmatprep.subr.mxu0 %v8179_v26  ;;  %494 = vmatpush1.msra.mxu1 %v8199_v27  ;;  %v8213_v26 = vld [vmem:[%s11039_s6 + $0x340] sm:$0xff]  ;;  %v8252_v27 = vld [vmem:[%s11039_s6 + $0x478] sm:$0xff] }
  0x44   :  { %9060 = vmatpush3.msra.mxu0 %v8163_v28  ;;  %495 = vmatprep.subr.mxu1 %v10990_v0  ;;  %v8297_v28 = vld [vmem:[%s11039_s6 + $0x5d8] sm:$0xff] }
  0x45   :  { %9061 = vmatprep.subr.mxu0 %v8178_v29  ;;  %496 = vmatpush1.msra.mxu1 %v8198_v30  ;;  %v8281_v29 = vld [vmem:[%s11039_s6 + $0x558] sm:$0xff]  ;;  %v8251_v30 = vld [vmem:[%s11039_s6 + $0x470] sm:$0xff] }
  0x46   :  { %9062 = vmatpush3.msra.mxu0 %v8162_v31  ;;  %497 = vmatprep.subr.mxu1 %v10990_v0  ;;  %v8296_v31 = vld [vmem:[%s11039_s6 + $0x5d0] sm:$0xff] }
  0x47   :  { %9063 = vmatprep.subr.mxu0 %v8177_v32  ;;  %498 = vmatpush1.msra.mxu1 %v8197_v33  ;;  %v8280_v32 = vld [vmem:[%s11039_s6 + $0x550] sm:$0xff]  ;;  %v8250_v33 = vld [vmem:[%s11039_s6 + $0x468] sm:$0xff] }
  0x48   :  { %9064 = vmatpush3.msra.mxu0 %v8161_v34  ;;  %499 = vmatprep.subr.mxu1 %v10990_v0  ;;  %v8295_v34 = vld [vmem:[%s11039_s6 + $0x5c8] sm:$0xff] }
  0x49   :  { %9065 = vmatprep.subr.mxu0 %v8176_v35  ;;  %500 = vmatpush1.msra.mxu1 %v8196_v36  ;;  %v8279_v35 = vld [vmem:[%s11039_s6 + $0x548] sm:$0xff]  ;;  %v8249_v36 = vld [vmem:[%s11039_s6 + $0x460] sm:$0xff] }
  0x4a   :  { %9066 = vmatpush3.msra.mxu0 %v8160_v37  ;;  %471 = vmatprep.mubr.f32.mxu0 %v11109_v49  ;;  %v8294_v37 = vld [vmem:[%s11039_s6 + $0x5c0] sm:$0xff] }
  0x4b   :  { %501 = vmatprep.subr.mxu1 %v10990_v0  ;;  %472 = vmatmul.mubr.f32.vlgmr.msra.gmra.mxu0 %v11113_v50 }
  0x4c   :  { %502 = vmatpush1.msra.mxu1 %v8195_v38  ;;  %9070 = vmatprep.subr.mxu0 %v8244_v39  ;;  %v8278_v38 = vld [vmem:[%s11039_s6 + $0x540] sm:$0xff]  ;;  %v8248_v39 = vld [vmem:[%s11039_s6 + $0x458] sm:$0xff] }
  0x4d   :  { %503 = vmatprep.subr.mxu1 %v10990_v0  ;;  %9071 = vmatpush3.msra.mxu0 %v8228_v40  ;;  %v8293_v40 = vld [vmem:[%s11039_s6 + $0x5b8] sm:$0xff] }
  0x4e   :  { %504 = vmatpush1.msra.mxu1 %v8194_v41  ;;  %9072 = vmatprep.subr.mxu0 %v8243_v42  ;;  %v8277_v41 = vld [vmem:[%s11039_s6 + $0x538] sm:$0xff]  ;;  %v8247_v42 = vld [vmem:[%s11039_s6 + $0x450] sm:$0xff] }
  0x4f   :  { %505 = vmatprep.subr.mxu1 %v10990_v0  ;;  %9073 = vmatpush3.msra.mxu0 %v8227_v43  ;;  %v8292_v43 = vld [vmem:[%s11039_s6 + $0x5b0] sm:$0xff] }
  0x50   :  { %506 = vmatpush1.msra.mxu1 %v8193_v44  ;;  %9074 = vmatprep.subr.mxu0 %v8242_v45  ;;  %v8276_v44 = vld [vmem:[%s11039_s6 + $0x530] sm:$0xff]  ;;  %v8246_v45 = vld [vmem:[%s11039_s6 + $0x448] sm:$0xff] }
  0x51   :  { %507 = vmatprep.subr.mxu1 %v10990_v0  ;;  %9075 = vmatpush3.msra.mxu0 %v8226_v46  ;;  %v8291_v46 = vld [vmem:[%s11039_s6 + $0x5a8] sm:$0xff] }
  0x52   :  { %508 = vmatpush1.msra.mxu1 %v8192_v47  ;;  %9076 = vmatprep.subr.mxu0 %v8241_v48  ;;  %v8275_v47 = vld [vmem:[%s11039_s6 + $0x528] sm:$0xff]  ;;  %v8245_v48 = vld [vmem:[%s11039_s6 + $0x440] sm:$0xff] }
  0x53   :  { %533 = vmatprep.subr.mxu1 %v10990_v0  ;;  %9077 = vmatpush3.msra.mxu0 %v8225_v51  ;;  %v8290_v51 = vld [vmem:[%s11039_s6 + $0x5a0] sm:$0xff] }
  0x54   :  { %534 = vmatpush2.msra.mxu1 %v8211_v52  ;;  %9078 = vmatprep.subr.mxu0 %v8240_v53  ;;  %v8274_v52 = vld [vmem:[%s11039_s6 + $0x520] sm:$0xff]  ;;  %v8264_v53 = vld [vmem:[%s11039_s6 + $0x4d8] sm:$0xff] }
  0x55   :  { %535 = vmatprep.subr.mxu1 %v10990_v0  ;;  %9079 = vmatpush3.msra.mxu0 %v8224_v54  ;;  %v8289_v54 = vld [vmem:[%s11039_s6 + $0x598] sm:$0xff] }
  0x56   :  { %536 = vmatpush2.msra.mxu1 %v8210_v55  ;;  %9080 = vmatprep.subr.mxu0 %v8239_v56  ;;  %v8273_v55 = vld [vmem:[%s11039_s6 + $0x518] sm:$0xff]  ;;  %v8263_v56 = vld [vmem:[%s11039_s6 + $0x4d0] sm:$0xff] }
  0x57   :  { %537 = vmatprep.subr.mxu1 %v10990_v0  ;;  %9081 = vmatpush3.msra.mxu0 %v8223_v57  ;;  %v8288_v57 = vld [vmem:[%s11039_s6 + $0x590] sm:$0xff] }
  0x58   :  { %538 = vmatpush2.msra.mxu1 %v8209_v58  ;;  %9082 = vmatprep.subr.mxu0 %v8238_v59  ;;  %v8272_v58 = vld [vmem:[%s11039_s6 + $0x510] sm:$0xff]  ;;  %v8262_v59 = vld [vmem:[%s11039_s6 + $0x4c8] sm:$0xff] }
  0x59   :  { %539 = vmatprep.subr.mxu1 %v10990_v0  ;;  %9083 = vmatpush3.msra.mxu0 %v8222_v60  ;;  %v8287_v60 = vld [vmem:[%s11039_s6 + $0x588] sm:$0xff] }
  0x5a   :  { %540 = vmatpush2.msra.mxu1 %v8208_v62  ;;  %8212 = vmatprep.mubr.msk.f32.mxu1 %vm210_vm0, %v11131_v61  ;;  %v8271_v62 = vld [vmem:[%s11039_s6 + $0x508] sm:$0xff] }
  0x5b   :  { %9084 = vmatprep.subr.mxu0 %v8237_v1  ;;  %542 = vmatmul.mubr.f32.vlgmr.msra.gmra.mxu1 %v11135_v63  ;;  %v8261_v1 = vld [vmem:[%s11039_s6 + $0x4c0] sm:$0xff] }
  0x5c   :  { %9085 = vmatpush3.msra.mxu0 %v8221_v2  ;;  %670 = vmatprep.subr.mxu1 %v10990_v0  ;;  %v8286_v2 = vld [vmem:[%s11039_s6 + $0x580] sm:$0xff] }
  0x5d   :  { %9086 = vmatprep.subr.mxu0 %v8236_v3  ;;  %671 = vmatpush1.msra.mxu1 %v8260_v4  ;;  %v8270_v3 = vld [vmem:[%s11039_s6 + $0x500] sm:$0xff]  ;;  %v8285_v4 = vld [vmem:[%s11039_s6 + $0x578] sm:$0xff] }
  0x5e   :  { %9087 = vmatpush3.msra.mxu0 %v8220_v5  ;;  %672 = vmatprep.subr.mxu1 %v10990_v0  ;;  %v8313_v5 = vld [vmem:[%s11039_s6 + $0x658] sm:$0xff] }
  0x5f   :  { %9088 = vmatprep.subr.mxu0 %v8235_v6  ;;  %673 = vmatpush1.msra.mxu1 %v8259_v7  ;;  %v8269_v6 = vld [vmem:[%s11039_s6 + $0x4f8] sm:$0xff]  ;;  %v8284_v7 = vld [vmem:[%s11039_s6 + $0x570] sm:$0xff] }
  0x60   :  { %9089 = vmatpush3.msra.mxu0 %v8219_v8  ;;  %674 = vmatprep.subr.mxu1 %v10990_v0  ;;  %v8312_v8 = vld [vmem:[%s11039_s6 + $0x650] sm:$0xff] }
  0x61   :  { %9090 = vmatprep.subr.mxu0 %v8234_v9  ;;  %675 = vmatpush1.msra.mxu1 %v8258_v10  ;;  %v8268_v9 = vld [vmem:[%s11039_s6 + $0x4f0] sm:$0xff]  ;;  %v8283_v10 = vld [vmem:[%s11039_s6 + $0x568] sm:$0xff] }
  0x62   :  { %9091 = vmatpush3.msra.mxu0 %v8218_v11  ;;  %676 = vmatprep.subr.mxu1 %v10990_v0  ;;  %v8311_v11 = vld [vmem:[%s11039_s6 + $0x648] sm:$0xff] }
  0x63   :  { %9092 = vmatprep.subr.mxu0 %v8233_v12  ;;  %677 = vmatpush1.msra.mxu1 %v8257_v13  ;;  %v8267_v12 = vld [vmem:[%s11039_s6 + $0x4e8] sm:$0xff]  ;;  %v8282_v13 = vld [vmem:[%s11039_s6 + $0x560] sm:$0xff] }
  0x64   :  { %9093 = vmatpush3.msra.mxu0 %v8217_v14  ;;  %678 = vmatprep.subr.mxu1 %v10990_v0  ;;  %v8310_v14 = vld [vmem:[%s11039_s6 + $0x640] sm:$0xff] }
  0x65   :  { %9094 = vmatprep.subr.mxu0 %v8232_v15  ;;  %679 = vmatpush1.msra.mxu1 %v8256_v16  ;;  %v8266_v15 = vld [vmem:[%s11039_s6 + $0x4e0] sm:$0xff]  ;;  %v8309_v16 = vld [vmem:[%s11039_s6 + $0x638] sm:$0xff] }
  0x66   :  { %9095 = vmatpush3.msra.mxu0 %v8216_v17  ;;  %680 = vmatprep.subr.mxu1 %v10990_v0  ;;  %v8350_v17 = vld [vmem:[%s11039_s6 + $0x778] sm:$0xff] }
  0x67   :  { %9096 = vmatprep.subr.mxu0 %v8231_v18  ;;  %681 = vmatpush1.msra.mxu1 %v8255_v19  ;;  %v8334_v18 = vld [vmem:[%s11039_s6 + $0x6f8] sm:$0xff]  ;;  %v8308_v19 = vld [vmem:[%s11039_s6 + $0x630] sm:$0xff] }
  0x68   :  { %9097 = vmatpush3.msra.mxu0 %v8215_v20  ;;  %682 = vmatprep.subr.mxu1 %v10990_v0  ;;  %v8349_v20 = vld [vmem:[%s11039_s6 + $0x770] sm:$0xff] }
  0x69   :  { %9098 = vmatprep.subr.mxu0 %v8230_v21  ;;  %683 = vmatpush1.msra.mxu1 %v8254_v22  ;;  %v8333_v21 = vld [vmem:[%s11039_s6 + $0x6f0] sm:$0xff]  ;;  %v8307_v22 = vld [vmem:[%s11039_s6 + $0x628] sm:$0xff] }
  0x6a   :  { %9099 = vmatpush3.msra.mxu0 %v8214_v23  ;;  %684 = vmatprep.subr.mxu1 %v10990_v0  ;;  %v8348_v23 = vld [vmem:[%s11039_s6 + $0x768] sm:$0xff] }
  0x6b   :  { %9100 = vmatprep.subr.mxu0 %v8229_v24  ;;  %685 = vmatpush1.msra.mxu1 %v8253_v25  ;;  %v8332_v24 = vld [vmem:[%s11039_s6 + $0x6e8] sm:$0xff]  ;;  %v8306_v25 = vld [vmem:[%s11039_s6 + $0x620] sm:$0xff] }
  0x6c   :  { %9101 = vmatpush3.msra.mxu0 %v8213_v26  ;;  %664 = vmatprep.mubr.f32.mxu0 %v11109_v49  ;;  %v8347_v26 = vld [vmem:[%s11039_s6 + $0x760] sm:$0xff] }
  0x6d   :  { %686 = vmatprep.subr.mxu1 %v10990_v0  ;;  %665 = vmatmul.mubr.f32.vlgmr.msra.gmra.mxu0 %v11113_v50 }
  0x6e   :  { %687 = vmatpush1.msra.mxu1 %v8252_v27  ;;  %9105 = vmatprep.subr.mxu0 %v8297_v28  ;;  %v8331_v27 = vld [vmem:[%s11039_s6 + $0x6e0] sm:$0xff]  ;;  %v8305_v28 = vld [vmem:[%s11039_s6 + $0x618] sm:$0xff] }
  0x6f   :  { %688 = vmatprep.subr.mxu1 %v10990_v0  ;;  %9106 = vmatpush3.msra.mxu0 %v8281_v29  ;;  %v8346_v29 = vld [vmem:[%s11039_s6 + $0x758] sm:$0xff] }
  0x70   :  { %689 = vmatpush1.msra.mxu1 %v8251_v30  ;;  %9107 = vmatprep.subr.mxu0 %v8296_v31  ;;  %v8330_v30 = vld [vmem:[%s11039_s6 + $0x6d8] sm:$0xff]  ;;  %v8304_v31 = vld [vmem:[%s11039_s6 + $0x610] sm:$0xff] }
  0x71   :  { %690 = vmatprep.subr.mxu1 %v10990_v0  ;;  %9108 = vmatpush3.msra.mxu0 %v8280_v32  ;;  %v8345_v32 = vld [vmem:[%s11039_s6 + $0x750] sm:$0xff] }
  0x72   :  { %691 = vmatpush1.msra.mxu1 %v8250_v33  ;;  %9109 = vmatprep.subr.mxu0 %v8295_v34  ;;  %v8329_v33 = vld [vmem:[%s11039_s6 + $0x6d0] sm:$0xff]  ;;  %v8303_v34 = vld [vmem:[%s11039_s6 + $0x608] sm:$0xff] }
  0x73   :  { %692 = vmatprep.subr.mxu1 %v10990_v0  ;;  %9110 = vmatpush3.msra.mxu0 %v8279_v35  ;;  %v8344_v35 = vld [vmem:[%s11039_s6 + $0x748] sm:$0xff] }
  0x74   :  { %693 = vmatpush1.msra.mxu1 %v8249_v36  ;;  %9111 = vmatprep.subr.mxu0 %v8294_v37  ;;  %v8328_v36 = vld [vmem:[%s11039_s6 + $0x6c8] sm:$0xff]  ;;  %v8302_v37 = vld [vmem:[%s11039_s6 + $0x600] sm:$0xff] }
  0x75   :  { %694 = vmatprep.subr.mxu1 %v10990_v0  ;;  %9112 = vmatpush3.msra.mxu0 %v8278_v38  ;;  %v8343_v38 = vld [vmem:[%s11039_s6 + $0x740] sm:$0xff] }
  0x76   :  { %695 = vmatpush1.msra.mxu1 %v8248_v39  ;;  %9113 = vmatprep.subr.mxu0 %v8293_v40  ;;  %v8327_v39 = vld [vmem:[%s11039_s6 + $0x6c0] sm:$0xff]  ;;  %v8301_v40 = vld [vmem:[%s11039_s6 + $0x5f8] sm:$0xff] }
  0x77   :  { %696 = vmatprep.subr.mxu1 %v10990_v0  ;;  %9114 = vmatpush3.msra.mxu0 %v8277_v41  ;;  %v8342_v41 = vld [vmem:[%s11039_s6 + $0x738] sm:$0xff] }
  0x78   :  { %697 = vmatpush1.msra.mxu1 %v8247_v42  ;;  %9115 = vmatprep.subr.mxu0 %v8292_v43  ;;  %v8326_v42 = vld [vmem:[%s11039_s6 + $0x6b8] sm:$0xff]  ;;  %v8300_v43 = vld [vmem:[%s11039_s6 + $0x5f0] sm:$0xff] }
  0x79   :  { %698 = vmatprep.subr.mxu1 %v10990_v0  ;;  %9116 = vmatpush3.msra.mxu0 %v8276_v44  ;;  %v8341_v44 = vld [vmem:[%s11039_s6 + $0x730] sm:$0xff] }
  0x7a   :  { %699 = vmatpush1.msra.mxu1 %v8246_v45  ;;  %9117 = vmatprep.subr.mxu0 %v8291_v46  ;;  %v8325_v45 = vld [vmem:[%s11039_s6 + $0x6b0] sm:$0xff]  ;;  %v8299_v46 = vld [vmem:[%s11039_s6 + $0x5e8] sm:$0xff] }
  0x7b   :  { %700 = vmatprep.subr.mxu1 %v10990_v0  ;;  %9118 = vmatpush3.msra.mxu0 %v8275_v47  ;;  %v8340_v47 = vld [vmem:[%s11039_s6 + $0x728] sm:$0xff] }
  0x7c   :  { %701 = vmatpush1.msra.mxu1 %v8245_v48  ;;  %9119 = vmatprep.subr.mxu0 %v8290_v51  ;;  %v8324_v48 = vld [vmem:[%s11039_s6 + $0x6a8] sm:$0xff]  ;;  %v8298_v51 = vld [vmem:[%s11039_s6 + $0x5e0] sm:$0xff] }
  0x7d   :  { %726 = vmatprep.subr.mxu1 %v10990_v0  ;;  %9120 = vmatpush3.msra.mxu0 %v8274_v52  ;;  %v8339_v52 = vld [vmem:[%s11039_s6 + $0x720] sm:$0xff] }
  0x7e   :  { %727 = vmatpush2.msra.mxu1 %v8264_v53  ;;  %9121 = vmatprep.subr.mxu0 %v8289_v54  ;;  %v8323_v53 = vld [vmem:[%s11039_s6 + $0x6a0] sm:$0xff]  ;;  %v8317_v54 = vld [vmem:[%s11039_s6 + $0x678] sm:$0xff] }
  0x7f   :  { %728 = vmatprep.subr.mxu1 %v10990_v0  ;;  %9122 = vmatpush3.msra.mxu0 %v8273_v55  ;;  %v8338_v55 = vld [vmem:[%s11039_s6 + $0x718] sm:$0xff] }
  0x80   :  { %729 = vmatpush2.msra.mxu1 %v8263_v56  ;;  %9123 = vmatprep.subr.mxu0 %v8288_v57  ;;  %v8322_v56 = vld [vmem:[%s11039_s6 + $0x698] sm:$0xff]  ;;  %v8316_v57 = vld [vmem:[%s11039_s6 + $0x670] sm:$0xff] }
  0x81   :  { %730 = vmatprep.subr.mxu1 %v10990_v0  ;;  %9124 = vmatpush3.msra.mxu0 %v8272_v58  ;;  %v8337_v58 = vld [vmem:[%s11039_s6 + $0x710] sm:$0xff] }
  0x82   :  { %731 = vmatpush2.msra.mxu1 %v8262_v59  ;;  %9125 = vmatprep.subr.mxu0 %v8287_v60  ;;  %v8321_v59 = vld [vmem:[%s11039_s6 + $0x690] sm:$0xff]  ;;  %v8315_v60 = vld [vmem:[%s11039_s6 + $0x668] sm:$0xff] }
  0x83   :  { %732 = vmatprep.subr.mxu1 %v10990_v0  ;;  %9126 = vmatpush3.msra.mxu0 %v8271_v62  ;;  %v8336_v62 = vld [vmem:[%s11039_s6 + $0x708] sm:$0xff] }
  0x84   :  { %733 = vmatpush2.msra.mxu1 %v8261_v1  ;;  %8265 = vmatprep.mubr.msk.f32.mxu1 %vm210_vm0, %v11131_v61  ;;  %v8320_v1 = vld [vmem:[%s11039_s6 + $0x688] sm:$0xff] }
  0x85   :  { %9127 = vmatprep.subr.mxu0 %v8286_v2  ;;  %735 = vmatmul.mubr.f32.vlgmr.msra.gmra.mxu1 %v11135_v63  ;;  %v8314_v2 = vld [vmem:[%s11039_s6 + $0x660] sm:$0xff] }
  0x86   :  { %9128 = vmatpush3.msra.mxu0 %v8270_v3  ;;  %863 = vmatprep.subr.mxu1 %v10990_v0  ;;  %v8335_v3 = vld [vmem:[%s11039_s6 + $0x700] sm:$0xff] }
  0x87   :  { %9129 = vmatprep.subr.mxu0 %v8285_v4  ;;  %864 = vmatpush1.msra.mxu1 %v8313_v5  ;;  %v8319_v4 = vld [vmem:[%s11039_s6 + $0x680] sm:$0xff]  ;;  %v8366_v5 = vld [vmem:[%s11039_s6 + $0x7f8] sm:$0xff] }
  0x88   :  { %9130 = vmatpush3.msra.mxu0 %v8269_v6  ;;  %865 = vmatprep.subr.mxu1 %v10990_v0  ;;  %v8403_v6 = vld [vmem:[%s11039_s6 + $0x918] sm:$0xff] }
  0x89   :  { %9131 = vmatprep.subr.mxu0 %v8284_v7  ;;  %866 = vmatpush1.msra.mxu1 %v8312_v8  ;;  %v8387_v7 = vld [vmem:[%s11039_s6 + $0x898] sm:$0xff]  ;;  %v8365_v8 = vld [vmem:[%s11039_s6 + $0x7f0] sm:$0xff] }
  0x8a   :  { %9132 = vmatpush3.msra.mxu0 %v8268_v9  ;;  %867 = vmatprep.subr.mxu1 %v10990_v0  ;;  %v8364_v9 = vld [vmem:[%s11039_s6 + $0x7e8] sm:$0xff] }
  0x8b   :  { %9133 = vmatprep.subr.mxu0 %v8283_v10  ;;  %868 = vmatpush1.msra.mxu1 %v8311_v11  ;;  %v8363_v10 = vld [vmem:[%s11039_s6 + $0x7e0] sm:$0xff] }
  0x8c   :  { %9134 = vmatpush3.msra.mxu0 %v8267_v12  ;;  %869 = vmatprep.subr.mxu1 %v10990_v0  ;;  %v8400_v11 = vld [vmem:[%s11039_s6 + $0x900] sm:$0xff] }
  0x8d   :  { %9135 = vmatprep.subr.mxu0 %v8282_v13  ;;  %870 = vmatpush1.msra.mxu1 %v8310_v14  ;;  %v8384_v12 = vld [vmem:[%s11039_s6 + $0x880] sm:$0xff]  ;;  %v8362_v13 = vld [vmem:[%s11039_s6 + $0x7d8] sm:$0xff] }
  0x8e   :  { %9136 = vmatpush3.msra.mxu0 %v8266_v15  ;;  %857 = vmatprep.mubr.f32.mxu0 %v11109_v49  ;;  %v8399_v14 = vld [vmem:[%s11039_s6 + $0x8f8] sm:$0xff] }
  0x8f   :  { %871 = vmatprep.subr.mxu1 %v10990_v0  ;;  %858 = vmatmul.mubr.f32.vlgmr.msra.gmra.mxu0 %v11113_v50  ;;  %v8383_v15 = vld [vmem:[%s11039_s6 + $0x878] sm:$0xff] }
  0x90   :  { %872 = vmatpush1.msra.mxu1 %v8309_v16  ;;  %9140 = vmatprep.subr.mxu0 %v8350_v17  ;;  %v8361_v16 = vld [vmem:[%s11039_s6 + $0x7d0] sm:$0xff] }
  0x91   :  { %873 = vmatprep.subr.mxu1 %v10990_v0  ;;  %9141 = vmatpush3.msra.mxu0 %v8334_v18  ;;  %v8398_v17 = vld [vmem:[%s11039_s6 + $0x8f0] sm:$0xff] }
  0x92   :  { %874 = vmatpush1.msra.mxu1 %v8308_v19  ;;  %9142 = vmatprep.subr.mxu0 %v8349_v20  ;;  %v8382_v18 = vld [vmem:[%s11039_s6 + $0x870] sm:$0xff]  ;;  %v8360_v19 = vld [vmem:[%s11039_s6 + $0x7c8] sm:$0xff] }
  0x93   :  { %875 = vmatprep.subr.mxu1 %v10990_v0  ;;  %9143 = vmatpush3.msra.mxu0 %v8333_v21  ;;  %v8397_v20 = vld [vmem:[%s11039_s6 + $0x8e8] sm:$0xff] }
  0x94   :  { %876 = vmatpush1.msra.mxu1 %v8307_v22  ;;  %9144 = vmatprep.subr.mxu0 %v8348_v23  ;;  %v8381_v21 = vld [vmem:[%s11039_s6 + $0x868] sm:$0xff]  ;;  %v8359_v22 = vld [vmem:[%s11039_s6 + $0x7c0] sm:$0xff] }
  0x95   :  { %877 = vmatprep.subr.mxu1 %v10990_v0  ;;  %9145 = vmatpush3.msra.mxu0 %v8332_v24  ;;  %v8396_v23 = vld [vmem:[%s11039_s6 + $0x8e0] sm:$0xff] }
  0x96   :  { %878 = vmatpush1.msra.mxu1 %v8306_v25  ;;  %9146 = vmatprep.subr.mxu0 %v8347_v26  ;;  %v8380_v24 = vld [vmem:[%s11039_s6 + $0x860] sm:$0xff]  ;;  %v8358_v25 = vld [vmem:[%s11039_s6 + $0x7b8] sm:$0xff] }
  0x97   :  { %879 = vmatprep.subr.mxu1 %v10990_v0  ;;  %9147 = vmatpush3.msra.mxu0 %v8331_v27  ;;  %v8395_v26 = vld [vmem:[%s11039_s6 + $0x8d8] sm:$0xff] }
  0x98   :  { %880 = vmatpush1.msra.mxu1 %v8305_v28  ;;  %9148 = vmatprep.subr.mxu0 %v8346_v29  ;;  %v8379_v27 = vld [vmem:[%s11039_s6 + $0x858] sm:$0xff]  ;;  %v8357_v28 = vld [vmem:[%s11039_s6 + $0x7b0] sm:$0xff] }
  0x99   :  { %881 = vmatprep.subr.mxu1 %v10990_v0  ;;  %9149 = vmatpush3.msra.mxu0 %v8330_v30  ;;  %v8394_v29 = vld [vmem:[%s11039_s6 + $0x8d0] sm:$0xff] }
  0x9a   :  { %882 = vmatpush1.msra.mxu1 %v8304_v31  ;;  %9150 = vmatprep.subr.mxu0 %v8345_v32  ;;  %v8378_v30 = vld [vmem:[%s11039_s6 + $0x850] sm:$0xff]  ;;  %v8356_v31 = vld [vmem:[%s11039_s6 + $0x7a8] sm:$0xff] }
  0x9b   :  { %883 = vmatprep.subr.mxu1 %v10990_v0  ;;  %9151 = vmatpush3.msra.mxu0 %v8329_v33  ;;  %v8393_v32 = vld [vmem:[%s11039_s6 + $0x8c8] sm:$0xff] }
  0x9c   :  { %884 = vmatpush1.msra.mxu1 %v8303_v34  ;;  %9152 = vmatprep.subr.mxu0 %v8344_v35  ;;  %v8377_v33 = vld [vmem:[%s11039_s6 + $0x848] sm:$0xff]  ;;  %v8355_v34 = vld [vmem:[%s11039_s6 + $0x7a0] sm:$0xff] }
  0x9d   :  { %885 = vmatprep.subr.mxu1 %v10990_v0  ;;  %9153 = vmatpush3.msra.mxu0 %v8328_v36  ;;  %v8392_v35 = vld [vmem:[%s11039_s6 + $0x8c0] sm:$0xff] }
  0x9e   :  { %886 = vmatpush1.msra.mxu1 %v8302_v37  ;;  %9154 = vmatprep.subr.mxu0 %v8343_v38  ;;  %v8376_v36 = vld [vmem:[%s11039_s6 + $0x840] sm:$0xff]  ;;  %v8354_v37 = vld [vmem:[%s11039_s6 + $0x798] sm:$0xff] }
  0x9f   :  { %887 = vmatprep.subr.mxu1 %v10990_v0  ;;  %9155 = vmatpush3.msra.mxu0 %v8327_v39  ;;  %v8391_v38 = vld [vmem:[%s11039_s6 + $0x8b8] sm:$0xff] }
  0xa0   :  { %888 = vmatpush1.msra.mxu1 %v8301_v40  ;;  %9156 = vmatprep.subr.mxu0 %v8342_v41  ;;  %v8375_v39 = vld [vmem:[%s11039_s6 + $0x838] sm:$0xff]  ;;  %v8353_v40 = vld [vmem:[%s11039_s6 + $0x790] sm:$0xff] }
  0xa1   :  { %889 = vmatprep.subr.mxu1 %v10990_v0  ;;  %9157 = vmatpush3.msra.mxu0 %v8326_v42  ;;  %v8390_v41 = vld [vmem:[%s11039_s6 + $0x8b0] sm:$0xff] }
  0xa2   :  { %890 = vmatpush1.msra.mxu1 %v8300_v43  ;;  %9158 = vmatprep.subr.mxu0 %v8341_v44  ;;  %v8374_v42 = vld [vmem:[%s11039_s6 + $0x830] sm:$0xff]  ;;  %v8352_v43 = vld [vmem:[%s11039_s6 + $0x788] sm:$0xff] }
  0xa3   :  { %891 = vmatprep.subr.mxu1 %v10990_v0  ;;  %9159 = vmatpush3.msra.mxu0 %v8325_v45  ;;  %v8389_v44 = vld [vmem:[%s11039_s6 + $0x8a8] sm:$0xff] }
  0xa4   :  { %892 = vmatpush1.msra.mxu1 %v8299_v46  ;;  %9160 = vmatprep.subr.mxu0 %v8340_v47  ;;  %v8373_v45 = vld [vmem:[%s11039_s6 + $0x828] sm:$0xff]  ;;  %v8351_v46 = vld [vmem:[%s11039_s6 + $0x780] sm:$0xff] }
  0xa5   :  { %893 = vmatprep.subr.mxu1 %v10990_v0  ;;  %9161 = vmatpush3.msra.mxu0 %v8324_v48  ;;  %v8388_v47 = vld [vmem:[%s11039_s6 + $0x8a0] sm:$0xff] }
  0xa6   :  { %894 = vmatpush1.msra.mxu1 %v8298_v51  ;;  %9162 = vmatprep.subr.mxu0 %v8339_v52  ;;  %v8372_v48 = vld [vmem:[%s11039_s6 + $0x820] sm:$0xff]  ;;  %v8370_v51 = vld [vmem:[%s11039_s6 + $0x818] sm:$0xff]  ;;  %v8369_v52 = vld [vmem:[%s11039_s6 + $0x810] sm:$0xff] }
  0xa7   :  { %919 = vmatprep.subr.mxu1 %v10990_v0  ;;  %9163 = vmatpush3.msra.mxu0 %v8323_v53  ;;  %v11467_v53 = vld [vmem:[%s11090_s9 + $0x8] sm:$0xff] }
  0xa8   :  { %920 = vmatpush2.msra.mxu1 %v8317_v54  ;;  %9164 = vmatprep.subr.mxu0 %v8338_v55  ;;  %v8419_v54 = vld [vmem:[%s11039_s6 + $0x998] sm:$0xff]  ;;  %v8368_v55 = vld [vmem:[%s11039_s6 + $0x808] sm:$0xff] }
  0xa9   :  { %921 = vmatprep.subr.mxu1 %v10990_v0  ;;  %9165 = vmatpush3.msra.mxu0 %v8322_v56  ;;  %v11475_v56 = vld [vmem:[%s11090_s9] sm:$0xff] }
  0xaa   :  { %922 = vmatpush2.msra.mxu1 %v8316_v57  ;;  %9166 = vmatprep.subr.mxu0 %v8337_v58  ;;  %v8367_v57 = vld [vmem:[%s11039_s6 + $0x800] sm:$0xff]  ;;  %v8418_v58 = vld [vmem:[%s11039_s6 + $0x990] sm:$0xff] }
  0xab   :  { %923 = vmatprep.subr.mxu1 %v10990_v0  ;;  %9167 = vmatpush3.msra.mxu0 %v8321_v59  ;;  %v11482_v59 = vld [vmem:[%s11090_s9 + $0x18] sm:$0xff] }
  0xac   :  { %924 = vmatpush2.msra.mxu1 %v8315_v60  ;;  %9168 = vmatprep.subr.mxu0 %v8336_v62  ;;  %v8456_v60 = vld [vmem:[%s11039_s6 + $0xab8] sm:$0xff] }
  0xad   :  { %925 = vmatprep.subr.mxu1 %v10990_v0  ;;  %9169 = vmatpush3.msra.mxu0 %v8320_v1  ;;  %v8440_v62 = vld [vmem:[%s11039_s6 + $0xa38] sm:$0xff]  ;;  %v8417_v1 = vld [vmem:[%s11039_s6 + $0x988] sm:$0xff] }
  0xae   :  { %926 = vmatpush2.msra.mxu1 %v8314_v2  ;;  %8318 = vmatprep.mubr.msk.f32.mxu1 %vm210_vm0, %v11131_v61  ;;  %v8402_v61 = vld [vmem:[%s11039_s6 + $0x910] sm:$0xff] }
  0xaf   :  { %9170 = vmatprep.subr.mxu0 %v8335_v3  ;;  %928 = vmatmul.mubr.f32.vlgmr.msra.gmra.mxu1 %v11135_v63  ;;  %v8386_v63 = vld [vmem:[%s11039_s6 + $0x890] sm:$0xff] }
  0xb0   :  { %9171 = vmatpush3.msra.mxu0 %v8319_v4  ;;  %1050 = vmatprep.mubr.f32.mxu0 %v11109_v49  ;;  %v8401_v49 = vld [vmem:[%s11039_s6 + $0x908] sm:$0xff]  ;;  %v8455_v2 = vld [vmem:[%s11039_s6 + $0xab0] sm:$0xff] }
  0xb1   :  { %1051 = vmatmul.mubr.f32.vlgmr.msra.gmra.mxu0 %v11113_v50  ;;  %1056 = vmatprep.subr.mxu0 %v10990_v0  ;;  %v8385_v50 = vld [vmem:[%s11039_s6 + $0x888] sm:$0xff]  ;;  %v11493_v3 = vld [vmem:[%s11090_s9 + $0x10] sm:$0xff]  ;;  %s11016_s9 = smov 18  }
  0xb2   :  { %1057 = vmatpush1.msra.mxu0 %v8366_v5  ;;  %9175 = vmatprep.subr.mxu1 %v8403_v6  ;;  %v8439_v4 = vld [vmem:[%s11039_s6 + $0xa30] sm:$0xff]  ;;  %v8416_v5 = vld [vmem:[%s11039_s6 + $0x980] sm:$0xff]  ;;  %v8454_v6 = vld [vmem:[%s11039_s6 + $0xaa8] sm:$0xff]  ;;  %s8139_s12 = sld [smem:[%s13017_s0 + %s11016_s9]]  }
  0xb3   :  { %1058 = vmatprep.subr.mxu0 %v10990_v0  ;;  %9176 = vmatpush3.msra.mxu1 %v8387_v7  ;;  %v8438_v7 = vld [vmem:[%s11039_s6 + $0xa28] sm:$0xff] }
  0xb4   :  { %1059 = vmatpush1.msra.mxu0 %v8365_v8  ;;  %9177 = vmatprep.subr.mxu1 %v8402_v61  ;;  %v8415_v8 = vld [vmem:[%s11039_s6 + $0x978] sm:$0xff]  ;;  %v8453_v61 = vld [vmem:[%s11039_s6 + $0xaa0] sm:$0xff] }
  0xb5   :  { %1060 = vmatprep.subr.mxu0 %v10990_v0  ;;  %9178 = vmatpush3.msra.mxu1 %v8386_v63  ;;  %v8437_v63 = vld [vmem:[%s11039_s6 + $0xa20] sm:$0xff] }
  0xb6   :  { %1061 = vmatpush1.msra.mxu0 %v8364_v9  ;;  %9179 = vmatprep.subr.mxu1 %v8401_v49  ;;  %v8414_v9 = vld [vmem:[%s11039_s6 + $0x970] sm:$0xff]  ;;  %v8452_v49 = vld [vmem:[%s11039_s6 + $0xa98] sm:$0xff] }
  0xb7   :  { %1062 = vmatprep.subr.mxu0 %v10990_v0  ;;  %9180 = vmatpush3.msra.mxu1 %v8385_v50  ;;  %v8436_v50 = vld [vmem:[%s11039_s6 + $0xa18] sm:$0xff] }
  0xb8   :  { %1063 = vmatpush1.msra.mxu0 %v8363_v10  ;;  %9181 = vmatprep.subr.mxu1 %v8400_v11  ;;  %v8413_v10 = vld [vmem:[%s11039_s6 + $0x968] sm:$0xff]  ;;  %v8451_v11 = vld [vmem:[%s11039_s6 + $0xa90] sm:$0xff] }
  0xb9   :  { %1064 = vmatprep.subr.mxu0 %v10990_v0  ;;  %9182 = vmatpush3.msra.mxu1 %v8384_v12  ;;  %v8435_v12 = vld [vmem:[%s11039_s6 + $0xa10] sm:$0xff] }
  0xba   :  { %1065 = vmatpush1.msra.mxu0 %v8362_v13  ;;  %9183 = vmatprep.subr.mxu1 %v8399_v14  ;;  %v8412_v13 = vld [vmem:[%s11039_s6 + $0x960] sm:$0xff]  ;;  %v8450_v14 = vld [vmem:[%s11039_s6 + $0xa88] sm:$0xff] }
  0xbb   :  { %1066 = vmatprep.subr.mxu0 %v10990_v0  ;;  %9184 = vmatpush3.msra.mxu1 %v8383_v15  ;;  %v8434_v15 = vld [vmem:[%s11039_s6 + $0xa08] sm:$0xff] }
  0xbc   :  { %1067 = vmatpush1.msra.mxu0 %v8361_v16  ;;  %9185 = vmatprep.subr.mxu1 %v8398_v17  ;;  %v8411_v16 = vld [vmem:[%s11039_s6 + $0x958] sm:$0xff]  ;;  %v8449_v17 = vld [vmem:[%s11039_s6 + $0xa80] sm:$0xff] }
  0xbd   :  { %1068 = vmatprep.subr.mxu0 %v10990_v0  ;;  %9186 = vmatpush3.msra.mxu1 %v8382_v18  ;;  %v8433_v18 = vld [vmem:[%s11039_s6 + $0xa00] sm:$0xff] }
  0xbe   :  { %1069 = vmatpush1.msra.mxu0 %v8360_v19  ;;  %9187 = vmatprep.subr.mxu1 %v8397_v20  ;;  %v8410_v19 = vld [vmem:[%s11039_s6 + $0x950] sm:$0xff]  ;;  %v8448_v20 = vld [vmem:[%s11039_s6 + $0xa78] sm:$0xff] }
  0xbf   :  { %1070 = vmatprep.subr.mxu0 %v10990_v0  ;;  %9188 = vmatpush3.msra.mxu1 %v8381_v21  ;;  %v8432_v21 = vld [vmem:[%s11039_s6 + $0x9f8] sm:$0xff] }
  0xc0   :  { %1071 = vmatpush1.msra.mxu0 %v8359_v22  ;;  %9189 = vmatprep.subr.mxu1 %v8396_v23  ;;  %v8409_v22 = vld [vmem:[%s11039_s6 + $0x948] sm:$0xff]  ;;  %v8447_v23 = vld [vmem:[%s11039_s6 + $0xa70] sm:$0xff] }
  0xc1   :  { %1072 = vmatprep.subr.mxu0 %v10990_v0  ;;  %9190 = vmatpush3.msra.mxu1 %v8380_v24  ;;  %v8431_v24 = vld [vmem:[%s11039_s6 + $0x9f0] sm:$0xff] }
  0xc2   :  { %1073 = vmatpush1.msra.mxu0 %v8358_v25  ;;  %9191 = vmatprep.subr.mxu1 %v8395_v26  ;;  %v8408_v26 = vld [vmem:[%s11039_s6 + $0x940] sm:$0xff] }
  0xc3   :  { %1074 = vmatprep.subr.mxu0 %v10990_v0  ;;  %9192 = vmatpush3.msra.mxu1 %v8379_v27  ;;  %v8446_v27 = vld [vmem:[%s11039_s6 + $0xa68] sm:$0xff] }
  0xc4   :  { %1075 = vmatpush1.msra.mxu0 %v8357_v28  ;;  %9193 = vmatprep.subr.mxu1 %v8394_v29  ;;  %v8430_v28 = vld [vmem:[%s11039_s6 + $0x9e8] sm:$0xff] }
  0xc5   :  { %1076 = vmatprep.subr.mxu0 %v10990_v0  ;;  %9194 = vmatpush3.msra.mxu1 %v8378_v30  ;;  %v8407_v30 = vld [vmem:[%s11039_s6 + $0x938] sm:$0xff] }
  0xc6   :  { %1077 = vmatpush1.msra.mxu0 %v8356_v31  ;;  %9195 = vmatprep.subr.mxu1 %v8393_v32  ;;  %v8445_v31 = vld [vmem:[%s11039_s6 + $0xa60] sm:$0xff] }
  0xc7   :  { %1078 = vmatprep.subr.mxu0 %v10990_v0  ;;  %9196 = vmatpush3.msra.mxu1 %v8377_v33  ;;  %v8429_v33 = vld [vmem:[%s11039_s6 + $0x9e0] sm:$0xff] }
  0xc8   :  { %1079 = vmatpush1.msra.mxu0 %v8355_v34  ;;  %9197 = vmatprep.subr.mxu1 %v8392_v35  ;;  %v8406_v34 = vld [vmem:[%s11039_s6 + $0x930] sm:$0xff]  ;;  %v8444_v35 = vld [vmem:[%s11039_s6 + $0xa58] sm:$0xff] }
  0xc9   :  { %1080 = vmatprep.subr.mxu0 %v10990_v0  ;;  %9198 = vmatpush3.msra.mxu1 %v8376_v36  ;;  %v8428_v36 = vld [vmem:[%s11039_s6 + $0x9d8] sm:$0xff] }
  0xca   :  { %1081 = vmatpush1.msra.mxu0 %v8354_v37  ;;  %9199 = vmatprep.subr.mxu1 %v8391_v38  ;;  %v8405_v37 = vld [vmem:[%s11039_s6 + $0x928] sm:$0xff]  ;;  %v8443_v38 = vld [vmem:[%s11039_s6 + $0xa50] sm:$0xff] }
  0xcb   :  { %1082 = vmatprep.subr.mxu0 %v10990_v0  ;;  %9200 = vmatpush3.msra.mxu1 %v8375_v39  ;;  %v8427_v39 = vld [vmem:[%s11039_s6 + $0x9d0] sm:$0xff] }
  0xcc   :  { %1083 = vmatpush1.msra.mxu0 %v8353_v40  ;;  %9201 = vmatprep.subr.mxu1 %v8390_v41  ;;  %v8404_v41 = vld [vmem:[%s11039_s6 + $0x920] sm:$0xff] }
  0xcd   :  { %1084 = vmatprep.subr.mxu0 %v10990_v0  ;;  %9202 = vmatpush3.msra.mxu1 %v8374_v42  ;;  %v8442_v42 = vld [vmem:[%s11039_s6 + $0xa48] sm:$0xff] }
  0xce   :  { %1085 = vmatpush1.msra.mxu0 %v8352_v43  ;;  %9203 = vmatprep.subr.mxu1 %v8389_v44  ;;  %v8426_v44 = vld [vmem:[%s11039_s6 + $0x9c8] sm:$0xff] }
  0xcf   :  { %1086 = vmatprep.subr.mxu0 %v10990_v0  ;;  %9204 = vmatpush3.msra.mxu1 %v8373_v45 }
  0xd0   :  { %1087 = vmatpush1.msra.mxu0 %v8351_v46  ;;  %9205 = vmatprep.subr.mxu1 %v8388_v47  ;;  %v8423_v46 = vld [vmem:[%s11039_s6 + $0x9b8] sm:$0xff]  ;;  %v8441_v47 = vld [vmem:[%s11039_s6 + $0xa40] sm:$0xff] }
  0xd1   :  { %1112 = vmatprep.subr.mxu0 %v10990_v0  ;;  %9206 = vmatpush3.msra.mxu1 %v8372_v48  ;;  %v8425_v48 = vld [vmem:[%s11039_s6 + $0x9c0] sm:$0xff] }
  0xd2   :  { %1113 = vmatpush2.msra.mxu0 %v8370_v51  ;;  %1243 = vmatprep.mubr.f32.mxu1 %v11467_v53  ;;  %v8422_v51 = vld [vmem:[%s11039_s6 + $0x9b0] sm:$0xff] }
  0xd3   :  { %1114 = vmatprep.subr.mxu0 %v10990_v0  ;;  %1249 = vmatprep.subr.mxu1 %v10990_v0 }
  0xd4   :  { %1115 = vmatpush2.msra.mxu0 %v8369_v52  ;;  %1244 = vmatmul.mubr.f32.vlgmr.msra.gmra.mxu1 %v11475_v56  ;;  %v8472_v52 = vld [vmem:[%s11039_s6 + $0xb38] sm:$0xff] }
  0xd5   :  { %1116 = vmatprep.subr.mxu0 %v10990_v0  ;;  %1250 = vmatpush1.msra.mxu1 %v8419_v54  ;;  %v8421_v54 = vld [vmem:[%s11039_s6 + $0x9a8] sm:$0xff] }
  0xd6   :  { %1117 = vmatpush2.msra.mxu0 %v8368_v55  ;;  %8371 = vmatprep.mubr.msk.f32.mxu0 %vm210_vm0, %v11482_v59  ;;  %v8471_v55 = vld [vmem:[%s11039_s6 + $0xb30] sm:$0xff] }
  0xd7   :  { %1118 = vmatprep.subr.mxu0 %v10990_v0  ;;  %1251 = vmatprep.subr.mxu1 %v10990_v0 }
  0xd8   :  { %1119 = vmatpush2.msra.mxu0 %v8367_v57  ;;  %1252 = vmatpush1.msra.mxu1 %v8418_v58  ;;  %v8420_v57 = vld [vmem:[%s11039_s6 + $0x9a0] sm:$0xff]  ;;  %v8470_v58 = vld [vmem:[%s11039_s6 + $0xb28] sm:$0xff] }
  0xd9   :  { %1121 = vmatmul.mubr.f32.vlgmr.msra.gmra.mxu0 %v11493_v3  ;;  %9210 = vmatprep.subr.mxu0 %v8456_v60  ;;  %v8509_v60 = vld [vmem:[%s11039_s6 + $0xc58] sm:$0xff] }
  0xda   :  { %1253 = vmatprep.subr.mxu1 %v10990_v0  ;;  %9211 = vmatpush3.msra.mxu0 %v8440_v62  ;;  %v8493_v62 = vld [vmem:[%s11039_s6 + $0xbd8] sm:$0xff] }
  0xdb   :  { %1254 = vmatpush1.msra.mxu1 %v8417_v1  ;;  %9212 = vmatprep.subr.mxu0 %v8455_v2  ;;  %v8469_v1 = vld [vmem:[%s11039_s6 + $0xb20] sm:$0xff]  ;;  %v8508_v2 = vld [vmem:[%s11039_s6 + $0xc50] sm:$0xff] }
  0xdc   :  { %1255 = vmatprep.subr.mxu1 %v10990_v0  ;;  %9213 = vmatpush3.msra.mxu0 %v8439_v4  ;;  %v8492_v4 = vld [vmem:[%s11039_s6 + $0xbd0] sm:$0xff] }
  0xdd   :  { %1256 = vmatpush1.msra.mxu1 %v8416_v5  ;;  %9214 = vmatprep.subr.mxu0 %v8454_v6  ;;  %v8468_v5 = vld [vmem:[%s11039_s6 + $0xb18] sm:$0xff]  ;;  %v8507_v6 = vld [vmem:[%s11039_s6 + $0xc48] sm:$0xff] }
  0xde   :  { %1257 = vmatprep.subr.mxu1 %v10990_v0  ;;  %9215 = vmatpush3.msra.mxu0 %v8438_v7  ;;  %v8491_v7 = vld [vmem:[%s11039_s6 + $0xbc8] sm:$0xff] }
  0xdf   :  { %1258 = vmatpush1.msra.mxu1 %v8415_v8  ;;  %9216 = vmatprep.subr.mxu0 %v8453_v61  ;;  %v8467_v8 = vld [vmem:[%s11039_s6 + $0xb10] sm:$0xff]  ;;  %v8506_v61 = vld [vmem:[%s11039_s6 + $0xc40] sm:$0xff] }
  0xe0   :  { %1259 = vmatprep.subr.mxu1 %v10990_v0  ;;  %9217 = vmatpush3.msra.mxu0 %v8437_v63  ;;  %v8490_v63 = vld [vmem:[%s11039_s6 + $0xbc0] sm:$0xff] }
  0xe1   :  { %1260 = vmatpush1.msra.mxu1 %v8414_v9  ;;  %9218 = vmatprep.subr.mxu0 %v8452_v49  ;;  %v8466_v9 = vld [vmem:[%s11039_s6 + $0xb08] sm:$0xff]  ;;  %v8505_v49 = vld [vmem:[%s11039_s6 + $0xc38] sm:$0xff] }
  0xe2   :  { %1261 = vmatprep.subr.mxu1 %v10990_v0  ;;  %9219 = vmatpush3.msra.mxu0 %v8436_v50  ;;  %v8489_v50 = vld [vmem:[%s11039_s6 + $0xbb8] sm:$0xff] }
  0xe3   :  { %1262 = vmatpush1.msra.mxu1 %v8413_v10  ;;  %9220 = vmatprep.subr.mxu0 %v8451_v11  ;;  %v8465_v10 = vld [vmem:[%s11039_s6 + $0xb00] sm:$0xff]  ;;  %v8504_v11 = vld [vmem:[%s11039_s6 + $0xc30] sm:$0xff] }
  0xe4   :  { %1263 = vmatprep.subr.mxu1 %v10990_v0  ;;  %9221 = vmatpush3.msra.mxu0 %v8435_v12  ;;  %v8488_v12 = vld [vmem:[%s11039_s6 + $0xbb0] sm:$0xff] }
  0xe5   :  { %1264 = vmatpush1.msra.mxu1 %v8412_v13  ;;  %9222 = vmatprep.subr.mxu0 %v8450_v14  ;;  %v8464_v13 = vld [vmem:[%s11039_s6 + $0xaf8] sm:$0xff]  ;;  %v8503_v14 = vld [vmem:[%s11039_s6 + $0xc28] sm:$0xff] }
  0xe6   :  { %1265 = vmatprep.subr.mxu1 %v10990_v0  ;;  %9223 = vmatpush3.msra.mxu0 %v8434_v15  ;;  %v8487_v15 = vld [vmem:[%s11039_s6 + $0xba8] sm:$0xff] }
  0xe7   :  { %1266 = vmatpush1.msra.mxu1 %v8411_v16  ;;  %9224 = vmatprep.subr.mxu0 %v8449_v17  ;;  %v8463_v16 = vld [vmem:[%s11039_s6 + $0xaf0] sm:$0xff]  ;;  %v8502_v17 = vld [vmem:[%s11039_s6 + $0xc20] sm:$0xff] }
  0xe8   :  { %1267 = vmatprep.subr.mxu1 %v10990_v0  ;;  %9225 = vmatpush3.msra.mxu0 %v8433_v18 }
  0xe9   :  { %1268 = vmatpush1.msra.mxu1 %v8410_v19  ;;  %9226 = vmatprep.subr.mxu0 %v8448_v20  ;;  %v9032_v25 = vpop.f32.mrf.mxu0  ;;  %v8486_v19 = vld [vmem:[%s11039_s6 + $0xba0] sm:$0xff]  ;;  %v8462_v20 = vld [vmem:[%s11039_s6 + $0xae8] sm:$0xff] }
  0xea   :  { %1269 = vmatprep.subr.mxu1 %v10990_v0  ;;  %9227 = vmatpush3.msra.mxu0 %v8432_v21  ;;  %v8501_v21 = vld [vmem:[%s11039_s6 + $0xc18] sm:$0xff] }
  0xeb   :  { %1270 = vmatpush1.msra.mxu1 %v8409_v22  ;;  %9228 = vmatprep.subr.mxu0 %v8447_v23  ;;  %v9033_v29 = vpop.f32.mrf.mxu0  ;;  %v8485_v23 = vld [vmem:[%s11039_s6 + $0xb98] sm:$0xff] }
  0xec   :  { %1271 = vmatprep.subr.mxu1 %v10990_v0  ;;  %9229 = vmatpush3.msra.mxu0 %v8431_v24  ;;  %v9034_v32 = vadd.f32 %v9033_v29, %v9032_v25  ;;  %v8461_v25 = vld [vmem:[%s11039_s6 + $0xae0] sm:$0xff]  ;;  %v8499_v29 = vld [vmem:[%s11039_s6 + $0xc08] sm:$0xff] }
  0xed   :  { %1272 = vmatpush1.msra.mxu1 %v8408_v26  ;;  %9230 = vmatprep.subr.mxu0 %v8446_v27  ;;  %v8500_v26 = vld [vmem:[%s11039_s6 + $0xc10] sm:$0xff] }
  0xee   :  { %1273 = vmatprep.subr.mxu1 %v10990_v0  ;;  %9231 = vmatpush3.msra.mxu0 %v8430_v28  ;;  %v8484_v27 = vld [vmem:[%s11039_s6 + $0xb90] sm:$0xff]  ;;  %v8460_v28 = vld [vmem:[%s11039_s6 + $0xad8] sm:$0xff] }
  0xef   :  { %1274 = vmatpush1.msra.mxu1 %v8407_v30  ;;  %9232 = vmatprep.subr.mxu0 %v8445_v31  ;;  %v8483_v30 = vld [vmem:[%s11039_s6 + $0xb88] sm:$0xff]  ;;  %v8459_v31 = vld [vmem:[%s11039_s6 + $0xad0] sm:$0xff] }
  0xf0   :  { %1275 = vmatprep.subr.mxu1 %v10990_v0  ;;  %9233 = vmatpush3.msra.mxu0 %v8429_v33  ;;  %v8482_v33 = vld [vmem:[%s11039_s6 + $0xb80] sm:$0xff] }
  0xf1   :  { %1276 = vmatpush1.msra.mxu1 %v8406_v34  ;;  %9234 = vmatprep.subr.mxu0 %v8444_v35  ;;  %v350_v40 = vpop.f32.mrf.mxu1  ;;  %v8458_v34 = vld [vmem:[%s11039_s6 + $0xac8] sm:$0xff]  ;;  %v8497_v35 = vld [vmem:[%s11039_s6 + $0xbf8] sm:$0xff] }
  0xf2   :  { %1277 = vmatprep.subr.mxu1 %v10990_v0  ;;  %9235 = vmatpush3.msra.mxu0 %v8428_v36  ;;  %v11548_v43 = vadd.f32 %v9034_v32, %v350_v40  ;;  %v8498_v32 = vld [vmem:[%s11039_s6 + $0xc00] sm:$0xff]  ;;  %v8481_v36 = vld [vmem:[%s11039_s6 + $0xb78] sm:$0xff] }
  0xf3   :  { %1278 = vmatpush1.msra.mxu1 %v8405_v37  ;;  %9236 = vmatprep.subr.mxu0 %v8443_v38  ;;  %v352_v45 = vpop.f32.mrf.mxu1  ;;  %v8457_v37 = vld [vmem:[%s11039_s6 + $0xac0] sm:$0xff]  ;;  %v8496_v38 = vld [vmem:[%s11039_s6 + $0xbf0] sm:$0xff]  ;;  %v8476_v40 = vld [vmem:[%s11039_s6 + $0xb58] sm:$0xff] }
  0xf4   :  { %1279 = vmatprep.subr.mxu1 %v10990_v0  ;;  %9237 = vmatpush3.msra.mxu0 %v8427_v39  ;;  %v8480_v39 = vld [vmem:[%s11039_s6 + $0xb70] sm:$0xff]  ;;  %v8494_v45 = vld [vmem:[%s11039_s6 + $0xbe0] sm:$0xff] }
  0xf5   :  { %1280 = vmatpush1.msra.mxu1 %v8404_v41  ;;  %9238 = vmatprep.subr.mxu0 %v8442_v42  ;;  %v8495_v41 = vld [vmem:[%s11039_s6 + $0xbe8] sm:$0xff] }
  0xf6   :  { %1305 = vmatprep.subr.mxu1 %v10990_v0  ;;  %9239 = vmatpush3.msra.mxu0 %v8426_v44  ;;  %v8479_v42 = vld [vmem:[%s11039_s6 + $0xb68] sm:$0xff]  ;;  %v8475_v44 = vld [vmem:[%s11039_s6 + $0xb50] sm:$0xff] }
  0xf7   :  { %1306 = vmatpush2.msra.mxu1 %v8423_v46  ;;  %9240 = vmatprep.subr.mxu0 %v8441_v47  ;;  %v8478_v47 = vld [vmem:[%s11039_s6 + $0xb60] sm:$0xff] }
  0xf8   :  { %1307 = vmatprep.subr.mxu1 %v10990_v0  ;;  %9241 = vmatpush3.msra.mxu0 %v8425_v48 }
  0xf9   :  { %1436 = vmatprep.mubr.f32.mxu0 %v11467_v53  ;;  %1308 = vmatpush2.msra.mxu1 %v8422_v51  ;;  %v8474_v51 = vld [vmem:[%s11039_s6 + $0xb48] sm:$0xff] }
  0xfa   :  { %1437 = vmatmul.mubr.f32.vlgmr.msra.gmra.mxu0 %v11475_v56  ;;  %1442 = vmatprep.subr.mxu0 %v10990_v0 }
  0xfb   :  { %1309 = vmatprep.subr.mxu1 %v10990_v0  ;;  %1443 = vmatpush1.msra.mxu0 %v8472_v52 }
  0xfc   :  { %1310 = vmatpush2.msra.mxu1 %v8421_v54  ;;  %1444 = vmatprep.subr.mxu0 %v10990_v0  ;;  %v8473_v54 = vld [vmem:[%s11039_s6 + $0xb40] sm:$0xff] }
  0xfd   :  { %1311 = vmatprep.subr.mxu1 %v10990_v0  ;;  %1445 = vmatpush1.msra.mxu0 %v8471_v55  ;;  %v8525_v55 = vld [vmem:[%s11039_s6 + $0xcd8] sm:$0xff] }
  0xfe   :  { %1312 = vmatpush2.msra.mxu1 %v8420_v57  ;;  %8424 = vmatprep.mubr.msk.f32.mxu1 %vm210_vm0, %v11482_v59  ;;  %v8524_v57 = vld [vmem:[%s11039_s6 + $0xcd0] sm:$0xff] }
  0xff   :  { %1446 = vmatprep.subr.mxu0 %v10990_v0  ;;  %1314 = vmatmul.mubr.f32.vlgmr.msra.gmra.mxu1 %v11493_v3 }
 0x100   :  { %1447 = vmatpush1.msra.mxu0 %v8470_v58  ;;  %9245 = vmatprep.subr.mxu1 %v8509_v60  ;;  %v8562_v58 = vld [vmem:[%s11039_s6 + $0xdf8] sm:$0xff] }
 0x101   :  { %1448 = vmatprep.subr.mxu0 %v10990_v0  ;;  %9246 = vmatpush3.msra.mxu1 %v8493_v62  ;;  %v8546_v60 = vld [vmem:[%s11039_s6 + $0xd78] sm:$0xff]  ;;  %v8523_v62 = vld [vmem:[%s11039_s6 + $0xcc8] sm:$0xff] }
 0x102   :  { %1449 = vmatpush1.msra.mxu0 %v8469_v1  ;;  %9247 = vmatprep.subr.mxu1 %v8508_v2  ;;  %v8561_v1 = vld [vmem:[%s11039_s6 + $0xdf0] sm:$0xff] }
 0x103   :  { %1450 = vmatprep.subr.mxu0 %v10990_v0  ;;  %9248 = vmatpush3.msra.mxu1 %v8492_v4  ;;  %v8545_v2 = vld [vmem:[%s11039_s6 + $0xd70] sm:$0xff]  ;;  %v8522_v4 = vld [vmem:[%s11039_s6 + $0xcc0] sm:$0xff] }
 0x104   :  { %1451 = vmatpush1.msra.mxu0 %v8468_v5  ;;  %9249 = vmatprep.subr.mxu1 %v8507_v6  ;;  %v8560_v5 = vld [vmem:[%s11039_s6 + $0xde8] sm:$0xff] }
 0x105   :  { %1452 = vmatprep.subr.mxu0 %v10990_v0  ;;  %9250 = vmatpush3.msra.mxu1 %v8491_v7  ;;  %v8544_v6 = vld [vmem:[%s11039_s6 + $0xd68] sm:$0xff]  ;;  %v8521_v7 = vld [vmem:[%s11039_s6 + $0xcb8] sm:$0xff] }
 0x106   :  { %1453 = vmatpush1.msra.mxu0 %v8467_v8  ;;  %9251 = vmatprep.subr.mxu1 %v8506_v61  ;;  %v8559_v8 = vld [vmem:[%s11039_s6 + $0xde0] sm:$0xff] }
 0x107   :  { %1454 = vmatprep.subr.mxu0 %v10990_v0  ;;  %9252 = vmatpush3.msra.mxu1 %v8490_v63  ;;  %v8543_v61 = vld [vmem:[%s11039_s6 + $0xd60] sm:$0xff]  ;;  %v8520_v63 = vld [vmem:[%s11039_s6 + $0xcb0] sm:$0xff] }
 0x108   :  { %1455 = vmatpush1.msra.mxu0 %v8466_v9  ;;  %9253 = vmatprep.subr.mxu1 %v8505_v49  ;;  %v8558_v9 = vld [vmem:[%s11039_s6 + $0xdd8] sm:$0xff] }
 0x109   :  { %1456 = vmatprep.subr.mxu0 %v10990_v0  ;;  %9254 = vmatpush3.msra.mxu1 %v8489_v50  ;;  %v8542_v49 = vld [vmem:[%s11039_s6 + $0xd58] sm:$0xff]  ;;  %v8519_v50 = vld [vmem:[%s11039_s6 + $0xca8] sm:$0xff] }
 0x10a   :  { %1457 = vmatpush1.msra.mxu0 %v8465_v10  ;;  %9255 = vmatprep.subr.mxu1 %v8504_v11  ;;  %v8557_v10 = vld [vmem:[%s11039_s6 + $0xdd0] sm:$0xff] }
 0x10b   :  { %1458 = vmatprep.subr.mxu0 %v10990_v0  ;;  %9256 = vmatpush3.msra.mxu1 %v8488_v12  ;;  %v9067_v18 = vpop.f32.mrf.mxu0  ;;  %v8541_v11 = vld [vmem:[%s11039_s6 + $0xd50] sm:$0xff] }
 0x10c   :  { %1459 = vmatpush1.msra.mxu0 %v8464_v13  ;;  %9257 = vmatprep.subr.mxu1 %v8503_v14  ;;  %v8518_v13 = vld [vmem:[%s11039_s6 + $0xca0] sm:$0xff]  ;;  %v8556_v14 = vld [vmem:[%s11039_s6 + $0xdc8] sm:$0xff] }
 0x10d   :  { %1460 = vmatprep.subr.mxu0 %v10990_v0  ;;  %9258 = vmatpush3.msra.mxu1 %v8487_v15  ;;  %v9068_v22 = vpop.f32.mrf.mxu0  ;;  %v8540_v15 = vld [vmem:[%s11039_s6 + $0xd48] sm:$0xff] }
 0x10e   :  { %1461 = vmatpush1.msra.mxu0 %v8463_v16  ;;  %9259 = vmatprep.subr.mxu1 %v8502_v17  ;;  %v9069_v24 = vadd.f32 %v9068_v22, %v9067_v18  ;;  %v8517_v17 = vld [vmem:[%s11039_s6 + $0xc98] sm:$0xff]  ;;  %v8555_v18 = vld [vmem:[%s11039_s6 + $0xdc0] sm:$0xff] }
 0x10f   :  { %1462 = vmatprep.subr.mxu0 %v10990_v0  ;;  %9260 = vmatpush3.msra.mxu1 %v8486_v19  ;;  %v8554_v22 = vld [vmem:[%s11039_s6 + $0xdb8] sm:$0xff] }
 0x110   :  { %1463 = vmatpush1.msra.mxu0 %v8462_v20  ;;  %9261 = vmatprep.subr.mxu1 %v8501_v21  ;;  %v8539_v20 = vld [vmem:[%s11039_s6 + $0xd40] sm:$0xff]  ;;  %v8516_v21 = vld [vmem:[%s11039_s6 + $0xc90] sm:$0xff] }
 0x111   :  { %1464 = vmatprep.subr.mxu0 %v10990_v0  ;;  %9262 = vmatpush3.msra.mxu1 %v8485_v23  ;;  %v8538_v23 = vld [vmem:[%s11039_s6 + $0xd38] sm:$0xff] }
 0x112   :  { %1465 = vmatpush1.msra.mxu0 %v8461_v25  ;;  %9263 = vmatprep.subr.mxu1 %v8500_v26  ;;  %v8553_v25 = vld [vmem:[%s11039_s6 + $0xdb0] sm:$0xff] }
 0x113   :  { %1466 = vmatprep.subr.mxu0 %v10990_v0  ;;  %9264 = vmatpush3.msra.mxu1 %v8484_v27  ;;  %v8537_v26 = vld [vmem:[%s11039_s6 + $0xd30] sm:$0xff]  ;;  %v8514_v27 = vld [vmem:[%s11039_s6 + $0xc80] sm:$0xff] }
 0x114   :  { %1467 = vmatpush1.msra.mxu0 %v8460_v28  ;;  %9265 = vmatprep.subr.mxu1 %v8499_v29  ;;  %v8552_v28 = vld [vmem:[%s11039_s6 + $0xda8] sm:$0xff] }
 0x115   :  { %1468 = vmatprep.subr.mxu0 %v10990_v0  ;;  %9266 = vmatpush3.msra.mxu1 %v8483_v30  ;;  %v8536_v29 = vld [vmem:[%s11039_s6 + $0xd28] sm:$0xff]  ;;  %v8513_v30 = vld [vmem:[%s11039_s6 + $0xc78] sm:$0xff] }
 0x116   :  { %1469 = vmatpush1.msra.mxu0 %v8459_v31  ;;  %9267 = vmatprep.subr.mxu1 %v8498_v32  ;;  %v8551_v31 = vld [vmem:[%s11039_s6 + $0xda0] sm:$0xff] }
 0x117   :  { %1470 = vmatprep.subr.mxu0 %v10990_v0  ;;  %9268 = vmatpush3.msra.mxu1 %v8482_v33  ;;  %v8535_v32 = vld [vmem:[%s11039_s6 + $0xd20] sm:$0xff]  ;;  %v8512_v33 = vld [vmem:[%s11039_s6 + $0xc70] sm:$0xff] }
 0x118   :  { %1471 = vmatpush1.msra.mxu0 %v8458_v34  ;;  %9269 = vmatprep.subr.mxu1 %v8497_v35  ;;  %v8550_v34 = vld [vmem:[%s11039_s6 + $0xd98] sm:$0xff] }
 0x119   :  { %1472 = vmatprep.subr.mxu0 %v10990_v0  ;;  %9270 = vmatpush3.msra.mxu1 %v8481_v36  ;;  %v8534_v35 = vld [vmem:[%s11039_s6 + $0xd18] sm:$0xff]  ;;  %v8511_v36 = vld [vmem:[%s11039_s6 + $0xc68] sm:$0xff] }
 0x11a   :  { %1473 = vmatpush1.msra.mxu0 %v8457_v37  ;;  %9271 = vmatprep.subr.mxu1 %v8496_v38  ;;  %v8549_v37 = vld [vmem:[%s11039_s6 + $0xd90] sm:$0xff] }
 0x11b   :  { %1498 = vmatprep.subr.mxu0 %v10990_v0  ;;  %9272 = vmatpush3.msra.mxu1 %v8480_v39  ;;  %v543_v46 = vpop.f32.mrf.mxu1  ;;  %v8533_v38 = vld [vmem:[%s11039_s6 + $0xd10] sm:$0xff]  ;;  %v8510_v39 = vld [vmem:[%s11039_s6 + $0xc60] sm:$0xff] }
 0x11c   :  { %1499 = vmatpush2.msra.mxu0 %v8476_v40  ;;  %9273 = vmatprep.subr.mxu1 %v8495_v41  ;;  %v11634_v48 = vadd.f32 %v9069_v24, %v543_v46  ;;  %v8515_v24 = vld [vmem:[%s11039_s6 + $0xc88] sm:$0xff]  ;;  %v8528_v46 = vld [vmem:[%s11039_s6 + $0xcf0] sm:$0xff] }
 0x11d   :  { %1500 = vmatprep.subr.mxu0 %v10990_v0  ;;  %9274 = vmatpush3.msra.mxu1 %v8479_v42  ;;  %v545_v52 = vpop.f32.mrf.mxu1  ;;  %v8548_v40 = vld [vmem:[%s11039_s6 + $0xd88] sm:$0xff]  ;;  %v8529_v42 = vld [vmem:[%s11039_s6 + $0xcf8] sm:$0xff] }
 0x11e   :  { %1501 = vmatpush2.msra.mxu0 %v8475_v44  ;;  %9275 = vmatprep.subr.mxu1 %v8494_v45  ;;  %v8532_v41 = vld [vmem:[%s11039_s6 + $0xd08] sm:$0xff]  ;;  %v8547_v44 = vld [vmem:[%s11039_s6 + $0xd80] sm:$0xff] }
 0x11f   :  { %1502 = vmatprep.subr.mxu0 %v10990_v0  ;;  %9276 = vmatpush3.msra.mxu1 %v8478_v47  ;;  %v8531_v45 = vld [vmem:[%s11039_s6 + $0xd00] sm:$0xff]  ;;  %v8578_v47 = vld [vmem:[%s11039_s6 + $0xe78] sm:$0xff] }
 0x120   :  { %1503 = vmatpush2.msra.mxu0 %v8474_v51  ;;  %1629 = vmatprep.mubr.f32.mxu1 %v11467_v53  ;;  %v8527_v51 = vld [vmem:[%s11039_s6 + $0xce8] sm:$0xff] }
 0x121   :  { %1635 = vmatprep.subr.mxu1 %v10990_v0  ;;  %1504 = vmatprep.subr.mxu0 %v10990_v0 }
 0x122   :  { %1630 = vmatmul.mubr.f32.vlgmr.msra.gmra.mxu1 %v11475_v56  ;;  %1505 = vmatpush2.msra.mxu0 %v8473_v54  ;;  %v8577_v54 = vld [vmem:[%s11039_s6 + $0xe70] sm:$0xff] }
 0x123   :  { %1636 = vmatpush1.msra.mxu1 %v8525_v55  ;;  %8477 = vmatprep.mubr.msk.f32.mxu0 %vm210_vm0, %v11482_v59 }
 0x124   :  { %1637 = vmatprep.subr.mxu1 %v10990_v0  ;;  %1507 = vmatmul.mubr.f32.vlgmr.msra.gmra.mxu0 %v11493_v3 }
 0x125   :  { %1638 = vmatpush1.msra.mxu1 %v8524_v57  ;;  %9280 = vmatprep.subr.mxu0 %v8562_v58  ;;  %v8526_v57 = vld [vmem:[%s11039_s6 + $0xce0] sm:$0xff] }
 0x126   :  { %1639 = vmatprep.subr.mxu1 %v10990_v0  ;;  %9281 = vmatpush3.msra.mxu0 %v8546_v60  ;;  %v8574_v60 = vld [vmem:[%s11039_s6 + $0xe58] sm:$0xff] }
 0x127   :  { %1640 = vmatpush1.msra.mxu1 %v8523_v62  ;;  %9282 = vmatprep.subr.mxu0 %v8561_v1  ;;  %v8573_v62 = vld [vmem:[%s11039_s6 + $0xe50] sm:$0xff] }
 0x128   :  { %1641 = vmatprep.subr.mxu1 %v10990_v0  ;;  %9283 = vmatpush3.msra.mxu0 %v8545_v2  ;;  %v8572_v2 = vld [vmem:[%s11039_s6 + $0xe48] sm:$0xff] }
 0x129   :  { %1642 = vmatpush1.msra.mxu1 %v8522_v4  ;;  %9284 = vmatprep.subr.mxu0 %v8560_v5  ;;  %v8571_v5 = vld [vmem:[%s11039_s6 + $0xe40] sm:$0xff] }
 0x12a   :  { %1643 = vmatprep.subr.mxu1 %v10990_v0  ;;  %9285 = vmatpush3.msra.mxu0 %v8544_v6  ;;  %v8570_v6 = vld [vmem:[%s11039_s6 + $0xe38] sm:$0xff] }
 0x12b   :  { %1644 = vmatpush1.msra.mxu1 %v8521_v7  ;;  %9286 = vmatprep.subr.mxu0 %v8559_v8  ;;  %v8569_v7 = vld [vmem:[%s11039_s6 + $0xe30] sm:$0xff]  ;;  %v8568_v8 = vld [vmem:[%s11039_s6 + $0xe28] sm:$0xff] }
 0x12c   :  { %1645 = vmatprep.subr.mxu1 %v10990_v0  ;;  %9287 = vmatpush3.msra.mxu0 %v8543_v61  ;;  %v8567_v61 = vld [vmem:[%s11039_s6 + $0xe20] sm:$0xff] }
 0x12d   :  { %1646 = vmatpush1.msra.mxu1 %v8520_v63  ;;  %9288 = vmatprep.subr.mxu0 %v8558_v9  ;;  %v9102_v12 = vpop.f32.mrf.mxu0  ;;  %v8566_v63 = vld [vmem:[%s11039_s6 + $0xe18] sm:$0xff]  ;;  %v8565_v9 = vld [vmem:[%s11039_s6 + $0xe10] sm:$0xff] }
 0x12e   :  { %1647 = vmatprep.subr.mxu1 %v10990_v0  ;;  %9289 = vmatpush3.msra.mxu0 %v8542_v49  ;;  %v8564_v49 = vld [vmem:[%s11039_s6 + $0xe08] sm:$0xff] }
 0x12f   :  { %1648 = vmatpush1.msra.mxu1 %v8519_v50  ;;  %9290 = vmatprep.subr.mxu0 %v8557_v10  ;;  %v9103_v16 = vpop.f32.mrf.mxu0  ;;  %v8563_v50 = vld [vmem:[%s11039_s6 + $0xe00] sm:$0xff]  ;;  %v8582_v10 = vld [vmem:[%s11039_s6 + $0xe98] sm:$0xff] }
 0x130   :  { %1649 = vmatprep.subr.mxu1 %v10990_v0  ;;  %9291 = vmatpush3.msra.mxu0 %v8541_v11  ;;  %v11678_v19 = vadd.f32 %v9103_v16, %v9102_v12  ;;  %v8581_v11 = vld [vmem:[%s11039_s6 + $0xe90] sm:$0xff]  ;;  %v8580_v12 = vld [vmem:[%s11039_s6 + $0xe88] sm:$0xff] }
 0x131   :  { %1650 = vmatpush1.msra.mxu1 %v8518_v13  ;;  %9292 = vmatprep.subr.mxu0 %v8556_v14  ;;  %v8579_v13 = vld [vmem:[%s11039_s6 + $0xe80] sm:$0xff] }
 0x132   :  { %1651 = vmatprep.subr.mxu1 %v10990_v0  ;;  %9293 = vmatpush3.msra.mxu0 %v8540_v15 }
 0x133   :  { %1652 = vmatpush1.msra.mxu1 %v8517_v17  ;;  %9294 = vmatprep.subr.mxu0 %v8555_v18 }
 0x134   :  { %1653 = vmatprep.subr.mxu1 %v10990_v0  ;;  %9295 = vmatpush3.msra.mxu0 %v8539_v20 }
 0x135   :  { %1654 = vmatpush1.msra.mxu1 %v8516_v21  ;;  %9296 = vmatprep.subr.mxu0 %v8554_v22 }
 0x136   :  { %1655 = vmatprep.subr.mxu1 %v10990_v0  ;;  %9297 = vmatpush3.msra.mxu0 %v8538_v23 }
 0x137   :  { %1656 = vmatpush1.msra.mxu1 %v8515_v24  ;;  %9298 = vmatprep.subr.mxu0 %v8553_v25 }
 0x138   :  { %1657 = vmatprep.subr.mxu1 %v10990_v0  ;;  %9299 = vmatpush3.msra.mxu0 %v8537_v26 }
 0x139   :  { %1658 = vmatpush1.msra.mxu1 %v8514_v27  ;;  %9300 = vmatprep.subr.mxu0 %v8552_v28 }
 0x13a   :  { %1659 = vmatprep.subr.mxu1 %v10990_v0  ;;  %9301 = vmatpush3.msra.mxu0 %v8536_v29 }
 0x13b   :  { %1660 = vmatpush1.msra.mxu1 %v8513_v30  ;;  %9302 = vmatprep.subr.mxu0 %v8551_v31  ;;  %v10993_v31 = vmov 0  }
 0x13c   :  { %1661 = vmatprep.subr.mxu1 %v10990_v0  ;;  %9303 = vmatpush3.msra.mxu0 %v8535_v32  ;;  %v1899_v32 = vld [vmem:[%s8124_s13] sm:$0xff]  ;;  %s11017_s13 = smov 20  }
 0x13d   :  { %1662 = vmatpush1.msra.mxu1 %v8512_v33  ;;  %9304 = vmatprep.subr.mxu0 %v8550_v34  ;;  %v1981_v33 = vld [vmem:[%s8126_s17] sm:$0xff] }
 0x13e   :  { %1663 = vmatprep.subr.mxu1 %v10990_v0  ;;  %9305 = vmatpush3.msra.mxu0 %v8534_v35  ;;  %v3741_v34 = vld [vmem:[%s8134_s21] sm:$0xff]  ;;  %s12450_s21 = sld [smem:[%s13017_s0 + %s11011_s18]]   ;;  %s11026_s18 = smov 33  }
 0x13f   :  { %1664 = vmatpush1.msra.mxu1 %v8511_v36  ;;  %9306 = vmatprep.subr.mxu0 %v8549_v37  ;;  %v5313_v35 = vld [vmem:[%s8140_s25] sm:$0xff]  ;;  %v6859_v37 = vld [vmem:[%s11801_s3 + $0x8] sm:$0xff]  ;;  %s8131_s25 = sld [smem:[%s13017_s0 + %s11012_s22]]   ;;  %s11027_s22 = smov 36  }
 0x140   :  { %1665 = vmatprep.subr.mxu1 %v10990_v0  ;;  %9307 = vmatpush3.msra.mxu0 %v8533_v38  ;;  %v6125_v36 = vld [vmem:[%s8145_s29] sm:$0xff]  ;;  %v7779_v38 = vld [vmem:[%s8153_s7 + $0x8] sm:$0xff]  ;;  %s8133_s29 = sld [smem:[%s13017_s0 + %s11013_s26]]   ;;  %s11028_s26 = smov 35  }
 0x141   :  { %1666 = vmatpush1.msra.mxu1 %v8510_v39  ;;  %9308 = vmatprep.subr.mxu0 %v8548_v40  ;;  %v7778_v40 = vld [vmem:[%s8153_s7] sm:$0xff]  ;;  %s11008_s7 = smov 21  }
 0x142   :  { %1691 = vmatprep.subr.mxu1 %v10990_v0  ;;  %9309 = vmatpush3.msra.mxu0 %v8532_v41  ;;  %s8142_s10 = sld [smem:[%s13017_s0 + %s11008_s7]]   ;;  %s11023_s7 = smov 30  }
 0x143   :  { %1692 = vmatpush2.msra.mxu1 %v8529_v42  ;;  %9310 = vmatprep.subr.mxu0 %v8547_v44 }
 0x144   :  { %1693 = vmatprep.subr.mxu1 %v10990_v0  ;;  %9311 = vmatpush3.msra.mxu0 %v8531_v45 }
 0x145   :  { %1822 = vmatprep.mubr.f32.mxu0 %v11467_v53  ;;  %1694 = vmatpush2.msra.mxu1 %v8528_v46  ;;  %v736_v52 = vpop.f32.mrf.mxu1  ;;  %v8576_v53 = vld [vmem:[%s11039_s6 + $0xe68] sm:$0xff] }
 0x146   :  { %1823 = vmatmul.mubr.f32.vlgmr.msra.gmra.mxu0 %v11475_v56  ;;  %1828 = vmatprep.subr.mxu0 %v10990_v0  ;;  %v11723_v55 = vadd.f32 %v11678_v19, %v736_v52  ;;  %v8575_v56 = vld [vmem:[%s11039_s6 + $0xe60] sm:$0xff]  ;;  %s12144_s6 = sld [smem:[%s13017_s0 + %s11007_s2]]   ;;  %s11022_s2 = smov 28  }
 0x147   :  { %1695 = vmatprep.subr.mxu1 %v10990_v0  ;;  %1829 = vmatpush1.msra.mxu0 %v8578_v47  ;;  %v738_v58 = vpop.f32.mrf.mxu1 }
 0x148   :  { %1696 = vmatpush2.msra.mxu1 %v8527_v51  ;;  %1830 = vmatprep.subr.mxu0 %v10990_v0 }
 0x149   :  { %1697 = vmatprep.subr.mxu1 %v10990_v0  ;;  %1831 = vmatpush1.msra.mxu0 %v8577_v54 }
 0x14a   :  { %1698 = vmatpush2.msra.mxu1 %v8526_v57  ;;  %8530 = vmatprep.mubr.msk.f32.mxu1 %vm210_vm0, %v11482_v59 }
 0x14b   :  { %1832 = vmatprep.subr.mxu0 %v10990_v0  ;;  %1700 = vmatmul.mubr.f32.vlgmr.msra.gmra.mxu1 %v11493_v3 }
 0x14c   :  { %1833 = vmatpush1.msra.mxu0 %v8576_v53  ;;  %8583 = vmatprep.mubr.msk.f32.mxu0 %vm210_vm0, %v11482_v59  ;;  %vm8114_vm0 = vcmask 15360  }
 0x14d   :  { %1834 = vmatprep.subr.mxu0 %v10990_v0  ;;  %9861 = vmatprep.subr.mxu1 %v10990_v0 }
 0x14e   :  { %1835 = vmatpush1.msra.mxu0 %v8575_v56  ;;  %9879 = vmatprep.mubr.msk.f32.mxu1 %vm10992_vm1, %v10990_v0 }
 0x14f   :  { %1836 = vmatprep.subr.mxu0 %v10990_v0  ;;  %v9137_v1 = vpop.f32.mrf.mxu0  ;;  %10980 = vset.pattern.permute.xlu0 %v10993_v31 }
 0x150   :  { %1837 = vmatpush1.msra.mxu0 %v8574_v60  ;;  %10981 = vset.pattern.permute.xlu1 %v10993_v31  ;;  %v8611_v31 = vld [vmem:[%s11828_s19 + $0x120] sm:$0xff] }
 0x151   :  { %1838 = vmatprep.subr.mxu0 %v10990_v0  ;;  %v9138_v4 = vpop.f32.mrf.mxu0  ;;  %1902 = vperm.xlu0 %10980, %v1899_v32   ;;  %v8625_v32 = vld [vmem:[%s11828_s19 + $0x188] sm:$0xff] }
 0x152   :  { %1839 = vmatpush1.msra.mxu0 %v8573_v62  ;;  %v9139_v59 = vadd.f32 %v9138_v4, %v9137_v1  ;;  %v1898_v62 = vld [vmem:[%s8123_s11] sm:$0xff]  ;;  %s11009_s11 = smov 29  }
 0x153   :  { %1840 = vmatprep.subr.mxu0 %v10990_v0  ;;  %v1980_v1 = vld [vmem:[%s8125_s15] sm:$0xff]  ;;  %s8150_s14 = sld [smem:[%s13017_s0 + %s11009_s11]]   ;;  %s11024_s11 = smov 31  }
 0x154   :  { %1841 = vmatpush1.msra.mxu0 %v8572_v2  ;;  %v8599_v2 = vld [vmem:[%s11828_s19 + $0xc8] sm:$0xff]  ;;  %v8598_v4 = vld [vmem:[%s11828_s19 + $0xc0] sm:$0xff]  ;;  %s8141_s15 = sld [smem:[%s13017_s0 + %s11017_s13]]  }
 0x155   :  { %1842 = vmatprep.subr.mxu0 %v10990_v0  ;;  %1984 = vperm.xlu0 %10980, %v1981_v33   ;;  %v8610_v33 = vld [vmem:[%s11828_s19 + $0x118] sm:$0xff] }
 0x156   :  { %1843 = vmatpush1.msra.mxu0 %v8571_v5  ;;  %v2069_v5 = vld [vmem:[%s11828_s19 + $0x48] sm:$0xff] }
 0x157   :  { %1844 = vmatprep.subr.mxu0 %v10990_v0 }
 0x158   :  { %1845 = vmatpush1.msra.mxu0 %v8570_v6  ;;  %v8596_v6 = vld [vmem:[%s11828_s19 + $0xb0] sm:$0xff] }
 0x159   :  { %1846 = vmatprep.subr.mxu0 %v10990_v0  ;;  %3744 = vperm.xlu0 %10980, %v3741_v34   ;;  %v8624_v34 = vld [vmem:[%s11828_s19 + $0x180] sm:$0xff] }
 0x15a   :  { %1847 = vmatpush1.msra.mxu0 %v8569_v7  ;;  %v2068_v7 = vld [vmem:[%s11828_s19 + $0x40] sm:$0xff] }
 0x15b   :  { %1848 = vmatprep.subr.mxu0 %v10990_v0 }
 0x15c   :  { %1849 = vmatpush1.msra.mxu0 %v8568_v8  ;;  %v8595_v8 = vld [vmem:[%s11828_s19 + $0xa8] sm:$0xff] }
 0x15d   :  { %1850 = vmatprep.subr.mxu0 %v10990_v0  ;;  %5316 = vperm.xlu0 %10980, %v5313_v35   ;;  %v8609_v35 = vld [vmem:[%s11828_s19 + $0x110] sm:$0xff] }
 0x15e   :  { %1851 = vmatpush1.msra.mxu0 %v8567_v61  ;;  %v2067_v61 = vld [vmem:[%s11828_s19 + $0x38] sm:$0xff] }
 0x15f   :  { %1852 = vmatprep.subr.mxu0 %v10990_v0 }
 0x160   :  { %1853 = vmatpush1.msra.mxu0 %v8566_v63  ;;  %v8594_v63 = vld [vmem:[%s11828_s19 + $0xa0] sm:$0xff] }
 0x161   :  { %1854 = vmatprep.subr.mxu0 %v10990_v0  ;;  %6128 = vperm.xlu0 %10980, %v6125_v36   ;;  %v8623_v36 = vld [vmem:[%s11828_s19 + $0x178] sm:$0xff] }
 0x162   :  { %1855 = vmatpush1.msra.mxu0 %v8565_v9  ;;  %v2066_v9 = vld [vmem:[%s11828_s19 + $0x30] sm:$0xff] }
 0x163   :  { %1856 = vmatprep.subr.mxu0 %v10990_v0 }
 0x164   :  { %1857 = vmatpush1.msra.mxu0 %v8564_v49  ;;  %v8593_v49 = vld [vmem:[%s11828_s19 + $0x98] sm:$0xff] }
 0x165   :  { %1858 = vmatprep.subr.mxu0 %v10990_v0  ;;  %6867 = vperm.xlu0 %10980, %v6859_v37   ;;  %v8608_v37 = vld [vmem:[%s11828_s19 + $0x108] sm:$0xff] }
 0x166   :  { %1859 = vmatpush1.msra.mxu0 %v8563_v50  ;;  %v2065_v50 = vld [vmem:[%s11828_s19 + $0x28] sm:$0xff] }
 0x167   :  { %1884 = vmatprep.subr.mxu0 %v10990_v0 }
 0x168   :  { %1885 = vmatpush2.msra.mxu0 %v8582_v10  ;;  %v8592_v10 = vld [vmem:[%s11828_s19 + $0x90] sm:$0xff] }
 0x169   :  { %1886 = vmatprep.subr.mxu0 %v10990_v0  ;;  %7787 = vperm.xlu0 %10980, %v7779_v38   ;;  %v8622_v38 = vld [vmem:[%s11828_s19 + $0x170] sm:$0xff] }
 0x16a   :  { %1887 = vmatpush2.msra.mxu0 %v8581_v11  ;;  %v2064_v11 = vld [vmem:[%s11828_s19 + $0x20] sm:$0xff] }
 0x16b   :  { %1888 = vmatprep.subr.mxu0 %v10990_v0 }
 0x16c   :  { %1889 = vmatpush2.msra.mxu0 %v8580_v12  ;;  %v8591_v12 = vld [vmem:[%s11828_s19 + $0x88] sm:$0xff] }
 0x16d   :  { %1890 = vmatprep.subr.mxu0 %v10990_v0  ;;  %7782 = vperm.xlu0 %10980, %v7778_v40   ;;  %v8621_v40 = vld [vmem:[%s11828_s19 + $0x168] sm:$0xff] }
 0x16e   :  { %1891 = vmatpush2.msra.mxu0 %v8579_v13  ;;  %v2063_v13 = vld [vmem:[%s11828_s19 + $0x18] sm:$0xff] }
 0x16f   :  { %1893 = vmatmul.mubr.f32.vlgmr.msra.gmra.mxu0 %v11493_v3  ;;  %v929_v14 = vpop.f32.mrf.mxu1  ;;  %9840 = vmatprep.subr.mxu0 %v10990_v0 }
 0x170   :  { %v11773_v15 = vadd.f32 %v9139_v59, %v929_v14  ;;  %9858 = vmatprep.mubr.msk.f32.mxu0 %vm10992_vm1, %v10990_v0  ;;  %v8597_v59 = vld [vmem:[%s11828_s19 + $0xb8] sm:$0xff]  ;;  %v8590_v14 = vld [vmem:[%s11828_s19 + $0x80] sm:$0xff] }
 0x171   :  { %v9172_v16 = vpop.f32.mrf.mxu0  ;;  %v931_v17 = vpop.f32.mrf.mxu1 }
 0x172   :  { %v2061_v17 = vld [vmem:[%s11828_s19 + $0x8] sm:$0xff] }
 0x173   :  { %v9173_v18 = vpop.f32.mrf.mxu0 }
 0x174   :  { %v9174_v19 = vadd.f32 %v9173_v18, %v9172_v16  ;;  %v8589_v16 = vld [vmem:[%s11828_s19 + $0x78] sm:$0xff]  ;;  %v8588_v18 = vld [vmem:[%s11828_s19 + $0x70] sm:$0xff] }
 0x194   :  { %v9207_v20 = vpop.f32.mrf.mxu1 }
 0x196   :  { %v9208_v21 = vpop.f32.mrf.mxu1 }
 0x197   :  { %v9209_v22 = vadd.f32 %v9208_v21, %v9207_v20  ;;  %v8587_v20 = vld [vmem:[%s11828_s19 + $0x68] sm:$0xff] }
 0x199   :  { %v1122_v23 = vpop.f32.mrf.mxu0 }
 0x19a   :  { %v11775_v24 = vadd.f32 %v9174_v19, %v1122_v23  ;;  %v2060_v19 = vld [vmem:[%s11828_s19] sm:$0xff] }
 0x19b   :  { %v1124_v25 = vpop.f32.mrf.mxu0 }
 0x1ba   :  { %v9242_v26 = vpop.f32.mrf.mxu0 }
 0x1bc   :  { %v9243_v27 = vpop.f32.mrf.mxu0 }
 0x1bd   :  { %v9244_v28 = vadd.f32 %v9243_v27, %v9242_v26 }
 0x1bf   :  { %v1315_v3 = vpop.f32.mrf.mxu1 }
 0x1c0   :  { %v11777_v29 = vadd.f32 %v9209_v22, %v1315_v3  ;;  %v8627_v3 = vld [vmem:[%s11828_s19 + $0x198] sm:$0xff] }
 0x1c1   :  { %v1317_v30 = vpop.f32.mrf.mxu1 }
 0x1c2   :  { %v8626_v30 = vld [vmem:[%s11828_s19 + $0x190] sm:$0xff] }
 0x1cc   :  { %v1903_v21 = vpop.permute.xlu0 %1902 }
 0x1e2   :  { %v9277_v44 = vpop.f32.mrf.mxu1 }
 0x1e4   :  { %v1508_v39 = vpop.f32.mrf.mxu0  ;;  %v9278_v45 = vpop.f32.mrf.mxu1 }
 0x1e5   :  { %v1509_v41 = vadd.f32 %v9244_v28, %v1508_v39  ;;  %v9279_v57 = vadd.f32 %v9278_v45, %v9277_v44  ;;  %v8613_v28 = vld [vmem:[%s11828_s19 + $0x130] sm:$0xff]  ;;  %v8607_v39 = vld [vmem:[%s11828_s19 + $0x100] sm:$0xff]  ;;  %v8619_v45 = vld [vmem:[%s11828_s19 + $0x158] sm:$0xff] }
 0x1e6   :  { %v1510_v42 = vpop.f32.mrf.mxu0  ;;  %v8605_v44 = vld [vmem:[%s11828_s19 + $0xf0] sm:$0xff] }
 0x1e7   :  { %v8620_v42 = vld [vmem:[%s11828_s19 + $0x160] sm:$0xff] }
 0x206   :  { %v9312_v51 = vpop.f32.mrf.mxu0 }
 0x208   :  { %v9313_v52 = vpop.f32.mrf.mxu0 }
 0x209   :  { %v9314_v54 = vadd.f32 %v9313_v52, %v9312_v51  ;;  %v8603_v51 = vld [vmem:[%s11828_s19 + $0xe0] sm:$0xff]  ;;  %v8617_v52 = vld [vmem:[%s11828_s19 + $0x148] sm:$0xff] }
 0x20b   :  { %v1701_v46 = vpop.f32.mrf.mxu1 }
 0x20c   :  { %v1702_v60 = vadd.f32 %v9279_v57, %v1701_v46  ;;  %v8604_v46 = vld [vmem:[%s11828_s19 + $0xe8] sm:$0xff]  ;;  %v8616_v57 = vld [vmem:[%s11828_s19 + $0x140] sm:$0xff] }
 0x20d   :  { %v1703_v47 = vpop.f32.mrf.mxu1 }
 0x20e   :  { %v8618_v47 = vld [vmem:[%s11828_s19 + $0x150] sm:$0xff] }
 0x22f   :  { %v1894_v58 = vpop.f32.mrf.mxu0 }
 0x230   :  { %v1895_v53 = vadd.f32 %v9314_v54, %v1894_v58  ;;  %v8602_v54 = vld [vmem:[%s11828_s19 + $0xd8] sm:$0xff]  ;;  %v8601_v58 = vld [vmem:[%s11828_s19 + $0xd0] sm:$0xff] }
 0x231   :  { %v1896_v56 = vpop.f32.mrf.mxu0 }
 0x232   :  { %9841 = vmatpush3.msra.mxu0 %v1895_v53  ;;  %9862 = vmatpush3.msra.mxu1 %v1895_v53  ;;  %v8615_v53 = vld [vmem:[%s11828_s19 + $0x138] sm:$0xff]  ;;  %v8641_v56 = vld [vmem:[%s11828_s19 + $0x200] sm:$0xff] }
 0x233   :  { %9842 = vmatprep.subr.mxu0 %v10990_v0  ;;  %9863 = vmatprep.subr.mxu1 %v10990_v0 }
 0x234   :  { %9843 = vmatpush3.msra.mxu0 %v1702_v60  ;;  %9864 = vmatpush3.msra.mxu1 %v1702_v60  ;;  %v8655_v60 = vld [vmem:[%s11828_s19 + $0x268] sm:$0xff] }
 0x235   :  { %9844 = vmatprep.subr.mxu0 %v10990_v0  ;;  %9865 = vmatprep.subr.mxu1 %v10990_v0 }
 0x236   :  { %9845 = vmatpush3.msra.mxu0 %v1509_v41  ;;  %9866 = vmatpush3.msra.mxu1 %v1509_v41  ;;  %v8606_v41 = vld [vmem:[%s11828_s19 + $0xf8] sm:$0xff] }
 0x237   :  { %9846 = vmatprep.subr.mxu0 %v10990_v0  ;;  %9867 = vmatprep.subr.mxu1 %v10990_v0 }
 0x238   :  { %9847 = vmatpush3.msra.mxu0 %v11777_v29  ;;  %9868 = vmatpush3.msra.mxu1 %v11777_v29  ;;  %v8612_v29 = vld [vmem:[%s11828_s19 + $0x128] sm:$0xff] }
 0x239   :  { %9848 = vmatprep.subr.mxu0 %v10990_v0  ;;  %9869 = vmatprep.subr.mxu1 %v10990_v0 }
 0x23a   :  { %9849 = vmatpush3.msra.mxu0 %v11775_v24  ;;  %9870 = vmatpush3.msra.mxu1 %v11775_v24 }
 0x23b   :  { %9850 = vmatprep.subr.mxu0 %v10990_v0  ;;  %9871 = vmatprep.subr.mxu1 %v10990_v0 }
 0x23c   :  { %9851 = vmatpush3.msra.mxu0 %v11773_v15  ;;  %9872 = vmatpush3.msra.mxu1 %v11773_v15  ;;  %v2062_v15 = vld [vmem:[%s11828_s19 + $0x10] sm:$0xff] }
 0x23d   :  { %9852 = vmatprep.subr.mxu0 %v10990_v0  ;;  %9873 = vmatprep.subr.mxu1 %v10990_v0 }
 0x23e   :  { %9853 = vmatpush3.msra.mxu0 %v11723_v55  ;;  %9874 = vmatpush3.msra.mxu1 %v11723_v55  ;;  %v2072_v55 = vld [vmem:[%s11828_s19 + $0x60] sm:$0xff] }
 0x23f   :  { %9854 = vmatprep.subr.mxu0 %v10990_v0  ;;  %9875 = vmatprep.subr.mxu1 %v10990_v0 }
 0x240   :  { %9855 = vmatpush3.msra.mxu0 %v11634_v48  ;;  %9876 = vmatpush3.msra.mxu1 %v11634_v48  ;;  %v2071_v48 = vld [vmem:[%s11828_s19 + $0x58] sm:$0xff] }
 0x241   :  { %9856 = vmatprep.subr.mxu0 %v10990_v0  ;;  %9877 = vmatprep.subr.mxu1 %v10990_v0 }
 0x242   :  { %9857 = vmatpush3.msra.mxu0 %v11548_v43  ;;  %9878 = vmatpush3.msra.mxu1 %v11548_v43  ;;  %v2070_v43 = vld [vmem:[%s11828_s19 + $0x50] sm:$0xff] }
 0x243   :  { %9859 = vmatmul.mubr.msk.f32.vlgmr.msra.gmra.mxu0 %vm1905_vm2, %v1898_v62  ;;  %9880 = vmatmul.mubr.msk.f32.vlgmr.msra.gmra.mxu1 %vm1905_vm2, %v1980_v1  ;;  %v8640_v62 = vld [vmem:[%s11828_s19 + $0x1f8] sm:$0xff]  ;;  %v8654_v1 = vld [vmem:[%s11828_s19 + $0x260] sm:$0xff] }
 0x244   :  { %9882 = vmatprep.subr.mxu1 %v10990_v0  ;;  %9911 = vmatprep.subr.mxu0 %v10990_v0 }
 0x245   :  { %9883 = vmatpush3.msra.mxu1 %v2072_v55  ;;  %9912 = vmatpush3.msra.mxu0 %v8599_v2  ;;  %v8639_v55 = vld [vmem:[%s11828_s19 + $0x1f0] sm:$0xff]  ;;  %v8653_v2 = vld [vmem:[%s11828_s19 + $0x258] sm:$0xff] }
 0x246   :  { %9884 = vmatprep.subr.mxu1 %v10990_v0  ;;  %9913 = vmatprep.subr.mxu0 %v10990_v0 }
 0x247   :  { %9885 = vmatpush3.msra.mxu1 %v2071_v48  ;;  %9914 = vmatpush3.msra.mxu0 %v8598_v4  ;;  %v8638_v48 = vld [vmem:[%s11828_s19 + $0x1e8] sm:$0xff]  ;;  %v8652_v4 = vld [vmem:[%s11828_s19 + $0x250] sm:$0xff] }
 0x248   :  { %9886 = vmatprep.subr.mxu1 %v10990_v0  ;;  %9915 = vmatprep.subr.mxu0 %v10990_v0 }
 0x249   :  { %9887 = vmatpush3.msra.mxu1 %v2070_v43  ;;  %9916 = vmatpush3.msra.mxu0 %v8597_v59  ;;  %v8637_v43 = vld [vmem:[%s11828_s19 + $0x1e0] sm:$0xff]  ;;  %v8651_v59 = vld [vmem:[%s11828_s19 + $0x248] sm:$0xff] }
 0x24a   :  { %9888 = vmatprep.subr.mxu1 %v10990_v0  ;;  %9917 = vmatprep.subr.mxu0 %v10990_v0 }
 0x24b   :  { %9889 = vmatpush3.msra.mxu1 %v2069_v5  ;;  %9918 = vmatpush3.msra.mxu0 %v8596_v6  ;;  %v8636_v5 = vld [vmem:[%s11828_s19 + $0x1d8] sm:$0xff]  ;;  %v8650_v6 = vld [vmem:[%s11828_s19 + $0x240] sm:$0xff] }
 0x24c   :  { %9890 = vmatprep.subr.mxu1 %v10990_v0  ;;  %9919 = vmatprep.subr.mxu0 %v10990_v0 }
 0x24d   :  { %9891 = vmatpush3.msra.mxu1 %v2068_v7  ;;  %9920 = vmatpush3.msra.mxu0 %v8595_v8  ;;  %v8635_v7 = vld [vmem:[%s11828_s19 + $0x1d0] sm:$0xff]  ;;  %v8649_v8 = vld [vmem:[%s11828_s19 + $0x238] sm:$0xff] }
 0x24e   :  { %9892 = vmatprep.subr.mxu1 %v10990_v0  ;;  %9921 = vmatprep.subr.mxu0 %v10990_v0 }
 0x24f   :  { %9893 = vmatpush3.msra.mxu1 %v2067_v61  ;;  %9922 = vmatpush3.msra.mxu0 %v8594_v63  ;;  %v8634_v61 = vld [vmem:[%s11828_s19 + $0x1c8] sm:$0xff]  ;;  %v8648_v63 = vld [vmem:[%s11828_s19 + $0x230] sm:$0xff] }
 0x250   :  { %9894 = vmatprep.subr.mxu1 %v10990_v0  ;;  %9923 = vmatprep.subr.mxu0 %v10990_v0 }
 0x251   :  { %9895 = vmatpush3.msra.mxu1 %v2066_v9  ;;  %9924 = vmatpush3.msra.mxu0 %v8593_v49  ;;  %v8633_v9 = vld [vmem:[%s11828_s19 + $0x1c0] sm:$0xff]  ;;  %v8647_v49 = vld [vmem:[%s11828_s19 + $0x228] sm:$0xff] }
 0x252   :  { %9896 = vmatprep.subr.mxu1 %v10990_v0  ;;  %9925 = vmatprep.subr.mxu0 %v10990_v0 }
 0x253   :  { %9897 = vmatpush3.msra.mxu1 %v2065_v50  ;;  %9926 = vmatpush3.msra.mxu0 %v8592_v10  ;;  %v8632_v50 = vld [vmem:[%s11828_s19 + $0x1b8] sm:$0xff]  ;;  %v8646_v10 = vld [vmem:[%s11828_s19 + $0x220] sm:$0xff] }
 0x254   :  { %9898 = vmatprep.subr.mxu1 %v10990_v0  ;;  %9927 = vmatprep.subr.mxu0 %v10990_v0 }
 0x255   :  { %9899 = vmatpush3.msra.mxu1 %v2064_v11  ;;  %9928 = vmatpush3.msra.mxu0 %v8591_v12  ;;  %v8631_v11 = vld [vmem:[%s11828_s19 + $0x1b0] sm:$0xff]  ;;  %v8645_v12 = vld [vmem:[%s11828_s19 + $0x218] sm:$0xff] }
 0x256   :  { %9900 = vmatprep.subr.mxu1 %v10990_v0  ;;  %9929 = vmatprep.subr.mxu0 %v10990_v0 }
 0x257   :  { %9901 = vmatpush3.msra.mxu1 %v2063_v13  ;;  %9930 = vmatpush3.msra.mxu0 %v8590_v14  ;;  %v8630_v13 = vld [vmem:[%s11828_s19 + $0x1a8] sm:$0xff]  ;;  %v8644_v14 = vld [vmem:[%s11828_s19 + $0x210] sm:$0xff] }
 0x258   :  { %9902 = vmatprep.subr.mxu1 %v10990_v0  ;;  %9931 = vmatprep.subr.mxu0 %v10990_v0 }
 0x259   :  { %9903 = vmatpush3.msra.mxu1 %v2062_v15  ;;  %9932 = vmatpush3.msra.mxu0 %v8589_v16  ;;  %v8629_v15 = vld [vmem:[%s11828_s19 + $0x1a0] sm:$0xff]  ;;  %v8643_v16 = vld [vmem:[%s11828_s19 + $0x208] sm:$0xff] }
 0x25a   :  { %9904 = vmatprep.subr.mxu1 %v10990_v0  ;;  %9933 = vmatprep.subr.mxu0 %v10990_v0 }
 0x25b   :  { %9908 = vmatprep.mubr.msk.f32.mxu1 %vm10992_vm1, %v10990_v0  ;;  %9937 = vmatprep.mubr.msk.f32.mxu0 %vm10992_vm1, %v10990_v0 }
 0x25c   :  { %9905 = vmatpush3.msra.mxu1 %v2061_v17  ;;  %9934 = vmatpush3.msra.mxu0 %v8588_v18  ;;  %v8669_v17 = vld [vmem:[%s11828_s19 + $0x2d0] sm:$0xff]  ;;  %v8683_v18 = vld [vmem:[%s11828_s19 + $0x338] sm:$0xff] }
 0x25d   :  { %9906 = vmatprep.subr.mxu1 %v10990_v0  ;;  %9935 = vmatprep.subr.mxu0 %v10990_v0 }
 0x25e   :  { %9907 = vmatpush3.msra.mxu1 %v2060_v19  ;;  %9936 = vmatpush3.msra.mxu0 %v8587_v20  ;;  %v8668_v19 = vld [vmem:[%s11828_s19 + $0x2c8] sm:$0xff]  ;;  %v8682_v20 = vld [vmem:[%s11828_s19 + $0x330] sm:$0xff] }
 0x25f   :  { %9940 = vmatprep.subr.mxu1 %v10990_v0  ;;  %9969 = vmatprep.subr.mxu0 %v10990_v0 }
 0x303   :  { %v1975_v22 = vpop.f32.mrf.mxu0  ;;  %v11906_v23 = vpop.f32.mrf.mxu1 }
 0x304   :  { %v1976_v24 = vadd.f32 %v1975_v22, %v1903_v21  ;;  %v8667_v21 = vld [vmem:[%s11828_s19 + $0x2c0] sm:$0xff]  ;;  %v8681_v22 = vld [vmem:[%s11828_s19 + $0x328] sm:$0xff] }
 0x305   :  { %v9860_v25 = vpop.f32.mrf.mxu0  ;;  %v9881_v26 = vpop.f32.mrf.mxu1 }
 0x306   :  { %v11908_v27 = vmax.f32 %v1976_v24, 0.0  ;;  %v8666_v24 = vld [vmem:[%s11828_s19 + $0x2b8] sm:$0xff]  ;;  %v8680_v25 = vld [vmem:[%s11828_s19 + $0x320] sm:$0xff]  ;;  %v8665_v26 = vld [vmem:[%s11828_s19 + $0x2b0] sm:$0xff] }
 0x308   :  { %9909 = vmatmul.mubr.msk.f32.vlgmr.msra.gmra.mxu1 %vm2073_vm3, %v11908_v27  ;;  %9938 = vmatmul.mubr.msk.f32.vlgmr.msra.gmra.mxu0 %vm2073_vm3, %v11908_v27 }
 0x309   :  { %9941 = vmatpush3.msra.mxu1 %v8613_v28  ;;  %9970 = vmatpush3.msra.mxu0 %v8627_v3  ;;  %v8679_v28 = vld [vmem:[%s11828_s19 + $0x318] sm:$0xff]  ;;  %v8664_v3 = vld [vmem:[%s11828_s19 + $0x2a8] sm:$0xff] }
 0x30a   :  { %9942 = vmatprep.subr.mxu1 %v10990_v0  ;;  %9971 = vmatprep.subr.mxu0 %v10990_v0 }
 0x30b   :  { %9943 = vmatpush3.msra.mxu1 %v8612_v29  ;;  %9972 = vmatpush3.msra.mxu0 %v8626_v30  ;;  %v8678_v29 = vld [vmem:[%s11828_s19 + $0x310] sm:$0xff]  ;;  %v8663_v30 = vld [vmem:[%s11828_s19 + $0x2a0] sm:$0xff] }
 0x30c   :  { %9944 = vmatprep.subr.mxu1 %v10990_v0  ;;  %9973 = vmatprep.subr.mxu0 %v10990_v0 }
 0x30d   :  { %9945 = vmatpush3.msra.mxu1 %v8611_v31  ;;  %9974 = vmatpush3.msra.mxu0 %v8625_v32  ;;  %v8677_v31 = vld [vmem:[%s11828_s19 + $0x308] sm:$0xff]  ;;  %v8662_v32 = vld [vmem:[%s11828_s19 + $0x298] sm:$0xff] }
 0x30e   :  { %9946 = vmatprep.subr.mxu1 %v10990_v0  ;;  %9975 = vmatprep.subr.mxu0 %v10990_v0 }
 0x30f   :  { %9947 = vmatpush3.msra.mxu1 %v8610_v33  ;;  %9976 = vmatpush3.msra.mxu0 %v8624_v34  ;;  %v8676_v33 = vld [vmem:[%s11828_s19 + $0x300] sm:$0xff]  ;;  %v8661_v34 = vld [vmem:[%s11828_s19 + $0x290] sm:$0xff] }
 0x310   :  { %9948 = vmatprep.subr.mxu1 %v10990_v0  ;;  %9977 = vmatprep.subr.mxu0 %v10990_v0 }
 0x311   :  { %9949 = vmatpush3.msra.mxu1 %v8609_v35  ;;  %9978 = vmatpush3.msra.mxu0 %v8623_v36  ;;  %v8675_v35 = vld [vmem:[%s11828_s19 + $0x2f8] sm:$0xff]  ;;  %v8660_v36 = vld [vmem:[%s11828_s19 + $0x288] sm:$0xff] }
 0x312   :  { %9950 = vmatprep.subr.mxu1 %v10990_v0  ;;  %9979 = vmatprep.subr.mxu0 %v10990_v0 }
 0x313   :  { %9951 = vmatpush3.msra.mxu1 %v8608_v37  ;;  %9980 = vmatpush3.msra.mxu0 %v8622_v38  ;;  %v8674_v37 = vld [vmem:[%s11828_s19 + $0x2f0] sm:$0xff]  ;;  %v8659_v38 = vld [vmem:[%s11828_s19 + $0x280] sm:$0xff] }
 0x314   :  { %9952 = vmatprep.subr.mxu1 %v10990_v0  ;;  %9981 = vmatprep.subr.mxu0 %v10990_v0 }
 0x315   :  { %9953 = vmatpush3.msra.mxu1 %v8607_v39  ;;  %9982 = vmatpush3.msra.mxu0 %v8621_v40  ;;  %v8673_v39 = vld [vmem:[%s11828_s19 + $0x2e8] sm:$0xff]  ;;  %v8658_v40 = vld [vmem:[%s11828_s19 + $0x278] sm:$0xff] }
 0x316   :  { %9954 = vmatprep.subr.mxu1 %v10990_v0  ;;  %9983 = vmatprep.subr.mxu0 %v10990_v0 }
 0x317   :  { %9955 = vmatpush3.msra.mxu1 %v8606_v41  ;;  %9984 = vmatpush3.msra.mxu0 %v8620_v42  ;;  %v8672_v41 = vld [vmem:[%s11828_s19 + $0x2e0] sm:$0xff]  ;;  %v8657_v42 = vld [vmem:[%s11828_s19 + $0x270] sm:$0xff] }
 0x318   :  { %9956 = vmatprep.subr.mxu1 %v10990_v0  ;;  %9985 = vmatprep.subr.mxu0 %v10990_v0 }
 0x319   :  { %9957 = vmatpush3.msra.mxu1 %v8605_v44  ;;  %9986 = vmatpush3.msra.mxu0 %v8619_v45  ;;  %v8671_v44 = vld [vmem:[%s11828_s19 + $0x2d8] sm:$0xff]  ;;  %v8697_v45 = vld [vmem:[%s11828_s19 + $0x3a0] sm:$0xff] }
 0x31a   :  { %9958 = vmatprep.subr.mxu1 %v10990_v0  ;;  %9987 = vmatprep.subr.mxu0 %v10990_v0 }
 0x31b   :  { %9959 = vmatpush3.msra.mxu1 %v8604_v46  ;;  %9988 = vmatpush3.msra.mxu0 %v8618_v47  ;;  %v8696_v46 = vld [vmem:[%s11828_s19 + $0x398] sm:$0xff]  ;;  %v8695_v47 = vld [vmem:[%s11828_s19 + $0x390] sm:$0xff] }
 0x31c   :  { %9960 = vmatprep.subr.mxu1 %v10990_v0  ;;  %9989 = vmatprep.subr.mxu0 %v10990_v0 }
 0x31d   :  { %9961 = vmatpush3.msra.mxu1 %v8603_v51  ;;  %9990 = vmatpush3.msra.mxu0 %v8617_v52  ;;  %v8694_v51 = vld [vmem:[%s11828_s19 + $0x388] sm:$0xff]  ;;  %v8693_v52 = vld [vmem:[%s11828_s19 + $0x380] sm:$0xff] }
 0x31e   :  { %9962 = vmatprep.subr.mxu1 %v10990_v0  ;;  %9991 = vmatprep.subr.mxu0 %v10990_v0 }
 0x31f   :  { %9963 = vmatpush3.msra.mxu1 %v8602_v54  ;;  %9992 = vmatpush3.msra.mxu0 %v8616_v57  ;;  %v8692_v54 = vld [vmem:[%s11828_s19 + $0x378] sm:$0xff]  ;;  %v8691_v57 = vld [vmem:[%s11828_s19 + $0x370] sm:$0xff] }
 0x320   :  { %9964 = vmatprep.subr.mxu1 %v10990_v0  ;;  %9993 = vmatprep.subr.mxu0 %v10990_v0 }
 0x321   :  { %9965 = vmatpush3.msra.mxu1 %v8601_v58  ;;  %9966 = vmatprep.mubr.msk.f32.mxu1 %vm10992_vm1, %v10990_v0  ;;  %v8690_v58 = vld [vmem:[%s11828_s19 + $0x368] sm:$0xff] }
 0x322   :  { %9994 = vmatpush3.msra.mxu0 %v8615_v53  ;;  %9995 = vmatprep.mubr.msk.f32.mxu0 %vm10992_vm1, %v10990_v0  ;;  %v8689_v53 = vld [vmem:[%s11828_s19 + $0x360] sm:$0xff] }
 0x323   :  { %9967 = vmatmul.mubr.msk.f32.vlgmr.msra.gmra.mxu1 %vm2073_vm3, %v11908_v27  ;;  %9996 = vmatmul.mubr.msk.f32.vlgmr.msra.gmra.mxu0 %vm2073_vm3, %v11908_v27 }
 0x324   :  { %9998 = vmatprep.subr.mxu1 %v10990_v0  ;;  %10027 = vmatprep.subr.mxu0 %v10990_v0 }
 0x325   :  { %9999 = vmatpush3.msra.mxu1 %v8641_v56  ;;  %10028 = vmatpush3.msra.mxu0 %v8655_v60  ;;  %v8688_v56 = vld [vmem:[%s11828_s19 + $0x358] sm:$0xff]  ;;  %v8687_v60 = vld [vmem:[%s11828_s19 + $0x350] sm:$0xff] }
 0x326   :  { %10000 = vmatprep.subr.mxu1 %v10990_v0  ;;  %10029 = vmatprep.subr.mxu0 %v10990_v0 }
 0x327   :  { %10001 = vmatpush3.msra.mxu1 %v8640_v62  ;;  %10030 = vmatpush3.msra.mxu0 %v8654_v1  ;;  %v8686_v62 = vld [vmem:[%s11828_s19 + $0x348] sm:$0xff]  ;;  %v8685_v1 = vld [vmem:[%s11828_s19 + $0x340] sm:$0xff]  ;;  %s12780_s19 = sld [smem:[%s13017_s0 + %s11018_s16]]  }
 0x328   :  { %10002 = vmatprep.subr.mxu1 %v10990_v0  ;;  %10031 = vmatprep.subr.mxu0 %v10990_v0 }
 0x329   :  { %10003 = vmatpush3.msra.mxu1 %v8639_v55  ;;  %10032 = vmatpush3.msra.mxu0 %v8653_v2 }
 0x32a   :  { %10004 = vmatprep.subr.mxu1 %v10990_v0  ;;  %10033 = vmatprep.subr.mxu0 %v10990_v0 }
 0x32b   :  { %10005 = vmatpush3.msra.mxu1 %v8638_v48  ;;  %10034 = vmatpush3.msra.mxu0 %v8652_v4 }
 0x32c   :  { %10006 = vmatprep.subr.mxu1 %v10990_v0  ;;  %10035 = vmatprep.subr.mxu0 %v10990_v0 }
 0x32d   :  { %10007 = vmatpush3.msra.mxu1 %v8637_v43  ;;  %10036 = vmatpush3.msra.mxu0 %v8651_v59  ;;  %v3660_v43 = vld [vmem:[%s8132_s27] sm:$0xff]  ;;  %s12847_s27 = sld [smem:[%s13017_s0 + %s11020_s24]]  }
 0x32e   :  { %10008 = vmatprep.subr.mxu1 %v10990_v0  ;;  %10037 = vmatprep.subr.mxu0 %v10990_v0  ;;  %v4527_v59 = vld [vmem:[%s8137_s1] sm:$0xff]  ;;  %s12892_s1 = sld [smem:[%s13017_s0 + %s11021_s28]]  }
 0x32f   :  { %10009 = vmatpush3.msra.mxu1 %v8636_v5  ;;  %10038 = vmatpush3.msra.mxu0 %v8650_v6  ;;  %v8713_v5 = vld [vmem:[%s12144_s6 + $0xc8] sm:$0xff]  ;;  %v8712_v6 = vld [vmem:[%s12144_s6 + $0xc0] sm:$0xff] }
 0x330   :  { %10010 = vmatprep.subr.mxu1 %v10990_v0  ;;  %10039 = vmatprep.subr.mxu0 %v10990_v0 }
 0x331   :  { %10011 = vmatpush3.msra.mxu1 %v8635_v7  ;;  %10040 = vmatpush3.msra.mxu0 %v8649_v8  ;;  %v8711_v7 = vld [vmem:[%s12144_s6 + $0xb8] sm:$0xff]  ;;  %v5394_v8 = vld [vmem:[%s8142_s10] sm:$0xff]  ;;  %s12910_s10 = sld [smem:[%s13017_s0 + %s11023_s7]]  }
 0x332   :  { %10012 = vmatprep.subr.mxu1 %v10990_v0  ;;  %10041 = vmatprep.subr.mxu0 %v10990_v0 }
 0x333   :  { %10013 = vmatpush3.msra.mxu1 %v8634_v61  ;;  %10042 = vmatpush3.msra.mxu0 %v8648_v63  ;;  %v8710_v61 = vld [vmem:[%s12144_s6 + $0xb0] sm:$0xff]  ;;  %v8709_v63 = vld [vmem:[%s12144_s6 + $0xa8] sm:$0xff] }
 0x334   :  { %10014 = vmatprep.subr.mxu1 %v10990_v0  ;;  %10043 = vmatprep.subr.mxu0 %v10990_v0 }
 0x335   :  { %10015 = vmatpush3.msra.mxu1 %v8633_v9  ;;  %10044 = vmatpush3.msra.mxu0 %v8647_v49  ;;  %v6858_v9 = vld [vmem:[%s11801_s3] sm:$0xff]  ;;  %s11010_s3 = smov 7  }
 0x336   :  { %10016 = vmatprep.subr.mxu1 %v10990_v0  ;;  %10045 = vmatprep.subr.mxu0 %v10990_v0  ;;  %v8708_v49 = vld [vmem:[%s12144_s6 + $0xa0] sm:$0xff]  ;;  %s8128_s17 = sld [smem:[%s13017_s0 + %s11010_s3]]   ;;  %s11025_s3 = smov 34  }
 0x337   :  { %10017 = vmatpush3.msra.mxu1 %v8632_v50  ;;  %10046 = vmatpush3.msra.mxu0 %v8646_v10  ;;  %v8707_v50 = vld [vmem:[%s12144_s6 + $0x98] sm:$0xff]  ;;  %v6956_v10 = vld [vmem:[%s8150_s14 + $0x8] sm:$0xff] }
 0x338   :  { %10018 = vmatprep.subr.mxu1 %v10990_v0  ;;  %10047 = vmatprep.subr.mxu0 %v10990_v0 }
 0x339   :  { %10019 = vmatpush3.msra.mxu1 %v8631_v11  ;;  %10048 = vmatpush3.msra.mxu0 %v8645_v12  ;;  %v8706_v11 = vld [vmem:[%s12144_s6 + $0x90] sm:$0xff] }
 0x33a   :  { %10020 = vmatprep.subr.mxu1 %v10990_v0  ;;  %10049 = vmatprep.subr.mxu0 %v10990_v0 }
 0x33b   :  { %10021 = vmatpush3.msra.mxu1 %v8630_v13  ;;  %10050 = vmatpush3.msra.mxu0 %v8644_v14  ;;  %v8705_v14 = vld [vmem:[%s12144_s6 + $0x88] sm:$0xff] }
 0x33c   :  { %10022 = vmatprep.subr.mxu1 %v10990_v0  ;;  %10051 = vmatprep.subr.mxu0 %v10990_v0 }
 0x33d   :  { %10023 = vmatpush3.msra.mxu1 %v8629_v15  ;;  %10024 = vmatprep.mubr.msk.f32.mxu1 %vm10992_vm1, %v10990_v0 }
 0x33e   :  { %10052 = vmatpush3.msra.mxu0 %v8643_v16  ;;  %10053 = vmatprep.mubr.msk.f32.mxu0 %vm10992_vm1, %v10990_v0 }
 0x33f   :  { %10025 = vmatmul.mubr.msk.f32.vlgmr.msra.gmra.mxu1 %vm2073_vm3, %v11908_v27  ;;  %10054 = vmatmul.mubr.msk.f32.vlgmr.msra.gmra.mxu0 %vm2073_vm3, %v11908_v27 }
 0x340   :  { %10056 = vmatprep.subr.mxu1 %v10990_v0  ;;  %10085 = vmatprep.subr.mxu0 %v10990_v0 }
 0x341   :  { %10057 = vmatpush3.msra.mxu1 %v8669_v17  ;;  %10086 = vmatpush3.msra.mxu0 %v8683_v18  ;;  %v6955_v17 = vld [vmem:[%s8150_s14] sm:$0xff]  ;;  %s12961_s14 = sld [smem:[%s13017_s0 + %s11024_s11]]  }
 0x342   :  { %10058 = vmatprep.subr.mxu1 %v10990_v0  ;;  %10087 = vmatprep.subr.mxu0 %v10990_v0  ;;  %v8704_v18 = vld [vmem:[%s12144_s6 + $0x80] sm:$0xff] }
 0x343   :  { %10059 = vmatpush3.msra.mxu1 %v8668_v19  ;;  %10088 = vmatpush3.msra.mxu0 %v8682_v20 }
 0x344   :  { %10060 = vmatprep.subr.mxu1 %v10990_v0  ;;  %10089 = vmatprep.subr.mxu0 %v10990_v0 }
 0x345   :  { %10061 = vmatpush3.msra.mxu1 %v8667_v21  ;;  %10090 = vmatpush3.msra.mxu0 %v8681_v22 }
 0x346   :  { %10062 = vmatprep.subr.mxu1 %v10990_v0  ;;  %10091 = vmatprep.subr.mxu0 %v10990_v0 }
 0x347   :  { %10063 = vmatpush3.msra.mxu1 %v8666_v24  ;;  %10092 = vmatpush3.msra.mxu0 %v8680_v25 }
 0x348   :  { %10064 = vmatprep.subr.mxu1 %v10990_v0  ;;  %10093 = vmatprep.subr.mxu0 %v10990_v0 }
 0x349   :  { %10065 = vmatpush3.msra.mxu1 %v8665_v26  ;;  %10094 = vmatpush3.msra.mxu0 %v8679_v28 }
 0x34a   :  { %10066 = vmatprep.subr.mxu1 %v10990_v0  ;;  %10095 = vmatprep.subr.mxu0 %v10990_v0 }
 0x34b   :  { %10067 = vmatpush3.msra.mxu1 %v8664_v3  ;;  %10096 = vmatpush3.msra.mxu0 %v8678_v29 }
 0x34c   :  { %10068 = vmatprep.subr.mxu1 %v10990_v0  ;;  %10097 = vmatprep.subr.mxu0 %v10990_v0 }
 0x34d   :  { %10069 = vmatpush3.msra.mxu1 %v8663_v30  ;;  %10098 = vmatpush3.msra.mxu0 %v8677_v31  ;;  %v2819_v30 = vld [vmem:[%s8128_s17] sm:$0xff]  ;;  %s8155_s17 = sld [smem:[%s13017_s0 + %s11025_s3]]  }
 0x34e   :  { %10070 = vmatprep.subr.mxu1 %v10990_v0  ;;  %10099 = vmatprep.subr.mxu0 %v10990_v0  ;;  %v2913_v31 = vld [vmem:[%s12144_s6 + $0x60] sm:$0xff] }
 0x34f   :  { %10071 = vmatpush3.msra.mxu1 %v8662_v32  ;;  %10100 = vmatpush3.msra.mxu0 %v8676_v33  ;;  %v2912_v32 = vld [vmem:[%s12144_s6 + $0x58] sm:$0xff]  ;;  %v2911_v33 = vld [vmem:[%s12144_s6 + $0x50] sm:$0xff] }
 0x350   :  { %10072 = vmatprep.subr.mxu1 %v10990_v0  ;;  %10101 = vmatprep.subr.mxu0 %v10990_v0 }
 0x351   :  { %10073 = vmatpush3.msra.mxu1 %v8661_v34  ;;  %10102 = vmatpush3.msra.mxu0 %v8675_v35  ;;  %v2910_v34 = vld [vmem:[%s12144_s6 + $0x48] sm:$0xff]  ;;  %v2909_v35 = vld [vmem:[%s12144_s6 + $0x40] sm:$0xff] }
 0x352   :  { %10074 = vmatprep.subr.mxu1 %v10990_v0  ;;  %10103 = vmatprep.subr.mxu0 %v10990_v0 }
 0x353   :  { %10075 = vmatpush3.msra.mxu1 %v8660_v36  ;;  %10104 = vmatpush3.msra.mxu0 %v8674_v37  ;;  %v2908_v36 = vld [vmem:[%s12144_s6 + $0x38] sm:$0xff]  ;;  %v2907_v37 = vld [vmem:[%s12144_s6 + $0x30] sm:$0xff] }
 0x354   :  { %10076 = vmatprep.subr.mxu1 %v10990_v0  ;;  %10105 = vmatprep.subr.mxu0 %v10990_v0 }
 0x355   :  { %10077 = vmatpush3.msra.mxu1 %v8659_v38  ;;  %10106 = vmatpush3.msra.mxu0 %v8673_v39  ;;  %v2906_v38 = vld [vmem:[%s12144_s6 + $0x28] sm:$0xff]  ;;  %v2905_v39 = vld [vmem:[%s12144_s6 + $0x20] sm:$0xff] }
 0x356   :  { %10078 = vmatprep.subr.mxu1 %v10990_v0  ;;  %10107 = vmatprep.subr.mxu0 %v10990_v0 }
 0x357   :  { %10079 = vmatpush3.msra.mxu1 %v8658_v40  ;;  %10108 = vmatpush3.msra.mxu0 %v8672_v41  ;;  %v2904_v40 = vld [vmem:[%s12144_s6 + $0x18] sm:$0xff]  ;;  %v2903_v41 = vld [vmem:[%s12144_s6 + $0x10] sm:$0xff] }
 0x358   :  { %10080 = vmatprep.subr.mxu1 %v10990_v0  ;;  %10109 = vmatprep.subr.mxu0 %v10990_v0 }
 0x359   :  { %10081 = vmatpush3.msra.mxu1 %v8657_v42  ;;  %10082 = vmatprep.mubr.msk.f32.mxu1 %vm10992_vm1, %v10990_v0  ;;  %v8703_v42 = vld [vmem:[%s12144_s6 + $0x78] sm:$0xff] }
 0x35a   :  { %10110 = vmatpush3.msra.mxu0 %v8671_v44  ;;  %10111 = vmatprep.mubr.msk.f32.mxu0 %vm10992_vm1, %v10990_v0  ;;  %v2902_v44 = vld [vmem:[%s12144_s6 + $0x8] sm:$0xff] }
 0x35b   :  { %10083 = vmatmul.mubr.msk.f32.vlgmr.msra.gmra.mxu1 %vm2073_vm3, %v11908_v27  ;;  %10112 = vmatmul.mubr.msk.f32.vlgmr.msra.gmra.mxu0 %vm2073_vm3, %v11908_v27 }
 0x35c   :  { %10114 = vmatprep.subr.mxu1 %v10990_v0  ;;  %10140 = vmatprep.mubr.msk.f32.mxu1 %vm10992_vm1, %v10990_v0 }
 0x35d   :  { %10115 = vmatpush3.msra.mxu1 %v8697_v45  ;;  %10143 = vmatprep.subr.mxu0 %v10990_v0  ;;  %v8702_v45 = vld [vmem:[%s12144_s6 + $0x70] sm:$0xff] }
 0x35e   :  { %10116 = vmatprep.subr.mxu1 %v10990_v0  ;;  %10161 = vmatprep.mubr.msk.f32.mxu0 %vm10992_vm1, %v10990_v0 }
 0x35f   :  { %10117 = vmatpush3.msra.mxu1 %v8696_v46  ;;  %v2901_v46 = vld [vmem:[%s12144_s6] sm:$0xff] }
 0x360   :  { %10118 = vmatprep.subr.mxu1 %v10990_v0 }
 0x361   :  { %10119 = vmatpush3.msra.mxu1 %v8695_v47  ;;  %v8701_v47 = vld [vmem:[%s12144_s6 + $0x68] sm:$0xff] }
 0x362   :  { %10120 = vmatprep.subr.mxu1 %v10990_v0 }
 0x363   :  { %10121 = vmatpush3.msra.mxu1 %v8694_v51  ;;  %v1985_v51 = vpop.permute.xlu0 %1984 }
 0x364   :  { %10122 = vmatprep.subr.mxu1 %v10990_v0 }
 0x365   :  { %10123 = vmatpush3.msra.mxu1 %v8693_v52 }
 0x366   :  { %10124 = vmatprep.subr.mxu1 %v10990_v0 }
 0x367   :  { %10125 = vmatpush3.msra.mxu1 %v8692_v54 }
 0x368   :  { %10126 = vmatprep.subr.mxu1 %v10990_v0 }
 0x369   :  { %10127 = vmatpush3.msra.mxu1 %v8691_v57  ;;  %v2057_v57 = vadd.f32 %v11906_v23, %v1985_v51  ;;  %v8725_v23 = vld [vmem:[%s12144_s6 + $0x120] sm:$0xff]  ;;  %v8796_v51 = vld [vmem:[%s12144_s6 + $0x330] sm:$0xff] }
 0x36a   :  { %10128 = vmatprep.subr.mxu1 %v10990_v0 }
 0x36b   :  { %10129 = vmatpush3.msra.mxu1 %v8690_v58 }
 0x36c   :  { %10130 = vmatprep.subr.mxu1 %v10990_v0 }
 0x36d   :  { %10131 = vmatpush3.msra.mxu1 %v8689_v53 }
 0x36e   :  { %10132 = vmatprep.subr.mxu1 %v10990_v0 }
 0x36f   :  { %10133 = vmatpush3.msra.mxu1 %v8688_v56 }
 0x370   :  { %10134 = vmatprep.subr.mxu1 %v10990_v0 }
 0x371   :  { %10135 = vmatpush3.msra.mxu1 %v8687_v60 }
 0x372   :  { %10136 = vmatprep.subr.mxu1 %v10990_v0 }
 0x373   :  { %10137 = vmatpush3.msra.mxu1 %v8686_v62  ;;  %v8727_v62 = vld [vmem:[%s12144_s6 + $0x130] sm:$0xff] }
 0x374   :  { %10138 = vmatprep.subr.mxu1 %v10990_v0 }
 0x375   :  { %10139 = vmatpush3.msra.mxu1 %v8685_v1  ;;  %v8741_v1 = vld [vmem:[%s12144_s6 + $0x198] sm:$0xff] }
 0x376   :  { %10141 = vmatmul.mubr.msk.f32.vlgmr.msra.gmra.mxu1 %vm2073_vm3, %v11908_v27  ;;  %10193 = vmatprep.subr.mxu1 %v10990_v0  ;;  %v2820_v27 = vld [vmem:[%s8129_s23] sm:$0xff]  ;;  %s8144_s23 = sld [smem:[%s13017_s0 + %s11019_s20]]  }
 0x377   :  { %10219 = vmatprep.mubr.msk.f32.mxu1 %vm10992_vm1, %v10990_v0  ;;  %2823 = vperm.xlu1 %10981, %v2820_v27   ;;  %v8738_v27 = vld [vmem:[%s12144_s6 + $0x180] sm:$0xff] }
 0x378   :  { %10194 = vmatpush3.msra.mxu1 %v8713_v5  ;;  %v8722_v5 = vld [vmem:[%s12144_s6 + $0x108] sm:$0xff] }
 0x379   :  { %10195 = vmatprep.subr.mxu1 %v10990_v0 }
 0x37a   :  { %10196 = vmatpush3.msra.mxu1 %v8712_v6  ;;  %v8736_v6 = vld [vmem:[%s12144_s6 + $0x170] sm:$0xff] }
 0x37b   :  { %3663 = vperm.xlu1 %10981, %v3660_v43   ;;  %10197 = vmatprep.subr.mxu1 %v10990_v0  ;;  %v8723_v43 = vld [vmem:[%s12144_s6 + $0x110] sm:$0xff] }
 0x37c   :  { %10198 = vmatpush3.msra.mxu1 %v8711_v7  ;;  %v8721_v7 = vld [vmem:[%s12144_s6 + $0x100] sm:$0xff] }
 0x37d   :  { %10199 = vmatprep.subr.mxu1 %v10990_v0 }
 0x37e   :  { %10200 = vmatpush3.msra.mxu1 %v8710_v61  ;;  %v8720_v61 = vld [vmem:[%s12144_s6 + $0xf8] sm:$0xff] }
 0x37f   :  { %4530 = vperm.xlu1 %10981, %v4527_v59   ;;  %10201 = vmatprep.subr.mxu1 %v10990_v0  ;;  %v8737_v59 = vld [vmem:[%s12144_s6 + $0x178] sm:$0xff] }
 0x380   :  { %10202 = vmatpush3.msra.mxu1 %v8709_v63  ;;  %v8734_v63 = vld [vmem:[%s12144_s6 + $0x160] sm:$0xff] }
 0x381   :  { %10203 = vmatprep.subr.mxu1 %v10990_v0 }
 0x382   :  { %10204 = vmatpush3.msra.mxu1 %v8708_v49  ;;  %v8733_v49 = vld [vmem:[%s12144_s6 + $0x158] sm:$0xff] }
 0x383   :  { %5397 = vperm.xlu1 %10981, %v5394_v8   ;;  %10205 = vmatprep.subr.mxu1 %v10990_v0  ;;  %v8735_v8 = vld [vmem:[%s12144_s6 + $0x168] sm:$0xff] }
 0x384   :  { %10206 = vmatpush3.msra.mxu1 %v8707_v50  ;;  %v8718_v50 = vld [vmem:[%s12144_s6 + $0xe8] sm:$0xff] }
 0x385   :  { %10207 = vmatprep.subr.mxu1 %v10990_v0 }
 0x386   :  { %10208 = vmatpush3.msra.mxu1 %v8706_v11  ;;  %v8717_v11 = vld [vmem:[%s12144_s6 + $0xe0] sm:$0xff] }
 0x387   :  { %6862 = vperm.xlu1 %10981, %v6858_v9   ;;  %10209 = vmatprep.subr.mxu1 %v10990_v0  ;;  %v8719_v9 = vld [vmem:[%s12144_s6 + $0xf0] sm:$0xff] }
 0x388   :  { %10210 = vmatpush3.msra.mxu1 %v8705_v14  ;;  %v8730_v14 = vld [vmem:[%s12144_s6 + $0x140] sm:$0xff] }
 0x389   :  { %10211 = vmatprep.subr.mxu1 %v10990_v0 }
 0x38a   :  { %10212 = vmatpush3.msra.mxu1 %v8704_v18  ;;  %v8769_v18 = vld [vmem:[%s12144_s6 + $0x268] sm:$0xff] }
 0x38b   :  { %6964 = vperm.xlu1 %10981, %v6956_v10   ;;  %10213 = vmatprep.subr.mxu1 %v10990_v0  ;;  %v8732_v10 = vld [vmem:[%s12144_s6 + $0x150] sm:$0xff] }
 0x38c   :  { %10214 = vmatpush3.msra.mxu1 %v8703_v42  ;;  %v8743_v42 = vld [vmem:[%s12144_s6 + $0x1a0] sm:$0xff] }
 0x38d   :  { %10215 = vmatprep.subr.mxu1 %v10990_v0 }
 0x38e   :  { %10216 = vmatpush3.msra.mxu1 %v8702_v45  ;;  %v8783_v45 = vld [vmem:[%s12144_s6 + $0x2d0] sm:$0xff] }
 0x38f   :  { %6959 = vperm.xlu1 %10981, %v6955_v17   ;;  %10217 = vmatprep.subr.mxu1 %v10990_v0  ;;  %v8755_v17 = vld [vmem:[%s12144_s6 + $0x200] sm:$0xff] }
 0x390   :  { %10218 = vmatpush3.msra.mxu1 %v8701_v47  ;;  %v8782_v47 = vld [vmem:[%s12144_s6 + $0x2c8] sm:$0xff] }
 0x391   :  { %10251 = vmatprep.subr.mxu1 %v10990_v0 }
 0x3c8   :  { %v12128_v55 = vpop.f32.mrf.mxu1  ;;  %v12130_v2 = vpop.f32.mrf.mxu0 }
 0x3ca   :  { %v9910_v48 = vpop.f32.mrf.mxu1  ;;  %v9939_v4 = vpop.f32.mrf.mxu0 }
 0x3cb   :  { %v8739_v48 = vld [vmem:[%s12144_s6 + $0x188] sm:$0xff]  ;;  %v8724_v4 = vld [vmem:[%s12144_s6 + $0x118] sm:$0xff] }
 0x3e3   :  { %v2311_v12 = vpop.f32.mrf.mxu1  ;;  %v2395_v13 = vpop.f32.mrf.mxu0 }
 0x3e5   :  { %v9968_v15 = vpop.f32.mrf.mxu1  ;;  %v9997_v16 = vpop.f32.mrf.mxu0 }
 0x3e6   :  { %v8715_v15 = vld [vmem:[%s12144_s6 + $0xd0] sm:$0xff]  ;;  %v8729_v16 = vld [vmem:[%s12144_s6 + $0x138] sm:$0xff] }
 0x3f2   :  { %v2824_v52 = vpop.permute.xlu1 %2823 }
 0x3ff   :  { %v2479_v19 = vpop.f32.mrf.mxu1  ;;  %v2563_v20 = vpop.f32.mrf.mxu0 }
 0x401   :  { %v10026_v21 = vpop.f32.mrf.mxu1  ;;  %v10055_v22 = vpop.f32.mrf.mxu0 }
 0x402   :  { %v8753_v21 = vld [vmem:[%s12144_s6 + $0x1f0] sm:$0xff]  ;;  %v8767_v22 = vld [vmem:[%s12144_s6 + $0x258] sm:$0xff] }
 0x41b   :  { %v2647_v24 = vpop.f32.mrf.mxu1  ;;  %v2731_v25 = vpop.f32.mrf.mxu0 }
 0x41d   :  { %v10084_v26 = vpop.f32.mrf.mxu1  ;;  %v10113_v28 = vpop.f32.mrf.mxu0 }
 0x41e   :  { %v8751_v26 = vld [vmem:[%s12144_s6 + $0x1e0] sm:$0xff]  ;;  %v8765_v28 = vld [vmem:[%s12144_s6 + $0x248] sm:$0xff] }
 0x436   :  { %v2815_v3 = vpop.f32.mrf.mxu1 }
 0x437   :  { %10144 = vmatpush3.msra.mxu0 %v2815_v3  ;;  %v8750_v3 = vld [vmem:[%s12144_s6 + $0x1d8] sm:$0xff] }
 0x438   :  { %v10142_v29 = vpop.f32.mrf.mxu1  ;;  %10145 = vmatprep.subr.mxu0 %v10990_v0 }
 0x439   :  { %10146 = vmatpush3.msra.mxu0 %v2731_v25  ;;  %v8766_v25 = vld [vmem:[%s12144_s6 + $0x250] sm:$0xff]  ;;  %v8764_v29 = vld [vmem:[%s12144_s6 + $0x240] sm:$0xff] }
 0x43a   :  { %10147 = vmatprep.subr.mxu0 %v10990_v0 }
 0x43b   :  { %10148 = vmatpush3.msra.mxu0 %v2647_v24  ;;  %v8752_v24 = vld [vmem:[%s12144_s6 + $0x1e8] sm:$0xff] }
 0x43c   :  { %10149 = vmatprep.subr.mxu0 %v10990_v0 }
 0x43d   :  { %10150 = vmatpush3.msra.mxu0 %v2563_v20  ;;  %v8768_v20 = vld [vmem:[%s12144_s6 + $0x260] sm:$0xff] }
 0x43e   :  { %10151 = vmatprep.subr.mxu0 %v10990_v0 }
 0x43f   :  { %10152 = vmatpush3.msra.mxu0 %v2479_v19  ;;  %v8754_v19 = vld [vmem:[%s12144_s6 + $0x1f8] sm:$0xff] }
 0x440   :  { %10153 = vmatprep.subr.mxu0 %v10990_v0 }
 0x441   :  { %10154 = vmatpush3.msra.mxu0 %v2395_v13  ;;  %v8716_v13 = vld [vmem:[%s12144_s6 + $0xd8] sm:$0xff] }
 0x442   :  { %10155 = vmatprep.subr.mxu0 %v10990_v0 }
 0x443   :  { %10156 = vmatpush3.msra.mxu0 %v2311_v12  ;;  %v8731_v12 = vld [vmem:[%s12144_s6 + $0x148] sm:$0xff] }
 0x444   :  { %10157 = vmatprep.subr.mxu0 %v10990_v0 }
 0x445   :  { %10158 = vmatpush3.msra.mxu0 %v12130_v2  ;;  %v8740_v2 = vld [vmem:[%s12144_s6 + $0x190] sm:$0xff] }
 0x446   :  { %10159 = vmatprep.subr.mxu0 %v10990_v0 }
 0x447   :  { %10160 = vmatpush3.msra.mxu0 %v12128_v55  ;;  %v8726_v55 = vld [vmem:[%s12144_s6 + $0x128] sm:$0xff] }
 0x448   :  { %10162 = vmatmul.mubr.msk.f32.vlgmr.msra.gmra.mxu0 %vm1905_vm2, %v2819_v30  ;;  %10164 = vmatprep.subr.mxu0 %v10990_v0  ;;  %v8749_v30 = vld [vmem:[%s12144_s6 + $0x1d0] sm:$0xff] }
 0x449   :  { %10165 = vmatpush3.msra.mxu0 %v2913_v31  ;;  %10190 = vmatprep.mubr.msk.f32.mxu0 %vm10992_vm1, %v10990_v0  ;;  %v8763_v31 = vld [vmem:[%s12144_s6 + $0x238] sm:$0xff] }
 0x44a   :  { %10166 = vmatprep.subr.mxu0 %v10990_v0 }
 0x44b   :  { %10167 = vmatpush3.msra.mxu0 %v2912_v32  ;;  %v8748_v32 = vld [vmem:[%s12144_s6 + $0x1c8] sm:$0xff] }
 0x44c   :  { %10168 = vmatprep.subr.mxu0 %v10990_v0 }
 0x44d   :  { %10169 = vmatpush3.msra.mxu0 %v2911_v33  ;;  %v8762_v33 = vld [vmem:[%s12144_s6 + $0x230] sm:$0xff] }
 0x44e   :  { %10170 = vmatprep.subr.mxu0 %v10990_v0 }
 0x44f   :  { %10171 = vmatpush3.msra.mxu0 %v2910_v34  ;;  %v8747_v34 = vld [vmem:[%s12144_s6 + $0x1c0] sm:$0xff] }
 0x450   :  { %10172 = vmatprep.subr.mxu0 %v10990_v0 }
 0x451   :  { %10173 = vmatpush3.msra.mxu0 %v2909_v35  ;;  %v8761_v35 = vld [vmem:[%s12144_s6 + $0x228] sm:$0xff] }
 0x452   :  { %10174 = vmatprep.subr.mxu0 %v10990_v0 }
 0x453   :  { %10175 = vmatpush3.msra.mxu0 %v2908_v36  ;;  %v8746_v36 = vld [vmem:[%s12144_s6 + $0x1b8] sm:$0xff] }
 0x454   :  { %10176 = vmatprep.subr.mxu0 %v10990_v0 }
 0x455   :  { %10177 = vmatpush3.msra.mxu0 %v2907_v37  ;;  %v8760_v37 = vld [vmem:[%s12144_s6 + $0x220] sm:$0xff] }
 0x456   :  { %10178 = vmatprep.subr.mxu0 %v10990_v0 }
 0x457   :  { %10179 = vmatpush3.msra.mxu0 %v2906_v38  ;;  %v8745_v38 = vld [vmem:[%s12144_s6 + $0x1b0] sm:$0xff] }
 0x458   :  { %10180 = vmatprep.subr.mxu0 %v10990_v0 }
 0x459   :  { %10181 = vmatpush3.msra.mxu0 %v2905_v39  ;;  %v8759_v39 = vld [vmem:[%s12144_s6 + $0x218] sm:$0xff] }
 0x45a   :  { %10182 = vmatprep.subr.mxu0 %v10990_v0 }
 0x45b   :  { %10183 = vmatpush3.msra.mxu0 %v2904_v40  ;;  %v8744_v40 = vld [vmem:[%s12144_s6 + $0x1a8] sm:$0xff] }
 0x45c   :  { %10184 = vmatprep.subr.mxu0 %v10990_v0 }
 0x45d   :  { %10185 = vmatpush3.msra.mxu0 %v2903_v41  ;;  %v8758_v41 = vld [vmem:[%s12144_s6 + $0x210] sm:$0xff] }
 0x45e   :  { %10186 = vmatprep.subr.mxu0 %v10990_v0 }
 0x45f   :  { %10187 = vmatpush3.msra.mxu0 %v2902_v44  ;;  %v8757_v44 = vld [vmem:[%s12144_s6 + $0x208] sm:$0xff] }
 0x460   :  { %10188 = vmatprep.subr.mxu0 %v10990_v0 }
 0x461   :  { %10189 = vmatpush3.msra.mxu0 %v2901_v46  ;;  %v8797_v46 = vld [vmem:[%s12144_s6 + $0x338] sm:$0xff] }
 0x462   :  { %10222 = vmatprep.subr.mxu0 %v10990_v0 }
 0x508   :  { %v2895_v54 = vpop.f32.mrf.mxu0 }
 0x509   :  { %v2896_v58 = vadd.f32 %v2895_v54, %v2824_v52  ;;  %v8781_v52 = vld [vmem:[%s12144_s6 + $0x2c0] sm:$0xff]  ;;  %v8795_v54 = vld [vmem:[%s12144_s6 + $0x328] sm:$0xff] }
 0x50a   :  { %v10163_v53 = vpop.f32.mrf.mxu0 }
 0x50b   :  { %v2899_v56 = vadd.f32 %v2896_v58, %v2057_v57  ;;  %v8780_v57 = vld [vmem:[%s12144_s6 + $0x2b8] sm:$0xff]  ;;  %v8794_v58 = vld [vmem:[%s12144_s6 + $0x320] sm:$0xff]  ;;  %v8779_v53 = vld [vmem:[%s12144_s6 + $0x2b0] sm:$0xff] }
 0x50d   :  { %v12223_v60 = vmax.f32 %v2899_v56, 0.0  ;;  %v8793_v56 = vld [vmem:[%s12144_s6 + $0x318] sm:$0xff] }
 0x50f   :  { %10191 = vmatmul.mubr.msk.f32.vlgmr.msra.gmra.mxu0 %vm2073_vm3, %v12223_v60  ;;  %10220 = vmatmul.mubr.msk.f32.vlgmr.msra.gmra.mxu1 %vm2073_vm3, %v12223_v60 }
 0x510   :  { %10223 = vmatpush3.msra.mxu0 %v8727_v62  ;;  %10252 = vmatpush3.msra.mxu1 %v8741_v1  ;;  %v8778_v62 = vld [vmem:[%s12144_s6 + $0x2a8] sm:$0xff]  ;;  %v8792_v1 = vld [vmem:[%s12144_s6 + $0x310] sm:$0xff] }
 0x511   :  { %10224 = vmatprep.subr.mxu0 %v10990_v0  ;;  %10253 = vmatprep.subr.mxu1 %v10990_v0 }
 0x512   :  { %10225 = vmatpush3.msra.mxu0 %v8726_v55  ;;  %10254 = vmatpush3.msra.mxu1 %v8740_v2  ;;  %v8777_v55 = vld [vmem:[%s12144_s6 + $0x2a0] sm:$0xff]  ;;  %v8791_v2 = vld [vmem:[%s12144_s6 + $0x308] sm:$0xff] }
 0x513   :  { %10226 = vmatprep.subr.mxu0 %v10990_v0  ;;  %10255 = vmatprep.subr.mxu1 %v10990_v0 }
 0x514   :  { %10227 = vmatpush3.msra.mxu0 %v8725_v23  ;;  %10256 = vmatpush3.msra.mxu1 %v8739_v48  ;;  %v8776_v23 = vld [vmem:[%s12144_s6 + $0x298] sm:$0xff]  ;;  %v8790_v48 = vld [vmem:[%s12144_s6 + $0x300] sm:$0xff] }
 0x515   :  { %10228 = vmatprep.subr.mxu0 %v10990_v0  ;;  %10257 = vmatprep.subr.mxu1 %v10990_v0 }
 0x516   :  { %10229 = vmatpush3.msra.mxu0 %v8724_v4  ;;  %10258 = vmatpush3.msra.mxu1 %v8738_v27  ;;  %v8775_v4 = vld [vmem:[%s12144_s6 + $0x290] sm:$0xff]  ;;  %v8789_v27 = vld [vmem:[%s12144_s6 + $0x2f8] sm:$0xff] }
 0x517   :  { %10230 = vmatprep.subr.mxu0 %v10990_v0  ;;  %10259 = vmatprep.subr.mxu1 %v10990_v0 }
 0x518   :  { %10231 = vmatpush3.msra.mxu0 %v8723_v43  ;;  %10260 = vmatpush3.msra.mxu1 %v8737_v59  ;;  %v8774_v43 = vld [vmem:[%s12144_s6 + $0x288] sm:$0xff]  ;;  %v8788_v59 = vld [vmem:[%s12144_s6 + $0x2f0] sm:$0xff] }
 0x519   :  { %10232 = vmatprep.subr.mxu0 %v10990_v0  ;;  %10261 = vmatprep.subr.mxu1 %v10990_v0 }
 0x51a   :  { %10233 = vmatpush3.msra.mxu0 %v8722_v5  ;;  %10262 = vmatpush3.msra.mxu1 %v8736_v6  ;;  %v8773_v5 = vld [vmem:[%s12144_s6 + $0x280] sm:$0xff]  ;;  %v8787_v6 = vld [vmem:[%s12144_s6 + $0x2e8] sm:$0xff] }
 0x51b   :  { %10234 = vmatprep.subr.mxu0 %v10990_v0  ;;  %10263 = vmatprep.subr.mxu1 %v10990_v0 }
 0x51c   :  { %10235 = vmatpush3.msra.mxu0 %v8721_v7  ;;  %10264 = vmatpush3.msra.mxu1 %v8735_v8  ;;  %v8772_v7 = vld [vmem:[%s12144_s6 + $0x278] sm:$0xff]  ;;  %v8786_v8 = vld [vmem:[%s12144_s6 + $0x2e0] sm:$0xff] }
 0x51d   :  { %10236 = vmatprep.subr.mxu0 %v10990_v0  ;;  %10265 = vmatprep.subr.mxu1 %v10990_v0 }
 0x51e   :  { %10237 = vmatpush3.msra.mxu0 %v8720_v61  ;;  %10266 = vmatpush3.msra.mxu1 %v8734_v63  ;;  %v8771_v61 = vld [vmem:[%s12144_s6 + $0x270] sm:$0xff]  ;;  %v8785_v63 = vld [vmem:[%s12144_s6 + $0x2d8] sm:$0xff] }
 0x51f   :  { %10238 = vmatprep.subr.mxu0 %v10990_v0  ;;  %10267 = vmatprep.subr.mxu1 %v10990_v0 }
 0x520   :  { %10239 = vmatpush3.msra.mxu0 %v8719_v9  ;;  %10268 = vmatpush3.msra.mxu1 %v8733_v49  ;;  %v8811_v9 = vld [vmem:[%s12144_s6 + $0x3a0] sm:$0xff]  ;;  %v8810_v49 = vld [vmem:[%s12144_s6 + $0x398] sm:$0xff] }
 0x521   :  { %10240 = vmatprep.subr.mxu0 %v10990_v0  ;;  %10269 = vmatprep.subr.mxu1 %v10990_v0 }
 0x522   :  { %10241 = vmatpush3.msra.mxu0 %v8718_v50  ;;  %10270 = vmatpush3.msra.mxu1 %v8732_v10  ;;  %v8809_v50 = vld [vmem:[%s12144_s6 + $0x390] sm:$0xff]  ;;  %v8808_v10 = vld [vmem:[%s12144_s6 + $0x388] sm:$0xff] }
 0x523   :  { %10242 = vmatprep.subr.mxu0 %v10990_v0  ;;  %10271 = vmatprep.subr.mxu1 %v10990_v0 }
 0x524   :  { %10243 = vmatpush3.msra.mxu0 %v8717_v11  ;;  %10272 = vmatpush3.msra.mxu1 %v8731_v12  ;;  %v8807_v11 = vld [vmem:[%s12144_s6 + $0x380] sm:$0xff]  ;;  %v8806_v12 = vld [vmem:[%s12144_s6 + $0x378] sm:$0xff] }
 0x525   :  { %10244 = vmatprep.subr.mxu0 %v10990_v0  ;;  %10273 = vmatprep.subr.mxu1 %v10990_v0 }
 0x526   :  { %10245 = vmatpush3.msra.mxu0 %v8716_v13  ;;  %10274 = vmatpush3.msra.mxu1 %v8730_v14  ;;  %v8805_v13 = vld [vmem:[%s12144_s6 + $0x370] sm:$0xff]  ;;  %v8804_v14 = vld [vmem:[%s12144_s6 + $0x368] sm:$0xff] }
 0x527   :  { %10246 = vmatprep.subr.mxu0 %v10990_v0  ;;  %10275 = vmatprep.subr.mxu1 %v10990_v0 }
 0x528   :  { %10247 = vmatpush3.msra.mxu0 %v8715_v15  ;;  %10248 = vmatprep.mubr.msk.f32.mxu0 %vm10992_vm1, %v10990_v0  ;;  %v8803_v15 = vld [vmem:[%s12144_s6 + $0x360] sm:$0xff] }
 0x529   :  { %10276 = vmatpush3.msra.mxu1 %v8729_v16  ;;  %10277 = vmatprep.mubr.msk.f32.mxu1 %vm10992_vm1, %v10990_v0  ;;  %v8802_v16 = vld [vmem:[%s12144_s6 + $0x358] sm:$0xff] }
 0x52a   :  { %10249 = vmatmul.mubr.msk.f32.vlgmr.msra.gmra.mxu0 %vm2073_vm3, %v12223_v60  ;;  %10278 = vmatmul.mubr.msk.f32.vlgmr.msra.gmra.mxu1 %vm2073_vm3, %v12223_v60 }
 0x52b   :  { %10280 = vmatprep.subr.mxu0 %v10990_v0  ;;  %10309 = vmatprep.subr.mxu1 %v10990_v0 }
 0x52c   :  { %10281 = vmatpush3.msra.mxu0 %v8755_v17  ;;  %10310 = vmatpush3.msra.mxu1 %v8769_v18  ;;  %v8801_v17 = vld [vmem:[%s12144_s6 + $0x350] sm:$0xff]  ;;  %v8800_v18 = vld [vmem:[%s12144_s6 + $0x348] sm:$0xff] }
 0x52d   :  { %10282 = vmatprep.subr.mxu0 %v10990_v0  ;;  %10311 = vmatprep.subr.mxu1 %v10990_v0 }
 0x52e   :  { %10283 = vmatpush3.msra.mxu0 %v8754_v19  ;;  %10312 = vmatpush3.msra.mxu1 %v8768_v20  ;;  %v8799_v19 = vld [vmem:[%s12144_s6 + $0x340] sm:$0xff]  ;;  %s12897_s6 = sld [smem:[%s13017_s0 + %s11022_s2]]  }
 0x52f   :  { %10284 = vmatprep.subr.mxu0 %v10990_v0  ;;  %10313 = vmatprep.subr.mxu1 %v10990_v0 }
 0x530   :  { %10285 = vmatpush3.msra.mxu0 %v8753_v21  ;;  %10314 = vmatpush3.msra.mxu1 %v8767_v22 }
 0x531   :  { %10286 = vmatprep.subr.mxu0 %v10990_v0  ;;  %10315 = vmatprep.subr.mxu1 %v10990_v0 }
 0x532   :  { %10287 = vmatpush3.msra.mxu0 %v8752_v24  ;;  %10316 = vmatpush3.msra.mxu1 %v8766_v25  ;;  %v3822_v25 = vld [vmem:[%s12450_s21 + $0x10] sm:$0xff] }
 0x533   :  { %10288 = vmatprep.subr.mxu0 %v10990_v0  ;;  %10317 = vmatprep.subr.mxu1 %v10990_v0 }
 0x534   :  { %10289 = vmatpush3.msra.mxu0 %v8751_v26  ;;  %10318 = vmatpush3.msra.mxu1 %v8765_v28 }
 0x535   :  { %10290 = vmatprep.subr.mxu0 %v10990_v0  ;;  %10319 = vmatprep.subr.mxu1 %v10990_v0 }
 0x536   :  { %10291 = vmatpush3.msra.mxu0 %v8750_v3  ;;  %10320 = vmatpush3.msra.mxu1 %v8764_v29 }
 0x537   :  { %10292 = vmatprep.subr.mxu0 %v10990_v0  ;;  %10321 = vmatprep.subr.mxu1 %v10990_v0 }
 0x538   :  { %10293 = vmatpush3.msra.mxu0 %v8749_v30  ;;  %10322 = vmatpush3.msra.mxu1 %v8763_v31 }
 0x539   :  { %10294 = vmatprep.subr.mxu0 %v10990_v0  ;;  %10323 = vmatprep.subr.mxu1 %v10990_v0 }
 0x53a   :  { %10295 = vmatpush3.msra.mxu0 %v8748_v32  ;;  %10324 = vmatpush3.msra.mxu1 %v8762_v33 }
 0x53b   :  { %10296 = vmatprep.subr.mxu0 %v10990_v0  ;;  %10325 = vmatprep.subr.mxu1 %v10990_v0 }
 0x53c   :  { %10297 = vmatpush3.msra.mxu0 %v8747_v34  ;;  %10326 = vmatpush3.msra.mxu1 %v8761_v35 }
 0x53d   :  { %10298 = vmatprep.subr.mxu0 %v10990_v0  ;;  %10327 = vmatprep.subr.mxu1 %v10990_v0 }
 0x53e   :  { %10299 = vmatpush3.msra.mxu0 %v8746_v36  ;;  %10328 = vmatpush3.msra.mxu1 %v8760_v37 }
 0x53f   :  { %10300 = vmatprep.subr.mxu0 %v10990_v0  ;;  %10329 = vmatprep.subr.mxu1 %v10990_v0 }
 0x540   :  { %10301 = vmatpush3.msra.mxu0 %v8745_v38  ;;  %10330 = vmatpush3.msra.mxu1 %v8759_v39 }
 0x541   :  { %10302 = vmatprep.subr.mxu0 %v10990_v0  ;;  %10331 = vmatprep.subr.mxu1 %v10990_v0 }
 0x542   :  { %10303 = vmatpush3.msra.mxu0 %v8744_v40  ;;  %10332 = vmatpush3.msra.mxu1 %v8758_v41  ;;  %v3659_v40 = vld [vmem:[%s8131_s25] sm:$0xff]  ;;  %s8157_s25 = sld [smem:[%s13017_s0 + %s11027_s22]]  }
 0x543   :  { %10304 = vmatprep.subr.mxu0 %v10990_v0  ;;  %10333 = vmatprep.subr.mxu1 %v10990_v0  ;;  %v3740_v41 = vld [vmem:[%s8133_s29] sm:$0xff]  ;;  %s8156_s29 = sld [smem:[%s13017_s0 + %s11028_s26]]  }
 0x544   :  { %10305 = vmatpush3.msra.mxu0 %v8743_v42  ;;  %10306 = vmatprep.mubr.msk.f32.mxu0 %vm10992_vm1, %v10990_v0  ;;  %v8826_v42 = vld [vmem:[%s12450_s21 + $0x58] sm:$0xf] }
 0x545   :  { %10334 = vmatpush3.msra.mxu1 %v8757_v44  ;;  %10335 = vmatprep.mubr.msk.f32.mxu1 %vm10992_vm1, %v10990_v0  ;;  %v8825_v44 = vld [vmem:[%s12450_s21 + $0x50] sm:$0xff] }
 0x546   :  { %10307 = vmatmul.mubr.msk.f32.vlgmr.msra.gmra.mxu0 %vm2073_vm3, %v12223_v60  ;;  %10336 = vmatmul.mubr.msk.f32.vlgmr.msra.gmra.mxu1 %vm2073_vm3, %v12223_v60 }
 0x547   :  { %10338 = vmatprep.subr.mxu0 %v10990_v0  ;;  %10367 = vmatprep.subr.mxu1 %v10990_v0 }
 0x548   :  { %10339 = vmatpush3.msra.mxu0 %v8783_v45  ;;  %10368 = vmatpush3.msra.mxu1 %v8797_v46  ;;  %v3821_v45 = vld [vmem:[%s12450_s21 + $0x8] sm:$0xff] }
 0x549   :  { %10340 = vmatprep.subr.mxu0 %v10990_v0  ;;  %10369 = vmatprep.subr.mxu1 %v10990_v0  ;;  %v8824_v46 = vld [vmem:[%s12450_s21 + $0x48] sm:$0xff] }
 0x54a   :  { %10341 = vmatpush3.msra.mxu0 %v8782_v47  ;;  %10370 = vmatpush3.msra.mxu1 %v8796_v51  ;;  %v3820_v47 = vld [vmem:[%s12450_s21] sm:$0xff] }
 0x54b   :  { %10342 = vmatprep.subr.mxu0 %v10990_v0  ;;  %10371 = vmatprep.subr.mxu1 %v10990_v0  ;;  %v8823_v51 = vld [vmem:[%s12450_s21 + $0x40] sm:$0xff] }
 0x54c   :  { %10343 = vmatpush3.msra.mxu0 %v8781_v52  ;;  %10372 = vmatpush3.msra.mxu1 %v8795_v54  ;;  %v3664_v52 = vpop.permute.xlu1 %3663 }
 0x54d   :  { %10344 = vmatprep.subr.mxu0 %v10990_v0  ;;  %10373 = vmatprep.subr.mxu1 %v10990_v0 }
 0x54e   :  { %10345 = vmatpush3.msra.mxu0 %v8780_v57  ;;  %10374 = vmatpush3.msra.mxu1 %v8794_v58 }
 0x54f   :  { %10346 = vmatprep.subr.mxu0 %v10990_v0  ;;  %10375 = vmatprep.subr.mxu1 %v10990_v0 }
 0x550   :  { %10347 = vmatpush3.msra.mxu0 %v8779_v53  ;;  %10376 = vmatpush3.msra.mxu1 %v8793_v56  ;;  %v8820_v56 = vld [vmem:[%s12450_s21 + $0x38] sm:$0xf] }
 0x551   :  { %10348 = vmatprep.subr.mxu0 %v10990_v0  ;;  %10377 = vmatprep.subr.mxu1 %v10990_v0 }
 0x552   :  { %10349 = vmatpush3.msra.mxu0 %v8778_v62  ;;  %10378 = vmatpush3.msra.mxu1 %v8792_v1  ;;  %v8838_v62 = vld [vmem:[%s12450_s21 + $0x98] sm:$0xf]  ;;  %v8819_v1 = vld [vmem:[%s12450_s21 + $0x30] sm:$0xff] }
 0x553   :  { %10350 = vmatprep.subr.mxu0 %v10990_v0  ;;  %10379 = vmatprep.subr.mxu1 %v10990_v0 }
 0x554   :  { %10351 = vmatpush3.msra.mxu0 %v8777_v55  ;;  %10380 = vmatpush3.msra.mxu1 %v8791_v2  ;;  %v8837_v55 = vld [vmem:[%s12450_s21 + $0x90] sm:$0xff]  ;;  %v8818_v2 = vld [vmem:[%s12450_s21 + $0x28] sm:$0xff] }
 0x555   :  { %10352 = vmatprep.subr.mxu0 %v10990_v0  ;;  %10381 = vmatprep.subr.mxu1 %v10990_v0 }
 0x556   :  { %10353 = vmatpush3.msra.mxu0 %v8776_v23  ;;  %10382 = vmatpush3.msra.mxu1 %v8790_v48  ;;  %v8836_v23 = vld [vmem:[%s12450_s21 + $0x88] sm:$0xff]  ;;  %v8817_v48 = vld [vmem:[%s12450_s21 + $0x20] sm:$0xff] }
 0x557   :  { %10354 = vmatprep.subr.mxu0 %v10990_v0  ;;  %10383 = vmatprep.subr.mxu1 %v10990_v0 }
 0x558   :  { %10355 = vmatpush3.msra.mxu0 %v8775_v4  ;;  %10384 = vmatpush3.msra.mxu1 %v8789_v27  ;;  %v8835_v4 = vld [vmem:[%s12450_s21 + $0x80] sm:$0xff]  ;;  %v8832_v27 = vld [vmem:[%s12450_s21 + $0x78] sm:$0xf] }
 0x559   :  { %10356 = vmatprep.subr.mxu0 %v10990_v0  ;;  %10385 = vmatprep.subr.mxu1 %v10990_v0 }
 0x55a   :  { %10357 = vmatpush3.msra.mxu0 %v8774_v43  ;;  %10386 = vmatpush3.msra.mxu1 %v8788_v59  ;;  %v8850_v43 = vld [vmem:[%s12450_s21 + $0xd8] sm:$0xf]  ;;  %v8831_v59 = vld [vmem:[%s12450_s21 + $0x70] sm:$0xff] }
 0x55b   :  { %10358 = vmatprep.subr.mxu0 %v10990_v0  ;;  %10387 = vmatprep.subr.mxu1 %v10990_v0 }
 0x55c   :  { %10359 = vmatpush3.msra.mxu0 %v8773_v5  ;;  %10388 = vmatpush3.msra.mxu1 %v8787_v6  ;;  %v8849_v5 = vld [vmem:[%s12450_s21 + $0xd0] sm:$0xff]  ;;  %v8830_v6 = vld [vmem:[%s12450_s21 + $0x68] sm:$0xff] }
 0x55d   :  { %10360 = vmatprep.subr.mxu0 %v10990_v0  ;;  %10389 = vmatprep.subr.mxu1 %v10990_v0 }
 0x55e   :  { %10361 = vmatpush3.msra.mxu0 %v8772_v7  ;;  %10390 = vmatpush3.msra.mxu1 %v8786_v8  ;;  %v8848_v7 = vld [vmem:[%s12450_s21 + $0xc8] sm:$0xff] }
 0x55f   :  { %10362 = vmatprep.subr.mxu0 %v10990_v0  ;;  %10391 = vmatprep.subr.mxu1 %v10990_v0 }
 0x560   :  { %10363 = vmatpush3.msra.mxu0 %v8771_v61  ;;  %10364 = vmatprep.mubr.msk.f32.mxu0 %vm10992_vm1, %v10990_v0  ;;  %v8829_v61 = vld [vmem:[%s12450_s21 + $0x60] sm:$0xff] }
 0x561   :  { %10392 = vmatpush3.msra.mxu1 %v8785_v63  ;;  %10393 = vmatprep.mubr.msk.f32.mxu1 %vm10992_vm1, %v10990_v0  ;;  %v8847_v63 = vld [vmem:[%s12450_s21 + $0xc0] sm:$0xff] }
 0x562   :  { %10365 = vmatmul.mubr.msk.f32.vlgmr.msra.gmra.mxu0 %vm2073_vm3, %v12223_v60  ;;  %10394 = vmatmul.mubr.msk.f32.vlgmr.msra.gmra.mxu1 %vm2073_vm3, %v12223_v60 }
 0x563   :  { %10396 = vmatprep.subr.mxu0 %v10990_v0  ;;  %10422 = vmatprep.mubr.msk.f32.mxu0 %vm10992_vm1, %v10990_v0 }
 0x564   :  { %10397 = vmatpush3.msra.mxu0 %v8811_v9  ;;  %10425 = vmatprep.subr.mxu1 %v10990_v0 }
 0x565   :  { %10398 = vmatprep.subr.mxu0 %v10990_v0  ;;  %10443 = vmatprep.mubr.msk.f32.mxu1 %vm10992_vm1, %v10990_v0 }
 0x566   :  { %10399 = vmatpush3.msra.mxu0 %v8810_v49  ;;  %v8844_v49 = vld [vmem:[%s12450_s21 + $0xb8] sm:$0xf] }
 0x567   :  { %10400 = vmatprep.subr.mxu0 %v10990_v0 }
 0x568   :  { %10401 = vmatpush3.msra.mxu0 %v8809_v50  ;;  %v8862_v50 = vld [vmem:[%s12450_s21 + $0x118] sm:$0xf] }
 0x569   :  { %10402 = vmatprep.subr.mxu0 %v10990_v0 }
 0x56a   :  { %10403 = vmatpush3.msra.mxu0 %v8808_v10  ;;  %v8843_v10 = vld [vmem:[%s12450_s21 + $0xb0] sm:$0xff] }
 0x56b   :  { %10404 = vmatprep.subr.mxu0 %v10990_v0 }
 0x56c   :  { %10405 = vmatpush3.msra.mxu0 %v8807_v11  ;;  %v8861_v11 = vld [vmem:[%s12450_s21 + $0x110] sm:$0xff] }
 0x56d   :  { %10406 = vmatprep.subr.mxu0 %v10990_v0 }
 0x56e   :  { %10407 = vmatpush3.msra.mxu0 %v8806_v12  ;;  %v8842_v12 = vld [vmem:[%s12450_s21 + $0xa8] sm:$0xff] }
 0x56f   :  { %10408 = vmatprep.subr.mxu0 %v10990_v0 }
 0x570   :  { %10409 = vmatpush3.msra.mxu0 %v8805_v13  ;;  %v8860_v13 = vld [vmem:[%s12450_s21 + $0x108] sm:$0xff] }
 0x571   :  { %10410 = vmatprep.subr.mxu0 %v10990_v0 }
 0x572   :  { %10411 = vmatpush3.msra.mxu0 %v8804_v14  ;;  %v8841_v14 = vld [vmem:[%s12450_s21 + $0xa0] sm:$0xff] }
 0x573   :  { %10412 = vmatprep.subr.mxu0 %v10990_v0 }
 0x574   :  { %10413 = vmatpush3.msra.mxu0 %v8803_v15  ;;  %v8859_v15 = vld [vmem:[%s12450_s21 + $0x100] sm:$0xff] }
 0x575   :  { %10414 = vmatprep.subr.mxu0 %v10990_v0 }
 0x576   :  { %10415 = vmatpush3.msra.mxu0 %v8802_v16  ;;  %v8856_v16 = vld [vmem:[%s12450_s21 + $0xf8] sm:$0xf] }
 0x577   :  { %10416 = vmatprep.subr.mxu0 %v10990_v0 }
 0x578   :  { %10417 = vmatpush3.msra.mxu0 %v8801_v17  ;;  %v8855_v17 = vld [vmem:[%s12450_s21 + $0xf0] sm:$0xff] }
 0x579   :  { %10418 = vmatprep.subr.mxu0 %v10990_v0 }
 0x57a   :  { %10419 = vmatpush3.msra.mxu0 %v8800_v18  ;;  %v8854_v18 = vld [vmem:[%s12450_s21 + $0xe8] sm:$0xff] }
 0x57b   :  { %10420 = vmatprep.subr.mxu0 %v10990_v0 }
 0x57c   :  { %10421 = vmatpush3.msra.mxu0 %v8799_v19  ;;  %v8853_v19 = vld [vmem:[%s12450_s21 + $0xe0] sm:$0xff] }
 0x57d   :  { %10423 = vmatmul.mubr.msk.f32.vlgmr.msra.gmra.mxu0 %vm2073_vm3, %v12223_v60  ;;  %10467 = vmatprep.subr.mxu0 %v10990_v0  ;;  %v3823_v60 = vld [vmem:[%s12450_s21 + $0x18] sm:$0xf]  ;;  %s8154_s21 = sld [smem:[%s13017_s0 + %s11026_s18]]  }
 0x57e   :  { %10475 = vmatprep.mubr.msk.f32.mxu0 %vm10992_vm1, %v10990_v0  ;;  %10468 = vmatpush3.msk.msra.mxu0 %vm3828_vm4, %v3823_v60 }
 0x57f   :  { %10469 = vmatprep.subr.mxu0 %v10990_v0 }
 0x580   :  { %10470 = vmatpush3.msra.mxu0 %v3822_v25 }
 0x581   :  { %10471 = vmatprep.subr.mxu0 %v10990_v0 }
 0x582   :  { %10472 = vmatpush3.msra.mxu0 %v3821_v45  ;;  %v8875_v45 = vld [vmem:[%s12610_s4 + $0x48] sm:$0xff] }
 0x583   :  { %10473 = vmatprep.subr.mxu0 %v10990_v0 }
 0x584   :  { %10474 = vmatpush3.msra.mxu0 %v3820_v47  ;;  %v8874_v47 = vld [vmem:[%s12610_s4 + $0x40] sm:$0xff] }
 0x585   :  { %10478 = vmatprep.subr.mxu0 %v10990_v0 }
 0x5cf   :  { %v12443_v20 = vpop.f32.mrf.mxu0  ;;  %v12445_v21 = vpop.f32.mrf.mxu1 }
 0x5d1   :  { %v10192_v22 = vpop.f32.mrf.mxu0  ;;  %v10221_v24 = vpop.f32.mrf.mxu1 }
 0x5ea   :  { %v3151_v26 = vpop.f32.mrf.mxu0  ;;  %v3235_v28 = vpop.f32.mrf.mxu1 }
 0x5ec   :  { %v10250_v3 = vpop.f32.mrf.mxu0  ;;  %v10279_v29 = vpop.f32.mrf.mxu1 }
 0x606   :  { %v3319_v30 = vpop.f32.mrf.mxu0  ;;  %v3403_v31 = vpop.f32.mrf.mxu1 }
 0x608   :  { %v10308_v32 = vpop.f32.mrf.mxu0  ;;  %v10337_v33 = vpop.f32.mrf.mxu1 }
 0x622   :  { %v3487_v34 = vpop.f32.mrf.mxu0  ;;  %v3571_v35 = vpop.f32.mrf.mxu1 }
 0x624   :  { %v10366_v36 = vpop.f32.mrf.mxu0  ;;  %v10395_v37 = vpop.f32.mrf.mxu1 }
 0x63d   :  { %v3655_v38 = vpop.f32.mrf.mxu0 }
 0x63e   :  { %10426 = vmatpush3.msra.mxu1 %v3655_v38 }
 0x63f   :  { %v10424_v39 = vpop.f32.mrf.mxu0  ;;  %10427 = vmatprep.subr.mxu1 %v10990_v0 }
 0x640   :  { %10428 = vmatpush3.msra.mxu1 %v3571_v35  ;;  %v4526_v39 = vld [vmem:[%s8136_s8] sm:$0xff] }
 0x641   :  { %10429 = vmatprep.subr.mxu1 %v10990_v0 }
 0x642   :  { %10430 = vmatpush3.msra.mxu1 %v3487_v34 }
 0x643   :  { %10431 = vmatprep.subr.mxu1 %v10990_v0 }
 0x644   :  { %10432 = vmatpush3.msra.mxu1 %v3403_v31 }
 0x645   :  { %10433 = vmatprep.subr.mxu1 %v10990_v0 }
 0x646   :  { %10434 = vmatpush3.msra.mxu1 %v3319_v30 }
 0x647   :  { %10435 = vmatprep.subr.mxu1 %v10990_v0 }
 0x648   :  { %10436 = vmatpush3.msra.mxu1 %v3235_v28 }
 0x649   :  { %10437 = vmatprep.subr.mxu1 %v10990_v0 }
 0x64a   :  { %10438 = vmatpush3.msra.mxu1 %v3151_v26 }
 0x64b   :  { %10439 = vmatprep.subr.mxu1 %v10990_v0 }
 0x64c   :  { %10440 = vmatpush3.msra.mxu1 %v12445_v21 }
 0x64d   :  { %10441 = vmatprep.subr.mxu1 %v10990_v0 }
 0x64e   :  { %10442 = vmatpush3.msra.mxu1 %v12443_v20 }
 0x64f   :  { %10444 = vmatmul.mubr.msk.f32.vlgmr.msra.gmra.mxu1 %vm1905_vm2, %v3659_v40  ;;  %10446 = vmatprep.subr.mxu1 %v10990_v0  ;;  %v8877_v40 = vld [vmem:[%s12610_s4 + $0x58] sm:$0xf] }
 0x650   :  { %10447 = vmatpush3.msra.mxu1 %v3655_v38  ;;  %10464 = vmatprep.mubr.msk.f32.mxu1 %vm10992_vm1, %v10990_v0 }
 0x651   :  { %10448 = vmatprep.subr.mxu1 %v10990_v0 }
 0x652   :  { %10449 = vmatpush3.msra.mxu1 %v3571_v35 }
 0x653   :  { %10450 = vmatprep.subr.mxu1 %v10990_v0 }
 0x654   :  { %10451 = vmatpush3.msra.mxu1 %v3487_v34 }
 0x655   :  { %10452 = vmatprep.subr.mxu1 %v10990_v0 }
 0x656   :  { %10453 = vmatpush3.msra.mxu1 %v3403_v31 }
 0x657   :  { %10454 = vmatprep.subr.mxu1 %v10990_v0 }
 0x658   :  { %10455 = vmatpush3.msra.mxu1 %v3319_v30 }
 0x659   :  { %10456 = vmatprep.subr.mxu1 %v10990_v0 }
 0x65a   :  { %10457 = vmatpush3.msra.mxu1 %v3235_v28 }
 0x65b   :  { %10458 = vmatprep.subr.mxu1 %v10990_v0 }
 0x65c   :  { %10459 = vmatpush3.msra.mxu1 %v3151_v26 }
 0x65d   :  { %10460 = vmatprep.subr.mxu1 %v10990_v0 }
 0x65e   :  { %10461 = vmatpush3.msra.mxu1 %v12445_v21 }
 0x65f   :  { %10462 = vmatprep.subr.mxu1 %v10990_v0 }
 0x660   :  { %10463 = vmatpush3.msra.mxu1 %v12443_v20  ;;  %v4611_v20 = vld [vmem:[%s12610_s4 + $0x18] sm:$0xf] }
 0x661   :  { %10465 = vmatmul.mubr.msk.f32.vlgmr.msra.gmra.mxu1 %vm1905_vm2, %v3740_v41  ;;  %10489 = vmatprep.subr.mxu1 %v10990_v0  ;;  %v4610_v41 = vld [vmem:[%s12610_s4 + $0x10] sm:$0xff] }
 0x662   :  { %10490 = vmatpush3.msk.msra.mxu1 %vm3828_vm4, %v8826_v42  ;;  %10497 = vmatprep.mubr.msk.f32.mxu1 %vm10992_vm1, %v10990_v0  ;;  %v8876_v42 = vld [vmem:[%s12610_s4 + $0x50] sm:$0xff] }
 0x663   :  { %10491 = vmatprep.subr.mxu1 %v10990_v0 }
 0x664   :  { %10492 = vmatpush3.msra.mxu1 %v8825_v44  ;;  %v4609_v44 = vld [vmem:[%s12610_s4 + $0x8] sm:$0xff] }
 0x665   :  { %10493 = vmatprep.subr.mxu1 %v10990_v0 }
 0x666   :  { %10494 = vmatpush3.msra.mxu1 %v8824_v46  ;;  %v4608_v46 = vld [vmem:[%s12610_s4] sm:$0xff] }
 0x667   :  { %10495 = vmatprep.subr.mxu1 %v10990_v0 }
 0x668   :  { %10496 = vmatpush3.msra.mxu1 %v8823_v51  ;;  %v3745_v51 = vpop.permute.xlu0 %3744 }
 0x669   :  { %10511 = vmatprep.subr.mxu1 %v10990_v0 }
 0x70f   :  { %v3735_v54 = vpop.f32.mrf.mxu1 }
 0x710   :  { %v3736_v57 = vadd.f32 %v3735_v54, %v3664_v52  ;;  %v4531_v52 = vpop.permute.xlu1 %4530 }
 0x711   :  { %v10445_v58 = vpop.f32.mrf.mxu1 }
 0x712   :  { %v12504_v53 = vmax.f32 %v3736_v57, 0.0 }
 0x714   :  { %10476 = vmatmul.mubr.msk.f32.vlgmr.msra.gmra.mxu0 %vm3824_vm5, %v12504_v53  ;;  %10498 = vmatmul.mubr.msk.f32.vlgmr.msra.gmra.mxu1 %vm3824_vm5, %v12504_v53 }
 0x715   :  { %10479 = vmatpush3.msk.msra.mxu0 %vm3828_vm4, %v8820_v56  ;;  %10512 = vmatpush3.msk.msra.mxu1 %vm3828_vm4, %v8838_v62 }
 0x716   :  { %10480 = vmatprep.subr.mxu0 %v10990_v0  ;;  %10513 = vmatprep.subr.mxu1 %v10990_v0 }
 0x717   :  { %10481 = vmatpush3.msra.mxu0 %v8819_v1  ;;  %10514 = vmatpush3.msra.mxu1 %v8837_v55  ;;  %v8871_v1 = vld [vmem:[%s12610_s4 + $0x38] sm:$0xf] }
 0x718   :  { %10482 = vmatprep.subr.mxu0 %v10990_v0  ;;  %10515 = vmatprep.subr.mxu1 %v10990_v0  ;;  %v8889_v55 = vld [vmem:[%s12610_s4 + $0x98] sm:$0xf] }
 0x719   :  { %10483 = vmatpush3.msra.mxu0 %v8818_v2  ;;  %10516 = vmatpush3.msra.mxu1 %v8836_v23  ;;  %v8870_v2 = vld [vmem:[%s12610_s4 + $0x30] sm:$0xff] }
 0x71a   :  { %10484 = vmatprep.subr.mxu0 %v10990_v0  ;;  %10517 = vmatprep.subr.mxu1 %v10990_v0  ;;  %v8888_v23 = vld [vmem:[%s12610_s4 + $0x90] sm:$0xff] }
 0x71b   :  { %10485 = vmatpush3.msra.mxu0 %v8817_v48  ;;  %10486 = vmatprep.mubr.msk.f32.mxu0 %vm10992_vm1, %v10990_v0  ;;  %v8869_v48 = vld [vmem:[%s12610_s4 + $0x28] sm:$0xff] }
 0x71c   :  { %10518 = vmatpush3.msra.mxu1 %v8835_v4  ;;  %10519 = vmatprep.mubr.msk.f32.mxu1 %vm10992_vm1, %v10990_v0  ;;  %v8887_v4 = vld [vmem:[%s12610_s4 + $0x88] sm:$0xff] }
 0x71d   :  { %10487 = vmatmul.mubr.msk.f32.vlgmr.msra.gmra.mxu0 %vm3824_vm5, %v12504_v53  ;;  %10500 = vmatprep.subr.mxu0 %v10990_v0 }
 0x71e   :  { %10520 = vmatmul.mubr.msk.f32.vlgmr.msra.gmra.mxu1 %vm3824_vm5, %v12504_v53  ;;  %10533 = vmatprep.subr.mxu1 %v10990_v0 }
 0x71f   :  { %10501 = vmatpush3.msk.msra.mxu0 %vm3828_vm4, %v8832_v27  ;;  %10534 = vmatpush3.msk.msra.mxu1 %vm3828_vm4, %v8850_v43  ;;  %v8868_v27 = vld [vmem:[%s12610_s4 + $0x20] sm:$0xff] }
 0x720   :  { %10502 = vmatprep.subr.mxu0 %v10990_v0  ;;  %10535 = vmatprep.subr.mxu1 %v10990_v0  ;;  %v8886_v43 = vld [vmem:[%s12610_s4 + $0x80] sm:$0xff] }
 0x721   :  { %10503 = vmatpush3.msra.mxu0 %v8831_v59  ;;  %10536 = vmatpush3.msra.mxu1 %v8849_v5  ;;  %v12546_v8 = vpop.f32.mrf.mxu1  ;;  %v8883_v59 = vld [vmem:[%s12610_s4 + $0x78] sm:$0xf] }
 0x722   :  { %10504 = vmatprep.subr.mxu0 %v10990_v0  ;;  %10537 = vmatprep.subr.mxu1 %v10990_v0  ;;  %v3817_v57 = vadd.f32 %v12546_v8, %v3745_v51  ;;  %v8901_v5 = vld [vmem:[%s12610_s4 + $0xd8] sm:$0xf]  ;;  %v8881_v8 = vld [vmem:[%s12610_s4 + $0x68] sm:$0xff] }
 0x723   :  { %10505 = vmatpush3.msra.mxu0 %v8830_v6  ;;  %10538 = vmatpush3.msra.mxu1 %v8848_v7  ;;  %v10466_v9 = vpop.f32.mrf.mxu1  ;;  %v8882_v6 = vld [vmem:[%s12610_s4 + $0x70] sm:$0xff] }
 0x724   :  { %10506 = vmatprep.subr.mxu0 %v10990_v0  ;;  %10539 = vmatprep.subr.mxu1 %v10990_v0  ;;  %v8900_v7 = vld [vmem:[%s12610_s4 + $0xd0] sm:$0xff]  ;;  %v8898_v9 = vld [vmem:[%s12610_s4 + $0xc0] sm:$0xff] }
 0x725   :  { %10507 = vmatpush3.msra.mxu0 %v8829_v61  ;;  %10508 = vmatprep.mubr.msk.f32.mxu0 %vm10992_vm1, %v10990_v0  ;;  %v8899_v61 = vld [vmem:[%s12610_s4 + $0xc8] sm:$0xff] }
 0x726   :  { %10540 = vmatpush3.msra.mxu1 %v8847_v63  ;;  %10541 = vmatprep.mubr.msk.f32.mxu1 %vm10992_vm1, %v10990_v0  ;;  %v8880_v63 = vld [vmem:[%s12610_s4 + $0x60] sm:$0xff] }
 0x727   :  { %10509 = vmatmul.mubr.msk.f32.vlgmr.msra.gmra.mxu0 %vm3824_vm5, %v12504_v53  ;;  %10522 = vmatprep.subr.mxu0 %v10990_v0 }
 0x728   :  { %10542 = vmatmul.mubr.msk.f32.vlgmr.msra.gmra.mxu1 %vm3824_vm5, %v12504_v53  ;;  %10555 = vmatprep.subr.mxu1 %v10990_v0 }
 0x729   :  { %10523 = vmatpush3.msk.msra.mxu0 %vm3828_vm4, %v8844_v49  ;;  %10556 = vmatpush3.msk.msra.mxu1 %vm3828_vm4, %v8862_v50  ;;  %v8895_v49 = vld [vmem:[%s12610_s4 + $0xb8] sm:$0xf] }
 0x72a   :  { %10524 = vmatprep.subr.mxu0 %v10990_v0  ;;  %10557 = vmatprep.subr.mxu1 %v10990_v0  ;;  %v8913_v50 = vld [vmem:[%s12610_s4 + $0x118] sm:$0xf] }
 0x72b   :  { %10525 = vmatpush3.msra.mxu0 %v8843_v10  ;;  %10558 = vmatpush3.msra.mxu1 %v8861_v11  ;;  %v8894_v10 = vld [vmem:[%s12610_s4 + $0xb0] sm:$0xff] }
 0x72c   :  { %10526 = vmatprep.subr.mxu0 %v10990_v0  ;;  %10559 = vmatprep.subr.mxu1 %v10990_v0  ;;  %v8912_v11 = vld [vmem:[%s12610_s4 + $0x110] sm:$0xff] }
 0x72d   :  { %10527 = vmatpush3.msra.mxu0 %v8842_v12  ;;  %10560 = vmatpush3.msra.mxu1 %v8860_v13  ;;  %v8893_v12 = vld [vmem:[%s12610_s4 + $0xa8] sm:$0xff] }
 0x72e   :  { %10528 = vmatprep.subr.mxu0 %v10990_v0  ;;  %10561 = vmatprep.subr.mxu1 %v10990_v0  ;;  %v8911_v13 = vld [vmem:[%s12610_s4 + $0x108] sm:$0xff] }
 0x72f   :  { %10529 = vmatpush3.msra.mxu0 %v8841_v14  ;;  %10530 = vmatprep.mubr.msk.f32.mxu0 %vm10992_vm1, %v10990_v0  ;;  %v8892_v14 = vld [vmem:[%s12610_s4 + $0xa0] sm:$0xff] }
 0x730   :  { %10562 = vmatpush3.msra.mxu1 %v8859_v15  ;;  %10563 = vmatprep.mubr.msk.f32.mxu1 %vm10992_vm1, %v10990_v0  ;;  %v8910_v15 = vld [vmem:[%s12610_s4 + $0x100] sm:$0xff] }
 0x731   :  { %10531 = vmatmul.mubr.msk.f32.vlgmr.msra.gmra.mxu0 %vm3824_vm5, %v12504_v53  ;;  %10544 = vmatprep.subr.mxu0 %v10990_v0 }
 0x732   :  { %10564 = vmatmul.mubr.msk.f32.vlgmr.msra.gmra.mxu1 %vm3824_vm5, %v12504_v53  ;;  %10545 = vmatpush3.msk.msra.mxu0 %vm3828_vm4, %v8856_v16  ;;  %v8907_v16 = vld [vmem:[%s12610_s4 + $0xf8] sm:$0xf] }
 0x733   :  { %10546 = vmatprep.subr.mxu0 %v10990_v0  ;;  %10552 = vmatprep.mubr.msk.f32.mxu0 %vm10992_vm1, %v10990_v0 }
 0x734   :  { %10547 = vmatpush3.msra.mxu0 %v8855_v17  ;;  %10587 = vmatprep.subr.mxu1 %v10990_v0  ;;  %v8906_v17 = vld [vmem:[%s12610_s4 + $0xf0] sm:$0xff] }
 0x735   :  { %10548 = vmatprep.subr.mxu0 %v10990_v0  ;;  %10595 = vmatprep.mubr.msk.f32.mxu1 %vm10992_vm1, %v10990_v0 }
 0x736   :  { %10549 = vmatpush3.msra.mxu0 %v8854_v18  ;;  %10588 = vmatpush3.msk.msra.mxu1 %vm3828_vm4, %v4611_v20  ;;  %v8905_v18 = vld [vmem:[%s12610_s4 + $0xe8] sm:$0xff] }
 0x737   :  { %10550 = vmatprep.subr.mxu0 %v10990_v0  ;;  %10589 = vmatprep.subr.mxu1 %v10990_v0 }
 0x738   :  { %10551 = vmatpush3.msra.mxu0 %v8853_v19  ;;  %10590 = vmatpush3.msra.mxu1 %v4610_v41  ;;  %v8904_v19 = vld [vmem:[%s12610_s4 + $0xe0] sm:$0xff]  ;;  %v8923_v41 = vld [vmem:[%s12780_s19 + $0x18] sm:$0xff]  ;;  %s8158_s4 = sld [smem:[%s13017_s0 + %s11029_s30]]  }
 0x739   :  { %10553 = vmatmul.mubr.msk.f32.vlgmr.msra.gmra.mxu0 %vm3824_vm5, %v12504_v53  ;;  %10566 = vmatprep.subr.mxu0 %v10990_v0 }
 0x73a   :  { %10584 = vmatprep.mubr.msk.f32.mxu0 %vm10992_vm1, %v10990_v0  ;;  %10591 = vmatprep.subr.mxu1 %v10990_v0 }
 0x73b   :  { %10592 = vmatpush3.msra.mxu1 %v4609_v44 }
 0x73c   :  { %10593 = vmatprep.subr.mxu1 %v10990_v0 }
 0x73d   :  { %10594 = vmatpush3.msra.mxu1 %v4608_v46 }
 0x73e   :  { %10598 = vmatprep.subr.mxu1 %v10990_v0 }
 0x7d4   :  { %v3898_v21 = vpop.f32.mrf.mxu0  ;;  %v4054_v22 = vpop.f32.mrf.mxu1 }
 0x7d6   :  { %v10477_v24 = vpop.f32.mrf.mxu0  ;;  %v10499_v60 = vpop.f32.mrf.mxu1 }
 0x7dd   :  { %v3976_v25 = vpop.f32.mrf.mxu0 }
 0x7de   :  { %v4210_v26 = vpop.f32.mrf.mxu1 }
 0x7df   :  { %v10488_v28 = vpop.f32.mrf.mxu0 }
 0x7e0   :  { %v10521_v3 = vpop.f32.mrf.mxu1 }
 0x7e7   :  { %v4132_v29 = vpop.f32.mrf.mxu0 }
 0x7e8   :  { %v4366_v30 = vpop.f32.mrf.mxu1 }
 0x7e9   :  { %v10510_v31 = vpop.f32.mrf.mxu0 }
 0x7ea   :  { %v10543_v32 = vpop.f32.mrf.mxu1 }
 0x7f1   :  { %v4288_v33 = vpop.f32.mrf.mxu0 }
 0x7f2   :  { %v4522_v34 = vpop.f32.mrf.mxu1 }
 0x7f3   :  { %10567 = vmatpush3.msra.mxu0 %v4522_v34  ;;  %v10532_v35 = vpop.f32.mrf.mxu0 }
 0x7f4   :  { %v10565_v36 = vpop.f32.mrf.mxu1  ;;  %10568 = vmatprep.subr.mxu0 %v10990_v0 }
 0x7f9   :  { %v4444_v37 = vpop.f32.mrf.mxu0 }
 0x7fa   :  { %10569 = vmatpush3.msra.mxu0 %v4444_v37 }
 0x7fb   :  { %v10554_v38 = vpop.f32.mrf.mxu0  ;;  %10570 = vmatprep.subr.mxu0 %v10990_v0 }
 0x7fc   :  { %10571 = vmatpush3.msra.mxu0 %v4366_v30  ;;  %v5312_v38 = vld [vmem:[%s8139_s12] sm:$0xff] }
 0x7fd   :  { %10572 = vmatprep.subr.mxu0 %v10990_v0 }
 0x7fe   :  { %10573 = vmatpush3.msra.mxu0 %v4288_v33 }
 0x7ff   :  { %10574 = vmatprep.subr.mxu0 %v10990_v0 }
 0x800   :  { %10575 = vmatpush3.msra.mxu0 %v4210_v26 }
 0x801   :  { %10576 = vmatprep.subr.mxu0 %v10990_v0 }
 0x802   :  { %10577 = vmatpush3.msra.mxu0 %v4132_v29 }
 0x803   :  { %10578 = vmatprep.subr.mxu0 %v10990_v0 }
 0x804   :  { %10579 = vmatpush3.msra.mxu0 %v4054_v22 }
 0x805   :  { %10580 = vmatprep.subr.mxu0 %v10990_v0 }
 0x806   :  { %10581 = vmatpush3.msra.mxu0 %v3976_v25 }
 0x807   :  { %10582 = vmatprep.subr.mxu0 %v10990_v0 }
 0x808   :  { %10583 = vmatpush3.msra.mxu0 %v3898_v21 }
 0x809   :  { %10585 = vmatmul.mubr.msk.f32.vlgmr.msra.gmra.mxu0 %vm1905_vm2, %v4526_v39  ;;  %10609 = vmatprep.subr.mxu0 %v10990_v0  ;;  %v5393_v39 = vld [vmem:[%s8141_s15] sm:$0xff] }
 0x80a   :  { %10610 = vmatpush3.msk.msra.mxu0 %vm3828_vm4, %v8877_v40  ;;  %10617 = vmatprep.mubr.msk.f32.mxu0 %vm10992_vm1, %v10990_v0  ;;  %v5473_v40 = vld [vmem:[%s12780_s19] sm:$0xff] }
 0x80b   :  { %10611 = vmatprep.subr.mxu0 %v10990_v0 }
 0x80c   :  { %10612 = vmatpush3.msra.mxu0 %v8876_v42  ;;  %v5317_v42 = vpop.permute.xlu0 %5316 }
 0x80d   :  { %10613 = vmatprep.subr.mxu0 %v10990_v0 }
 0x80e   :  { %10614 = vmatpush3.msra.mxu0 %v8875_v45 }
 0x80f   :  { %10615 = vmatprep.subr.mxu0 %v10990_v0 }
 0x810   :  { %10616 = vmatpush3.msra.mxu0 %v8874_v47 }
 0x811   :  { %10631 = vmatprep.subr.mxu0 %v10990_v0 }
 0x8c9   :  { %v4602_v54 = vpop.f32.mrf.mxu0 }
 0x8ca   :  { %v4603_v58 = vadd.f32 %v4602_v54, %v4531_v52  ;;  %v8919_v54 = vld [vmem:[%s12780_s19 + $0x8] sm:$0xff] }
 0x8cb   :  { %v10586_v53 = vpop.f32.mrf.mxu0 }
 0x8cc   :  { %v4606_v56 = vadd.f32 %v4603_v58, %v3817_v57  ;;  %v8927_v57 = vld [vmem:[%s12780_s19 + $0x28] sm:$0xff]  ;;  %v8921_v58 = vld [vmem:[%s12780_s19 + $0x10] sm:$0xff]  ;;  %v8931_v53 = vld [vmem:[%s12780_s19 + $0x38] sm:$0xff] }
 0x8ce   :  { %v12646_v62 = vmax.f32 %v4606_v56, 0.0  ;;  %v8925_v56 = vld [vmem:[%s12780_s19 + $0x20] sm:$0xff] }
 0x8d0   :  { %10596 = vmatmul.mubr.msk.f32.vlgmr.msra.gmra.mxu1 %vm3824_vm5, %v12646_v62  ;;  %10618 = vmatmul.mubr.msk.f32.vlgmr.msra.gmra.mxu0 %vm3824_vm5, %v12646_v62 }
 0x8d1   :  { %10599 = vmatpush3.msk.msra.mxu1 %vm3828_vm4, %v8871_v1  ;;  %10632 = vmatpush3.msk.msra.mxu0 %vm3828_vm4, %v8889_v55  ;;  %v8933_v1 = vld [vmem:[%s12780_s19 + $0x40] sm:$0xff] }
 0x8d2   :  { %10600 = vmatprep.subr.mxu1 %v10990_v0  ;;  %10633 = vmatprep.subr.mxu0 %v10990_v0 }
 0x8d3   :  { %10601 = vmatpush3.msra.mxu1 %v8870_v2  ;;  %10634 = vmatpush3.msra.mxu0 %v8888_v23 }
 0x8d4   :  { %10602 = vmatprep.subr.mxu1 %v10990_v0  ;;  %10635 = vmatprep.subr.mxu0 %v10990_v0 }
 0x8d5   :  { %10603 = vmatpush3.msra.mxu1 %v8869_v48  ;;  %10636 = vmatpush3.msra.mxu0 %v8887_v4 }
 0x8d6   :  { %10604 = vmatprep.subr.mxu1 %v10990_v0  ;;  %10637 = vmatprep.subr.mxu0 %v10990_v0 }
 0x8d7   :  { %10605 = vmatpush3.msra.mxu1 %v8868_v27  ;;  %10606 = vmatprep.mubr.msk.f32.mxu1 %vm10992_vm1, %v10990_v0 }
 0x8d8   :  { %10638 = vmatpush3.msra.mxu0 %v8886_v43  ;;  %10639 = vmatprep.mubr.msk.f32.mxu0 %vm10992_vm1, %v10990_v0 }
 0x8d9   :  { %10607 = vmatmul.mubr.msk.f32.vlgmr.msra.gmra.mxu1 %vm3824_vm5, %v12646_v62  ;;  %10620 = vmatprep.subr.mxu1 %v10990_v0 }
 0x8da   :  { %10640 = vmatmul.mubr.msk.f32.vlgmr.msra.gmra.mxu0 %vm3824_vm5, %v12646_v62  ;;  %10653 = vmatprep.subr.mxu0 %v10990_v0 }
 0x8db   :  { %10621 = vmatpush3.msk.msra.mxu1 %vm3828_vm4, %v8883_v59  ;;  %10654 = vmatpush3.msk.msra.mxu0 %vm3828_vm4, %v8901_v5 }
 0x8dc   :  { %10622 = vmatprep.subr.mxu1 %v10990_v0  ;;  %10655 = vmatprep.subr.mxu0 %v10990_v0 }
 0x8dd   :  { %10623 = vmatpush3.msra.mxu1 %v8882_v6  ;;  %10656 = vmatpush3.msra.mxu0 %v8900_v7 }
 0x8de   :  { %10624 = vmatprep.subr.mxu1 %v10990_v0  ;;  %10657 = vmatprep.subr.mxu0 %v10990_v0 }
 0x8df   :  { %10625 = vmatpush3.msra.mxu1 %v8881_v8  ;;  %10658 = vmatpush3.msra.mxu0 %v8899_v61 }
 0x8e0   :  { %10626 = vmatprep.subr.mxu1 %v10990_v0  ;;  %10659 = vmatprep.subr.mxu0 %v10990_v0 }
 0x8e1   :  { %10627 = vmatpush3.msra.mxu1 %v8880_v63  ;;  %10628 = vmatprep.mubr.msk.f32.mxu1 %vm10992_vm1, %v10990_v0 }
 0x8e2   :  { %10660 = vmatpush3.msra.mxu0 %v8898_v9  ;;  %10661 = vmatprep.mubr.msk.f32.mxu0 %vm10992_vm1, %v10990_v0 }
 0x8e3   :  { %10629 = vmatmul.mubr.msk.f32.vlgmr.msra.gmra.mxu1 %vm3824_vm5, %v12646_v62  ;;  %10642 = vmatprep.subr.mxu1 %v10990_v0 }
 0x8e4   :  { %10662 = vmatmul.mubr.msk.f32.vlgmr.msra.gmra.mxu0 %vm3824_vm5, %v12646_v62  ;;  %10675 = vmatprep.subr.mxu0 %v10990_v0 }
 0x8e5   :  { %10643 = vmatpush3.msk.msra.mxu1 %vm3828_vm4, %v8895_v49  ;;  %10676 = vmatpush3.msk.msra.mxu0 %vm3828_vm4, %v8913_v50 }
 0x8e6   :  { %10644 = vmatprep.subr.mxu1 %v10990_v0  ;;  %10677 = vmatprep.subr.mxu0 %v10990_v0 }
 0x8e7   :  { %10645 = vmatpush3.msra.mxu1 %v8894_v10  ;;  %10678 = vmatpush3.msra.mxu0 %v8912_v11  ;;  %v6124_v11 = vld [vmem:[%s8144_s23] sm:$0xff] }
 0x8e8   :  { %10646 = vmatprep.subr.mxu1 %v10990_v0  ;;  %10679 = vmatprep.subr.mxu0 %v10990_v0 }
 0x8e9   :  { %10647 = vmatpush3.msra.mxu1 %v8893_v12  ;;  %10680 = vmatpush3.msra.mxu0 %v8911_v13  ;;  %v6206_v12 = vld [vmem:[%s12847_s27] sm:$0xff]  ;;  %v8945_v13 = vld [vmem:[%s12847_s27 + $0x28] sm:$0xff] }
 0x8ea   :  { %10648 = vmatprep.subr.mxu1 %v10990_v0  ;;  %10681 = vmatprep.subr.mxu0 %v10990_v0 }
 0x8eb   :  { %10649 = vmatpush3.msra.mxu1 %v8892_v14  ;;  %10650 = vmatprep.mubr.msk.f32.mxu1 %vm10992_vm1, %v10990_v0  ;;  %v6129_v14 = vpop.permute.xlu0 %6128 }
 0x8ec   :  { %10682 = vmatpush3.msra.mxu0 %v8910_v15  ;;  %10683 = vmatprep.mubr.msk.f32.mxu0 %vm10992_vm1, %v10990_v0  ;;  %v5398_v15 = vpop.permute.xlu1 %5397 }
 0x8ed   :  { %10651 = vmatmul.mubr.msk.f32.vlgmr.msra.gmra.mxu1 %vm3824_vm5, %v12646_v62  ;;  %10664 = vmatprep.subr.mxu1 %v10990_v0 }
 0x8ee   :  { %10684 = vmatmul.mubr.msk.f32.vlgmr.msra.gmra.mxu0 %vm3824_vm5, %v12646_v62  ;;  %10665 = vmatpush3.msk.msra.mxu1 %vm3828_vm4, %v8907_v16 }
 0x8ef   :  { %10666 = vmatprep.subr.mxu1 %v10990_v0  ;;  %10672 = vmatprep.mubr.msk.f32.mxu1 %vm10992_vm1, %v10990_v0 }
 0x8f0   :  { %10667 = vmatpush3.msra.mxu1 %v8906_v17  ;;  %10707 = vmatprep.subr.mxu0 %v10990_v0 }
 0x8f1   :  { %10668 = vmatprep.subr.mxu1 %v10990_v0  ;;  %10725 = vmatprep.mubr.msk.f32.mxu0 %vm10992_vm1, %v10990_v0 }
 0x8f2   :  { %10669 = vmatpush3.msra.mxu1 %v8905_v18 }
 0x8f3   :  { %10670 = vmatprep.subr.mxu1 %v10990_v0 }
 0x8f4   :  { %10671 = vmatpush3.msra.mxu1 %v8904_v19 }
 0x8f5   :  { %10673 = vmatmul.mubr.msk.f32.vlgmr.msra.gmra.mxu1 %vm3824_vm5, %v12646_v62  ;;  %10686 = vmatprep.subr.mxu1 %v10990_v0  ;;  %v8929_v62 = vld [vmem:[%s12780_s19 + $0x30] sm:$0xff] }
 0x8f6   :  { %10704 = vmatprep.mubr.msk.f32.mxu1 %vm10992_vm1, %v10990_v0 }
 0x990   :  { %v4684_v20 = vpop.f32.mrf.mxu1  ;;  %v4840_v21 = vpop.f32.mrf.mxu0 }
 0x992   :  { %v10597_v22 = vpop.f32.mrf.mxu1  ;;  %v10619_v24 = vpop.f32.mrf.mxu0 }
 0x993   :  { %v8937_v22 = vld [vmem:[%s12847_s27 + $0x8] sm:$0xff]  ;;  %v8949_v24 = vld [vmem:[%s12847_s27 + $0x38] sm:$0xff] }
 0x999   :  { %v4762_v60 = vpop.f32.mrf.mxu1 }
 0x99a   :  { %v4996_v25 = vpop.f32.mrf.mxu0 }
 0x99b   :  { %v10608_v26 = vpop.f32.mrf.mxu1 }
 0x99c   :  { %v10641_v28 = vpop.f32.mrf.mxu0  ;;  %v8943_v26 = vld [vmem:[%s12847_s27 + $0x20] sm:$0xff] }
 0x99d   :  { %v8947_v28 = vld [vmem:[%s12847_s27 + $0x30] sm:$0xff] }
 0x9a3   :  { %v4918_v3 = vpop.f32.mrf.mxu1 }
 0x9a4   :  { %v5152_v29 = vpop.f32.mrf.mxu0 }
 0x9a5   :  { %v10630_v30 = vpop.f32.mrf.mxu1 }
 0x9a6   :  { %v10663_v31 = vpop.f32.mrf.mxu0  ;;  %v6953_v30 = vld [vmem:[%s12897_s6] sm:$0xff] }
 0x9ad   :  { %v5074_v32 = vpop.f32.mrf.mxu1 }
 0x9ae   :  { %v5308_v33 = vpop.f32.mrf.mxu0 }
 0x9af   :  { %10687 = vmatpush3.msra.mxu1 %v5308_v33  ;;  %10708 = vmatpush3.msra.mxu0 %v5308_v33  ;;  %v10652_v34 = vpop.f32.mrf.mxu1 }
 0x9b0   :  { %v10685_v35 = vpop.f32.mrf.mxu0  ;;  %10688 = vmatprep.subr.mxu1 %v10990_v0  ;;  %10709 = vmatprep.subr.mxu0 %v10990_v0 }
 0x9b5   :  { %v5230_v36 = vpop.f32.mrf.mxu1 }
 0x9b6   :  { %10689 = vmatpush3.msra.mxu1 %v5230_v36  ;;  %10710 = vmatpush3.msra.mxu0 %v5230_v36 }
 0x9b7   :  { %v10674_v37 = vpop.f32.mrf.mxu1  ;;  %10690 = vmatprep.subr.mxu1 %v10990_v0  ;;  %10711 = vmatprep.subr.mxu0 %v10990_v0 }
 0x9b8   :  { %10691 = vmatpush3.msra.mxu1 %v5152_v29  ;;  %10712 = vmatpush3.msra.mxu0 %v5152_v29  ;;  %v6856_v29 = vld [vmem:[%s12892_s1] sm:$0xff] }
 0x9b9   :  { %10692 = vmatprep.subr.mxu1 %v10990_v0  ;;  %10713 = vmatprep.subr.mxu0 %v10990_v0 }
 0x9ba   :  { %10693 = vmatpush3.msra.mxu1 %v5074_v32  ;;  %10714 = vmatpush3.msra.mxu0 %v5074_v32 }
 0x9bb   :  { %10694 = vmatprep.subr.mxu1 %v10990_v0  ;;  %10715 = vmatprep.subr.mxu0 %v10990_v0 }
 0x9bc   :  { %10695 = vmatpush3.msra.mxu1 %v4996_v25  ;;  %10716 = vmatpush3.msra.mxu0 %v4996_v25  ;;  %v8941_v25 = vld [vmem:[%s12847_s27 + $0x18] sm:$0xff] }
 0x9bd   :  { %10696 = vmatprep.subr.mxu1 %v10990_v0  ;;  %10717 = vmatprep.subr.mxu0 %v10990_v0 }
 0x9be   :  { %10697 = vmatpush3.msra.mxu1 %v4918_v3  ;;  %10718 = vmatpush3.msra.mxu0 %v4918_v3  ;;  %v8951_v3 = vld [vmem:[%s12847_s27 + $0x40] sm:$0xff] }
 0x9bf   :  { %10698 = vmatprep.subr.mxu1 %v10990_v0  ;;  %10719 = vmatprep.subr.mxu0 %v10990_v0 }
 0x9c0   :  { %10699 = vmatpush3.msra.mxu1 %v4840_v21  ;;  %10720 = vmatpush3.msra.mxu0 %v4840_v21 }
 0x9c1   :  { %10700 = vmatprep.subr.mxu1 %v10990_v0  ;;  %10721 = vmatprep.subr.mxu0 %v10990_v0 }
 0x9c2   :  { %10701 = vmatpush3.msra.mxu1 %v4762_v60  ;;  %10722 = vmatpush3.msra.mxu0 %v4762_v60  ;;  %v8939_v60 = vld [vmem:[%s12847_s27 + $0x10] sm:$0xff] }
 0x9c3   :  { %10702 = vmatprep.subr.mxu1 %v10990_v0  ;;  %10723 = vmatprep.subr.mxu0 %v10990_v0 }
 0x9c4   :  { %10703 = vmatpush3.msra.mxu1 %v4684_v20  ;;  %10724 = vmatpush3.msra.mxu0 %v4684_v20 }
 0x9c5   :  { %10705 = vmatmul.mubr.msk.f32.vlgmr.msra.gmra.mxu1 %vm1905_vm2, %v5312_v38  ;;  %10726 = vmatmul.mubr.msk.f32.vlgmr.msra.gmra.mxu0 %vm1905_vm2, %v5393_v39 }
 0x9c6   :  { %10728 = vmatprep.subr.mxu1 %v10990_v0  ;;  %10743 = vmatprep.subr.mxu0 %v10990_v0 }
 0x9c7   :  { %10730 = vmatprep.mubr.msk.f32.mxu1 %vm10992_vm1, %v10990_v0  ;;  %10745 = vmatprep.mubr.msk.f32.mxu0 %vm10992_vm1, %v10990_v0 }
 0x9c8   :  { %10729 = vmatpush3.msra.mxu1 %v5473_v40  ;;  %10744 = vmatpush3.msra.mxu0 %v8923_v41 }
 0x9c9   :  { %10733 = vmatprep.subr.mxu1 %v10990_v0  ;;  %10753 = vmatprep.subr.mxu0 %v10990_v0 }
 0xa85   :  { %v5388_v44 = vpop.f32.mrf.mxu1  ;;  %v12786_v45 = vpop.f32.mrf.mxu0 }
 0xa86   :  { %v5389_v46 = vadd.f32 %v5388_v44, %v5317_v42  ;;  %v5470_v17 = vadd.f32 %v12786_v45, %v5398_v15 }
 0xa87   :  { %v10706_v47 = vpop.f32.mrf.mxu1  ;;  %v10727_v51 = vpop.f32.mrf.mxu0 }
 0xa88   :  { %v5392_v52 = vmax.f32 %v5389_v46, 0.0 }
 0xa8a   :  { %10731 = vmatmul.mubr.msk.f32.vlgmr.msra.gmra.mxu1 %vm5474_vm6, %v5392_v52  ;;  %10746 = vmatmul.mubr.msk.f32.vlgmr.msra.gmra.mxu0 %vm5474_vm6, %v5392_v52 }
 0xa8b   :  { %10734 = vmatpush3.msra.mxu1 %v8919_v54  ;;  %10735 = vmatprep.mubr.msk.f32.mxu1 %vm10992_vm1, %v10990_v0  ;;  %v6857_v54 = vld [vmem:[%s12892_s1 + $0x8] sm:$0xff] }
 0xa8c   :  { %10754 = vmatpush3.msra.mxu0 %v8927_v57  ;;  %10755 = vmatprep.mubr.msk.f32.mxu0 %vm10992_vm1, %v10990_v0  ;;  %v6954_v57 = vld [vmem:[%s12897_s6 + $0x8] sm:$0xff] }
 0xa8d   :  { %10738 = vmatprep.subr.mxu1 %v10990_v0  ;;  %10763 = vmatprep.subr.mxu0 %v10990_v0 }
 0xa8e   :  { %10736 = vmatmul.mubr.msk.f32.vlgmr.msra.gmra.mxu1 %vm5474_vm6, %v5392_v52  ;;  %10756 = vmatmul.mubr.msk.f32.vlgmr.msra.gmra.mxu0 %vm5474_vm6, %v5392_v52 }
 0xa8f   :  { %10739 = vmatpush3.msra.mxu1 %v8921_v58  ;;  %10740 = vmatprep.mubr.msk.f32.mxu1 %vm10992_vm1, %v10990_v0  ;;  %v8960_v58 = vld [vmem:[%s12910_s10 + $0x4] sm:$0xf] }
 0xa90   :  { %10764 = vmatpush3.msra.mxu0 %v8931_v53  ;;  %10765 = vmatprep.mubr.msk.f32.mxu0 %vm10992_vm1, %v10990_v0  ;;  %v7048_v53 = vld [vmem:[%s12910_s10] sm:$0xf] }
 0xa91   :  { %10748 = vmatprep.subr.mxu1 %v10990_v0  ;;  %10773 = vmatprep.subr.mxu0 %v10990_v0 }
 0xa92   :  { %10741 = vmatmul.mubr.msk.f32.vlgmr.msra.gmra.mxu1 %vm5474_vm6, %v5392_v52  ;;  %10766 = vmatmul.mubr.msk.f32.vlgmr.msra.gmra.mxu0 %vm5474_vm6, %v5392_v52 }
 0xa93   :  { %10749 = vmatpush3.msra.mxu1 %v8925_v56  ;;  %10750 = vmatprep.mubr.msk.f32.mxu1 %vm10992_vm1, %v10990_v0  ;;  %v8968_v56 = vld [vmem:[%s12910_s10 + $0xc] sm:$0xf] }
 0xa94   :  { %10758 = vmatprep.subr.mxu1 %v10990_v0  ;;  %10791 = vmatprep.mubr.msk.f32.mxu0 %vm10992_vm1, %v10990_v0 }
 0xa96   :  { %10751 = vmatmul.mubr.msk.f32.vlgmr.msra.gmra.mxu1 %vm5474_vm6, %v5392_v52 }
 0xa97   :  { %10759 = vmatpush3.msra.mxu1 %v8929_v62  ;;  %10760 = vmatprep.mubr.msk.f32.mxu1 %vm10992_vm1, %v10990_v0  ;;  %v8964_v62 = vld [vmem:[%s12910_s10 + $0x8] sm:$0xf] }
 0xa98   :  { %10768 = vmatprep.subr.mxu1 %v10990_v0 }
 0xa9a   :  { %10761 = vmatmul.mubr.msk.f32.vlgmr.msra.gmra.mxu1 %vm5474_vm6, %v5392_v52 }
 0xa9b   :  { %10769 = vmatpush3.msra.mxu1 %v8933_v1  ;;  %10770 = vmatprep.mubr.msk.f32.mxu1 %vm10992_vm1, %v10990_v0 }
 0xa9c   :  { %10794 = vmatprep.subr.mxu1 %v10990_v0 }
 0xa9e   :  { %10771 = vmatmul.mubr.msk.f32.vlgmr.msra.gmra.mxu1 %vm5474_vm6, %v5392_v52 }
 0xa9f   :  { %10796 = vmatprep.mubr.msk.f32.mxu1 %vm10992_vm1, %v10990_v0  ;;  %10795 = vmatpush3.msra.mxu1 %v6206_v12 }
 0xaa0   :  { %10799 = vmatprep.subr.mxu1 %v10990_v0 }
 0xb4a   :  { %v5544_v55 = vpop.f32.mrf.mxu1  ;;  %v5760_v2 = vpop.f32.mrf.mxu0 }
 0xb4c   :  { %v10732_v23 = vpop.f32.mrf.mxu1  ;;  %v10747_v48 = vpop.f32.mrf.mxu0 }
 0xb4e   :  { %v5616_v4 = vpop.f32.mrf.mxu1  ;;  %v5904_v27 = vpop.f32.mrf.mxu0 }
 0xb50   :  { %v10737_v43 = vpop.f32.mrf.mxu1  ;;  %v10757_v59 = vpop.f32.mrf.mxu0 }
 0xb51   :  { %v8976_v59 = vld [vmem:[%s12910_s10 + $0x14] sm:$0xf] }
 0xb52   :  { %v5688_v5 = vpop.f32.mrf.mxu1  ;;  %v6048_v6 = vpop.f32.mrf.mxu0 }
 0xb54   :  { %v10742_v7 = vpop.f32.mrf.mxu1  ;;  %v10767_v8 = vpop.f32.mrf.mxu0 }
 0xb55   :  { %v8980_v7 = vld [vmem:[%s12910_s10 + $0x18] sm:$0xf]  ;;  %v8988_v8 = vld [vmem:[%s12910_s10 + $0x20] sm:$0xf] }
 0xb56   :  { %v5832_v61 = vpop.f32.mrf.mxu1 }
 0xb58   :  { %v10752_v63 = vpop.f32.mrf.mxu1 }
 0xb5a   :  { %v5976_v9 = vpop.f32.mrf.mxu1 }
 0xb5c   :  { %v10762_v49 = vpop.f32.mrf.mxu1 }
 0xb5e   :  { %v6120_v50 = vpop.f32.mrf.mxu1 }
 0xb5f   :  { %10774 = vmatpush3.msra.mxu0 %v6120_v50 }
 0xb60   :  { %v10772_v10 = vpop.f32.mrf.mxu1  ;;  %10775 = vmatprep.subr.mxu0 %v10990_v0 }
 0xb61   :  { %10776 = vmatpush3.msra.mxu0 %v6048_v6  ;;  %v8984_v6 = vld [vmem:[%s12910_s10 + $0x1c] sm:$0xf] }
 0xb62   :  { %10777 = vmatprep.subr.mxu0 %v10990_v0 }
 0xb63   :  { %10778 = vmatpush3.msra.mxu0 %v5976_v9 }
 0xb64   :  { %10779 = vmatprep.subr.mxu0 %v10990_v0 }
 0xb65   :  { %10780 = vmatpush3.msra.mxu0 %v5904_v27 }
 0xb66   :  { %10781 = vmatprep.subr.mxu0 %v10990_v0 }
 0xb67   :  { %10782 = vmatpush3.msra.mxu0 %v5832_v61  ;;  %v7775_v61 = vld [vmem:[%s12961_s14 + $0x8] sm:$0xff] }
 0xb68   :  { %10783 = vmatprep.subr.mxu0 %v10990_v0 }
 0xb69   :  { %10784 = vmatpush3.msra.mxu0 %v5760_v2  ;;  %v6863_v2 = vpop.permute.xlu1 %6862 }
 0xb6a   :  { %10785 = vmatprep.subr.mxu0 %v10990_v0 }
 0xb6b   :  { %10786 = vmatpush3.msra.mxu0 %v5688_v5  ;;  %v8972_v5 = vld [vmem:[%s12910_s10 + $0x10] sm:$0xf] }
 0xb6c   :  { %10787 = vmatprep.subr.mxu0 %v10990_v0 }
 0xb6d   :  { %10788 = vmatpush3.msra.mxu0 %v5616_v4 }
 0xb6e   :  { %10789 = vmatprep.subr.mxu0 %v10990_v0 }
 0xb6f   :  { %10790 = vmatpush3.msra.mxu0 %v5544_v55  ;;  %v6868_v55 = vpop.permute.xlu0 %6867 }
 0xb70   :  { %10792 = vmatmul.mubr.msk.f32.vlgmr.msra.gmra.mxu0 %vm1905_vm2, %v6124_v11  ;;  %10819 = vmatprep.subr.mxu0 %v10990_v0 }
 0xb71   :  { %10821 = vmatprep.mubr.msk.f32.mxu0 %vm10992_vm1, %v10990_v0  ;;  %10820 = vmatpush3.msra.mxu0 %v8945_v13 }
 0xb72   :  { %10829 = vmatprep.subr.mxu0 %v10990_v0 }
 0xc30   :  { %v6200_v16 = vpop.f32.mrf.mxu0 }
 0xc31   :  { %v6201_v18 = vadd.f32 %v6200_v16, %v6129_v14 }
 0xc32   :  { %v10793_v19 = vpop.f32.mrf.mxu0 }
 0xc33   :  { %v6204_v20 = vadd.f32 %v6201_v18, %v5470_v17 }
 0xc35   :  { %v6205_v21 = vmax.f32 %v6204_v20, 0.0 }
 0xc37   :  { %10797 = vmatmul.mubr.msk.f32.vlgmr.msra.gmra.mxu1 %vm5474_vm6, %v6205_v21  ;;  %10822 = vmatmul.mubr.msk.f32.vlgmr.msra.gmra.mxu0 %vm5474_vm6, %v6205_v21 }
 0xc38   :  { %10800 = vmatpush3.msra.mxu1 %v8937_v22  ;;  %10801 = vmatprep.mubr.msk.f32.mxu1 %vm10992_vm1, %v10990_v0 }
 0xc39   :  { %10830 = vmatpush3.msra.mxu0 %v8949_v24  ;;  %10831 = vmatprep.mubr.msk.f32.mxu0 %vm10992_vm1, %v10990_v0 }
 0xc3a   :  { %10804 = vmatprep.subr.mxu1 %v10990_v0 }
 0xc3b   :  { %10802 = vmatmul.mubr.msk.f32.vlgmr.msra.gmra.mxu1 %vm5474_vm6, %v6205_v21  ;;  %10832 = vmatmul.mubr.msk.f32.vlgmr.msra.gmra.mxu0 %vm5474_vm6, %v6205_v21 }
 0xc3c   :  { %10805 = vmatpush3.msra.mxu1 %v8939_v60  ;;  %10806 = vmatprep.mubr.msk.f32.mxu1 %vm10992_vm1, %v10990_v0 }
 0xc3d   :  { %10809 = vmatprep.subr.mxu1 %v10990_v0  ;;  %10857 = vmatprep.mubr.msk.f32.mxu0 %vm1905_vm2, %v6856_v29  ;;  %v7788_v29 = vpop.permute.xlu0 %7787 }
 0xc3f   :  { %10807 = vmatmul.mubr.msk.f32.vlgmr.msra.gmra.mxu1 %vm5474_vm6, %v6205_v21 }
 0xc40   :  { %10810 = vmatpush3.msra.mxu1 %v8941_v25  ;;  %10811 = vmatprep.mubr.msk.f32.mxu1 %vm10992_vm1, %v10990_v0  ;;  %v7774_v25 = vld [vmem:[%s12961_s14] sm:$0xff] }
 0xc41   :  { %10814 = vmatprep.subr.mxu1 %v10990_v0 }
 0xc43   :  { %10812 = vmatmul.mubr.msk.f32.vlgmr.msra.gmra.mxu1 %vm5474_vm6, %v6205_v21 }
 0xc44   :  { %10815 = vmatpush3.msra.mxu1 %v8943_v26  ;;  %10816 = vmatprep.mubr.msk.f32.mxu1 %vm10992_vm1, %v10990_v0 }
 0xc45   :  { %10824 = vmatprep.subr.mxu1 %v10990_v0 }
 0xc47   :  { %10817 = vmatmul.mubr.msk.f32.vlgmr.msra.gmra.mxu1 %vm5474_vm6, %v6205_v21 }
 0xc48   :  { %10825 = vmatpush3.msra.mxu1 %v8947_v28  ;;  %10826 = vmatprep.mubr.msk.f32.mxu1 %vm10992_vm1, %v10990_v0  ;;  %v7777_v28 = vld [vmem:[%s12961_s14 + $0x18] sm:$0xff] }
 0xc49   :  { %10834 = vmatprep.subr.mxu1 %v10990_v0 }
 0xc4b   :  { %10827 = vmatmul.mubr.msk.f32.vlgmr.msra.gmra.mxu1 %vm5474_vm6, %v6205_v21 }
 0xc4c   :  { %10835 = vmatpush3.msra.mxu1 %v8951_v3  ;;  %10836 = vmatprep.mubr.msk.f32.mxu1 %vm10992_vm1, %v10990_v0  ;;  %v7776_v3 = vld [vmem:[%s12961_s14 + $0x10] sm:$0xff] }
 0xc4f   :  { %10837 = vmatmul.mubr.msk.f32.vlgmr.msra.gmra.mxu1 %vm5474_vm6, %v6205_v21 }
 0xc50   :  { %10878 = vmatprep.mubr.msk.f32.mxu1 %vm1905_vm2, %v6953_v30  ;;  %v6965_v30 = vpop.permute.xlu1 %6964 }
 0xcf7   :  { %v6276_v31 = vpop.f32.mrf.mxu1  ;;  %v6636_v32 = vpop.f32.mrf.mxu0 }
 0xcf9   :  { %v10798_v33 = vpop.f32.mrf.mxu1  ;;  %v10823_v34 = vpop.f32.mrf.mxu0 }
 0xcfb   :  { %v6348_v35 = vpop.f32.mrf.mxu1  ;;  %v6780_v36 = vpop.f32.mrf.mxu0 }
 0xcfd   :  { %v10803_v37 = vpop.f32.mrf.mxu1  ;;  %v10833_v38 = vpop.f32.mrf.mxu0 }
 0xcff   :  { %v6420_v39 = vpop.f32.mrf.mxu1 }
 0xd01   :  { %v10808_v40 = vpop.f32.mrf.mxu1 }
 0xd03   :  { %v6492_v41 = vpop.f32.mrf.mxu1 }
 0xd05   :  { %v10813_v42 = vpop.f32.mrf.mxu1 }
 0xd07   :  { %v6564_v44 = vpop.f32.mrf.mxu1 }
 0xd09   :  { %v10818_v45 = vpop.f32.mrf.mxu1 }
 0xd0b   :  { %v6708_v46 = vpop.f32.mrf.mxu1 }
 0xd0d   :  { %v10828_v47 = vpop.f32.mrf.mxu1 }
 0xd0f   :  { %v6852_v51 = vpop.f32.mrf.mxu1 }
 0xd10   :  { %10839 = vmatprep.subr.mxu0 %v6852_v51  ;;  %10860 = vmatprep.subr.mxu1 %v6852_v51 }
 0xd11   :  { %v10838_v52 = vpop.f32.mrf.mxu1  ;;  %10840 = vmatpush3.msra.mxu0 %v6852_v51  ;;  %10861 = vmatpush3.msra.mxu1 %v6852_v51 }
 0xd12   :  { %10841 = vmatprep.subr.mxu0 %v6780_v36  ;;  %10862 = vmatprep.subr.mxu1 %v6780_v36 }
 0xd13   :  { %10842 = vmatpush3.msra.mxu0 %v6780_v36  ;;  %10863 = vmatpush3.msra.mxu1 %v6780_v36 }
 0xd14   :  { %10843 = vmatprep.subr.mxu0 %v6708_v46  ;;  %10864 = vmatprep.subr.mxu1 %v6708_v46 }
 0xd15   :  { %10844 = vmatpush3.msra.mxu0 %v6708_v46  ;;  %10865 = vmatpush3.msra.mxu1 %v6708_v46 }
 0xd16   :  { %10845 = vmatprep.subr.mxu0 %v6636_v32  ;;  %10866 = vmatprep.subr.mxu1 %v6636_v32 }
 0xd17   :  { %10846 = vmatpush3.msra.mxu0 %v6636_v32  ;;  %10867 = vmatpush3.msra.mxu1 %v6636_v32  ;;  %v7783_v32 = vpop.permute.xlu0 %7782 }
 0xd18   :  { %10847 = vmatprep.subr.mxu0 %v6564_v44  ;;  %10868 = vmatprep.subr.mxu1 %v6564_v44 }
 0xd19   :  { %10848 = vmatpush3.msra.mxu0 %v6564_v44  ;;  %10869 = vmatpush3.msra.mxu1 %v6564_v44 }
 0xd1a   :  { %10849 = vmatprep.subr.mxu0 %v6492_v41  ;;  %10870 = vmatprep.subr.mxu1 %v6492_v41 }
 0xd1b   :  { %10850 = vmatpush3.msra.mxu0 %v6492_v41  ;;  %10871 = vmatpush3.msra.mxu1 %v6492_v41 }
 0xd1c   :  { %10851 = vmatprep.subr.mxu0 %v6420_v39  ;;  %10872 = vmatprep.subr.mxu1 %v6420_v39 }
 0xd1d   :  { %10852 = vmatpush3.msra.mxu0 %v6420_v39  ;;  %10873 = vmatpush3.msra.mxu1 %v6420_v39 }
 0xd1e   :  { %10853 = vmatprep.subr.mxu0 %v6348_v35  ;;  %10874 = vmatprep.subr.mxu1 %v6348_v35 }
 0xd1f   :  { %10854 = vmatpush3.msra.mxu0 %v6348_v35  ;;  %10875 = vmatpush3.msra.mxu1 %v6348_v35  ;;  %v6960_v35 = vpop.permute.xlu1 %6959 }
 0xd20   :  { %10855 = vmatprep.subr.mxu0 %v6276_v31  ;;  %10876 = vmatprep.subr.mxu1 %v6276_v31 }
 0xd21   :  { %10856 = vmatpush3.msra.mxu0 %v6276_v31  ;;  %10877 = vmatpush3.msra.mxu1 %v6276_v31  ;;  %v7876_v31 = vlaneseq }
 0xd22   :  { %10858 = vmatmul.mubr.msk.f32.vlgmr.msra.gmra.mxu0 %vm1905_vm2, %v6857_v54  ;;  %10879 = vmatmul.mubr.msk.f32.vlgmr.msra.gmra.mxu1 %vm1905_vm2, %v6954_v57 }
 0xd23   :  { %10886 = vmatprep.subr.msk.mxu1 %vm3828_vm4, %v8960_v58  ;;  %10881 = vmatprep.subr.msk.mxu0 %vm3828_vm4, %v7048_v53  ;;  %v7877_v38 = vand.u32 127, %v7876_v31 }
 0xd24   :  { %10887 = vmatpush3.msk.msra.mxu1 %vm3828_vm4, %v8960_v58  ;;  %10882 = vmatpush3.msk.msra.mxu0 %vm3828_vm4, %v7048_v53 }
 0xd25   :  { %10896 = vmatprep.subr.msk.mxu1 %vm3828_vm4, %v8968_v56  ;;  %10891 = vmatprep.subr.msk.mxu0 %vm3828_vm4, %v8964_v62  ;;  %vm7896_vm9 = vcmp.ge.s32.totalorder %v7877_v38, 2  ;;  %vm7897_vm10 = vcmp.lt.s32.totalorder %v7877_v38, 4  ;;  %vm7879_vm12 = vcmp.lt.s32.totalorder %v7877_v38, 2  ;;  %vm7907_vm13 = vcmp.eq.s32.totalorder %v7877_v38, 1 }
 0xd26   :  { %vm7898_vm11 = vmand %vm7896_vm9, %vm7897_vm10  ;;  %vm7889_vm14 = vcmp.eq.s32.totalorder %v7877_v38, 0 }
 0xde2   :  { %v10859_v1 = vpop.f32.mrf.mxu0  ;;  %v12965_v63 = vpop.f32.mrf.mxu1 }
 0xde3   :  { %v6948_v23 = vadd.f32 %v10859_v1, %v6868_v55  ;;  %v7045_v40 = vadd.f32 %v12965_v63, %v6965_v30  ;;  %v7916_v1 = vld [vmem:[%s8155_s17] sm:$0xff] }
 0xde4   :  { %v6942_v48 = vpop.f32.mrf.mxu0  ;;  %v12967_v9 = vpop.f32.mrf.mxu1  ;;  %v7914_v55 = vld [vmem:[%s8154_s21] sm:$0xff] }
 0xde5   :  { %v6943_v4 = vadd.f32 %v6942_v48, %v6863_v2  ;;  %v6952_v43 = vmax.f32 %v6948_v23, 0.0  ;;  %v7040_v37 = vadd.f32 %v12967_v9, %v6960_v35  ;;  %v8013_v2 = vld [vmem:[%s8157_s25] sm:$0xff]  ;;  %v7917_v23 = vld [vmem:[%s8155_s17 + $0x8] sm:$0xff] }
 0xde6   :  { %v8014_v48 = vld [vmem:[%s8157_s25 + $0x8] sm:$0x3] }
 0xde7   :  { %v6951_v27 = vmax.f32 %v6943_v4, 0.0  ;;  %v8995_v4 = vsel %vm7907_vm13, 1.0, %v10990_v0 }
 0xde9   :  { %10883 = vmatprep.mubr.msk.f32.mxu0 %vm7049_vm7, %v6951_v27  ;;  %10888 = vmatprep.mubr.msk.f32.mxu1 %vm7049_vm7, %v6951_v27 }
 0xdea   :  { %10884 = vmatmul.mubr.msk.f32.vlgmr.msra.gmra.mxu0 %vm7049_vm7, %v6952_v43  ;;  %10889 = vmatmul.mubr.msk.f32.vlgmr.msra.gmra.mxu1 %vm7049_vm7, %v6952_v43 }
 0xdeb   :  { %10893 = vmatprep.mubr.msk.f32.mxu0 %vm7049_vm7, %v6951_v27  ;;  %10897 = vmatpush3.msk.msra.mxu1 %vm3828_vm4, %v8968_v56 }
 0xdec   :  { %10898 = vmatprep.mubr.msk.f32.mxu1 %vm7049_vm7, %v6951_v27  ;;  %10892 = vmatpush3.msk.msra.mxu0 %vm3828_vm4, %v8964_v62 }
 0xded   :  { %10906 = vmatprep.subr.msk.mxu1 %vm3828_vm4, %v8976_v59  ;;  %10901 = vmatprep.subr.msk.mxu0 %vm3828_vm4, %v8972_v5 }
 0xdee   :  { %10894 = vmatmul.mubr.msk.f32.vlgmr.msra.gmra.mxu0 %vm7049_vm7, %v6952_v43  ;;  %10899 = vmatmul.mubr.msk.f32.vlgmr.msra.gmra.mxu1 %vm7049_vm7, %v6952_v43 }
 0xdef   :  { %10903 = vmatprep.mubr.msk.f32.mxu0 %vm7049_vm7, %v6951_v27  ;;  %10907 = vmatpush3.msk.msra.mxu1 %vm3828_vm4, %v8976_v59 }
 0xdf0   :  { %10908 = vmatprep.mubr.msk.f32.mxu1 %vm7049_vm7, %v6951_v27  ;;  %10902 = vmatpush3.msk.msra.mxu0 %vm3828_vm4, %v8972_v5 }
 0xdf1   :  { %10916 = vmatprep.subr.msk.mxu1 %vm3828_vm4, %v8984_v6  ;;  %10911 = vmatprep.subr.msk.mxu0 %vm3828_vm4, %v8980_v7 }
 0xdf2   :  { %10904 = vmatmul.mubr.msk.f32.vlgmr.msra.gmra.mxu0 %vm7049_vm7, %v6952_v43  ;;  %10909 = vmatmul.mubr.msk.f32.vlgmr.msra.gmra.mxu1 %vm7049_vm7, %v6952_v43 }
 0xdf3   :  { %10913 = vmatprep.mubr.msk.f32.mxu0 %vm7049_vm7, %v6951_v27  ;;  %10917 = vmatpush3.msk.msra.mxu1 %vm3828_vm4, %v8984_v6 }
 0xdf4   :  { %10918 = vmatprep.mubr.msk.f32.mxu1 %vm7049_vm7, %v6951_v27  ;;  %10912 = vmatpush3.msk.msra.mxu0 %vm3828_vm4, %v8980_v7 }
 0xdf5   :  { %10921 = vmatprep.subr.msk.mxu0 %vm3828_vm4, %v8988_v8  ;;  %7797 = vmatprep.subr.mxu1 %v10990_v0 }
 0xdf6   :  { %10914 = vmatmul.mubr.msk.f32.vlgmr.msra.gmra.mxu0 %vm7049_vm7, %v6952_v43  ;;  %10919 = vmatmul.mubr.msk.f32.vlgmr.msra.gmra.mxu1 %vm7049_vm7, %v6952_v43 }
 0xdf7   :  { %10923 = vmatprep.mubr.msk.f32.mxu0 %vm7049_vm7, %v6951_v27  ;;  %10922 = vmatpush3.msk.msra.mxu0 %vm3828_vm4, %v8988_v8  ;;  %v8994_v27 = vsel %vm7889_vm14, 1.0, %v10990_v0 }
 0xdf8   :  { %8992 = vmatprep.mubr.msk.f32.mxu1 %vm7790_vm8, %v7775_v61 }
 0xdfa   :  { %10924 = vmatmul.mubr.msk.f32.vlgmr.msra.gmra.mxu0 %vm7049_vm7, %v6952_v43 }
 0xdfb   :  { %10930 = vmatprep.mubr.msk.f32.mxu0 %vm7790_vm8, %v7914_v55 }
 0xeaa   :  { %v10885_v49 = vpop.f32.mrf.mxu0  ;;  %v10890_v50 = vpop.f32.mrf.mxu1 }
 0xeac   :  { %v7125_v10 = vpop.f32.mrf.mxu0  ;;  %v7205_v11 = vpop.f32.mrf.mxu1 }
 0xeae   :  { %v10895_v12 = vpop.f32.mrf.mxu0  ;;  %v10900_v13 = vpop.f32.mrf.mxu1 }
 0xeb0   :  { %v7285_v14 = vpop.f32.mrf.mxu0  ;;  %v7365_v15 = vpop.f32.mrf.mxu1 }
 0xeb2   :  { %v10905_v16 = vpop.f32.mrf.mxu0  ;;  %v10910_v17 = vpop.f32.mrf.mxu1 }
 0xeb4   :  { %v7445_v18 = vpop.f32.mrf.mxu0  ;;  %v7525_v19 = vpop.f32.mrf.mxu1 }
 0xeb6   :  { %v10920_v20 = vpop.f32.mrf.mxu1  ;;  %v10915_v21 = vpop.f32.mrf.mxu0 }
 0xeb7   :  { %7798 = vmatpush1.msra.mxu1 %v10920_v20 }
 0xeb8   :  { %v7685_v22 = vpop.f32.mrf.mxu1  ;;  %7799 = vmatprep.subr.mxu1 %v10990_v0  ;;  %v7605_v24 = vpop.f32.mrf.mxu0 }
 0xeb9   :  { %7800 = vmatpush1.msra.mxu1 %v7685_v22 }
 0xeba   :  { %7801 = vmatprep.subr.mxu1 %v10990_v0  ;;  %v10925_v60 = vpop.f32.mrf.mxu0 }
 0xebb   :  { %7802 = vmatpush1.msra.mxu1 %v10915_v21 }
 0xebc   :  { %7803 = vmatprep.subr.mxu1 %v10990_v0  ;;  %v7765_v26 = vpop.f32.mrf.mxu0 }
 0xebd   :  { %7804 = vmatpush1.msra.mxu1 %v7605_v24 }
 0xebe   :  { %7805 = vmatprep.subr.mxu1 %v10990_v0 }
 0xebf   :  { %7806 = vmatpush1.msra.mxu1 %v10910_v17 }
 0xec0   :  { %7807 = vmatprep.subr.mxu1 %v10990_v0 }
 0xec1   :  { %7808 = vmatpush1.msra.mxu1 %v7525_v19 }
 0xec2   :  { %7809 = vmatprep.subr.mxu1 %v10990_v0 }
 0xec3   :  { %7810 = vmatpush1.msra.mxu1 %v10905_v16 }
 0xec4   :  { %7811 = vmatprep.subr.mxu1 %v10990_v0 }
 0xec5   :  { %7812 = vmatpush1.msra.mxu1 %v7445_v18  ;;  %v8012_v18 = vld [vmem:[%s8156_s29 + $0x8] sm:$0x3] }
 0xec6   :  { %7813 = vmatprep.subr.mxu1 %v10990_v0 }
 0xec7   :  { %7814 = vmatpush1.msra.mxu1 %v10900_v13 }
 0xec8   :  { %7815 = vmatprep.subr.mxu1 %v10990_v0 }
 0xec9   :  { %7816 = vmatpush1.msra.mxu1 %v7365_v15 }
 0xeca   :  { %7817 = vmatprep.subr.mxu1 %v10990_v0 }
 0xecb   :  { %7818 = vmatpush1.msra.mxu1 %v10895_v12 }
 0xecc   :  { %7819 = vmatprep.subr.mxu1 %v10990_v0 }
 0xecd   :  { %7820 = vmatpush1.msra.mxu1 %v7285_v14 }
 0xece   :  { %7821 = vmatprep.subr.mxu1 %v10990_v0 }
 0xecf   :  { %7822 = vmatpush1.msra.mxu1 %v10890_v50  ;;  %v7915_v50 = vld [vmem:[%s8154_s21 + $0x8] sm:$0xff] }
 0xed0   :  { %7823 = vmatprep.subr.mxu1 %v10990_v0 }
 0xed1   :  { %7824 = vmatpush1.msra.mxu1 %v7205_v11 }
 0xed2   :  { %7825 = vmatprep.subr.mxu1 %v10990_v0 }
 0xed3   :  { %7826 = vmatpush1.msra.mxu1 %v10885_v49 }
 0xed4   :  { %7827 = vmatprep.subr.mxu1 %v10990_v0 }
 0xed5   :  { %7828 = vmatpush1.msra.mxu1 %v7125_v10 }
 0xed6   :  { %7857 = vmatprep.subr.mxu1 %v10990_v0 }
 0xed7   :  { %7858 = vmatpush2.msra.mxu1 %v10925_v60 }
 0xed8   :  { %7859 = vmatprep.subr.mxu1 %v10990_v0  ;;  %v8011_v0 = vld [vmem:[%s8156_s29] sm:$0xff] }
 0xed9   :  { %7860 = vmatpush2.msra.mxu1 %v7765_v26 }
 0xeda   :  { %7862 = vmatmul.mubr.f32.vlgmr.msra.gmra.mxu1 %v7774_v25 }
 0xedb   :  { %8993 = vmatprep.mubr.msk.f32.mxu1 %vm7790_vm8, %v7777_v28 }
 0xede   :  { %7867 = vmatmul.mubr.f32.gmra.mxu1 %v7776_v3 }
 0xf9a   :  { %v7863_v33 = vpop.f32.mrf.mxu1 }
 0xf9b   :  { %v7864_v34 = vadd.f32 %v7863_v33, %v7783_v32 }
 0xf9c   :  { %v7865_v36 = vpop.f32.mrf.mxu1 }
 0xf9d   :  { %v7872_v41 = vadd.f32 %v7864_v34, %v7040_v37 }
 0xf9e   :  { %v7868_v39 = vpop.f32.mrf.mxu1 }
 0xf9f   :  { %v7869_v42 = vadd.f32 %v7868_v39, %v7788_v29  ;;  %v7874_v46 = vmax.f32 %v7872_v41, 0.0 }
 0xfa0   :  { %v7870_v44 = vpop.f32.mrf.mxu1 }
 0xfa1   :  { %v7873_v45 = vadd.f32 %v7869_v42, %v7045_v40  ;;  %v7899_v58 = vsel %vm7898_vm11, %v7874_v46, -inf  ;;  %v7881_v53 = vsel %vm7879_vm12, %v7874_v46, -inf }
 0xfa2   :  { %v7901_v56 = vsel %vm7049_vm7, %v7899_v58, -inf  ;;  %v7883_v62 = vsel %vm7049_vm7, %v7881_v53, -inf }
 0xfa3   :  { %v7875_v47 = vmax.f32 %v7873_v45, 0.0 }
 0xfa5   :  { %v7900_v51 = vsel %vm7898_vm11, %v7875_v47, -inf  ;;  %v7882_v52 = vsel %vm7879_vm12, %v7875_v47, -inf }
 0xfa6   :  { %v7904_v54 = vsel %vm7049_vm7, %v7900_v51, -inf  ;;  %v7886_v57 = vsel %vm7049_vm7, %v7882_v52, -inf }
 0xfa7   :  { %7905 = vmax.xlane.f32.xlu0 %v7904_v54  ;;  %7887 = vmax.xlane.f32.xlu1 %v7886_v57 }
 0xfab   :  { %7902 = vmax.xlane.f32.xlu1 %v7901_v56  ;;  %7884 = vmax.xlane.f32.xlu0 %v7883_v62 }
 0xfbc   :  { %7920 = vperm.xlu1 %10981, %v7916_v1  }
 0xfc0   :  { %8017 = vperm.xlu1 %10981, %v8013_v2  }
 0xfc1   :  { %7925 = vperm.xlu0 %10980, %v7917_v23  }
 0xfc5   :  { %8022 = vperm.xlu0 %10980, %v8014_v48  }
0x1030   :  { %v7906_v43 = vpop.xlane.xlu0 %7905  ;;  %v7888_v59 = vpop.xlane.xlu1 %7887 }
0x1031   :  { %v7911_v5 = vmul.f32 %v8995_v4, %v7906_v43  ;;  %v7893_v6 = vmul.f32 %v8994_v27, %v7888_v59 }
0x1033   :  { %v7913_v7 = vadd.f32 %v7911_v5, %v7893_v6 }
0x1034   :  { %v7903_v8 = vpop.xlane.xlu1 %7902  ;;  %v7885_v61 = vpop.xlane.xlu0 %7884 }
0x1035   :  { %v7910_v63 = vmul.f32 %v8995_v4, %v7903_v8  ;;  %v7892_v9 = vmul.f32 %v8994_v27, %v7885_v61  ;;  %10926 = vmatprep.subr.mxu0 %v7913_v7 }
0x1036   :  { %10927 = vmatpush3.msra.mxu0 %v7913_v7 }
0x1037   :  { %v7912_v49 = vadd.f32 %v7910_v63, %v7892_v9 }
0x1038   :  { %v7921_v13 = vpop.permute.xlu1 %7920 }
0x1039   :  { %10928 = vmatprep.subr.mxu0 %v7912_v49 }
0x103a   :  { %10929 = vmatpush3.msra.mxu0 %v7912_v49 }
0x103b   :  { %10931 = vmatmul.mubr.msk.f32.vlgmr.msra.gmra.mxu0 %vm7790_vm8, %v7915_v50 }
0x103c   :  { %10937 = vmatprep.mubr.msk.f32.mxu0 %vm7790_vm8, %v8011_v0  ;;  %v7926_v10 = vpop.permute.xlu0 %7925  ;;  %v8018_v22 = vpop.permute.xlu1 %8017 }
0x1040   :  { %v8023_v19 = vpop.permute.xlu0 %8022 }
0x10fb   :  { %v10932_v11 = vpop.f32.mrf.mxu0 }
0x10fc   :  { %v8006_v12 = vadd.f32 %v10932_v11, %v7926_v10 }
0x10fd   :  { %v8000_v14 = vpop.f32.mrf.mxu0 }
0x10fe   :  { %v8010_v15 = vmax.f32 %v8006_v12, 0.0  ;;  %v8001_v16 = vadd.f32 %v8000_v14, %v7921_v13 }
0x1100   :  { %v8009_v17 = vmax.f32 %v8001_v16, 0.0  ;;  %10933 = vmatprep.subr.mxu0 %v8010_v15 }
0x1101   :  { %10934 = vmatpush3.msra.mxu0 %v8010_v15 }
0x1102   :  { %10935 = vmatprep.subr.mxu0 %v8009_v17 }
0x1103   :  { %10936 = vmatpush3.msra.mxu0 %v8009_v17 }
0x1104   :  { %10938 = vmatmul.mubr.msk.f32.vlgmr.msra.gmra.mxu0 %vm7790_vm8, %v8012_v18 }
0x11c4   :  { %v10939_v20 = vpop.f32.mrf.mxu0 }
0x11c5   :  { %v8103_v21 = vadd.f32 %v10939_v20, %v8023_v19 }
0x11c6   :  { %v8097_v24 = vpop.f32.mrf.mxu0 }
0x11c7   :  { %v8107_v60 = vmul.f32 0.5, %v8103_v21  ;;  %v8098_v25 = vadd.f32 %v8097_v24, %v8018_v22 }
0x11c9   :  { %10982 = vtanh.f32 %v8107_v60  ;;  %v8106_v26 = vmul.f32 0.5, %v8098_v25 }
0x11cb   :  { %10984 = vtanh.f32 %v8106_v26 }
0x11d6   :  { %v10983_v28 = vpop.eup %10982 }
0x11d7   :  { %v8111_v3 = vadd.f32 1.0, %v10983_v28 }
0x11d8   :  { %v10985_v29 = vpop.eup %10984 }
0x11d9   :  { %v8113_v30 = vmul.f32 0.5, %v8111_v3  ;;  %v8110_v31 = vadd.f32 1.0, %v10985_v29 }
0x11db   :  { %8117 = vst.msk [vmem:[%s8158_s4 + $0x8] sm:$0x3] %vm8116_vm15, %v8113_v30  ;;  %v8112_v32 = vmul.f32 0.5, %v8110_v31 }
0x11dd   :  { %8115 = vst.msk [vmem:[%s8158_s4] sm:$0xff] %vm8114_vm0, %v8112_v32 }

</bundles_post_ra>
